<compile_context>
chip_gen: v7x
topology: tpu7x:2x2x1
jax: 0.10.0
libtpu: 0.0.40
codegen_flags: <defaults>
</compile_context>

<pallas_src>
import numpy as np
import jax
import jax.numpy as jnp
from jax.experimental import pallas as pl
from jax.experimental.pallas import tpu as pltpu

# ---------------- model dimensions ----------------
W_IN = 198                      # input width so that 18 * 45 = 810 matches fc1
W_PAD = 256                     # zero-padded input width (lane aligned)
C1, C2 = 18, 18
K = 7
W1 = W_IN - K + 1               # 192 conv1 output positions
W1P = W1 // 2                   # 96  after pool1
W2 = W1P - K + 1                # 90  conv2 output positions
W2P = W2 // 2                   # 45  after pool2
FLAT = C2 * W2P                 # 810
HID, HID_PAD = 100, 128
OUT, OUT_PAD = 5, 128

# even/odd "halves" (so maxpool becomes a lane-aligned slice max), 128-padded
HALF1 = ((W1P * C1 + 127) // 128) * 128      # 1728 -> 1792
N1 = 2 * HALF1                               # 3584 conv1 Toeplitz columns
HALF2 = ((W2P * C2 + 127) // 128) * 128      # 810 -> 896
N2 = 2 * HALF2                               # 1792 conv2 Toeplitz columns
K2 = HALF1                                   # conv2 contracting dim (pad rows zero)

B_DEFAULT = 2


def net_kernel(x_ref, t1_ref, bc1_ref, t2_ref, bc2_ref,
               fw1_ref, fb1_ref, fw2_ref, fb2_ref, o_ref):
    x = x_ref[...]                                                    # (TB, 256) f32

    # ---- conv1 + bias + ReLU as one Toeplitz matmul (f32 MXU) ----------------
    h = jnp.dot(x, t1_ref[...], preferred_element_type=jnp.float32)   # (TB, 3584)
    h = jnp.maximum(h + bc1_ref[...], 0.0)
    # maxpool (1,2): even/odd output positions live in the two aligned halves
    h1 = jnp.maximum(h[:, :HALF1], h[:, HALF1:])                      # (TB, 1792)

    # ---- conv2 + bias + ReLU as one Toeplitz matmul (bf16 MXU, f32 acc) ------
    g = jnp.dot(h1.astype(jnp.bfloat16), t2_ref[...],
                preferred_element_type=jnp.float32)                   # (TB, 1792)
    g = jnp.maximum(g + bc2_ref[...], 0.0)
    # maxpool (1,2); result is already flatten(1) in (w*18 + c) order + zero pad
    g1 = jnp.maximum(g[:, :HALF2], g[:, HALF2:])                      # (TB, 896)

    # ---- fc1 + ReLU + fc2 (lane-dense, HID/OUT padded to 128) ----------------
    z = jnp.dot(g1.astype(jnp.bfloat16), fw1_ref[...],
                preferred_element_type=jnp.float32)                   # (TB, 128)
    z = jnp.maximum(z + fb1_ref[...], 0.0)
    y = jnp.dot(z.astype(jnp.bfloat16), fw2_ref[...],
                preferred_element_type=jnp.float32)                   # (TB, 128)
    o_ref[...] = (y + fb2_ref[...]).astype(o_ref.dtype)               # unmasked store


def prepare_params(params):
    """One-time re-layout of the PyTorch parameters into kernel operands."""
    w1, b1, w2, b2, fw1, fb1, fw2, fb2 = params
    w1s = w1[:, 0, 0, :]                              # (18, 7)
    w2s = w2[:, :, 0, :]                              # (18, 18, 7)  (out, in, k)

    # conv1 Toeplitz (W_PAD, N1): T1[w + k, col(w, c)] = w1[c, k]
    k_i, c_i, w_i = np.meshgrid(np.arange(K), np.arange(C1), np.arange(W1),
                                indexing="ij")
    r1 = (w_i + k_i).ravel()
    col1 = ((w_i % 2) * HALF1 + (w_i // 2) * C1 + c_i).ravel()
    t1 = jnp.zeros((W_PAD, N1), jnp.float32).at[r1, col1].set(
        w1s[c_i, k_i].ravel())

    wb_i, cb_i = np.meshgrid(np.arange(W1), np.arange(C1), indexing="ij")
    colb1 = ((wb_i % 2) * HALF1 + (wb_i // 2) * C1 + cb_i).ravel()
    bc1 = jnp.zeros((1, N1), jnp.float32).at[0, colb1].set(
        jnp.broadcast_to(b1[None, :], (W1, C1)).ravel())

    # conv2 Toeplitz (K2, N2): T2[(p + k)*18 + c, col(p, co)] = w2[co, c, k]
    k_i, c_i, o_i, p_i = np.meshgrid(np.arange(K), np.arange(C1), np.arange(C2),
                                     np.arange(W2), indexing="ij")
    r2 = ((p_i + k_i) * C1 + c_i).ravel()
    col2 = ((p_i % 2) * HALF2 + (p_i // 2) * C2 + o_i).ravel()
    t2 = jnp.zeros((K2, N2), jnp.float32).at[r2, col2].set(
        w2s[o_i, c_i, k_i].ravel()).astype(jnp.bfloat16)

    pb_i, ob_i = np.meshgrid(np.arange(W2), np.arange(C2), indexing="ij")
    colb2 = ((pb_i % 2) * HALF2 + (pb_i // 2) * C2 + ob_i).ravel()
    bc2 = jnp.zeros((1, N2), jnp.float32).at[0, colb2].set(
        jnp.broadcast_to(b2[None, :], (W2, C2)).ravel())

    # fc1: kernel column j = wp*18 + co  <->  torch flatten index co*45 + wp
    wp_i, co_i = np.meshgrid(np.arange(W2P), np.arange(C2), indexing="ij")
    perm = (co_i * W2P + wp_i).ravel()                               # length 810
    fw1_k = jnp.zeros((HALF2, HID_PAD), jnp.float32).at[:FLAT, :HID].set(
        fw1[:, perm].T).astype(jnp.bfloat16)                         # (896, 128)
    fb1_k = jnp.zeros((1, HID_PAD), jnp.float32).at[0, :HID].set(fb1)

    fw2_k = jnp.zeros((HID_PAD, OUT_PAD), jnp.float32).at[:HID, :OUT].set(
        fw2.T).astype(jnp.bfloat16)                                  # (128, 128)
    fb2_k = jnp.zeros((1, OUT_PAD), jnp.float32).at[0, :OUT].set(fb2)

    return (t1, bc1, t2, bc2, fw1_k, fb1_k, fw2_k, fb2_k)


def _batch_tile(batch):
    """Generation-specific batch tile: 128 on v5*, 256 otherwise."""
    try:
        kind = jax.devices()[0].device_kind.lower()
    except Exception:
        kind = ""
    cap = 128 if "v5" in kind else 256
    rup8 = lambda n: max(8, ((n + 7) // 8) * 8)
    if batch <= cap:
        return rup8(batch)
    if batch <= 2 * cap:                 # 2 grid steps -> both v7x TensorCores busy
        return rup8((batch + 1) // 2)
    return cap


def net_forward(x_nchw, kparams):
    t1, bc1, t2, bc2, fw1_k, fb1_k, fw2_k, fb2_k = kparams
    batch = x_nchw.shape[0]
    tb = _batch_tile(batch)
    b_pad = ((batch + tb - 1) // tb) * tb

    x2d = x_nchw.reshape(batch, W_IN).astype(jnp.float32)
    x2d = jnp.pad(x2d, ((0, b_pad - batch), (0, W_PAD - W_IN)))

    grid = (b_pad // tb,)
    in_specs = [
        pl.BlockSpec((tb, W_PAD), lambda i: (i, 0)),          # x: batch tiled
        pl.BlockSpec((W_PAD, N1), lambda i: (0, 0)),          # weights: resident
        pl.BlockSpec((1, N1), lambda i: (0, 0)),
        pl.BlockSpec((K2, N2), lambda i: (0, 0)),
        pl.BlockSpec((1, N2), lambda i: (0, 0)),
        pl.BlockSpec((HALF2, HID_PAD), lambda i: (0, 0)),
        pl.BlockSpec((1, HID_PAD), lambda i: (0, 0)),
        pl.BlockSpec((HID_PAD, OUT_PAD), lambda i: (0, 0)),
        pl.BlockSpec((1, OUT_PAD), lambda i: (0, 0)),
    ]
    out_spec = pl.BlockSpec((tb, OUT_PAD), lambda i: (i, 0))

    y = pl.pallas_call(
        net_kernel,
        out_shape=jax.ShapeDtypeStruct((b_pad, OUT_PAD), jnp.bfloat16),
        grid=grid,
        in_specs=in_specs,
        out_specs=out_spec,
        compiler_params=pltpu.CompilerParams(
            dimension_semantics=("parallel",),
            vmem_limit_bytes=48 * 1024 * 1024),
    )(x2d, t1, bc1, t2, bc2, fw1_k, fb1_k, fw2_k, fb2_k)

    return y[:batch, :OUT].astype(jnp.float32)


def init_params(key):
    ks = jax.random.split(key, 8)
    w1 = 0.1 * jax.random.normal(ks[0], (C1, 1, 1, K), jnp.float32)
    b1 = 0.1 * jax.random.normal(ks[1], (C1,), jnp.float32)
    w2 = 0.05 * jax.random.normal(ks[2], (C2, C1, 1, K), jnp.float32)
    b2 = 0.1 * jax.random.normal(ks[3], (C2,), jnp.float32)
    fw1 = 0.03 * jax.random.normal(ks[4], (HID, FLAT), jnp.float32)
    fb1 = 0.1 * jax.random.normal(ks[5], (HID,), jnp.float32)
    fw2 = 0.1 * jax.random.normal(ks[6], (OUT, HID), jnp.float32)
    fb2 = 0.1 * jax.random.normal(ks[7], (OUT,), jnp.float32)
    return (w1, b1, w2, b2, fw1, fb1, fw2, fb2)


def ref_forward(x_nchw, params):
    """Pure-JAX f32 reference with PyTorch NCHW semantics."""
    w1, b1, w2, b2, fw1, fb1, fw2, fb2 = params
    dn = ("NCHW", "OIHW", "NCHW")
    h = jax.lax.conv_general_dilated(x_nchw, w1, (1, 1), "VALID", dimension_numbers=dn)
    h = jnp.maximum(h + b1[None, :, None, None], 0.0)
    h = jax.lax.reduce_window(h, -jnp.inf, jax.lax.max,
                              (1, 1, 1, 2), (1, 1, 1, 2), "VALID")
    g = jax.lax.conv_general_dilated(h, w2, (1, 1), "VALID", dimension_numbers=dn)
    g = jnp.maximum(g + b2[None, :, None, None], 0.0)
    g = jax.lax.reduce_window(g, -jnp.inf, jax.lax.max,
                              (1, 1, 1, 2), (1, 1, 1, 2), "VALID")
    flat = g.reshape(g.shape[0], -1)                  # channel-major flatten(1)
    z = jnp.maximum(flat @ fw1.T + fb1, 0.0)
    return z @ fw2.T + fb2


if __name__ == "__main__":
    key = jax.random.PRNGKey(0)
    kx, kp = jax.random.split(key)
    x = jax.random.normal(kx, (B_DEFAULT, 1, 1, W_IN), jnp.float32)
    params = init_params(kp)
    kparams = prepare_params(params)                  # one-time weight re-layout

    y = jax.block_until_ready(net_forward(x, kparams))
    y_ref = jax.block_until_ready(ref_forward(x, params))

    # bf16 MXU operands with f32 accumulation -> bf16-appropriate tolerance.
    np.testing.assert_allclose(np.asarray(y), np.asarray(y_ref), rtol=2e-2, atol=2e-2)
    print("KERNEL_OK")
</pallas_src>

<mosaic_0001>
module attributes {stable_mosaic.version = 11 : i64} {
  func.func @net_kernel(%arg0: i32, %arg1: memref<8x256xf32, #tpu.memory_space<vmem>>, %arg2: memref<256x3584xf32, #tpu.memory_space<vmem>>, %arg3: memref<1x3584xf32, #tpu.memory_space<vmem>>, %arg4: memref<1792x1792xbf16, #tpu.memory_space<vmem>>, %arg5: memref<1x1792xf32, #tpu.memory_space<vmem>>, %arg6: memref<896x128xbf16, #tpu.memory_space<vmem>>, %arg7: memref<1x128xf32, #tpu.memory_space<vmem>>, %arg8: memref<128x128xbf16, #tpu.memory_space<vmem>>, %arg9: memref<1x128xf32, #tpu.memory_space<vmem>>, %arg10: memref<8x128xbf16, #tpu.memory_space<vmem>>) attributes {dimension_semantics = [#tpu.dimension_semantics<parallel>], iteration_bounds = array<i64: 1>, scalar_prefetch = 0 : i64, scratch_operands = 0 : i64, tpu.core_type = #tpu.core_type<tc>, window_params = [{transform_indices = @transform_0, window_bounds = array<i64: 8, 256>}, {pipeline_mode = #tpu.pipeline_mode<synchronous>, transform_indices = @transform_1, window_bounds = array<i64: 256, 3584>}, {pipeline_mode = #tpu.pipeline_mode<synchronous>, transform_indices = @transform_2, window_bounds = array<i64: 1, 3584>}, {pipeline_mode = #tpu.pipeline_mode<synchronous>, transform_indices = @transform_3, window_bounds = array<i64: 1792, 1792>}, {pipeline_mode = #tpu.pipeline_mode<synchronous>, transform_indices = @transform_4, window_bounds = array<i64: 1, 1792>}, {pipeline_mode = #tpu.pipeline_mode<synchronous>, transform_indices = @transform_5, window_bounds = array<i64: 896, 128>}, {pipeline_mode = #tpu.pipeline_mode<synchronous>, transform_indices = @transform_6, window_bounds = array<i64: 1, 128>}, {pipeline_mode = #tpu.pipeline_mode<synchronous>, transform_indices = @transform_7, window_bounds = array<i64: 128, 128>}, {pipeline_mode = #tpu.pipeline_mode<synchronous>, transform_indices = @transform_8, window_bounds = array<i64: 1, 128>}, {transform_indices = @transform_9, window_bounds = array<i64: 8, 128>}]} {
    %c0 = arith.constant 0 : index
    %c0_0 = arith.constant 0 : index
    %0 = vector.load %arg1[%c0, %c0_0] : memref<8x256xf32, #tpu.memory_space<vmem>>, vector<8x256xf32>
    %c0_1 = arith.constant 0 : index
    %c0_2 = arith.constant 0 : index
    %1 = vector.load %arg2[%c0_1, %c0_2] : memref<256x3584xf32, #tpu.memory_space<vmem>>, vector<256x3584xf32>
    %cst = arith.constant dense<0.000000e+00> : vector<8x3584xf32>
    %2 = tpu.matmul %0, %1, %cst {dimension_numbers = #tpu.dot_dimension_numbers<[1], [0], [0], [1], [0, 0, 1, 1], [], []>} : vector<8x256xf32>, vector<256x3584xf32>, vector<8x3584xf32> -> vector<8x3584xf32>
    %c0_3 = arith.constant 0 : index
    %c0_4 = arith.constant 0 : index
    %3 = vector.load %arg3[%c0_3, %c0_4] : memref<1x3584xf32, #tpu.memory_space<vmem>>, vector<1x3584xf32>
    %4 = vector.broadcast %3 : vector<1x3584xf32> to vector<8x3584xf32>
    %5 = arith.addf %2, %4 : vector<8x3584xf32>
    %cst_5 = arith.constant 0.000000e+00 : f32
    %6 = vector.broadcast %cst_5 : f32 to vector<8x3584xf32>
    %7 = arith.maximumf %5, %6 : vector<8x3584xf32>
    %8 = vector.extract_strided_slice %7 {offsets = [0, 0], sizes = [8, 1792], strides = [1, 1]} : vector<8x3584xf32> to vector<8x1792xf32>
    %9 = vector.extract_strided_slice %7 {offsets = [0, 1792], sizes = [8, 1792], strides = [1, 1]} : vector<8x3584xf32> to vector<8x1792xf32>
    %10 = arith.maximumf %8, %9 : vector<8x1792xf32>
    %11 = arith.truncf %10 : vector<8x1792xf32> to vector<8x1792xbf16>
    %c0_6 = arith.constant 0 : index
    %c0_7 = arith.constant 0 : index
    %12 = vector.load %arg4[%c0_6, %c0_7] : memref<1792x1792xbf16, #tpu.memory_space<vmem>>, vector<1792x1792xbf16>
    %cst_8 = arith.constant dense<0.000000e+00> : vector<8x1792xf32>
    %13 = tpu.matmul %11, %12, %cst_8 {dimension_numbers = #tpu.dot_dimension_numbers<[1], [0], [0], [1], [0, 0, 1, 1], [], []>} : vector<8x1792xbf16>, vector<1792x1792xbf16>, vector<8x1792xf32> -> vector<8x1792xf32>
    %c0_9 = arith.constant 0 : index
    %c0_10 = arith.constant 0 : index
    %14 = vector.load %arg5[%c0_9, %c0_10] : memref<1x1792xf32, #tpu.memory_space<vmem>>, vector<1x1792xf32>
    %15 = vector.broadcast %14 : vector<1x1792xf32> to vector<8x1792xf32>
    %16 = arith.addf %13, %15 : vector<8x1792xf32>
    %cst_11 = arith.constant 0.000000e+00 : f32
    %17 = vector.broadcast %cst_11 : f32 to vector<8x1792xf32>
    %18 = arith.maximumf %16, %17 : vector<8x1792xf32>
    %19 = vector.extract_strided_slice %18 {offsets = [0, 0], sizes = [8, 896], strides = [1, 1]} : vector<8x1792xf32> to vector<8x896xf32>
    %20 = vector.extract_strided_slice %18 {offsets = [0, 896], sizes = [8, 896], strides = [1, 1]} : vector<8x1792xf32> to vector<8x896xf32>
    %21 = arith.maximumf %19, %20 : vector<8x896xf32>
    %22 = arith.truncf %21 : vector<8x896xf32> to vector<8x896xbf16>
    %c0_12 = arith.constant 0 : index
    %c0_13 = arith.constant 0 : index
    %23 = vector.load %arg6[%c0_12, %c0_13] : memref<896x128xbf16, #tpu.memory_space<vmem>>, vector<896x128xbf16>
    %cst_14 = arith.constant dense<0.000000e+00> : vector<8x128xf32>
    %24 = tpu.matmul %22, %23, %cst_14 {dimension_numbers = #tpu.dot_dimension_numbers<[1], [0], [0], [1], [0, 0, 1, 1], [], []>} : vector<8x896xbf16>, vector<896x128xbf16>, vector<8x128xf32> -> vector<8x128xf32>
    %c0_15 = arith.constant 0 : index
    %c0_16 = arith.constant 0 : index
    %25 = vector.load %arg7[%c0_15, %c0_16] : memref<1x128xf32, #tpu.memory_space<vmem>>, vector<1x128xf32>
    %26 = vector.broadcast %25 : vector<1x128xf32> to vector<8x128xf32>
    %27 = arith.addf %24, %26 : vector<8x128xf32>
    %cst_17 = arith.constant 0.000000e+00 : f32
    %28 = vector.broadcast %cst_17 : f32 to vector<8x128xf32>
    %29 = arith.maximumf %27, %28 : vector<8x128xf32>
    %30 = arith.truncf %29 : vector<8x128xf32> to vector<8x128xbf16>
    %c0_18 = arith.constant 0 : index
    %c0_19 = arith.constant 0 : index
    %31 = vector.load %arg8[%c0_18, %c0_19] : memref<128x128xbf16, #tpu.memory_space<vmem>>, vector<128x128xbf16>
    %cst_20 = arith.constant dense<0.000000e+00> : vector<8x128xf32>
    %32 = tpu.matmul %30, %31, %cst_20 {dimension_numbers = #tpu.dot_dimension_numbers<[1], [0], [0], [1], [0, 0, 1, 1], [], []>} : vector<8x128xbf16>, vector<128x128xbf16>, vector<8x128xf32> -> vector<8x128xf32>
    %c0_21 = arith.constant 0 : index
    %c0_22 = arith.constant 0 : index
    %33 = vector.load %arg9[%c0_21, %c0_22] : memref<1x128xf32, #tpu.memory_space<vmem>>, vector<1x128xf32>
    %34 = vector.broadcast %33 : vector<1x128xf32> to vector<8x128xf32>
    %35 = arith.addf %32, %34 : vector<8x128xf32>
    %36 = arith.truncf %35 : vector<8x128xf32> to vector<8x128xbf16>
    %c0_23 = arith.constant 0 : index
    %c0_24 = arith.constant 0 : index
    %37 = vector.load %arg10[%c0_23, %c0_24] : memref<8x128xbf16, #tpu.memory_space<vmem>>, vector<8x128xbf16>
    tpu.vector_store %arg10[%c0_23, %c0_24], %36 {strides = array<i32>} : memref<8x128xbf16, #tpu.memory_space<vmem>>, vector<8x128xbf16>,
    return
  }
  func.func @transform_0(%arg0: i32) -> (i32, i32) {
    %c0_i32 = arith.constant 0 : i32
    %c0_i32_0 = arith.constant 0 : i32
    return %arg0, %c0_i32 : i32, i32
  }
  func.func @transform_1(%arg0: i32) -> (i32, i32) {
    %c0_i32 = arith.constant 0 : i32
    %c0_i32_0 = arith.constant 0 : i32
    %c0_i32_1 = arith.constant 0 : i32
    return %c0_i32, %c0_i32_0 : i32, i32
  }
  func.func @transform_2(%arg0: i32) -> (i32, i32) {
    %c0_i32 = arith.constant 0 : i32
    %c0_i32_0 = arith.constant 0 : i32
    %c0_i32_1 = arith.constant 0 : i32
    return %c0_i32, %c0_i32_0 : i32, i32
  }
  func.func @transform_3(%arg0: i32) -> (i32, i32) {
    %c0_i32 = arith.constant 0 : i32
    %c0_i32_0 = arith.constant 0 : i32
    %c0_i32_1 = arith.constant 0 : i32
    return %c0_i32, %c0_i32_0 : i32, i32
  }
  func.func @transform_4(%arg0: i32) -> (i32, i32) {
    %c0_i32 = arith.constant 0 : i32
    %c0_i32_0 = arith.constant 0 : i32
    %c0_i32_1 = arith.constant 0 : i32
    return %c0_i32, %c0_i32_0 : i32, i32
  }
  func.func @transform_5(%arg0: i32) -> (i32, i32) {
    %c0_i32 = arith.constant 0 : i32
    %c0_i32_0 = arith.constant 0 : i32
    %c0_i32_1 = arith.constant 0 : i32
    return %c0_i32, %c0_i32_0 : i32, i32
  }
  func.func @transform_6(%arg0: i32) -> (i32, i32) {
    %c0_i32 = arith.constant 0 : i32
    %c0_i32_0 = arith.constant 0 : i32
    %c0_i32_1 = arith.constant 0 : i32
    return %c0_i32, %c0_i32_0 : i32, i32
  }
  func.func @transform_7(%arg0: i32) -> (i32, i32) {
    %c0_i32 = arith.constant 0 : i32
    %c0_i32_0 = arith.constant 0 : i32
    %c0_i32_1 = arith.constant 0 : i32
    return %c0_i32, %c0_i32_0 : i32, i32
  }
  func.func @transform_8(%arg0: i32) -> (i32, i32) {
    %c0_i32 = arith.constant 0 : i32
    %c0_i32_0 = arith.constant 0 : i32
    %c0_i32_1 = arith.constant 0 : i32
    return %c0_i32, %c0_i32_0 : i32, i32
  }
  func.func @transform_9(%arg0: i32) -> (i32, i32) {
    %c0_i32 = arith.constant 0 : i32
    %c0_i32_0 = arith.constant 0 : i32
    return %arg0, %c0_i32 : i32, i32
  }
}

</mosaic_0001>

<bundles_post_ra>
// kernel: tpu_custom_call.1
= control target key start
LH: loop header
LB: loop body
LE: loop exit
PB: predicated region body
PF: predicated region fallthrough
CT: control target
= control target key end

     0   :  { %14 = vsyncpa [#allocation3], 0  ;;  %s20631_s0 = inlined_call_operand.hbm [shape: f32[8,256], index: 0, kind: input, shape index: {}]   ;;  %s20632_s1 = inlined_call_operand.hbm [shape: f32[256,3584], index: 1, kind: input, shape index: {}]   ;;  %s20633_s2 = inlined_call_operand.hbm [shape: f32[1,3584], index: 2, kind: input, shape index: {}]   ;;  %s20634_s3 = inlined_call_operand.hbm [shape: bf16[1792,1792], index: 3, kind: input, shape index: {}]   ;;  %s20635_s4 = inlined_call_operand.hbm [shape: f32[1,1792], index: 4, kind: input, shape index: {}]   ;;  %s20636_s5 = inlined_call_operand.hbm [shape: bf16[896,128], index: 5, kind: input, shape index: {}]   ;;  %s20637_s6 = inlined_call_operand.hbm [shape: f32[1,128], index: 6, kind: input, shape index: {}]   ;;  %s20638_s7 = inlined_call_operand.hbm [shape: bf16[128,128], index: 7, kind: input, shape index: {}]   ;;  %s20639_s8 = inlined_call_operand.hbm [shape: f32[1,128], index: 8, kind: input, shape index: {}]   ;;  %s20640_s9 = inlined_call_operand.hbm [shape: bf16[8,128], index: 9, kind: output, shape index: {}]  }
   0x1   :  { %15 = vsyncpa [#allocation6], 0 }
   0x2   :  { %16 = vsyncpa [#allocation9], 0 }
   0x3   :  { %17 = vsyncpa [#allocation12], 0 }
   0x4   :  { %18 = vsyncpa [#allocation15], 0 }
   0x5   :  { %19 = vsyncpa [#allocation4], 0  ;;  %s20024_s30 = smov [#allocation5]   ;;  %s19792_s13 = scalar_lea.hbm %s20632_s1, 114688 }
   0x6   :  { %s35_s10 = sshll.u32 %s20024_s30, 4  ;;  %p19793_p0 = scmp.ne.s32.totalorder %s20632_s1, %s19792_s13  ;;  %s36_s10 = int_to_ptr.vmem [resolvable:$true] %s35_s10 }
   0x7   :  { %p19796_p1 = scmp.lt.u32.totalorder %s19792_s13, %s20632_s1 }
   0x9   :  { %p19798_p2 = pnand %p19796_p1, %p19793_p0 }
   0xb   :  { %19801 = shalt.err (!%p19798_p2)
}
   0xc   :  { %s19802_s18 = scalar_lea.vmem %s36_s10, 114688  ;;  %p19807_p4 = scmp.lt.s32.totalorder %s36_s10, %s36_s10 }
   0xd   :  { %p19803_p3 = scmp.ne.s32.totalorder %s36_s10, %s19802_s18  ;;  %p19808_p5 = scmp.lt.s32.totalorder %s19802_s18, %s19802_s18 }
   0xf   :  { %p19809_p6 = por %p19808_p5, %p19807_p4 }
  0x11   :  { %p19810_p7 = pnand %p19809_p6, %p19803_p3 }
  0x13   :  { %19813 = shalt.err (!%p19810_p7)
}
  0x14   :  { %s20025_s19 = smov 3584   ;;  %s20026_s20 = smov 224  }
  0x15   :  { %41 = dma.hbm_to_vmem [thread:$0]  %s20632_s1, 114688, %s36_s10, [#allocation6], %s20025_s19, %s20025_s19, %s20026_s20  }
  0x16   :  { %s20027_s23 = smov [#allocation8]   ;;  %s19814_s27 = scalar_lea.hbm %s20634_s3, 200704 }
  0x17   :  { %s57_s24 = sshll.u32 %s20027_s23, 4  ;;  %p19815_p8 = scmp.ne.s32.totalorder %s20634_s3, %s19814_s27  ;;  %s58_s24 = int_to_ptr.vmem [resolvable:$true] %s57_s24 }
  0x18   :  { %p19818_p9 = scmp.lt.u32.totalorder %s19814_s27, %s20634_s3 }
  0x1a   :  { %p19820_p10 = pnand %p19818_p9, %p19815_p8 }
  0x1c   :  { %19823 = shalt.err (!%p19820_p10)
}
  0x1d   :  { %s19824_s12 = scalar_lea.vmem %s58_s24, 200704  ;;  %p19829_p12 = scmp.lt.s32.totalorder %s58_s24, %s58_s24 }
  0x1e   :  { %p19825_p11 = scmp.ne.s32.totalorder %s58_s24, %s19824_s12  ;;  %p19830_p13 = scmp.lt.s32.totalorder %s19824_s12, %s19824_s12 }
  0x20   :  { %p19831_p0 = por %p19830_p13, %p19829_p12 }
  0x22   :  { %p19832_p1 = pnand %p19831_p0, %p19825_p11 }
  0x24   :  { %19835 = shalt.err (!%p19832_p1)
}
  0x25   :  { %s20028_s1 = smov 896   ;;  %s20029_s10 = smov 56  }
  0x26   :  { %63 = dma.hbm_to_vmem [thread:$0]  %s20634_s3, 200704, %s58_s24, [#allocation9], %s20028_s1, %s20028_s1, %s20029_s10  }
  0x27   :  { %s20030_s15 = smov [#allocation11]   ;;  %s19836_s19 = scalar_lea.hbm %s20636_s5, 7168 }
  0x28   :  { %s79_s16 = sshll.u32 %s20030_s15, 4  ;;  %p19837_p2 = scmp.ne.s32.totalorder %s20636_s5, %s19836_s19  ;;  %s80_s16 = int_to_ptr.vmem [resolvable:$true] %s79_s16 }
  0x29   :  { %p19840_p3 = scmp.lt.u32.totalorder %s19836_s19, %s20636_s5 }
  0x2b   :  { %p19842_p4 = pnand %p19840_p3, %p19837_p2 }
  0x2d   :  { %19845 = shalt.err (!%p19842_p4)
}
  0x2e   :  { %s19846_s25 = scalar_lea.vmem %s80_s16, 7168  ;;  %p19851_p6 = scmp.lt.s32.totalorder %s80_s16, %s80_s16 }
  0x2f   :  { %p19847_p5 = scmp.ne.s32.totalorder %s80_s16, %s19846_s25  ;;  %p19852_p7 = scmp.lt.s32.totalorder %s19846_s25, %s19846_s25 }
  0x31   :  { %p19853_p8 = por %p19852_p7, %p19851_p6 }
  0x33   :  { %p19854_p9 = pnand %p19853_p8, %p19847_p5 }
  0x35   :  { %19857 = shalt.err (!%p19854_p9)
}
  0x36   :  { %s20031_s3 = smov 64   ;;  %s20032_s24 = smov 4  }
  0x37   :  { %85 = dma.hbm_to_vmem [thread:$0]  %s20636_s5, 7168, %s80_s16, [#allocation12], %s20031_s3, %s20031_s3, %s20032_s24  }
  0x38   :  { %s20033_s28 = smov [#allocation14]   ;;  %s20034_s30 = smov [#allocation2]  }
  0x39   :  { %s101_s29 = sshll.u32 %s20033_s28, 4  ;;  %s26_s11 = sshll.u32 %s20034_s30, 4  ;;  %s102_s29 = int_to_ptr.vmem [resolvable:$true] %s101_s29  ;;  %s27_s11 = int_to_ptr.vmem [resolvable:$true] %s26_s11 }
  0x3a   :  { %s19858_s10 = scalar_lea.hbm %s20638_s7, 1024 }
  0x3b   :  { %p19859_p10 = scmp.ne.s32.totalorder %s20638_s7, %s19858_s10  ;;  %p19862_p11 = scmp.lt.u32.totalorder %s19858_s10, %s20638_s7 }
  0x3d   :  { %p19864_p12 = pnand %p19862_p11, %p19859_p10 }
  0x3f   :  { %19867 = shalt.err (!%p19864_p12)
}
  0x40   :  { %s19868_s5 = scalar_lea.vmem %s102_s29, 1024  ;;  %p19873_p0 = scmp.lt.s32.totalorder %s102_s29, %s102_s29 }
  0x41   :  { %p19869_p13 = scmp.ne.s32.totalorder %s102_s29, %s19868_s5  ;;  %p19874_p1 = scmp.lt.s32.totalorder %s19868_s5, %s19868_s5 }
  0x43   :  { %p19875_p2 = por %p19874_p1, %p19873_p0 }
  0x45   :  { %p19876_p3 = pnand %p19875_p2, %p19869_p13 }
  0x47   :  { %19879 = shalt.err (!%p19876_p3)
}
  0x48   :  { %107 = dma.hbm_to_vmem [thread:$0]  %s20638_s7, 1024, %s102_s29, [#allocation15], %s20031_s3, %s20031_s3, %s20032_s24  }
  0x49   :  { %s19880_s21 = scalar_lea.hbm %s20631_s0, 256 }
  0x4a   :  { %p19881_p4 = scmp.ne.s32.totalorder %s20631_s0, %s19880_s21  ;;  %p19884_p5 = scmp.lt.u32.totalorder %s19880_s21, %s20631_s0 }
  0x4c   :  { %p19886_p6 = pnand %p19884_p5, %p19881_p4 }
  0x4e   :  { %19889 = shalt.err (!%p19886_p6)
}
  0x4f   :  { %s19890_s27 = scalar_lea.vmem %s27_s11, 256  ;;  %p19895_p8 = scmp.lt.s32.totalorder %s27_s11, %s27_s11 }
  0x50   :  { %p19891_p7 = scmp.ne.s32.totalorder %s27_s11, %s19890_s27  ;;  %p19896_p9 = scmp.lt.s32.totalorder %s19890_s27, %s19890_s27 }
  0x52   :  { %p19897_p10 = por %p19896_p9, %p19895_p8 }
  0x54   :  { %p19898_p11 = pnand %p19897_p10, %p19891_p7 }
  0x56   :  { %19901 = shalt.err (!%p19898_p11)
}
  0x57   :  { %29 = dma.hbm_to_vmem [thread:$0]  %s20631_s0, 256, %s27_s11, [#allocation3]  }
  0x58   :  { %s20035_s24 = smov [#allocation7]   ;;  %s20036_s29 = smov [#allocation10]  }
  0x59   :  { %s48_s28 = sshll.u32 %s20035_s24, 4  ;;  %s70_s30 = sshll.u32 %s20036_s29, 4  ;;  %s49_s28 = int_to_ptr.vmem [resolvable:$true] %s48_s28  ;;  %s71_s30 = int_to_ptr.vmem [resolvable:$true] %s70_s30 }
  0x5a   :  { %s19902_s10 = scalar_lea.hbm %s20633_s2, 448 }
  0x5b   :  { %p19903_p12 = scmp.ne.s32.totalorder %s20633_s2, %s19902_s10  ;;  %p19906_p13 = scmp.lt.u32.totalorder %s19902_s10, %s20633_s2 }
  0x5d   :  { %p19908_p0 = pnand %p19906_p13, %p19903_p12 }
  0x5f   :  { %19911 = shalt.err (!%p19908_p0)
}
  0x60   :  { %s19912_s0 = scalar_lea.vmem %s49_s28, 448  ;;  %p19917_p2 = scmp.lt.s32.totalorder %s49_s28, %s49_s28 }
  0x61   :  { %p19913_p1 = scmp.ne.s32.totalorder %s49_s28, %s19912_s0  ;;  %p19918_p3 = scmp.lt.s32.totalorder %s19912_s0, %s19912_s0 }
  0x63   :  { %p19919_p4 = por %p19918_p3, %p19917_p2 }
  0x65   :  { %p19920_p5 = pnand %p19919_p4, %p19913_p1 }
  0x67   :  { %19923 = shalt.err (!%p19920_p5)
}
  0x68   :  { %51 = dma.hbm_to_vmem [thread:$0]  %s20633_s2, 448, %s49_s28, [#allocation6]  }
  0x69   :  { %s19924_s19 = scalar_lea.hbm %s20635_s4, 224 }
  0x6a   :  { %p19925_p6 = scmp.ne.s32.totalorder %s20635_s4, %s19924_s19  ;;  %p19928_p7 = scmp.lt.u32.totalorder %s19924_s19, %s20635_s4 }
  0x6c   :  { %p19930_p8 = pnand %p19928_p7, %p19925_p6 }
  0x6e   :  { %19933 = shalt.err (!%p19930_p8)
}
  0x6f   :  { %s19934_s25 = scalar_lea.vmem %s71_s30, 224  ;;  %p19939_p10 = scmp.lt.s32.totalorder %s71_s30, %s71_s30 }
  0x70   :  { %p19935_p9 = scmp.ne.s32.totalorder %s71_s30, %s19934_s25  ;;  %p19940_p11 = scmp.lt.s32.totalorder %s19934_s25, %s19934_s25 }
  0x72   :  { %p19941_p12 = por %p19940_p11, %p19939_p10 }
  0x74   :  { %p19942_p13 = pnand %p19941_p12, %p19935_p9 }
  0x76   :  { %19945 = shalt.err (!%p19942_p13)
}
  0x77   :  { %73 = dma.hbm_to_vmem [thread:$0]  %s20635_s4, 224, %s71_s30, [#allocation9]  }
  0x78   :  { %s20037_s27 = smov [#allocation13]   ;;  %s20038_s3 = smov [#allocation16]  }
  0x79   :  { %s92_s7 = sshll.u32 %s20037_s27, 4  ;;  %s114_s24 = sshll.u32 %s20038_s3, 4  ;;  %s93_s7 = int_to_ptr.vmem [resolvable:$true] %s92_s7  ;;  %s115_s24 = int_to_ptr.vmem [resolvable:$true] %s114_s24 }
  0x7a   :  { %s19946_s12 = scalar_lea.hbm %s20637_s6, 16 }
  0x7b   :  { %p19947_p0 = scmp.ne.s32.totalorder %s20637_s6, %s19946_s12  ;;  %p19950_p1 = scmp.lt.u32.totalorder %s19946_s12, %s20637_s6 }
  0x7d   :  { %p19952_p2 = pnand %p19950_p1, %p19947_p0 }
  0x7f   :  { %19955 = shalt.err (!%p19952_p2)
}
  0x80   :  { %s19956_s4 = scalar_lea.vmem %s93_s7, 16  ;;  %s19960_s30 = scalar_lea.vmem %s93_s7, 32 }
  0x81   :  { %p19957_p3 = scmp.ne.s32.totalorder %s93_s7, %s19956_s4  ;;  %p19961_p4 = scmp.lt.s32.totalorder %s93_s7, %s93_s7 }
  0x82   :  { %p19962_p5 = scmp.lt.s32.totalorder %s19960_s30, %s19956_s4 }
  0x84   :  { %p19963_p6 = por %p19962_p5, %p19961_p4 }
  0x86   :  { %p19964_p7 = pnand %p19963_p6, %p19957_p3 }
  0x88   :  { %19967 = shalt.err (!%p19964_p7)
}
  0x89   :  { %95 = dma.hbm_to_vmem [thread:$0]  %s20637_s6, 16, %s93_s7, [#allocation12]  }
  0x8a   :  { %s19968_s5 = scalar_lea.hbm %s20639_s8, 16 }
  0x8b   :  { %p19969_p8 = scmp.ne.s32.totalorder %s20639_s8, %s19968_s5  ;;  %p19972_p9 = scmp.lt.u32.totalorder %s19968_s5, %s20639_s8 }
  0x8d   :  { %p19974_p10 = pnand %p19972_p9, %p19969_p8 }
  0x8f   :  { %19977 = shalt.err (!%p19974_p10)
}
  0x90   :  { %s19978_s21 = scalar_lea.vmem %s115_s24, 16  ;;  %s19982_s22 = scalar_lea.vmem %s115_s24, 32 }
  0x91   :  { %p19979_p11 = scmp.ne.s32.totalorder %s115_s24, %s19978_s21  ;;  %p19983_p12 = scmp.lt.s32.totalorder %s115_s24, %s115_s24 }
  0x92   :  { %p19984_p13 = scmp.lt.s32.totalorder %s19982_s22, %s19978_s21 }
  0x94   :  { %p19985_p0 = por %p19984_p13, %p19983_p12 }
  0x96   :  { %p19986_p1 = pnand %p19985_p0, %p19979_p11 }
  0x98   :  { %19989 = shalt.err (!%p19986_p1)
}
  0x99   :  { %117 = dma.hbm_to_vmem [thread:$0]  %s20639_s8, 16, %s115_s24, [#allocation15]  }
  0x9a   :  { %20012 = dma.done.wait [#allocation3], 256  }
  0x9b   :  { %20013 = vsyncadd [#allocation3], 4294967040 }
  0x9c   :  { %20014 = dma.done.wait [#allocation6], 115136  }
  0x9d   :  { %20015 = vsyncadd [#allocation6], 4294852160 }
  0x9e   :  { %20016 = dma.done.wait [#allocation9], 200928  }
  0x9f   :  { %20017 = vsyncadd [#allocation9], 4294766368 }
  0xa0   :  { %20018 = dma.done.wait [#allocation12], 7184  }
  0xa1   :  { %20019 = vsyncadd [#allocation12], 4294960112 }
  0xa2   :  { %20020 = dma.done.wait [#allocation15], 1040  }
  0xa3   :  { %20021 = vsyncadd [#allocation15], 4294966256  ;;  %v149_v0 = vld [vmem:[#allocation5 + $0x8] sm:$0xff]  ;;  %v148_v5 = vld [vmem:[#allocation5] sm:$0xff]  ;;  %vm20040_vm0 = vmmov 0   ;;  %s20041_s8 = smov [#allocation17]  }
  0xa4   :  { %v177_v1 = vld [vmem:[#allocation5 + $0xe8] sm:$0xff]  ;;  %v176_v6 = vld [vmem:[#allocation5 + $0xe0] sm:$0xff]  ;;  %s14497_s25 = sshll.u32 %s20041_s8, 4  ;;  %s14498_s25 = int_to_ptr.vmem [resolvable:$true] %s14497_s25 }
  0xa5   :  { %v157_v2 = vld [vmem:[#allocation5 + $0x48] sm:$0xff]  ;;  %v16268_v3 = vpack.c.bf16 %v177_v1, %v149_v0  ;;  %v16270_v8 = vpack.c.bf16 %v176_v6, %v148_v5  ;;  %v156_v9 = vld [vmem:[#allocation5 + $0x40] sm:$0xff]  ;;  %s19990_s2 = scalar_lea.vmem %s14498_s25, 64  ;;  %p19995_p3 = scmp.lt.s32.totalorder %s14498_s25, %s14498_s25 }
  0xa6   :  { %v185_v4 = vld [vmem:[#allocation5 + $0x128] sm:$0xff]  ;;  %v184_v10 = vld [vmem:[#allocation5 + $0x120] sm:$0xff]  ;;  %p19991_p2 = scmp.ne.s32.totalorder %s14498_s25, %s19990_s2  ;;  %p19996_p4 = scmp.lt.s32.totalorder %s19990_s2, %s19990_s2 }
  0xa7   :  { %v16524_v7 = vpack.c.bf16 %v185_v4, %v157_v2  ;;  %v205_v11 = vld [vmem:[#allocation5 + $0x1c8] sm:$0xff]  ;;  %16269 = vmatprep.subr.bf16.mxu1 %v16268_v3  ;;  %v16526_v12 = vpack.c.bf16 %v184_v10, %v156_v9  ;;  %v204_v18 = vld [vmem:[#allocation5 + $0x1c0] sm:$0xff] }
  0xa8   :  { %v233_v13 = vld [vmem:[#allocation5 + $0x2a8] sm:$0xff]  ;;  %16271 = vmatpush1.bf16.msra.mxu1 %v16270_v8  ;;  %v232_v19 = vld [vmem:[#allocation5 + $0x2a0] sm:$0xff]  ;;  %p19997_p5 = por %p19996_p4, %p19995_p3 }
  0xa9   :  { %v213_v14 = vld [vmem:[#allocation5 + $0x208] sm:$0xff]  ;;  %16525 = vmatprep.subr.bf16.mxu0 %v16524_v7  ;;  %v16272_v16 = vpack.c.bf16 %v233_v13, %v205_v11  ;;  %v212_v20 = vld [vmem:[#allocation5 + $0x200] sm:$0xff]  ;;  %v16274_v21 = vpack.c.bf16 %v232_v19, %v204_v18 }
  0xaa   :  { %v241_v15 = vld [vmem:[#allocation5 + $0x2e8] sm:$0xff]  ;;  %16527 = vmatpush1.bf16.msra.mxu0 %v16526_v12  ;;  %v240_v22 = vld [vmem:[#allocation5 + $0x2e0] sm:$0xff]  ;;  %p19998_p6 = pnand %p19997_p5, %p19991_p2 }
  0xab   :  { %v16528_v17 = vpack.c.bf16 %v241_v15, %v213_v14  ;;  %v261_v23 = vld [vmem:[#allocation5 + $0x388] sm:$0xff]  ;;  %16273 = vmatprep.subr.bf16.mxu1 %v16272_v16  ;;  %v16530_v25 = vpack.c.bf16 %v240_v22, %v212_v20  ;;  %v260_v29 = vld [vmem:[#allocation5 + $0x380] sm:$0xff] }
  0xac   :  { %v289_v24 = vld [vmem:[#allocation5 + $0x468] sm:$0xff]  ;;  %v288_v31 = vld [vmem:[#allocation5 + $0x460] sm:$0xff]  ;;  %16275 = vmatpush1.bf16.msra.mxu1 %v16274_v21 }
  0xad   :  { %16529 = vmatprep.subr.bf16.mxu0 %v16528_v17  ;;  %v16276_v26 = vpack.c.bf16 %v289_v24, %v261_v23  ;;  %v269_v27 = vld [vmem:[#allocation5 + $0x3c8] sm:$0xff]  ;;  %v268_v32 = vld [vmem:[#allocation5 + $0x3c0] sm:$0xff]  ;;  %v16278_v34 = vpack.c.bf16 %v288_v31, %v260_v29 }
  0xae   :  { %v297_v28 = vld [vmem:[#allocation5 + $0x4a8] sm:$0xff]  ;;  %v296_v33 = vld [vmem:[#allocation5 + $0x4a0] sm:$0xff]  ;;  %16531 = vmatpush1.bf16.msra.mxu0 %v16530_v25 }
  0xaf   :  { %v16532_v30 = vpack.c.bf16 %v297_v28, %v269_v27  ;;  %v317_v35 = vld [vmem:[#allocation5 + $0x548] sm:$0xff]  ;;  %16277 = vmatprep.subr.bf16.mxu1 %v16276_v26  ;;  %v16534_v38 = vpack.c.bf16 %v296_v33, %v268_v32  ;;  %v316_v41 = vld [vmem:[#allocation5 + $0x540] sm:$0xff] }
  0xb0   :  { %v345_v36 = vld [vmem:[#allocation5 + $0x628] sm:$0xff]  ;;  %v344_v42 = vld [vmem:[#allocation5 + $0x620] sm:$0xff]  ;;  %16279 = vmatpush1.bf16.msra.mxu1 %v16278_v34 }
  0xb1   :  { %v325_v37 = vld [vmem:[#allocation5 + $0x588] sm:$0xff]  ;;  %v16280_v39 = vpack.c.bf16 %v345_v36, %v317_v35  ;;  %16533 = vmatprep.subr.bf16.mxu0 %v16532_v30  ;;  %v324_v44 = vld [vmem:[#allocation5 + $0x580] sm:$0xff]  ;;  %v16282_v50 = vpack.c.bf16 %v344_v42, %v316_v41 }
  0xb2   :  { %v353_v40 = vld [vmem:[#allocation5 + $0x668] sm:$0xff]  ;;  %v352_v45 = vld [vmem:[#allocation5 + $0x660] sm:$0xff]  ;;  %16535 = vmatpush1.bf16.msra.mxu0 %v16534_v38 }
  0xb3   :  { %v16536_v43 = vpack.c.bf16 %v353_v40, %v325_v37  ;;  %v373_v46 = vld [vmem:[#allocation5 + $0x708] sm:$0xff]  ;;  %16281 = vmatprep.subr.bf16.mxu1 %v16280_v39  ;;  %v16538_v51 = vpack.c.bf16 %v352_v45, %v324_v44  ;;  %v372_v53 = vld [vmem:[#allocation5 + $0x700] sm:$0xff] }
  0xb4   :  { %v401_v47 = vld [vmem:[#allocation5 + $0x7e8] sm:$0xff]  ;;  %v400_v54 = vld [vmem:[#allocation5 + $0x7e0] sm:$0xff]  ;;  %16283 = vmatpush1.bf16.msra.mxu1 %v16282_v50 }
  0xb5   :  { %v381_v48 = vld [vmem:[#allocation5 + $0x748] sm:$0xff]  ;;  %v16284_v52 = vpack.c.bf16 %v401_v47, %v373_v46  ;;  %v380_v55 = vld [vmem:[#allocation5 + $0x740] sm:$0xff]  ;;  %16537 = vmatprep.subr.bf16.mxu0 %v16536_v43  ;;  %v16286_v62 = vpack.c.bf16 %v400_v54, %v372_v53 }
  0xb6   :  { %v409_v49 = vld [vmem:[#allocation5 + $0x828] sm:$0xff]  ;;  %v408_v57 = vld [vmem:[#allocation5 + $0x820] sm:$0xff]  ;;  %16539 = vmatpush1.bf16.msra.mxu0 %v16538_v51 }
  0xb7   :  { %v16540_v56 = vpack.c.bf16 %v409_v49, %v381_v48  ;;  %v429_v58 = vld [vmem:[#allocation5 + $0x8c8] sm:$0xff]  ;;  %16285 = vmatprep.subr.bf16.mxu1 %v16284_v52  ;;  %v16542_v63 = vpack.c.bf16 %v408_v57, %v380_v55  ;;  %v428_v1 = vld [vmem:[#allocation5 + $0x8c0] sm:$0xff] }
  0xb8   :  { %v457_v59 = vld [vmem:[#allocation5 + $0x9a8] sm:$0xff]  ;;  %v456_v2 = vld [vmem:[#allocation5 + $0x9a0] sm:$0xff]  ;;  %16287 = vmatpush1.bf16.msra.mxu1 %v16286_v62 }
  0xb9   :  { %v437_v60 = vld [vmem:[#allocation5 + $0x908] sm:$0xff]  ;;  %v16288_v0 = vpack.c.bf16 %v457_v59, %v429_v58  ;;  %v436_v3 = vld [vmem:[#allocation5 + $0x900] sm:$0xff]  ;;  %16541 = vmatprep.subr.bf16.mxu0 %v16540_v56  ;;  %v16290_v10 = vpack.c.bf16 %v456_v2, %v428_v1 }
  0xba   :  { %v465_v61 = vld [vmem:[#allocation5 + $0x9e8] sm:$0xff]  ;;  %v464_v5 = vld [vmem:[#allocation5 + $0x9e0] sm:$0xff]  ;;  %16543 = vmatpush1.bf16.msra.mxu0 %v16542_v63 }
  0xbb   :  { %v16544_v4 = vpack.c.bf16 %v465_v61, %v437_v60  ;;  %v485_v6 = vld [vmem:[#allocation5 + $0xa88] sm:$0xff]  ;;  %16289 = vmatprep.subr.bf16.mxu1 %v16288_v0  ;;  %v16546_v11 = vpack.c.bf16 %v464_v5, %v436_v3  ;;  %v484_v13 = vld [vmem:[#allocation5 + $0xa80] sm:$0xff] }
  0xbc   :  { %v513_v7 = vld [vmem:[#allocation5 + $0xb68] sm:$0xff]  ;;  %v512_v14 = vld [vmem:[#allocation5 + $0xb60] sm:$0xff]  ;;  %16291 = vmatpush1.bf16.msra.mxu1 %v16290_v10 }
  0xbd   :  { %v493_v8 = vld [vmem:[#allocation5 + $0xac8] sm:$0xff]  ;;  %v16292_v12 = vpack.c.bf16 %v513_v7, %v485_v6  ;;  %v492_v15 = vld [vmem:[#allocation5 + $0xac0] sm:$0xff]  ;;  %16545 = vmatprep.subr.bf16.mxu0 %v16544_v4  ;;  %v16294_v22 = vpack.c.bf16 %v512_v14, %v484_v13 }
  0xbe   :  { %v521_v9 = vld [vmem:[#allocation5 + $0xba8] sm:$0xff]  ;;  %v520_v17 = vld [vmem:[#allocation5 + $0xba0] sm:$0xff]  ;;  %16547 = vmatpush1.bf16.msra.mxu0 %v16546_v11 }
  0xbf   :  { %v16548_v16 = vpack.c.bf16 %v521_v9, %v493_v8  ;;  %v541_v18 = vld [vmem:[#allocation5 + $0xc48] sm:$0xff]  ;;  %16293 = vmatprep.subr.bf16.mxu1 %v16292_v12  ;;  %v16550_v23 = vpack.c.bf16 %v520_v17, %v492_v15  ;;  %v540_v25 = vld [vmem:[#allocation5 + $0xc40] sm:$0xff] }
  0xc0   :  { %v569_v19 = vld [vmem:[#allocation5 + $0xd28] sm:$0xff]  ;;  %v568_v26 = vld [vmem:[#allocation5 + $0xd20] sm:$0xff]  ;;  %16295 = vmatpush1.bf16.msra.mxu1 %v16294_v22 }
  0xc1   :  { %v549_v20 = vld [vmem:[#allocation5 + $0xc88] sm:$0xff]  ;;  %v16296_v24 = vpack.c.bf16 %v569_v19, %v541_v18  ;;  %v548_v27 = vld [vmem:[#allocation5 + $0xc80] sm:$0xff]  ;;  %16549 = vmatprep.subr.bf16.mxu0 %v16548_v16  ;;  %v16298_v34 = vpack.c.bf16 %v568_v26, %v540_v25  ;;  %v20200_v16 = vld [vmem:[#allocation2 + $0x8] sm:$0xff] }
  0xc2   :  { %v577_v21 = vld [vmem:[#allocation5 + $0xd68] sm:$0xff]  ;;  %v576_v29 = vld [vmem:[#allocation5 + $0xd60] sm:$0xff]  ;;  %16551 = vmatpush1.bf16.msra.mxu0 %v16550_v23  ;;  %1256 = vmatprep.mubr.f32.mxu1 %v20200_v16 }
  0xc3   :  { %v16552_v28 = vpack.c.bf16 %v577_v21, %v549_v20  ;;  %v597_v30 = vld [vmem:[#allocation5 + $0xe08] sm:$0xff]  ;;  %16297 = vmatprep.subr.bf16.mxu1 %v16296_v24  ;;  %v16554_v35 = vpack.c.bf16 %v576_v29, %v548_v27  ;;  %v596_v37 = vld [vmem:[#allocation5 + $0xe00] sm:$0xff]  ;;  %1540 = vmatprep.mubr.f32.mxu0 %v20200_v16 }
  0xc4   :  { %v625_v31 = vld [vmem:[#allocation5 + $0xee8] sm:$0xff]  ;;  %v624_v38 = vld [vmem:[#allocation5 + $0xee0] sm:$0xff]  ;;  %16299 = vmatpush1.bf16.msra.mxu1 %v16298_v34 }
  0xc5   :  { %v605_v32 = vld [vmem:[#allocation5 + $0xe48] sm:$0xff]  ;;  %v16300_v36 = vpack.c.bf16 %v625_v31, %v597_v30  ;;  %v604_v39 = vld [vmem:[#allocation5 + $0xe40] sm:$0xff]  ;;  %16553 = vmatprep.subr.bf16.mxu0 %v16552_v28  ;;  %v16302_v46 = vpack.c.bf16 %v624_v38, %v596_v37 }
  0xc6   :  { %v633_v33 = vld [vmem:[#allocation5 + $0xf28] sm:$0xff]  ;;  %v632_v41 = vld [vmem:[#allocation5 + $0xf20] sm:$0xff]  ;;  %16555 = vmatpush1.bf16.msra.mxu0 %v16554_v35 }
  0xc7   :  { %v16556_v40 = vpack.c.bf16 %v633_v33, %v605_v32  ;;  %v653_v42 = vld [vmem:[#allocation5 + $0xfc8] sm:$0xff]  ;;  %16301 = vmatprep.subr.bf16.mxu1 %v16300_v36  ;;  %v16558_v47 = vpack.c.bf16 %v632_v41, %v604_v39  ;;  %v652_v49 = vld [vmem:[#allocation5 + $0xfc0] sm:$0xff] }
  0xc8   :  { %v681_v43 = vld [vmem:[#allocation5 + $0x10a8] sm:$0xff]  ;;  %v680_v50 = vld [vmem:[#allocation5 + $0x10a0] sm:$0xff]  ;;  %16303 = vmatpush1.bf16.msra.mxu1 %v16302_v46 }
  0xc9   :  { %v661_v44 = vld [vmem:[#allocation5 + $0x1008] sm:$0xff]  ;;  %v16304_v48 = vpack.c.bf16 %v681_v43, %v653_v42  ;;  %v660_v51 = vld [vmem:[#allocation5 + $0x1000] sm:$0xff]  ;;  %16557 = vmatprep.subr.bf16.mxu0 %v16556_v40  ;;  %v16306_v58 = vpack.c.bf16 %v680_v50, %v652_v49 }
  0xca   :  { %v689_v45 = vld [vmem:[#allocation5 + $0x10e8] sm:$0xff]  ;;  %v688_v53 = vld [vmem:[#allocation5 + $0x10e0] sm:$0xff]  ;;  %16559 = vmatpush1.bf16.msra.mxu0 %v16558_v47 }
  0xcb   :  { %v16560_v52 = vpack.c.bf16 %v689_v45, %v661_v44  ;;  %v709_v54 = vld [vmem:[#allocation5 + $0x1188] sm:$0xff]  ;;  %16305 = vmatprep.subr.bf16.mxu1 %v16304_v48  ;;  %v16562_v59 = vpack.c.bf16 %v688_v53, %v660_v51  ;;  %v708_v61 = vld [vmem:[#allocation5 + $0x1180] sm:$0xff] }
  0xcc   :  { %v737_v55 = vld [vmem:[#allocation5 + $0x1268] sm:$0xff]  ;;  %v736_v62 = vld [vmem:[#allocation5 + $0x1260] sm:$0xff]  ;;  %16307 = vmatpush1.bf16.msra.mxu1 %v16306_v58 }
  0xcd   :  { %v717_v56 = vld [vmem:[#allocation5 + $0x11c8] sm:$0xff]  ;;  %v16308_v60 = vpack.c.bf16 %v737_v55, %v709_v54  ;;  %v716_v63 = vld [vmem:[#allocation5 + $0x11c0] sm:$0xff]  ;;  %16561 = vmatprep.subr.bf16.mxu0 %v16560_v52  ;;  %v16310_v6 = vpack.c.bf16 %v736_v62, %v708_v61 }
  0xce   :  { %v745_v57 = vld [vmem:[#allocation5 + $0x12a8] sm:$0xff]  ;;  %v744_v1 = vld [vmem:[#allocation5 + $0x12a0] sm:$0xff]  ;;  %16563 = vmatpush1.bf16.msra.mxu0 %v16562_v59 }
  0xcf   :  { %v16564_v0 = vpack.c.bf16 %v745_v57, %v717_v56  ;;  %v765_v2 = vld [vmem:[#allocation5 + $0x1348] sm:$0xff]  ;;  %v764_v7 = vld [vmem:[#allocation5 + $0x1340] sm:$0xff]  ;;  %16309 = vmatprep.subr.bf16.mxu1 %v16308_v60  ;;  %v16566_v8 = vpack.c.bf16 %v744_v1, %v716_v63  ;;  %v151_v63 = vld [vmem:[#allocation5 + $0x18] sm:$0xff] }
  0xd0   :  { %v793_v3 = vld [vmem:[#allocation5 + $0x1428] sm:$0xff]  ;;  %v792_v10 = vld [vmem:[#allocation5 + $0x1420] sm:$0xff]  ;;  %16311 = vmatpush1.bf16.msra.mxu1 %v16310_v6  ;;  %v150_v6 = vld [vmem:[#allocation5 + $0x10] sm:$0xff] }
  0xd1   :  { %v773_v4 = vld [vmem:[#allocation5 + $0x1388] sm:$0xff]  ;;  %v16312_v9 = vpack.c.bf16 %v793_v3, %v765_v2  ;;  %v772_v11 = vld [vmem:[#allocation5 + $0x1380] sm:$0xff]  ;;  %16565 = vmatprep.subr.bf16.mxu0 %v16564_v0  ;;  %v16314_v19 = vpack.c.bf16 %v792_v10, %v764_v7  ;;  %v179_v0 = vld [vmem:[#allocation5 + $0xf8] sm:$0xff] }
  0xd2   :  { %v801_v5 = vld [vmem:[#allocation5 + $0x1468] sm:$0xff]  ;;  %v800_v12 = vld [vmem:[#allocation5 + $0x1460] sm:$0xff]  ;;  %16567 = vmatpush1.bf16.msra.mxu0 %v16566_v8  ;;  %v178_v7 = vld [vmem:[#allocation5 + $0xf0] sm:$0xff] }
  0xd3   :  { %v16568_v13 = vpack.c.bf16 %v801_v5, %v773_v4  ;;  %v821_v14 = vld [vmem:[#allocation5 + $0x1508] sm:$0xff]  ;;  %16313 = vmatprep.subr.bf16.mxu1 %v16312_v9  ;;  %v16570_v20 = vpack.c.bf16 %v800_v12, %v772_v11  ;;  %v820_v22 = vld [vmem:[#allocation5 + $0x1500] sm:$0xff]  ;;  %v16332_v5 = vpack.c.bf16 %v179_v0, %v151_v63  ;;  %v207_v11 = vld [vmem:[#allocation5 + $0x1d8] sm:$0xff] }
  0xd4   :  { %v849_v15 = vld [vmem:[#allocation5 + $0x15e8] sm:$0xff]  ;;  %v848_v23 = vld [vmem:[#allocation5 + $0x15e0] sm:$0xff]  ;;  %16315 = vmatpush1.bf16.msra.mxu1 %v16314_v19  ;;  %v235_v12 = vld [vmem:[#allocation5 + $0x2b8] sm:$0xff] }
  0xd5   :  { %v829_v17 = vld [vmem:[#allocation5 + $0x1548] sm:$0xff]  ;;  %v16316_v21 = vpack.c.bf16 %v849_v15, %v821_v14  ;;  %v828_v24 = vld [vmem:[#allocation5 + $0x1540] sm:$0xff]  ;;  %16569 = vmatprep.subr.bf16.mxu0 %v16568_v13  ;;  %v16318_v31 = vpack.c.bf16 %v848_v23, %v820_v22  ;;  %v20204_v15 = vld [vmem:[#allocation2] sm:$0xff]  ;;  %v16336_v19 = vpack.c.bf16 %v235_v12, %v207_v11 }
  0xd6   :  { %v857_v18 = vld [vmem:[#allocation5 + $0x1628] sm:$0xff]  ;;  %v856_v26 = vld [vmem:[#allocation5 + $0x1620] sm:$0xff]  ;;  %16571 = vmatpush1.bf16.msra.mxu0 %v16570_v20  ;;  %v206_v20 = vld [vmem:[#allocation5 + $0x1d0] sm:$0xff] }
  0xd7   :  { %v16572_v25 = vpack.c.bf16 %v857_v18, %v829_v17  ;;  %v877_v27 = vld [vmem:[#allocation5 + $0x16c8] sm:$0xff]  ;;  %16317 = vmatprep.subr.bf16.mxu1 %v16316_v21  ;;  %v16574_v32 = vpack.c.bf16 %v856_v26, %v828_v24  ;;  %v876_v34 = vld [vmem:[#allocation5 + $0x16c0] sm:$0xff]  ;;  %v16334_v17 = vpack.c.bf16 %v178_v7, %v150_v6  ;;  %v234_v21 = vld [vmem:[#allocation5 + $0x2b0] sm:$0xff] }
  0xd8   :  { %v905_v28 = vld [vmem:[#allocation5 + $0x17a8] sm:$0xff]  ;;  %v904_v35 = vld [vmem:[#allocation5 + $0x17a0] sm:$0xff]  ;;  %16319 = vmatpush1.bf16.msra.mxu1 %v16318_v31  ;;  %v291_v26 = vld [vmem:[#allocation5 + $0x478] sm:$0xff] }
  0xd9   :  { %v885_v29 = vld [vmem:[#allocation5 + $0x1708] sm:$0xff]  ;;  %v16320_v33 = vpack.c.bf16 %v905_v28, %v877_v27  ;;  %v884_v36 = vld [vmem:[#allocation5 + $0x1700] sm:$0xff]  ;;  %16573 = vmatprep.subr.bf16.mxu0 %v16572_v25  ;;  %v16322_v43 = vpack.c.bf16 %v904_v35, %v876_v34  ;;  %v263_v25 = vld [vmem:[#allocation5 + $0x398] sm:$0xff] }
  0xda   :  { %v913_v30 = vld [vmem:[#allocation5 + $0x17e8] sm:$0xff]  ;;  %v912_v38 = vld [vmem:[#allocation5 + $0x17e0] sm:$0xff]  ;;  %16575 = vmatpush1.bf16.msra.mxu0 %v16574_v32  ;;  %v16340_v31 = vpack.c.bf16 %v291_v26, %v263_v25  ;;  %v262_v32 = vld [vmem:[#allocation5 + $0x390] sm:$0xff] }
  0xdb   :  { %v16576_v37 = vpack.c.bf16 %v913_v30, %v885_v29  ;;  %v933_v39 = vld [vmem:[#allocation5 + $0x1888] sm:$0xff]  ;;  %16321 = vmatprep.subr.bf16.mxu1 %v16320_v33  ;;  %v16578_v44 = vpack.c.bf16 %v912_v38, %v884_v36  ;;  %v932_v46 = vld [vmem:[#allocation5 + $0x1880] sm:$0xff]  ;;  %v16338_v29 = vpack.c.bf16 %v234_v21, %v206_v20  ;;  %v290_v33 = vld [vmem:[#allocation5 + $0x470] sm:$0xff] }
  0xdc   :  { %v961_v40 = vld [vmem:[#allocation5 + $0x1968] sm:$0xff]  ;;  %v960_v47 = vld [vmem:[#allocation5 + $0x1960] sm:$0xff]  ;;  %16323 = vmatpush1.bf16.msra.mxu1 %v16322_v43  ;;  %v347_v38 = vld [vmem:[#allocation5 + $0x638] sm:$0xff] }
  0xdd   :  { %v941_v41 = vld [vmem:[#allocation5 + $0x18c8] sm:$0xff]  ;;  %v16324_v45 = vpack.c.bf16 %v961_v40, %v933_v39  ;;  %v940_v48 = vld [vmem:[#allocation5 + $0x18c0] sm:$0xff]  ;;  %16577 = vmatprep.subr.bf16.mxu0 %v16576_v37  ;;  %v16326_v55 = vpack.c.bf16 %v960_v47, %v932_v46  ;;  %v319_v37 = vld [vmem:[#allocation5 + $0x558] sm:$0xff] }
  0xde   :  { %v969_v42 = vld [vmem:[#allocation5 + $0x19a8] sm:$0xff]  ;;  %v968_v50 = vld [vmem:[#allocation5 + $0x19a0] sm:$0xff]  ;;  %16579 = vmatpush1.bf16.msra.mxu0 %v16578_v44  ;;  %v16344_v43 = vpack.c.bf16 %v347_v38, %v319_v37  ;;  %v318_v44 = vld [vmem:[#allocation5 + $0x550] sm:$0xff] }
  0xdf   :  { %v16580_v49 = vpack.c.bf16 %v969_v42, %v941_v41  ;;  %v989_v51 = vld [vmem:[#allocation5 + $0x1a48] sm:$0xff]  ;;  %16325 = vmatprep.subr.bf16.mxu1 %v16324_v45  ;;  %v16582_v56 = vpack.c.bf16 %v968_v50, %v940_v48  ;;  %v988_v58 = vld [vmem:[#allocation5 + $0x1a40] sm:$0xff]  ;;  %v16342_v41 = vpack.c.bf16 %v290_v33, %v262_v32  ;;  %v346_v45 = vld [vmem:[#allocation5 + $0x630] sm:$0xff] }
  0xe0   :  { %v1017_v52 = vld [vmem:[#allocation5 + $0x1b28] sm:$0xff]  ;;  %v1016_v59 = vld [vmem:[#allocation5 + $0x1b20] sm:$0xff]  ;;  %16327 = vmatpush1.bf16.msra.mxu1 %v16326_v55  ;;  %v403_v50 = vld [vmem:[#allocation5 + $0x7f8] sm:$0xff] }
  0xe1   :  { %v997_v53 = vld [vmem:[#allocation5 + $0x1a88] sm:$0xff]  ;;  %v16328_v57 = vpack.c.bf16 %v1017_v52, %v989_v51  ;;  %v996_v60 = vld [vmem:[#allocation5 + $0x1a80] sm:$0xff]  ;;  %16581 = vmatprep.subr.bf16.mxu0 %v16580_v49  ;;  %v16330_v3 = vpack.c.bf16 %v1016_v59, %v988_v58  ;;  %v375_v49 = vld [vmem:[#allocation5 + $0x718] sm:$0xff] }
  0xe2   :  { %v1025_v54 = vld [vmem:[#allocation5 + $0x1b68] sm:$0xff]  ;;  %v1024_v62 = vld [vmem:[#allocation5 + $0x1b60] sm:$0xff]  ;;  %16583 = vmatpush1.bf16.msra.mxu0 %v16582_v56  ;;  %v16348_v55 = vpack.c.bf16 %v403_v50, %v375_v49  ;;  %v374_v56 = vld [vmem:[#allocation5 + $0x710] sm:$0xff] }
  0xe3   :  { %v16584_v61 = vpack.c.bf16 %v1025_v54, %v997_v53  ;;  %v161_v1 = vld [vmem:[#allocation5 + $0x68] sm:$0xff]  ;;  %16329 = vmatprep.subr.bf16.mxu1 %v16328_v57  ;;  %v16586_v4 = vpack.c.bf16 %v1024_v62, %v996_v60  ;;  %v160_v8 = vld [vmem:[#allocation5 + $0x60] sm:$0xff]  ;;  %v16346_v53 = vpack.c.bf16 %v346_v45, %v318_v44  ;;  %v402_v57 = vld [vmem:[#allocation5 + $0x7f0] sm:$0xff] }
  0xe4   :  { %v189_v2 = vld [vmem:[#allocation5 + $0x148] sm:$0xff]  ;;  %v188_v10 = vld [vmem:[#allocation5 + $0x140] sm:$0xff]  ;;  %16331 = vmatpush1.bf16.msra.mxu1 %v16330_v3  ;;  %v459_v62 = vld [vmem:[#allocation5 + $0x9b8] sm:$0xff] }
  0xe5   :  { %16585 = vmatprep.subr.bf16.mxu0 %v16584_v61  ;;  %v16652_v9 = vpack.c.bf16 %v189_v2, %v161_v1  ;;  %v217_v13 = vld [vmem:[#allocation5 + $0x228] sm:$0xff]  ;;  %16333 = vmatprep.subr.bf16.mxu1 %v16332_v5  ;;  %v16654_v18 = vpack.c.bf16 %v188_v10, %v160_v8  ;;  %v216_v22 = vld [vmem:[#allocation5 + $0x220] sm:$0xff]  ;;  %v431_v61 = vld [vmem:[#allocation5 + $0x8d8] sm:$0xff]  ;;  %v16350_v1 = vpack.c.bf16 %v402_v57, %v374_v56 }
  0xe6   :  { %v245_v14 = vld [vmem:[#allocation5 + $0x308] sm:$0xff]  ;;  %16587 = vmatpush1.bf16.msra.mxu0 %v16586_v4  ;;  %v244_v24 = vld [vmem:[#allocation5 + $0x300] sm:$0xff]  ;;  %v16352_v3 = vpack.c.bf16 %v459_v62, %v431_v61  ;;  %v430_v4 = vld [vmem:[#allocation5 + $0x8d0] sm:$0xff] }
  0xe7   :  { %16653 = vmatprep.subr.bf16.mxu0 %v16652_v9  ;;  %v16656_v23 = vpack.c.bf16 %v245_v14, %v217_v13  ;;  %1257 = vmatmul.mubr.f32.vlgmr.msra.gmra.mrb[0].mxu1 %v20204_v15  ;;  %v273_v27 = vld [vmem:[#allocation5 + $0x3e8] sm:$0xff]  ;;  %v16658_v30 = vpack.c.bf16 %v244_v24, %v216_v22  ;;  %v272_v34 = vld [vmem:[#allocation5 + $0x3e0] sm:$0xff]  ;;  %v458_v5 = vld [vmem:[#allocation5 + $0x9b0] sm:$0xff] }
  0xe8   :  { %v301_v28 = vld [vmem:[#allocation5 + $0x4c8] sm:$0xff]  ;;  %16335 = vmatpush1.bf16.msra.mxu1 %v16334_v17  ;;  %v300_v36 = vld [vmem:[#allocation5 + $0x4c0] sm:$0xff]  ;;  %1327 = vmatprep.mubr.f32.mxu1 %v20200_v16  ;;  %v487_v9 = vld [vmem:[#allocation5 + $0xa98] sm:$0xff]  ;;  %v16354_v13 = vpack.c.bf16 %v458_v5, %v430_v4 }
  0xe9   :  { %1541 = vmatmul.mubr.f32.vlgmr.msra.gmra.mrb[0].mxu0 %v20204_v15  ;;  %16337 = vmatprep.subr.bf16.mxu1 %v16336_v19  ;;  %v16660_v35 = vpack.c.bf16 %v301_v28, %v273_v27  ;;  %v329_v39 = vld [vmem:[#allocation5 + $0x5a8] sm:$0xff]  ;;  %v16662_v42 = vpack.c.bf16 %v300_v36, %v272_v34  ;;  %v328_v46 = vld [vmem:[#allocation5 + $0x5a0] sm:$0xff]  ;;  %v515_v10 = vld [vmem:[#allocation5 + $0xb78] sm:$0xff] }
  0xea   :  { %16655 = vmatpush1.bf16.msra.mxu0 %v16654_v18  ;;  %v357_v40 = vld [vmem:[#allocation5 + $0x688] sm:$0xff]  ;;  %1682 = vmatprep.mubr.f32.mxu0 %v20200_v16  ;;  %v356_v48 = vld [vmem:[#allocation5 + $0x680] sm:$0xff]  ;;  %v16356_v17 = vpack.c.bf16 %v515_v10, %v487_v9  ;;  %v486_v18 = vld [vmem:[#allocation5 + $0xa90] sm:$0xff] }
  0xeb   :  { %16657 = vmatprep.subr.bf16.mxu0 %v16656_v23  ;;  %v16664_v47 = vpack.c.bf16 %v357_v40, %v329_v39  ;;  %v385_v51 = vld [vmem:[#allocation5 + $0x768] sm:$0xff]  ;;  %v16666_v54 = vpack.c.bf16 %v356_v48, %v328_v46  ;;  %v384_v58 = vld [vmem:[#allocation5 + $0x760] sm:$0xff]  ;;  %v514_v19 = vld [vmem:[#allocation5 + $0xb70] sm:$0xff] }
  0xec   :  { %16339 = vmatpush1.bf16.msra.mxu1 %v16338_v29  ;;  %v413_v52 = vld [vmem:[#allocation5 + $0x848] sm:$0xff]  ;;  %v412_v60 = vld [vmem:[#allocation5 + $0x840] sm:$0xff]  ;;  %v543_v23 = vld [vmem:[#allocation5 + $0xc58] sm:$0xff]  ;;  %v16358_v27 = vpack.c.bf16 %v514_v19, %v486_v18 }
  0xed   :  { %16341 = vmatprep.subr.bf16.mxu1 %v16340_v31  ;;  %v16668_v59 = vpack.c.bf16 %v413_v52, %v385_v51  ;;  %v441_v63 = vld [vmem:[#allocation5 + $0x928] sm:$0xff]  ;;  %v16670_v2 = vpack.c.bf16 %v412_v60, %v384_v58  ;;  %v440_v6 = vld [vmem:[#allocation5 + $0x920] sm:$0xff]  ;;  %v571_v24 = vld [vmem:[#allocation5 + $0xd38] sm:$0xff] }
  0xee   :  { %16659 = vmatpush1.bf16.msra.mxu0 %v16658_v30  ;;  %v469_v0 = vld [vmem:[#allocation5 + $0xa08] sm:$0xff]  ;;  %v468_v8 = vld [vmem:[#allocation5 + $0xa00] sm:$0xff]  ;;  %v16360_v29 = vpack.c.bf16 %v571_v24, %v543_v23  ;;  %v542_v30 = vld [vmem:[#allocation5 + $0xc50] sm:$0xff] }
  0xef   :  { %16661 = vmatprep.subr.bf16.mxu0 %v16660_v35  ;;  %v16672_v7 = vpack.c.bf16 %v469_v0, %v441_v63  ;;  %v497_v11 = vld [vmem:[#allocation5 + $0xae8] sm:$0xff]  ;;  %v16674_v14 = vpack.c.bf16 %v468_v8, %v440_v6  ;;  %v496_v20 = vld [vmem:[#allocation5 + $0xae0] sm:$0xff]  ;;  %v570_v31 = vld [vmem:[#allocation5 + $0xd30] sm:$0xff] }
  0xf0   :  { %16343 = vmatpush1.bf16.msra.mxu1 %v16342_v41  ;;  %v525_v12 = vld [vmem:[#allocation5 + $0xbc8] sm:$0xff]  ;;  %v524_v22 = vld [vmem:[#allocation5 + $0xbc0] sm:$0xff]  ;;  %v599_v35 = vld [vmem:[#allocation5 + $0xe18] sm:$0xff]  ;;  %v16362_v39 = vpack.c.bf16 %v570_v31, %v542_v30 }
  0xf1   :  { %16345 = vmatprep.subr.bf16.mxu1 %v16344_v43  ;;  %v16676_v21 = vpack.c.bf16 %v525_v12, %v497_v11  ;;  %v553_v25 = vld [vmem:[#allocation5 + $0xca8] sm:$0xff]  ;;  %v16678_v28 = vpack.c.bf16 %v524_v22, %v496_v20  ;;  %v552_v32 = vld [vmem:[#allocation5 + $0xca0] sm:$0xff]  ;;  %v627_v36 = vld [vmem:[#allocation5 + $0xef8] sm:$0xff] }
  0xf2   :  { %16663 = vmatpush1.bf16.msra.mxu0 %v16662_v42  ;;  %v581_v26 = vld [vmem:[#allocation5 + $0xd88] sm:$0xff]  ;;  %v580_v34 = vld [vmem:[#allocation5 + $0xd80] sm:$0xff]  ;;  %v16364_v41 = vpack.c.bf16 %v627_v36, %v599_v35  ;;  %v598_v42 = vld [vmem:[#allocation5 + $0xe10] sm:$0xff] }
  0xf3   :  { %16665 = vmatprep.subr.bf16.mxu0 %v16664_v47  ;;  %v16680_v33 = vpack.c.bf16 %v581_v26, %v553_v25  ;;  %v609_v37 = vld [vmem:[#allocation5 + $0xe68] sm:$0xff]  ;;  %v16682_v40 = vpack.c.bf16 %v580_v34, %v552_v32  ;;  %v626_v43 = vld [vmem:[#allocation5 + $0xef0] sm:$0xff]  ;;  %v608_v44 = vld [vmem:[#allocation5 + $0xe60] sm:$0xff] }
  0xf4   :  { %16347 = vmatpush1.bf16.msra.mxu1 %v16346_v53  ;;  %v637_v38 = vld [vmem:[#allocation5 + $0xf48] sm:$0xff]  ;;  %v636_v46 = vld [vmem:[#allocation5 + $0xf40] sm:$0xff]  ;;  %v655_v47 = vld [vmem:[#allocation5 + $0xfd8] sm:$0xff]  ;;  %v16366_v51 = vpack.c.bf16 %v626_v43, %v598_v42 }
  0xf5   :  { %16349 = vmatprep.subr.bf16.mxu1 %v16348_v55  ;;  %v16684_v45 = vpack.c.bf16 %v637_v38, %v609_v37  ;;  %v683_v48 = vld [vmem:[#allocation5 + $0x10b8] sm:$0xff]  ;;  %v665_v49 = vld [vmem:[#allocation5 + $0x1028] sm:$0xff]  ;;  %v16686_v52 = vpack.c.bf16 %v636_v46, %v608_v44  ;;  %v682_v55 = vld [vmem:[#allocation5 + $0x10b0] sm:$0xff] }
  0xf6   :  { %16667 = vmatpush1.bf16.msra.mxu0 %v16666_v54  ;;  %v693_v50 = vld [vmem:[#allocation5 + $0x1108] sm:$0xff]  ;;  %v16368_v53 = vpack.c.bf16 %v683_v48, %v655_v47  ;;  %v654_v54 = vld [vmem:[#allocation5 + $0xfd0] sm:$0xff]  ;;  %v664_v56 = vld [vmem:[#allocation5 + $0x1020] sm:$0xff] }
  0xf7   :  { %16669 = vmatprep.subr.bf16.mxu0 %v16668_v59  ;;  %v16688_v57 = vpack.c.bf16 %v693_v50, %v665_v49  ;;  %v692_v58 = vld [vmem:[#allocation5 + $0x1100] sm:$0xff]  ;;  %v711_v59 = vld [vmem:[#allocation5 + $0x1198] sm:$0xff]  ;;  %v721_v61 = vld [vmem:[#allocation5 + $0x11e8] sm:$0xff]  ;;  %v16370_v63 = vpack.c.bf16 %v682_v55, %v654_v54 }
  0xf8   :  { %16351 = vmatpush1.bf16.msra.mxu1 %v16350_v1  ;;  %v739_v60 = vld [vmem:[#allocation5 + $0x1278] sm:$0xff]  ;;  %v749_v62 = vld [vmem:[#allocation5 + $0x12c8] sm:$0xff]  ;;  %v16690_v0 = vpack.c.bf16 %v692_v58, %v664_v56  ;;  %v720_v4 = vld [vmem:[#allocation5 + $0x11e0] sm:$0xff] }
  0xf9   :  { %16353 = vmatprep.subr.bf16.mxu1 %v16352_v3  ;;  %v16372_v1 = vpack.c.bf16 %v739_v60, %v711_v59  ;;  %v738_v3 = vld [vmem:[#allocation5 + $0x1270] sm:$0xff]  ;;  %v16692_v5 = vpack.c.bf16 %v749_v62, %v721_v61  ;;  %v748_v6 = vld [vmem:[#allocation5 + $0x12c0] sm:$0xff]  ;;  %v795_v8 = vld [vmem:[#allocation5 + $0x1438] sm:$0xff] }
  0xfa   :  { %16671 = vmatpush1.bf16.msra.mxu0 %v16670_v2  ;;  %v710_v2 = vld [vmem:[#allocation5 + $0x1190] sm:$0xff]  ;;  %v777_v9 = vld [vmem:[#allocation5 + $0x13a8] sm:$0xff]  ;;  %v16694_v12 = vpack.c.bf16 %v748_v6, %v720_v4  ;;  %v776_v18 = vld [vmem:[#allocation5 + $0x13a0] sm:$0xff] }
  0xfb   :  { %16673 = vmatprep.subr.bf16.mxu0 %v16672_v7  ;;  %v767_v7 = vld [vmem:[#allocation5 + $0x1358] sm:$0xff]  ;;  %v805_v10 = vld [vmem:[#allocation5 + $0x1488] sm:$0xff]  ;;  %v16374_v11 = vpack.c.bf16 %v738_v3, %v710_v2  ;;  %v804_v20 = vld [vmem:[#allocation5 + $0x1480] sm:$0xff] }
  0xfc   :  { %16355 = vmatpush1.bf16.msra.mxu1 %v16354_v13  ;;  %v16376_v13 = vpack.c.bf16 %v795_v8, %v767_v7  ;;  %v16696_v19 = vpack.c.bf16 %v805_v10, %v777_v9  ;;  %v851_v22 = vld [vmem:[#allocation5 + $0x15f8] sm:$0xff]  ;;  %v833_v23 = vld [vmem:[#allocation5 + $0x1568] sm:$0xff]  ;;  %v16698_v26 = vpack.c.bf16 %v804_v20, %v776_v18  ;;  %v832_v30 = vld [vmem:[#allocation5 + $0x1560] sm:$0xff] }
  0xfd   :  { %16357 = vmatprep.subr.bf16.mxu1 %v16356_v17  ;;  %v794_v17 = vld [vmem:[#allocation5 + $0x1430] sm:$0xff]  ;;  %v861_v24 = vld [vmem:[#allocation5 + $0x1648] sm:$0xff]  ;;  %v860_v32 = vld [vmem:[#allocation5 + $0x1640] sm:$0xff] }
  0xfe   :  { %16675 = vmatpush1.bf16.msra.mxu0 %v16674_v14  ;;  %v766_v14 = vld [vmem:[#allocation5 + $0x1350] sm:$0xff]  ;;  %v16700_v31 = vpack.c.bf16 %v861_v24, %v833_v23  ;;  %v907_v34 = vld [vmem:[#allocation5 + $0x17b8] sm:$0xff]  ;;  %v889_v35 = vld [vmem:[#allocation5 + $0x1728] sm:$0xff]  ;;  %v16702_v38 = vpack.c.bf16 %v860_v32, %v832_v30 }
  0xff   :  { %16677 = vmatprep.subr.bf16.mxu0 %v16676_v21  ;;  %v823_v21 = vld [vmem:[#allocation5 + $0x1518] sm:$0xff]  ;;  %v16378_v25 = vpack.c.bf16 %v794_v17, %v766_v14  ;;  %v917_v36 = vld [vmem:[#allocation5 + $0x1808] sm:$0xff]  ;;  %v888_v42 = vld [vmem:[#allocation5 + $0x1720] sm:$0xff] }
 0x100   :  { %16359 = vmatpush1.bf16.msra.mxu1 %v16358_v27  ;;  %v16380_v27 = vpack.c.bf16 %v851_v22, %v823_v21  ;;  %v16704_v43 = vpack.c.bf16 %v917_v36, %v889_v35  ;;  %v916_v44 = vld [vmem:[#allocation5 + $0x1800] sm:$0xff]  ;;  %v963_v46 = vld [vmem:[#allocation5 + $0x1978] sm:$0xff]  ;;  %v945_v47 = vld [vmem:[#allocation5 + $0x18e8] sm:$0xff] }
 0x101   :  { %16361 = vmatprep.subr.bf16.mxu1 %v16360_v29  ;;  %v850_v29 = vld [vmem:[#allocation5 + $0x15f0] sm:$0xff]  ;;  %v973_v48 = vld [vmem:[#allocation5 + $0x19c8] sm:$0xff]  ;;  %v16706_v50 = vpack.c.bf16 %v916_v44, %v888_v42  ;;  %v944_v54 = vld [vmem:[#allocation5 + $0x18e0] sm:$0xff] }
 0x102   :  { %16679 = vmatpush1.bf16.msra.mxu0 %v16678_v28  ;;  %v822_v28 = vld [vmem:[#allocation5 + $0x1510] sm:$0xff]  ;;  %v16708_v55 = vpack.c.bf16 %v973_v48, %v945_v47  ;;  %v972_v56 = vld [vmem:[#allocation5 + $0x19c0] sm:$0xff]  ;;  %v1019_v58 = vld [vmem:[#allocation5 + $0x1b38] sm:$0xff] }
 0x103   :  { %16681 = vmatprep.subr.bf16.mxu0 %v16680_v33  ;;  %v879_v33 = vld [vmem:[#allocation5 + $0x16d8] sm:$0xff]  ;;  %v16382_v37 = vpack.c.bf16 %v850_v29, %v822_v28  ;;  %v1001_v59 = vld [vmem:[#allocation5 + $0x1aa8] sm:$0xff]  ;;  %v16710_v62 = vpack.c.bf16 %v972_v56, %v944_v54  ;;  %v1000_v2 = vld [vmem:[#allocation5 + $0x1aa0] sm:$0xff] }
 0x104   :  { %16363 = vmatpush1.bf16.msra.mxu1 %v16362_v39  ;;  %v16384_v39 = vpack.c.bf16 %v907_v34, %v879_v33  ;;  %v1029_v60 = vld [vmem:[#allocation5 + $0x1b88] sm:$0xff]  ;;  %v1028_v4 = vld [vmem:[#allocation5 + $0x1b80] sm:$0xff] }
 0x105   :  { %16365 = vmatprep.subr.bf16.mxu1 %v16364_v41  ;;  %v906_v41 = vld [vmem:[#allocation5 + $0x17b0] sm:$0xff]  ;;  %v16712_v3 = vpack.c.bf16 %v1029_v60, %v1001_v59  ;;  %v181_v6 = vld [vmem:[#allocation5 + $0x108] sm:$0xff]  ;;  %v16714_v10 = vpack.c.bf16 %v1028_v4, %v1000_v2  ;;  %v164_v14 = vld [vmem:[#allocation5 + $0x80] sm:$0xff] }
 0x106   :  { %16683 = vmatpush1.bf16.msra.mxu0 %v16682_v40  ;;  %v878_v40 = vld [vmem:[#allocation5 + $0x16d0] sm:$0xff]  ;;  %v165_v7 = vld [vmem:[#allocation5 + $0x88] sm:$0xff]  ;;  %v192_v18 = vld [vmem:[#allocation5 + $0x160] sm:$0xff] }
 0x107   :  { %16685 = vmatprep.subr.bf16.mxu0 %v16684_v45  ;;  %v935_v45 = vld [vmem:[#allocation5 + $0x1898] sm:$0xff]  ;;  %v16386_v49 = vpack.c.bf16 %v906_v41, %v878_v40  ;;  %v193_v8 = vld [vmem:[#allocation5 + $0x168] sm:$0xff]  ;;  %v16782_v24 = vpack.c.bf16 %v192_v18, %v164_v14  ;;  %v220_v28 = vld [vmem:[#allocation5 + $0x240] sm:$0xff] }
 0x108   :  { %16367 = vmatpush1.bf16.msra.mxu1 %v16366_v51  ;;  %v16388_v51 = vpack.c.bf16 %v963_v46, %v935_v45  ;;  %v16780_v17 = vpack.c.bf16 %v193_v8, %v165_v7  ;;  %v237_v20 = vld [vmem:[#allocation5 + $0x2c8] sm:$0xff]  ;;  %v248_v30 = vld [vmem:[#allocation5 + $0x320] sm:$0xff] }
 0x109   :  { %16369 = vmatprep.subr.bf16.mxu1 %v16368_v53  ;;  %v962_v53 = vld [vmem:[#allocation5 + $0x1970] sm:$0xff]  ;;  %v221_v21 = vld [vmem:[#allocation5 + $0x248] sm:$0xff]  ;;  %v16786_v36 = vpack.c.bf16 %v248_v30, %v220_v28  ;;  %v276_v40 = vld [vmem:[#allocation5 + $0x400] sm:$0xff] }
 0x10a   :  { %16687 = vmatpush1.bf16.msra.mxu0 %v16686_v52  ;;  %v934_v52 = vld [vmem:[#allocation5 + $0x1890] sm:$0xff]  ;;  %v249_v22 = vld [vmem:[#allocation5 + $0x328] sm:$0xff]  ;;  %v304_v42 = vld [vmem:[#allocation5 + $0x4e0] sm:$0xff] }
 0x10b   :  { %16689 = vmatprep.subr.bf16.mxu0 %v16688_v57  ;;  %v991_v57 = vld [vmem:[#allocation5 + $0x1a58] sm:$0xff]  ;;  %v16390_v61 = vpack.c.bf16 %v962_v53, %v934_v52  ;;  %v16784_v29 = vpack.c.bf16 %v249_v22, %v221_v21  ;;  %v293_v32 = vld [vmem:[#allocation5 + $0x488] sm:$0xff]  ;;  %v16790_v47 = vpack.c.bf16 %v304_v42, %v276_v40  ;;  %v360_v53 = vld [vmem:[#allocation5 + $0x6a0] sm:$0xff] }
 0x10c   :  { %16371 = vmatpush1.bf16.msra.mxu1 %v16370_v63  ;;  %v16392_v63 = vpack.c.bf16 %v1019_v58, %v991_v57  ;;  %v277_v33 = vld [vmem:[#allocation5 + $0x408] sm:$0xff]  ;;  %v376_v60 = vld [vmem:[#allocation5 + $0x720] sm:$0xff] }
 0x10d   :  { %16373 = vmatprep.subr.bf16.mxu1 %v16372_v1  ;;  %v1018_v1 = vld [vmem:[#allocation5 + $0x1b30] sm:$0xff]  ;;  %v305_v34 = vld [vmem:[#allocation5 + $0x4e8] sm:$0xff]  ;;  %v432_v8 = vld [vmem:[#allocation5 + $0x8e0] sm:$0xff] }
 0x10e   :  { %16691 = vmatpush1.bf16.msra.mxu0 %v16690_v0  ;;  %v990_v0 = vld [vmem:[#allocation5 + $0x1a50] sm:$0xff]  ;;  %v16788_v41 = vpack.c.bf16 %v305_v34, %v277_v33  ;;  %v349_v44 = vld [vmem:[#allocation5 + $0x648] sm:$0xff]  ;;  %v488_v22 = vld [vmem:[#allocation5 + $0xaa0] sm:$0xff] }
 0x10f   :  { %16693 = vmatprep.subr.bf16.mxu0 %v16692_v5  ;;  %v153_v5 = vld [vmem:[#allocation5 + $0x28] sm:$0xff]  ;;  %v16394_v9 = vpack.c.bf16 %v1018_v1, %v990_v0  ;;  %v416_v0 = vld [vmem:[#allocation5 + $0x860] sm:$0xff] }
 0x110   :  { %16375 = vmatpush1.bf16.msra.mxu1 %v16374_v11  ;;  %v16396_v11 = vpack.c.bf16 %v181_v6, %v153_v5  ;;  %v333_v45 = vld [vmem:[#allocation5 + $0x5c8] sm:$0xff]  ;;  %v544_v34 = vld [vmem:[#allocation5 + $0xc60] sm:$0xff] }
 0x111   :  { %16377 = vmatprep.subr.bf16.mxu1 %v16376_v13  ;;  %v180_v13 = vld [vmem:[#allocation5 + $0x100] sm:$0xff]  ;;  %v361_v46 = vld [vmem:[#allocation5 + $0x6a8] sm:$0xff] }
 0x112   :  { %16695 = vmatpush1.bf16.msra.mxu0 %v16694_v12  ;;  %v152_v12 = vld [vmem:[#allocation5 + $0x20] sm:$0xff]  ;;  %v16792_v52 = vpack.c.bf16 %v361_v46, %v333_v45  ;;  %v377_v54 = vld [vmem:[#allocation5 + $0x728] sm:$0xff] }
 0x113   :  { %16697 = vmatprep.subr.bf16.mxu0 %v16696_v19  ;;  %v209_v19 = vld [vmem:[#allocation5 + $0x1e8] sm:$0xff]  ;;  %v16398_v23 = vpack.c.bf16 %v180_v13, %v152_v12  ;;  %v472_v12 = vld [vmem:[#allocation5 + $0xa20] sm:$0xff] }
 0x114   :  { %16379 = vmatpush1.bf16.msra.mxu1 %v16378_v25  ;;  %v16400_v25 = vpack.c.bf16 %v237_v20, %v209_v19  ;;  %v389_v56 = vld [vmem:[#allocation5 + $0x788] sm:$0xff]  ;;  %v600_v46 = vld [vmem:[#allocation5 + $0xe20] sm:$0xff] }
 0x115   :  { %16381 = vmatprep.subr.bf16.mxu1 %v16380_v27  ;;  %v236_v27 = vld [vmem:[#allocation5 + $0x2c0] sm:$0xff]  ;;  %v417_v57 = vld [vmem:[#allocation5 + $0x868] sm:$0xff] }
 0x116   :  { %16699 = vmatpush1.bf16.msra.mxu0 %v16698_v26  ;;  %v208_v26 = vld [vmem:[#allocation5 + $0x1e0] sm:$0xff]  ;;  %v433_v1 = vld [vmem:[#allocation5 + $0x8e8] sm:$0xff] }
 0x117   :  { %16701 = vmatprep.subr.bf16.mxu0 %v16700_v31  ;;  %v265_v31 = vld [vmem:[#allocation5 + $0x3a8] sm:$0xff]  ;;  %v16402_v35 = vpack.c.bf16 %v236_v27, %v208_v26  ;;  %v528_v26 = vld [vmem:[#allocation5 + $0xbe0] sm:$0xff] }
 0x118   :  { %16383 = vmatpush1.bf16.msra.mxu1 %v16382_v37  ;;  %v16404_v37 = vpack.c.bf16 %v293_v32, %v265_v31  ;;  %v461_v2 = vld [vmem:[#allocation5 + $0x9c8] sm:$0xff] }
 0x119   :  { %16385 = vmatprep.subr.bf16.mxu1 %v16384_v39  ;;  %v292_v39 = vld [vmem:[#allocation5 + $0x480] sm:$0xff]  ;;  %v473_v4 = vld [vmem:[#allocation5 + $0xa28] sm:$0xff]  ;;  %v16416_v7 = vpack.c.bf16 %v461_v2, %v433_v1 }
 0x11a   :  { %16703 = vmatpush1.bf16.msra.mxu0 %v16702_v38  ;;  %v264_v38 = vld [vmem:[#allocation5 + $0x3a0] sm:$0xff]  ;;  %v489_v13 = vld [vmem:[#allocation5 + $0xaa8] sm:$0xff] }
 0x11b   :  { %16705 = vmatprep.subr.bf16.mxu0 %v16704_v43  ;;  %v321_v43 = vld [vmem:[#allocation5 + $0x568] sm:$0xff] }
 0x11c   :  { %16387 = vmatpush1.bf16.msra.mxu1 %v16386_v49  ;;  %v16408_v48 = vpack.c.bf16 %v349_v44, %v321_v43  ;;  %v320_v49 = vld [vmem:[#allocation5 + $0x560] sm:$0xff]  ;;  %v517_v14 = vld [vmem:[#allocation5 + $0xb88] sm:$0xff] }
 0x11d   :  { %16389 = vmatprep.subr.bf16.mxu1 %v16388_v51  ;;  %v332_v51 = vld [vmem:[#allocation5 + $0x5c0] sm:$0xff]  ;;  %v529_v18 = vld [vmem:[#allocation5 + $0xbe8] sm:$0xff]  ;;  %v16420_v21 = vpack.c.bf16 %v517_v14, %v489_v13 }
 0x11e   :  { %16707 = vmatpush1.bf16.msra.mxu0 %v16706_v50  ;;  %v348_v50 = vld [vmem:[#allocation5 + $0x640] sm:$0xff]  ;;  %v545_v27 = vld [vmem:[#allocation5 + $0xc68] sm:$0xff] }
 0x11f   :  { %16709 = vmatprep.subr.bf16.mxu0 %v16708_v55  ;;  %v405_v55 = vld [vmem:[#allocation5 + $0x808] sm:$0xff]  ;;  %v16410_v58 = vpack.c.bf16 %v348_v50, %v320_v49  ;;  %v640_v49 = vld [vmem:[#allocation5 + $0xf60] sm:$0xff] }
 0x120   :  { %16391 = vmatpush1.bf16.msra.mxu1 %v16390_v61  ;;  %v16412_v59 = vpack.c.bf16 %v405_v55, %v377_v54  ;;  %v404_v61 = vld [vmem:[#allocation5 + $0x800] sm:$0xff]  ;;  %v573_v28 = vld [vmem:[#allocation5 + $0xd48] sm:$0xff] }
 0x121   :  { %16393 = vmatprep.subr.bf16.mxu1 %v16392_v63  ;;  %v16796_v63 = vpack.c.bf16 %v417_v57, %v389_v56  ;;  %v16414_v5 = vpack.c.bf16 %v404_v61, %v376_v60  ;;  %v585_v30 = vld [vmem:[#allocation5 + $0xda8] sm:$0xff]  ;;  %v16424_v33 = vpack.c.bf16 %v573_v28, %v545_v27  ;;  %v656_v57 = vld [vmem:[#allocation5 + $0xfe0] sm:$0xff] }
 0x122   :  { %16711 = vmatpush1.bf16.msra.mxu0 %v16710_v62  ;;  %v388_v62 = vld [vmem:[#allocation5 + $0x780] sm:$0xff]  ;;  %v629_v40 = vld [vmem:[#allocation5 + $0xf08] sm:$0xff] }
 0x123   :  { %16713 = vmatprep.subr.bf16.mxu0 %v16712_v3  ;;  %v445_v3 = vld [vmem:[#allocation5 + $0x948] sm:$0xff]  ;;  %v16798_v6 = vpack.c.bf16 %v416_v0, %v388_v62  ;;  %v696_v60 = vld [vmem:[#allocation5 + $0x1120] sm:$0xff] }
 0x124   :  { %16395 = vmatpush1.bf16.msra.mxu1 %v16394_v9  ;;  %v460_v9 = vld [vmem:[#allocation5 + $0x9c0] sm:$0xff]  ;;  %v641_v42 = vld [vmem:[#allocation5 + $0xf68] sm:$0xff] }
 0x125   :  { %16397 = vmatprep.subr.bf16.mxu1 %v16396_v11  ;;  %v16800_v11 = vpack.c.bf16 %v473_v4, %v445_v3  ;;  %v16418_v19 = vpack.c.bf16 %v460_v9, %v432_v8  ;;  %v657_v50 = vld [vmem:[#allocation5 + $0xfe8] sm:$0xff]  ;;  %v712_v4 = vld [vmem:[#allocation5 + $0x11a0] sm:$0xff] }
 0x126   :  { %16715 = vmatpush1.bf16.msra.mxu0 %v16714_v10  ;;  %v444_v10 = vld [vmem:[#allocation5 + $0x940] sm:$0xff]  ;;  %v713_v61 = vld [vmem:[#allocation5 + $0x11a8] sm:$0xff] }
 0x127   :  { %16781 = vmatprep.subr.bf16.mxu0 %v16780_v17  ;;  %1328 = vmatmul.mubr.f32.vlgmr.msra.gmra.mrb[2].mxu1 %v20204_v15  ;;  %v501_v17 = vld [vmem:[#allocation5 + $0xb08] sm:$0xff]  ;;  %v16802_v20 = vpack.c.bf16 %v472_v12, %v444_v10  ;;  %v752_v8 = vld [vmem:[#allocation5 + $0x12e0] sm:$0xff] }
 0x128   :  { %16399 = vmatpush1.bf16.msra.mxu1 %v16398_v23  ;;  %1398 = vmatprep.mubr.f32.mxu1 %v20200_v16  ;;  %v516_v23 = vld [vmem:[#allocation5 + $0xb80] sm:$0xff]  ;;  %v741_v62 = vld [vmem:[#allocation5 + $0x1288] sm:$0xff] }
 0x129   :  { %1683 = vmatmul.mubr.f32.vlgmr.msra.gmra.mrb[2].mxu0 %v20204_v15  ;;  %16401 = vmatprep.subr.bf16.mxu1 %v16400_v25  ;;  %v16406_v15 = vpack.c.bf16 %v292_v39, %v264_v38  ;;  %v16804_v25 = vpack.c.bf16 %v529_v18, %v501_v17  ;;  %v16422_v31 = vpack.c.bf16 %v516_v23, %v488_v22  ;;  %v584_v38 = vld [vmem:[#allocation5 + $0xda0] sm:$0xff]  ;;  %v601_v39 = vld [vmem:[#allocation5 + $0xe28] sm:$0xff] }
 0x12a   :  { %16783 = vmatpush1.bf16.msra.mxu0 %v16782_v24  ;;  %1824 = vmatprep.mubr.f32.mxu0 %v20200_v16  ;;  %v16794_v16 = vpack.c.bf16 %v360_v53, %v332_v51  ;;  %v500_v24 = vld [vmem:[#allocation5 + $0xb00] sm:$0xff]  ;;  %v16428_v45 = vpack.c.bf16 %v629_v40, %v601_v39  ;;  %v685_v51 = vld [vmem:[#allocation5 + $0x10c8] sm:$0xff]  ;;  %v16436_v3 = vpack.c.bf16 %v741_v62, %v713_v61 }
 0x12b   :  { %16785 = vmatprep.subr.bf16.mxu0 %v16784_v29  ;;  %v557_v29 = vld [vmem:[#allocation5 + $0xcc8] sm:$0xff]  ;;  %v16806_v32 = vpack.c.bf16 %v528_v26, %v500_v24  ;;  %v16432_v56 = vpack.c.bf16 %v685_v51, %v657_v50  ;;  %v768_v18 = vld [vmem:[#allocation5 + $0x1360] sm:$0xff] }
 0x12c   :  { %16403 = vmatpush1.bf16.msra.mxu1 %v16402_v35  ;;  %v572_v35 = vld [vmem:[#allocation5 + $0xd40] sm:$0xff]  ;;  %v697_v53 = vld [vmem:[#allocation5 + $0x1128] sm:$0xff] }
 0x12d   :  { %16405 = vmatprep.subr.bf16.mxu1 %v16404_v37  ;;  %v16808_v37 = vpack.c.bf16 %v585_v30, %v557_v29  ;;  %v16426_v43 = vpack.c.bf16 %v572_v35, %v544_v34  ;;  %v753_v0 = vld [vmem:[#allocation5 + $0x12e8] sm:$0xff]  ;;  %v808_v22 = vld [vmem:[#allocation5 + $0x14a0] sm:$0xff] }
 0x12e   :  { %16787 = vmatpush1.bf16.msra.mxu0 %v16786_v36  ;;  %v556_v36 = vld [vmem:[#allocation5 + $0xcc0] sm:$0xff]  ;;  %v769_v9 = vld [vmem:[#allocation5 + $0x1368] sm:$0xff] }
 0x12f   :  { %16789 = vmatprep.subr.bf16.mxu0 %v16788_v41  ;;  %v613_v41 = vld [vmem:[#allocation5 + $0xe88] sm:$0xff]  ;;  %v16810_v44 = vpack.c.bf16 %v584_v38, %v556_v36  ;;  %v824_v30 = vld [vmem:[#allocation5 + $0x1520] sm:$0xff] }
 0x130   :  { %16407 = vmatpush1.bf16.msra.mxu1 %v16406_v15  ;;  %v628_v15 = vld [vmem:[#allocation5 + $0xf00] sm:$0xff]  ;;  %v797_v10 = vld [vmem:[#allocation5 + $0x1448] sm:$0xff] }
 0x131   :  { %16409 = vmatprep.subr.bf16.mxu1 %v16408_v48  ;;  %v16812_v48 = vpack.c.bf16 %v641_v42, %v613_v41  ;;  %v16430_v54 = vpack.c.bf16 %v628_v15, %v600_v46  ;;  %v809_v12 = vld [vmem:[#allocation5 + $0x14a8] sm:$0xff]  ;;  %v16440_v17 = vpack.c.bf16 %v797_v10, %v769_v9  ;;  %v864_v34 = vld [vmem:[#allocation5 + $0x1660] sm:$0xff] }
 0x132   :  { %16791 = vmatpush1.bf16.msra.mxu0 %v16790_v47  ;;  %v612_v47 = vld [vmem:[#allocation5 + $0xe80] sm:$0xff]  ;;  %v825_v23 = vld [vmem:[#allocation5 + $0x1528] sm:$0xff] }
 0x133   :  { %16793 = vmatprep.subr.bf16.mxu0 %v16792_v52  ;;  %v669_v52 = vld [vmem:[#allocation5 + $0x1048] sm:$0xff]  ;;  %v16814_v55 = vpack.c.bf16 %v640_v49, %v612_v47  ;;  %v880_v42 = vld [vmem:[#allocation5 + $0x16e0] sm:$0xff] }
 0x134   :  { %16411 = vmatpush1.bf16.msra.mxu1 %v16410_v58  ;;  %v684_v58 = vld [vmem:[#allocation5 + $0x10c0] sm:$0xff]  ;;  %v853_v24 = vld [vmem:[#allocation5 + $0x1608] sm:$0xff] }
 0x135   :  { %16413 = vmatprep.subr.bf16.mxu1 %v16412_v59  ;;  %v16816_v59 = vpack.c.bf16 %v697_v53, %v669_v52  ;;  %v16434_v1 = vpack.c.bf16 %v684_v58, %v656_v57  ;;  %v865_v26 = vld [vmem:[#allocation5 + $0x1668] sm:$0xff]  ;;  %v16444_v29 = vpack.c.bf16 %v853_v24, %v825_v23  ;;  %v920_v46 = vld [vmem:[#allocation5 + $0x1820] sm:$0xff] }
 0x136   :  { %16795 = vmatpush1.bf16.msra.mxu0 %v16794_v16  ;;  %v668_v16 = vld [vmem:[#allocation5 + $0x1040] sm:$0xff]  ;;  %v881_v35 = vld [vmem:[#allocation5 + $0x16e8] sm:$0xff] }
 0x137   :  { %16797 = vmatprep.subr.bf16.mxu0 %v16796_v63  ;;  %v725_v63 = vld [vmem:[#allocation5 + $0x1208] sm:$0xff]  ;;  %v16818_v2 = vpack.c.bf16 %v696_v60, %v668_v16  ;;  %v936_v53 = vld [vmem:[#allocation5 + $0x18a0] sm:$0xff] }
 0x138   :  { %16415 = vmatpush1.bf16.msra.mxu1 %v16414_v5  ;;  %v740_v5 = vld [vmem:[#allocation5 + $0x1280] sm:$0xff]  ;;  %v909_v36 = vld [vmem:[#allocation5 + $0x17c8] sm:$0xff] }
 0x139   :  { %16417 = vmatprep.subr.bf16.mxu1 %v16416_v7  ;;  %v16820_v7 = vpack.c.bf16 %v753_v0, %v725_v63  ;;  %v16438_v13 = vpack.c.bf16 %v740_v5, %v712_v4  ;;  %v921_v38 = vld [vmem:[#allocation5 + $0x1828] sm:$0xff]  ;;  %v16448_v41 = vpack.c.bf16 %v909_v36, %v881_v35  ;;  %v976_v57 = vld [vmem:[#allocation5 + $0x19e0] sm:$0xff]  ;;  %v155_v5 = vld [vmem:[#allocation5 + $0x38] sm:$0xff] }
 0x13a   :  { %16799 = vmatpush1.bf16.msra.mxu0 %v16798_v6  ;;  %v724_v6 = vld [vmem:[#allocation5 + $0x1200] sm:$0xff]  ;;  %v937_v15 = vld [vmem:[#allocation5 + $0x18a8] sm:$0xff] }
 0x13b   :  { %16801 = vmatprep.subr.bf16.mxu0 %v16800_v11  ;;  %v781_v11 = vld [vmem:[#allocation5 + $0x13c8] sm:$0xff]  ;;  %v16822_v14 = vpack.c.bf16 %v752_v8, %v724_v6  ;;  %v992_v0 = vld [vmem:[#allocation5 + $0x1a60] sm:$0xff]  ;;  %v183_v6 = vld [vmem:[#allocation5 + $0x118] sm:$0xff] }
 0x13c   :  { %16419 = vmatpush1.bf16.msra.mxu1 %v16418_v19  ;;  %v796_v19 = vld [vmem:[#allocation5 + $0x1440] sm:$0xff]  ;;  %v965_v47 = vld [vmem:[#allocation5 + $0x1988] sm:$0xff] }
 0x13d   :  { %16421 = vmatprep.subr.bf16.mxu1 %v16420_v21  ;;  %v16824_v21 = vpack.c.bf16 %v809_v12, %v781_v11  ;;  %v16442_v27 = vpack.c.bf16 %v796_v19, %v768_v18  ;;  %v977_v49 = vld [vmem:[#allocation5 + $0x19e8] sm:$0xff]  ;;  %v16452_v52 = vpack.c.bf16 %v965_v47, %v937_v15  ;;  %v1032_v4 = vld [vmem:[#allocation5 + $0x1ba0] sm:$0xff]  ;;  %v16460_v11 = vpack.c.bf16 %v183_v6, %v155_v5  ;;  %v154_v12 = vld [vmem:[#allocation5 + $0x30] sm:$0xff] }
 0x13e   :  { %16803 = vmatpush1.bf16.msra.mxu0 %v16802_v20  ;;  %v780_v20 = vld [vmem:[#allocation5 + $0x13c0] sm:$0xff]  ;;  %v993_v58 = vld [vmem:[#allocation5 + $0x1a68] sm:$0xff]  ;;  %v211_v19 = vld [vmem:[#allocation5 + $0x1f8] sm:$0xff] }
 0x13f   :  { %16805 = vmatprep.subr.bf16.mxu0 %v16804_v25  ;;  %v837_v25 = vld [vmem:[#allocation5 + $0x1588] sm:$0xff]  ;;  %v16826_v28 = vpack.c.bf16 %v808_v22, %v780_v20  ;;  %v196_v18 = vld [vmem:[#allocation5 + $0x180] sm:$0xff]  ;;  %v239_v20 = vld [vmem:[#allocation5 + $0x2d8] sm:$0xff] }
 0x140   :  { %16423 = vmatpush1.bf16.msra.mxu1 %v16422_v31  ;;  %v852_v31 = vld [vmem:[#allocation5 + $0x1600] sm:$0xff]  ;;  %v1021_v16 = vld [vmem:[#allocation5 + $0x1b48] sm:$0xff] }
 0x141   :  { %16425 = vmatprep.subr.bf16.mxu1 %v16424_v33  ;;  %v16828_v33 = vpack.c.bf16 %v865_v26, %v837_v25  ;;  %v16446_v39 = vpack.c.bf16 %v852_v31, %v824_v30  ;;  %v1033_v60 = vld [vmem:[#allocation5 + $0x1ba8] sm:$0xff]  ;;  %v16456_v63 = vpack.c.bf16 %v1021_v16, %v993_v58  ;;  %v16464_v25 = vpack.c.bf16 %v239_v20, %v211_v19  ;;  %v210_v26 = vld [vmem:[#allocation5 + $0x1f0] sm:$0xff]  ;;  %v252_v30 = vld [vmem:[#allocation5 + $0x340] sm:$0xff] }
 0x142   :  { %16807 = vmatpush1.bf16.msra.mxu0 %v16806_v32  ;;  %v836_v32 = vld [vmem:[#allocation5 + $0x1580] sm:$0xff]  ;;  %v197_v8 = vld [vmem:[#allocation5 + $0x188] sm:$0xff]  ;;  %v267_v31 = vld [vmem:[#allocation5 + $0x3b8] sm:$0xff] }
 0x143   :  { %16809 = vmatprep.subr.bf16.mxu0 %v16808_v37  ;;  %v893_v37 = vld [vmem:[#allocation5 + $0x1748] sm:$0xff]  ;;  %v16830_v40 = vpack.c.bf16 %v864_v34, %v836_v32  ;;  %v295_v32 = vld [vmem:[#allocation5 + $0x498] sm:$0xff] }
 0x144   :  { %16427 = vmatpush1.bf16.msra.mxu1 %v16426_v43  ;;  %v908_v43 = vld [vmem:[#allocation5 + $0x17c0] sm:$0xff]  ;;  %v253_v22 = vld [vmem:[#allocation5 + $0x348] sm:$0xff] }
 0x145   :  { %16429 = vmatprep.subr.bf16.mxu1 %v16428_v45  ;;  %v16832_v45 = vpack.c.bf16 %v921_v38, %v893_v37  ;;  %v16450_v50 = vpack.c.bf16 %v908_v43, %v880_v42  ;;  %v281_v34 = vld [vmem:[#allocation5 + $0x428] sm:$0xff]  ;;  %v16468_v38 = vpack.c.bf16 %v295_v32, %v267_v31  ;;  %v308_v43 = vld [vmem:[#allocation5 + $0x500] sm:$0xff] }
 0x146   :  { %16811 = vmatpush1.bf16.msra.mxu0 %v16810_v44  ;;  %v892_v44 = vld [vmem:[#allocation5 + $0x1740] sm:$0xff]  ;;  %v309_v35 = vld [vmem:[#allocation5 + $0x508] sm:$0xff] }
 0x147   :  { %16813 = vmatprep.subr.bf16.mxu0 %v16812_v48  ;;  %v949_v48 = vld [vmem:[#allocation5 + $0x1908] sm:$0xff]  ;;  %v16834_v51 = vpack.c.bf16 %v920_v46, %v892_v44  ;;  %v16916_v42 = vpack.c.bf16 %v309_v35, %v281_v34  ;;  %v323_v44 = vld [vmem:[#allocation5 + $0x578] sm:$0xff] }
 0x148   :  { %16431 = vmatpush1.bf16.msra.mxu1 %v16430_v54  ;;  %v964_v54 = vld [vmem:[#allocation5 + $0x1980] sm:$0xff]  ;;  %v20218_v46 = vld [vmem:[#allocation2 + $0x8] sm:$0xff]  ;;  %v337_v15 = vld [vmem:[#allocation5 + $0x5e8] sm:$0xff] }
 0x149   :  { %16433 = vmatprep.subr.bf16.mxu1 %v16432_v56  ;;  %v16836_v56 = vpack.c.bf16 %v977_v49, %v949_v48  ;;  %v16454_v61 = vpack.c.bf16 %v964_v54, %v936_v53  ;;  %v365_v47 = vld [vmem:[#allocation5 + $0x6c8] sm:$0xff]  ;;  %v336_v53 = vld [vmem:[#allocation5 + $0x5e0] sm:$0xff] }
 0x14a   :  { %16815 = vmatpush1.bf16.msra.mxu0 %v16814_v55  ;;  %v948_v55 = vld [vmem:[#allocation5 + $0x1900] sm:$0xff]  ;;  %v16920_v54 = vpack.c.bf16 %v365_v47, %v337_v15  ;;  %v393_v58 = vld [vmem:[#allocation5 + $0x7a8] sm:$0xff] }
 0x14b   :  { %16817 = vmatprep.subr.bf16.mxu0 %v16816_v59  ;;  %v1005_v59 = vld [vmem:[#allocation5 + $0x1ac8] sm:$0xff]  ;;  %v16838_v62 = vpack.c.bf16 %v976_v57, %v948_v55  ;;  %v364_v55 = vld [vmem:[#allocation5 + $0x6c0] sm:$0xff]  ;;  %v407_v57 = vld [vmem:[#allocation5 + $0x818] sm:$0xff] }
 0x14c   :  { %16435 = vmatpush1.bf16.msra.mxu1 %v16434_v1  ;;  %v1020_v1 = vld [vmem:[#allocation5 + $0x1b40] sm:$0xff]  ;;  %v421_v16 = vld [vmem:[#allocation5 + $0x888] sm:$0xff] }
 0x14d   :  { %16437 = vmatprep.subr.bf16.mxu1 %v16436_v3  ;;  %v16840_v3 = vpack.c.bf16 %v1033_v60, %v1005_v59  ;;  %v16458_v9 = vpack.c.bf16 %v1020_v1, %v992_v0  ;;  %v16922_v60 = vpack.c.bf16 %v364_v55, %v336_v53  ;;  %v392_v0 = vld [vmem:[#allocation5 + $0x7a0] sm:$0xff]  ;;  %v16924_v1 = vpack.c.bf16 %v421_v16, %v393_v58  ;;  %v449_v5 = vld [vmem:[#allocation5 + $0x968] sm:$0xff]  ;;  %v687_v55 = vld [vmem:[#allocation5 + $0x10d8] sm:$0xff] }
 0x14e   :  { %16819 = vmatpush1.bf16.msra.mxu0 %v16818_v2  ;;  %v1004_v2 = vld [vmem:[#allocation5 + $0x1ac0] sm:$0xff]  ;;  %v477_v6 = vld [vmem:[#allocation5 + $0xa48] sm:$0xff]  ;;  %v658_v58 = vld [vmem:[#allocation5 + $0xff0] sm:$0xff] }
 0x14f   :  { %16821 = vmatprep.subr.bf16.mxu0 %v16820_v7  ;;  %v169_v7 = vld [vmem:[#allocation5 + $0xa8] sm:$0xff]  ;;  %v16842_v10 = vpack.c.bf16 %v1032_v4, %v1004_v2  ;;  %v420_v2 = vld [vmem:[#allocation5 + $0x880] sm:$0xff]  ;;  %v463_v4 = vld [vmem:[#allocation5 + $0x9d8] sm:$0xff] }
 0x150   :  { %16439 = vmatpush1.bf16.msra.mxu1 %v16438_v13  ;;  %v182_v13 = vld [vmem:[#allocation5 + $0x110] sm:$0xff]  ;;  %v505_v19 = vld [vmem:[#allocation5 + $0xb28] sm:$0xff]  ;;  %v644_v53 = vld [vmem:[#allocation5 + $0xf80] sm:$0xff] }
 0x151   :  { %16441 = vmatprep.subr.bf16.mxu1 %v16440_v17  ;;  %v16908_v17 = vpack.c.bf16 %v197_v8, %v169_v7  ;;  %v16462_v23 = vpack.c.bf16 %v182_v13, %v154_v12  ;;  %v16926_v8 = vpack.c.bf16 %v420_v2, %v392_v0  ;;  %v448_v12 = vld [vmem:[#allocation5 + $0x960] sm:$0xff]  ;;  %v16928_v13 = vpack.c.bf16 %v477_v6, %v449_v5  ;;  %v533_v20 = vld [vmem:[#allocation5 + $0xc08] sm:$0xff]  ;;  %v715_v0 = vld [vmem:[#allocation5 + $0x11b8] sm:$0xff] }
 0x152   :  { %16823 = vmatpush1.bf16.msra.mxu0 %v16822_v14  ;;  %v168_v14 = vld [vmem:[#allocation5 + $0xa0] sm:$0xff]  ;;  %v561_v31 = vld [vmem:[#allocation5 + $0xce8] sm:$0xff]  ;;  %v714_v5 = vld [vmem:[#allocation5 + $0x11b0] sm:$0xff] }
 0x153   :  { %16825 = vmatprep.subr.bf16.mxu0 %v16824_v21  ;;  %v225_v21 = vld [vmem:[#allocation5 + $0x268] sm:$0xff]  ;;  %v16910_v24 = vpack.c.bf16 %v196_v18, %v168_v14  ;;  %v476_v14 = vld [vmem:[#allocation5 + $0xa40] sm:$0xff]  ;;  %v519_v18 = vld [vmem:[#allocation5 + $0xb98] sm:$0xff] }
 0x154   :  { %16443 = vmatpush1.bf16.msra.mxu1 %v16442_v27  ;;  %v238_v27 = vld [vmem:[#allocation5 + $0x2d0] sm:$0xff]  ;;  %v589_v32 = vld [vmem:[#allocation5 + $0xdc8] sm:$0xff] }
 0x155   :  { %16445 = vmatprep.subr.bf16.mxu1 %v16444_v29  ;;  %v16912_v29 = vpack.c.bf16 %v253_v22, %v225_v21  ;;  %v16466_v36 = vpack.c.bf16 %v238_v27, %v210_v26  ;;  %v16930_v22 = vpack.c.bf16 %v476_v14, %v448_v12  ;;  %v504_v26 = vld [vmem:[#allocation5 + $0xb20] sm:$0xff]  ;;  %v16932_v27 = vpack.c.bf16 %v533_v20, %v505_v19  ;;  %v729_v2 = vld [vmem:[#allocation5 + $0x1228] sm:$0xff]  ;;  %v742_v6 = vld [vmem:[#allocation5 + $0x1290] sm:$0xff] }
 0x156   :  { %16827 = vmatpush1.bf16.msra.mxu0 %v16826_v28  ;;  %v224_v28 = vld [vmem:[#allocation5 + $0x260] sm:$0xff]  ;;  %v785_v14 = vld [vmem:[#allocation5 + $0x13e8] sm:$0xff]  ;;  %v770_v19 = vld [vmem:[#allocation5 + $0x1370] sm:$0xff] }
 0x157   :  { %16829 = vmatprep.subr.bf16.mxu0 %v16828_v33  ;;  %v20214_v33 = vld [vmem:[#allocation2] sm:$0xff]  ;;  %v16914_v37 = vpack.c.bf16 %v252_v30, %v224_v28  ;;  %v532_v28 = vld [vmem:[#allocation5 + $0xc00] sm:$0xff]  ;;  %v575_v30 = vld [vmem:[#allocation5 + $0xd58] sm:$0xff] }
 0x158   :  { %16447 = vmatpush1.bf16.msra.mxu1 %v16446_v39  ;;  %v266_v39 = vld [vmem:[#allocation5 + $0x3b0] sm:$0xff]  ;;  %v16934_v35 = vpack.c.bf16 %v532_v28, %v504_v26  ;;  %v841_v28 = vld [vmem:[#allocation5 + $0x15a8] sm:$0xff] }
 0x159   :  { %16449 = vmatprep.subr.bf16.mxu1 %v16448_v41  ;;  %v280_v41 = vld [vmem:[#allocation5 + $0x420] sm:$0xff]  ;;  %v798_v20 = vld [vmem:[#allocation5 + $0x1450] sm:$0xff] }
 0x15a   :  { %16831 = vmatpush1.bf16.msra.mxu0 %v16830_v40  ;;  %v294_v40 = vld [vmem:[#allocation5 + $0x490] sm:$0xff]  ;;  %v16918_v49 = vpack.c.bf16 %v308_v43, %v280_v41  ;;  %v588_v41 = vld [vmem:[#allocation5 + $0xdc0] sm:$0xff]  ;;  %v631_v43 = vld [vmem:[#allocation5 + $0xf18] sm:$0xff] }
 0x15b   :  { %16833 = vmatprep.subr.bf16.mxu0 %v16832_v45  ;;  %v351_v45 = vld [vmem:[#allocation5 + $0x658] sm:$0xff]  ;;  %v16470_v48 = vpack.c.bf16 %v294_v40, %v266_v39  ;;  %v560_v39 = vld [vmem:[#allocation5 + $0xce0] sm:$0xff]  ;;  %v16936_v40 = vpack.c.bf16 %v589_v32, %v561_v31  ;;  %v826_v31 = vld [vmem:[#allocation5 + $0x1530] sm:$0xff] }
 0x15c   :  { %16451 = vmatpush1.bf16.msra.mxu1 %v16450_v50  ;;  %v16472_v50 = vpack.c.bf16 %v351_v45, %v323_v44  ;;  %v617_v44 = vld [vmem:[#allocation5 + $0xea8] sm:$0xff]  ;;  %v16938_v47 = vpack.c.bf16 %v588_v41, %v560_v39  ;;  %v854_v32 = vld [vmem:[#allocation5 + $0x1610] sm:$0xff] }
 0x15d   :  { %16453 = vmatprep.subr.bf16.mxu1 %v16452_v52  ;;  %v350_v52 = vld [vmem:[#allocation5 + $0x650] sm:$0xff]  ;;  %v645_v45 = vld [vmem:[#allocation5 + $0xf88] sm:$0xff] }
 0x15e   :  { %16835 = vmatpush1.bf16.msra.mxu0 %v16834_v51  ;;  %v322_v51 = vld [vmem:[#allocation5 + $0x570] sm:$0xff]  ;;  %v897_v41 = vld [vmem:[#allocation5 + $0x1768] sm:$0xff] }
 0x15f   :  { %16837 = vmatprep.subr.bf16.mxu0 %v16836_v56  ;;  %v379_v56 = vld [vmem:[#allocation5 + $0x738] sm:$0xff]  ;;  %v16474_v59 = vpack.c.bf16 %v350_v52, %v322_v51  ;;  %v616_v51 = vld [vmem:[#allocation5 + $0xea0] sm:$0xff]  ;;  %v16940_v52 = vpack.c.bf16 %v645_v45, %v617_v44  ;;  %v882_v44 = vld [vmem:[#allocation5 + $0x16f0] sm:$0xff] }
 0x160   :  { %16455 = vmatpush1.bf16.msra.mxu1 %v16454_v61  ;;  %v16476_v61 = vpack.c.bf16 %v407_v57, %v379_v56  ;;  %v673_v56 = vld [vmem:[#allocation5 + $0x1068] sm:$0xff]  ;;  %v910_v45 = vld [vmem:[#allocation5 + $0x17d0] sm:$0xff] }
 0x161   :  { %16457 = vmatprep.subr.bf16.mxu1 %v16456_v63  ;;  %v406_v63 = vld [vmem:[#allocation5 + $0x810] sm:$0xff]  ;;  %v701_v57 = vld [vmem:[#allocation5 + $0x1148] sm:$0xff] }
 0x162   :  { %16839 = vmatpush1.bf16.msra.mxu0 %v16838_v62  ;;  %v378_v62 = vld [vmem:[#allocation5 + $0x730] sm:$0xff] }
 0x163   :  { %16841 = vmatprep.subr.bf16.mxu0 %v16840_v3  ;;  %v435_v3 = vld [vmem:[#allocation5 + $0x8f8] sm:$0xff]  ;;  %v16478_v7 = vpack.c.bf16 %v406_v63, %v378_v62  ;;  %v16942_v62 = vpack.c.bf16 %v644_v53, %v616_v51  ;;  %v953_v53 = vld [vmem:[#allocation5 + $0x1928] sm:$0xff] }
 0x164   :  { %16459 = vmatpush1.bf16.msra.mxu1 %v16458_v9  ;;  %v16480_v9 = vpack.c.bf16 %v463_v4, %v435_v3  ;;  %v16944_v3 = vpack.c.bf16 %v701_v57, %v673_v56  ;;  %v757_v4 = vld [vmem:[#allocation5 + $0x1308] sm:$0xff]  ;;  %v938_v56 = vld [vmem:[#allocation5 + $0x18b0] sm:$0xff] }
 0x165   :  { %16461 = vmatprep.subr.bf16.mxu1 %v16460_v11  ;;  %v462_v11 = vld [vmem:[#allocation5 + $0x9d0] sm:$0xff] }
 0x166   :  { %16843 = vmatpush1.bf16.msra.mxu0 %v16842_v10  ;;  %v434_v10 = vld [vmem:[#allocation5 + $0x8f0] sm:$0xff] }
 0x167   :  { %16909 = vmatprep.subr.bf16.mxu0 %v16908_v17  ;;  %1399 = vmatmul.mubr.f32.vlgmr.msra.gmra.mrb[4].mxu1 %v20214_v33  ;;  %v491_v17 = vld [vmem:[#allocation5 + $0xab8] sm:$0xff]  ;;  %v16482_v21 = vpack.c.bf16 %v462_v11, %v434_v10  ;;  %v966_v57 = vld [vmem:[#allocation5 + $0x1990] sm:$0xff] }
 0x168   :  { %16463 = vmatpush1.bf16.msra.mxu1 %v16462_v23  ;;  %1469 = vmatprep.mubr.f32.mxu1 %v20218_v46  ;;  %v16484_v23 = vpack.c.bf16 %v519_v18, %v491_v17  ;;  %v771_v10 = vld [vmem:[#allocation5 + $0x1378] sm:$0xff]  ;;  %v813_v17 = vld [vmem:[#allocation5 + $0x14c8] sm:$0xff]  ;;  %v16948_v18 = vpack.c.bf16 %v757_v4, %v729_v2  ;;  %v1022_v4 = vld [vmem:[#allocation5 + $0x1b50] sm:$0xff] }
 0x169   :  { %1825 = vmatmul.mubr.f32.vlgmr.msra.gmra.mrb[4].mxu0 %v20214_v33  ;;  %16465 = vmatprep.subr.bf16.mxu1 %v16464_v25  ;;  %v518_v25 = vld [vmem:[#allocation5 + $0xb90] sm:$0xff]  ;;  %v799_v11 = vld [vmem:[#allocation5 + $0x1458] sm:$0xff] }
 0x16a   :  { %16911 = vmatpush1.bf16.msra.mxu0 %v16910_v24  ;;  %1966 = vmatprep.mubr.f32.mxu0 %v20218_v46  ;;  %v490_v24 = vld [vmem:[#allocation5 + $0xab0] sm:$0xff] }
 0x16b   :  { %16913 = vmatprep.subr.bf16.mxu0 %v16912_v29  ;;  %v547_v29 = vld [vmem:[#allocation5 + $0xc78] sm:$0xff]  ;;  %v16486_v34 = vpack.c.bf16 %v518_v25, %v490_v24 }
 0x16c   :  { %16467 = vmatpush1.bf16.msra.mxu1 %v16466_v36  ;;  %v16488_v36 = vpack.c.bf16 %v575_v30, %v547_v29  ;;  %v827_v24 = vld [vmem:[#allocation5 + $0x1538] sm:$0xff]  ;;  %v869_v29 = vld [vmem:[#allocation5 + $0x1688] sm:$0xff]  ;;  %v16952_v30 = vpack.c.bf16 %v813_v17, %v785_v14  ;;  %v158_v17 = vld [vmem:[#allocation5 + $0x50] sm:$0xff] }
 0x16d   :  { %16469 = vmatprep.subr.bf16.mxu1 %v16468_v38  ;;  %v574_v38 = vld [vmem:[#allocation5 + $0xd50] sm:$0xff]  ;;  %v855_v25 = vld [vmem:[#allocation5 + $0x1618] sm:$0xff] }
 0x16e   :  { %16915 = vmatpush1.bf16.msra.mxu0 %v16914_v37  ;;  %v546_v37 = vld [vmem:[#allocation5 + $0xc70] sm:$0xff] }
 0x16f   :  { %16917 = vmatprep.subr.bf16.mxu0 %v16916_v42  ;;  %v603_v42 = vld [vmem:[#allocation5 + $0xe38] sm:$0xff]  ;;  %v16490_v15 = vpack.c.bf16 %v574_v38, %v546_v37 }
 0x170   :  { %16471 = vmatpush1.bf16.msra.mxu1 %v16470_v48  ;;  %v16492_v48 = vpack.c.bf16 %v631_v43, %v603_v42  ;;  %v883_v37 = vld [vmem:[#allocation5 + $0x16f8] sm:$0xff]  ;;  %v925_v42 = vld [vmem:[#allocation5 + $0x1848] sm:$0xff]  ;;  %v16956_v43 = vpack.c.bf16 %v869_v29, %v841_v28  ;;  %v214_v29 = vld [vmem:[#allocation5 + $0x210] sm:$0xff] }
 0x171   :  { %16473 = vmatprep.subr.bf16.mxu1 %v16472_v50  ;;  %v630_v50 = vld [vmem:[#allocation5 + $0xf10] sm:$0xff]  ;;  %v911_v38 = vld [vmem:[#allocation5 + $0x17d8] sm:$0xff] }
 0x172   :  { %16919 = vmatpush1.bf16.msra.mxu0 %v16918_v49  ;;  %v602_v49 = vld [vmem:[#allocation5 + $0xe30] sm:$0xff] }
 0x173   :  { %16921 = vmatprep.subr.bf16.mxu0 %v16920_v54  ;;  %v659_v54 = vld [vmem:[#allocation5 + $0xff8] sm:$0xff]  ;;  %v16494_v16 = vpack.c.bf16 %v630_v50, %v602_v49 }
 0x174   :  { %16475 = vmatpush1.bf16.msra.mxu1 %v16474_v59  ;;  %v686_v59 = vld [vmem:[#allocation5 + $0x10d0] sm:$0xff]  ;;  %v16496_v63 = vpack.c.bf16 %v687_v55, %v659_v54  ;;  %v939_v49 = vld [vmem:[#allocation5 + $0x18b8] sm:$0xff]  ;;  %v981_v54 = vld [vmem:[#allocation5 + $0x1a08] sm:$0xff]  ;;  %v16960_v55 = vpack.c.bf16 %v925_v42, %v897_v41 }
 0x175   :  { %16477 = vmatprep.subr.bf16.mxu1 %v16476_v61  ;;  %v700_v61 = vld [vmem:[#allocation5 + $0x1140] sm:$0xff]  ;;  %v967_v50 = vld [vmem:[#allocation5 + $0x1998] sm:$0xff]  ;;  %v16964_v2 = vpack.c.bf16 %v981_v54, %v953_v53  ;;  %v313_v41 = vld [vmem:[#allocation5 + $0x528] sm:$0xff] }
 0x176   :  { %16923 = vmatpush1.bf16.msra.mxu0 %v16922_v60  ;;  %v672_v60 = vld [vmem:[#allocation5 + $0x1060] sm:$0xff]  ;;  %v270_v42 = vld [vmem:[#allocation5 + $0x3d0] sm:$0xff] }
 0x177   :  { %16925 = vmatprep.subr.bf16.mxu0 %v16924_v1  ;;  %v743_v1 = vld [vmem:[#allocation5 + $0x1298] sm:$0xff]  ;;  %v16946_v12 = vpack.c.bf16 %v700_v61, %v672_v60  ;;  %v326_v54 = vld [vmem:[#allocation5 + $0x590] sm:$0xff] }
 0x178   :  { %16479 = vmatpush1.bf16.msra.mxu1 %v16478_v7  ;;  %v16498_v7 = vpack.c.bf16 %v686_v59, %v658_v58  ;;  %v16514_v58 = vpack.c.bf16 %v910_v45, %v882_v44  ;;  %v980_v59 = vld [vmem:[#allocation5 + $0x1a00] sm:$0xff]  ;;  %v995_v60 = vld [vmem:[#allocation5 + $0x1a78] sm:$0xff] }
 0x179   :  { %16481 = vmatprep.subr.bf16.mxu1 %v16480_v9  ;;  %v756_v9 = vld [vmem:[#allocation5 + $0x1300] sm:$0xff]  ;;  %v1023_v61 = vld [vmem:[#allocation5 + $0x1b58] sm:$0xff] }
 0x17a   :  { %16927 = vmatpush1.bf16.msra.mxu0 %v16926_v8  ;;  %v728_v8 = vld [vmem:[#allocation5 + $0x1220] sm:$0xff] }
 0x17b   :  { %16929 = vmatprep.subr.bf16.mxu0 %v16928_v13  ;;  %v16500_v13 = vpack.c.bf16 %v743_v1, %v715_v0  ;;  %v16950_v26 = vpack.c.bf16 %v756_v9, %v728_v8  ;;  %v1009_v0 = vld [vmem:[#allocation5 + $0x1ae8] sm:$0xff]  ;;  %v159_v8 = vld [vmem:[#allocation5 + $0x58] sm:$0xff]  ;;  %v284_v45 = vld [vmem:[#allocation5 + $0x440] sm:$0xff] }
 0x17c   :  { %16483 = vmatpush1.bf16.msra.mxu1 %v16482_v21  ;;  %v16502_v21 = vpack.c.bf16 %v742_v6, %v714_v5  ;;  %v1037_v1 = vld [vmem:[#allocation5 + $0x1bc8] sm:$0xff]  ;;  %v16518_v5 = vpack.c.bf16 %v966_v57, %v938_v56  ;;  %v1008_v6 = vld [vmem:[#allocation5 + $0x1ae0] sm:$0xff]  ;;  %v187_v9 = vld [vmem:[#allocation5 + $0x138] sm:$0xff] }
 0x17d   :  { %16485 = vmatprep.subr.bf16.mxu1 %v16484_v23  ;;  %v812_v23 = vld [vmem:[#allocation5 + $0x14c0] sm:$0xff]  ;;  %v16968_v14 = vpack.c.bf16 %v1037_v1, %v1009_v0  ;;  %v382_v0 = vld [vmem:[#allocation5 + $0x750] sm:$0xff] }
 0x17e   :  { %16931 = vmatpush1.bf16.msra.mxu0 %v16930_v22  ;;  %v784_v22 = vld [vmem:[#allocation5 + $0x13e0] sm:$0xff]  ;;  %v410_v1 = vld [vmem:[#allocation5 + $0x830] sm:$0xff] }
 0x17f   :  { %16933 = vmatprep.subr.bf16.mxu0 %v16932_v27  ;;  %v16504_v27 = vpack.c.bf16 %v799_v11, %v771_v10  ;;  %v16954_v39 = vpack.c.bf16 %v812_v23, %v784_v22  ;;  %v16520_v11 = vpack.c.bf16 %v1023_v61, %v995_v60  ;;  %v215_v22 = vld [vmem:[#allocation5 + $0x218] sm:$0xff]  ;;  %v340_v56 = vld [vmem:[#allocation5 + $0x600] sm:$0xff]  ;;  %v397_v61 = vld [vmem:[#allocation5 + $0x7c8] sm:$0xff] }
 0x180   :  { %16487 = vmatpush1.bf16.msra.mxu1 %v16486_v34  ;;  %v16506_v34 = vpack.c.bf16 %v798_v20, %v770_v19  ;;  %v172_v20 = vld [vmem:[#allocation5 + $0xc0] sm:$0xff]  ;;  %v243_v23 = vld [vmem:[#allocation5 + $0x2f8] sm:$0xff] }
 0x181   :  { %16489 = vmatprep.subr.bf16.mxu1 %v16488_v36  ;;  %v868_v36 = vld [vmem:[#allocation5 + $0x1680] sm:$0xff] }
 0x182   :  { %16935 = vmatpush1.bf16.msra.mxu0 %v16934_v35  ;;  %v840_v35 = vld [vmem:[#allocation5 + $0x15a0] sm:$0xff] }
 0x183   :  { %16937 = vmatprep.subr.bf16.mxu0 %v16936_v40  ;;  %v16508_v40 = vpack.c.bf16 %v855_v25, %v827_v24  ;;  %v16958_v51 = vpack.c.bf16 %v868_v36, %v840_v35  ;;  %v16588_v25 = vpack.c.bf16 %v187_v9, %v159_v8  ;;  %v16592_v36 = vpack.c.bf16 %v243_v23, %v215_v22  ;;  %v368_v57 = vld [vmem:[#allocation5 + $0x6e0] sm:$0xff]  ;;  %v453_v8 = vld [vmem:[#allocation5 + $0x988] sm:$0xff] }
 0x184   :  { %16491 = vmatpush1.bf16.msra.mxu1 %v16490_v15  ;;  %v16510_v15 = vpack.c.bf16 %v854_v32, %v826_v31  ;;  %v228_v32 = vld [vmem:[#allocation5 + $0x280] sm:$0xff]  ;;  %v481_v9 = vld [vmem:[#allocation5 + $0xa68] sm:$0xff] }
 0x185   :  { %16493 = vmatprep.subr.bf16.mxu1 %v16492_v48  ;;  %v924_v48 = vld [vmem:[#allocation5 + $0x1840] sm:$0xff]  ;;  %v509_v22 = vld [vmem:[#allocation5 + $0xb48] sm:$0xff] }
 0x186   :  { %16939 = vmatpush1.bf16.msra.mxu0 %v16938_v47  ;;  %v896_v47 = vld [vmem:[#allocation5 + $0x1760] sm:$0xff]  ;;  %v537_v23 = vld [vmem:[#allocation5 + $0xc28] sm:$0xff] }
 0x187   :  { %16941 = vmatprep.subr.bf16.mxu0 %v16940_v52  ;;  %v16512_v52 = vpack.c.bf16 %v911_v38, %v883_v37  ;;  %v271_v37 = vld [vmem:[#allocation5 + $0x3d8] sm:$0xff] }
 0x188   :  { %16495 = vmatpush1.bf16.msra.mxu1 %v16494_v16  ;;  %v952_v16 = vld [vmem:[#allocation5 + $0x1920] sm:$0xff]  ;;  %v299_v38 = vld [vmem:[#allocation5 + $0x4b8] sm:$0xff] }
 0x189   :  { %16497 = vmatprep.subr.bf16.mxu1 %v16496_v63  ;;  %v16516_v63 = vpack.c.bf16 %v967_v50, %v939_v49  ;;  %v16966_v10 = vpack.c.bf16 %v980_v59, %v952_v16  ;;  %v16596_v50 = vpack.c.bf16 %v299_v38, %v271_v37  ;;  %v411_v16 = vld [vmem:[#allocation5 + $0x838] sm:$0xff]  ;;  %v565_v37 = vld [vmem:[#allocation5 + $0xd08] sm:$0xff] }
 0x18a   :  { %16943 = vmatpush1.bf16.msra.mxu0 %v16942_v62  ;;  %v16962_v62 = vpack.c.bf16 %v924_v48, %v896_v47  ;;  %v327_v47 = vld [vmem:[#allocation5 + $0x598] sm:$0xff]  ;;  %v593_v38 = vld [vmem:[#allocation5 + $0xde8] sm:$0xff] }
 0x18b   :  { %16945 = vmatprep.subr.bf16.mxu0 %v16944_v3  ;;  %v994_v3 = vld [vmem:[#allocation5 + $0x1a70] sm:$0xff]  ;;  %v355_v48 = vld [vmem:[#allocation5 + $0x678] sm:$0xff] }
 0x18c   :  { %16499 = vmatpush1.bf16.msra.mxu1 %v16498_v7  ;;  %v1036_v7 = vld [vmem:[#allocation5 + $0x1bc0] sm:$0xff]  ;;  %v16522_v19 = vpack.c.bf16 %v1022_v4, %v994_v3  ;;  %v16600_v60 = vpack.c.bf16 %v355_v48, %v327_v47  ;;  %v439_v4 = vld [vmem:[#allocation5 + $0x918] sm:$0xff] }
 0x18d   :  { %16501 = vmatprep.subr.bf16.mxu1 %v16500_v13  ;;  %v201_v13 = vld [vmem:[#allocation5 + $0x1a8] sm:$0xff]  ;;  %v16970_v24 = vpack.c.bf16 %v1036_v7, %v1008_v6  ;;  %v396_v3 = vld [vmem:[#allocation5 + $0x7c0] sm:$0xff]  ;;  %v17050_v6 = vpack.c.bf16 %v368_v57, %v340_v56 }
 0x18e   :  { %16947 = vmatpush1.bf16.msra.mxu0 %v16946_v12  ;;  %v173_v12 = vld [vmem:[#allocation5 + $0xc8] sm:$0xff]  ;;  %v620_v56 = vld [vmem:[#allocation5 + $0xec0] sm:$0xff] }
 0x18f   :  { %16949 = vmatprep.subr.bf16.mxu0 %v16948_v18  ;;  %v186_v18 = vld [vmem:[#allocation5 + $0x130] sm:$0xff]  ;;  %v17036_v28 = vpack.c.bf16 %v201_v13, %v173_v12  ;;  %v16606_v13 = vpack.c.bf16 %v410_v1, %v382_v0  ;;  %v648_v57 = vld [vmem:[#allocation5 + $0xfa0] sm:$0xff] }
 0x190   :  { %16503 = vmatpush1.bf16.msra.mxu1 %v16502_v21  ;;  %v200_v21 = vld [vmem:[#allocation5 + $0x1a0] sm:$0xff]  ;;  %v16590_v31 = vpack.c.bf16 %v186_v18, %v158_v17  ;;  %v466_v12 = vld [vmem:[#allocation5 + $0x9f0] sm:$0xff]  ;;  %v495_v18 = vld [vmem:[#allocation5 + $0xad8] sm:$0xff] }
 0x191   :  { %16505 = vmatprep.subr.bf16.mxu1 %v16504_v27  ;;  %v257_v27 = vld [vmem:[#allocation5 + $0x368] sm:$0xff]  ;;  %v17038_v35 = vpack.c.bf16 %v200_v21, %v172_v20  ;;  %v480_v17 = vld [vmem:[#allocation5 + $0xa60] sm:$0xff]  ;;  %v662_v0 = vld [vmem:[#allocation5 + $0x1010] sm:$0xff] }
 0x192   :  { %16951 = vmatpush1.bf16.msra.mxu0 %v16950_v26  ;;  %v229_v26 = vld [vmem:[#allocation5 + $0x288] sm:$0xff]  ;;  %v690_v1 = vld [vmem:[#allocation5 + $0x10f0] sm:$0xff] }
 0x193   :  { %16953 = vmatprep.subr.bf16.mxu0 %v16952_v30  ;;  %v242_v30 = vld [vmem:[#allocation5 + $0x2f0] sm:$0xff] }
 0x194   :  { %16507 = vmatpush1.bf16.msra.mxu1 %v16506_v34  ;;  %v256_v34 = vld [vmem:[#allocation5 + $0x360] sm:$0xff]  ;;  %v16594_v44 = vpack.c.bf16 %v242_v30, %v214_v29 }
 0x195   :  { %16509 = vmatprep.subr.bf16.mxu1 %v16508_v40  ;;  %v285_v40 = vld [vmem:[#allocation5 + $0x448] sm:$0xff]  ;;  %v17042_v49 = vpack.c.bf16 %v256_v34, %v228_v32  ;;  %v551_v32 = vld [vmem:[#allocation5 + $0xc98] sm:$0xff] }
 0x196   :  { %16955 = vmatpush1.bf16.msra.mxu0 %v16954_v39  ;;  %v17040_v39 = vpack.c.bf16 %v257_v27, %v229_v26  ;;  %v17044_v53 = vpack.c.bf16 %v313_v41, %v285_v40  ;;  %v522_v26 = vld [vmem:[#allocation5 + $0xbb0] sm:$0xff]  ;;  %v579_v34 = vld [vmem:[#allocation5 + $0xd78] sm:$0xff] }
 0x197   :  { %16957 = vmatprep.subr.bf16.mxu0 %v16956_v43  ;;  %v298_v43 = vld [vmem:[#allocation5 + $0x4b0] sm:$0xff]  ;;  %v16616_v48 = vpack.c.bf16 %v579_v34, %v551_v32 }
 0x198   :  { %16511 = vmatpush1.bf16.msra.mxu1 %v16510_v15  ;;  %v312_v15 = vld [vmem:[#allocation5 + $0x520] sm:$0xff]  ;;  %v550_v40 = vld [vmem:[#allocation5 + $0xc90] sm:$0xff] }
 0x199   :  { %16513 = vmatprep.subr.bf16.mxu1 %v16512_v52  ;;  %v369_v52 = vld [vmem:[#allocation5 + $0x6e8] sm:$0xff]  ;;  %v17046_v59 = vpack.c.bf16 %v312_v15, %v284_v45  ;;  %v578_v41 = vld [vmem:[#allocation5 + $0xd70] sm:$0xff]  ;;  %v592_v45 = vld [vmem:[#allocation5 + $0xde0] sm:$0xff] }
 0x19a   :  { %16959 = vmatpush1.bf16.msra.mxu0 %v16958_v51  ;;  %v341_v51 = vld [vmem:[#allocation5 + $0x608] sm:$0xff] }
 0x19b   :  { %16961 = vmatprep.subr.bf16.mxu0 %v16960_v55  ;;  %v354_v55 = vld [vmem:[#allocation5 + $0x670] sm:$0xff] }
 0x19c   :  { %16515 = vmatpush1.bf16.msra.mxu1 %v16514_v58  ;;  %v383_v58 = vld [vmem:[#allocation5 + $0x758] sm:$0xff] }
 0x19d   :  { %16517 = vmatprep.subr.bf16.mxu1 %v16516_v63  ;;  %v17048_v63 = vpack.c.bf16 %v369_v52, %v341_v51  ;;  %v16604_v7 = vpack.c.bf16 %v411_v16, %v383_v58  ;;  %v17064_v51 = vpack.c.bf16 %v593_v38, %v565_v37  ;;  %v621_v52 = vld [vmem:[#allocation5 + $0xec8] sm:$0xff] }
 0x19e   :  { %16963 = vmatpush1.bf16.msra.mxu0 %v16962_v62  ;;  %v425_v62 = vld [vmem:[#allocation5 + $0x8a8] sm:$0xff] }
 0x19f   :  { %16965 = vmatprep.subr.bf16.mxu0 %v16964_v2  ;;  %v16602_v2 = vpack.c.bf16 %v354_v55, %v326_v54  ;;  %v606_v54 = vld [vmem:[#allocation5 + $0xe50] sm:$0xff]  ;;  %v873_v37 = vld [vmem:[#allocation5 + $0x16a8] sm:$0xff] }
 0x1a0   :  { %16519 = vmatpush1.bf16.msra.mxu1 %v16518_v5  ;;  %v467_v5 = vld [vmem:[#allocation5 + $0x9f8] sm:$0xff]  ;;  %v634_v55 = vld [vmem:[#allocation5 + $0xf30] sm:$0xff] }
 0x1a1   :  { %16521 = vmatprep.subr.bf16.mxu1 %v16520_v11  ;;  %v438_v11 = vld [vmem:[#allocation5 + $0x910] sm:$0xff]  ;;  %v16608_v21 = vpack.c.bf16 %v467_v5, %v439_v4  ;;  %v719_v4 = vld [vmem:[#allocation5 + $0x11d8] sm:$0xff] }
 0x1a2   :  { %16967 = vmatpush1.bf16.msra.mxu0 %v16966_v10  ;;  %v17052_v10 = vpack.c.bf16 %v425_v62, %v397_v61  ;;  %v16610_v27 = vpack.c.bf16 %v466_v12, %v438_v11  ;;  %v677_v62 = vld [vmem:[#allocation5 + $0x1088] sm:$0xff]  ;;  %v747_v5 = vld [vmem:[#allocation5 + $0x12b8] sm:$0xff]  ;;  %v718_v11 = vld [vmem:[#allocation5 + $0x11d0] sm:$0xff] }
 0x1a3   :  { %16969 = vmatprep.subr.bf16.mxu0 %v16968_v14  ;;  %v452_v14 = vld [vmem:[#allocation5 + $0x980] sm:$0xff]  ;;  %v746_v12 = vld [vmem:[#allocation5 + $0x12b0] sm:$0xff] }
 0x1a4   :  { %16523 = vmatpush1.bf16.msra.mxu1 %v16522_v19  ;;  %v523_v19 = vld [vmem:[#allocation5 + $0xbb8] sm:$0xff]  ;;  %v17058_v29 = vpack.c.bf16 %v480_v17, %v452_v14  ;;  %v732_v14 = vld [vmem:[#allocation5 + $0x1240] sm:$0xff] }
 0x1a5   :  { %16589 = vmatprep.subr.bf16.mxu1 %v16588_v25  ;;  %v494_v25 = vld [vmem:[#allocation5 + $0xad0] sm:$0xff]  ;;  %v16612_v30 = vpack.c.bf16 %v523_v19, %v495_v18  ;;  %v760_v17 = vld [vmem:[#allocation5 + $0x1320] sm:$0xff]  ;;  %v775_v18 = vld [vmem:[#allocation5 + $0x1398] sm:$0xff] }
 0x1a6   :  { %16971 = vmatpush1.bf16.msra.mxu0 %v16970_v24  ;;  %v17056_v24 = vpack.c.bf16 %v481_v9, %v453_v8  ;;  %v733_v8 = vld [vmem:[#allocation5 + $0x1248] sm:$0xff]  ;;  %v803_v19 = vld [vmem:[#allocation5 + $0x1478] sm:$0xff]  ;;  %v17078_v32 = vpack.c.bf16 %v760_v17, %v732_v14  ;;  %v1012_v14 = vld [vmem:[#allocation5 + $0x1b00] sm:$0xff] }
 0x1a7   :  { %17037 = vmatprep.subr.bf16.mxu0 %v17036_v28  ;;  %1470 = vmatmul.mubr.f32.vlgmr.msra.gmra.mrb[6].mxu1 %v20214_v33  ;;  %v508_v28 = vld [vmem:[#allocation5 + $0xb40] sm:$0xff]  ;;  %v761_v9 = vld [vmem:[#allocation5 + $0x1328] sm:$0xff]  ;;  %v16632_v34 = vpack.c.bf16 %v803_v19, %v775_v18 }
 0x1a8   :  { %16591 = vmatpush1.bf16.msra.mxu1 %v16590_v31  ;;  %1611 = vmatprep.mubr.f32.mxu1 %v20218_v46  ;;  %v536_v31 = vld [vmem:[#allocation5 + $0xc20] sm:$0xff] }
 0x1a9   :  { %1967 = vmatmul.mubr.f32.vlgmr.msra.gmra.mrb[6].mxu0 %v20214_v33  ;;  %16593 = vmatprep.subr.bf16.mxu1 %v16592_v36  ;;  %v16598_v33 = vpack.c.bf16 %v298_v43, %v270_v42  ;;  %v17060_v36 = vpack.c.bf16 %v537_v23, %v509_v22  ;;  %v16614_v43 = vpack.c.bf16 %v522_v26, %v494_v25  ;;  %v789_v22 = vld [vmem:[#allocation5 + $0x1408] sm:$0xff]  ;;  %v774_v25 = vld [vmem:[#allocation5 + $0x1390] sm:$0xff]  ;;  %v1040_v17 = vld [vmem:[#allocation5 + $0x1be0] sm:$0xff] }
 0x1aa   :  { %17039 = vmatpush1.bf16.msra.mxu0 %v17038_v35  ;;  %2108 = vmatprep.mubr.f32.mxu0 %v20218_v46  ;;  %v424_v46 = vld [vmem:[#allocation5 + $0x8a0] sm:$0xff]  ;;  %v17062_v47 = vpack.c.bf16 %v536_v31, %v508_v28  ;;  %v817_v23 = vld [vmem:[#allocation5 + $0x14e8] sm:$0xff]  ;;  %v802_v26 = vld [vmem:[#allocation5 + $0x1470] sm:$0xff] }
 0x1ab   :  { %17041 = vmatprep.subr.bf16.mxu0 %v17040_v39  ;;  %v17054_v20 = vpack.c.bf16 %v424_v46, %v396_v3  ;;  %v676_v3 = vld [vmem:[#allocation5 + $0x1080] sm:$0xff]  ;;  %v859_v31 = vld [vmem:[#allocation5 + $0x1638] sm:$0xff]  ;;  %v17080_v38 = vpack.c.bf16 %v817_v23, %v789_v22 }
 0x1ac   :  { %16595 = vmatpush1.bf16.msra.mxu1 %v16594_v44  ;;  %v564_v44 = vld [vmem:[#allocation5 + $0xd00] sm:$0xff] }
 0x1ad   :  { %16597 = vmatprep.subr.bf16.mxu1 %v16596_v50  ;;  %v635_v50 = vld [vmem:[#allocation5 + $0xf38] sm:$0xff]  ;;  %v17066_v58 = vpack.c.bf16 %v592_v45, %v564_v44  ;;  %v704_v46 = vld [vmem:[#allocation5 + $0x1160] sm:$0xff] }
 0x1ae   :  { %17043 = vmatpush1.bf16.msra.mxu0 %v17042_v49  ;;  %v607_v49 = vld [vmem:[#allocation5 + $0xe58] sm:$0xff]  ;;  %v788_v28 = vld [vmem:[#allocation5 + $0x1400] sm:$0xff] }
 0x1af   :  { %17045 = vmatprep.subr.bf16.mxu0 %v17044_v53  ;;  %v649_v53 = vld [vmem:[#allocation5 + $0xfa8] sm:$0xff]  ;;  %v16620_v16 = vpack.c.bf16 %v635_v50, %v607_v49  ;;  %v844_v44 = vld [vmem:[#allocation5 + $0x15c0] sm:$0xff] }
 0x1b0   :  { %16599 = vmatpush1.bf16.msra.mxu1 %v16598_v33  ;;  %v16618_v33 = vpack.c.bf16 %v578_v41, %v550_v40  ;;  %v17068_v61 = vpack.c.bf16 %v649_v53, %v621_v52  ;;  %v830_v40 = vld [vmem:[#allocation5 + $0x1550] sm:$0xff]  ;;  %v872_v45 = vld [vmem:[#allocation5 + $0x16a0] sm:$0xff]  ;;  %v929_v52 = vld [vmem:[#allocation5 + $0x1868] sm:$0xff] }
 0x1b1   :  { %16601 = vmatprep.subr.bf16.mxu1 %v16600_v60  ;;  %v691_v60 = vld [vmem:[#allocation5 + $0x10f8] sm:$0xff]  ;;  %v858_v41 = vld [vmem:[#allocation5 + $0x1630] sm:$0xff] }
 0x1b2   :  { %17047 = vmatpush1.bf16.msra.mxu0 %v17046_v59  ;;  %v663_v59 = vld [vmem:[#allocation5 + $0x1018] sm:$0xff] }
 0x1b3   :  { %17049 = vmatprep.subr.bf16.mxu0 %v17048_v63  ;;  %v705_v63 = vld [vmem:[#allocation5 + $0x1168] sm:$0xff] }
 0x1b4   :  { %16603 = vmatpush1.bf16.msra.mxu1 %v16602_v2  ;;  %v16622_v2 = vpack.c.bf16 %v634_v55, %v606_v54  ;;  %v886_v54 = vld [vmem:[#allocation5 + $0x1710] sm:$0xff] }
 0x1b5   :  { %16605 = vmatprep.subr.bf16.mxu1 %v16604_v7  ;;  %v16624_v7 = vpack.c.bf16 %v691_v60, %v663_v59  ;;  %v914_v55 = vld [vmem:[#allocation5 + $0x17f0] sm:$0xff]  ;;  %v17086_v59 = vpack.c.bf16 %v872_v45, %v844_v44  ;;  %v331_v45 = vld [vmem:[#allocation5 + $0x5b8] sm:$0xff] }
 0x1b6   :  { %17051 = vmatpush1.bf16.msra.mxu0 %v17050_v6  ;;  %v17070_v6 = vpack.c.bf16 %v648_v57, %v620_v56  ;;  %v900_v56 = vld [vmem:[#allocation5 + $0x1780] sm:$0xff] }
 0x1b7   :  { %17053 = vmatprep.subr.bf16.mxu0 %v17052_v10  ;;  %v17072_v10 = vpack.c.bf16 %v705_v63, %v677_v62  ;;  %v928_v57 = vld [vmem:[#allocation5 + $0x1860] sm:$0xff]  ;;  %v985_v62 = vld [vmem:[#allocation5 + $0x1a28] sm:$0xff] }
 0x1b8   :  { %16607 = vmatpush1.bf16.msra.mxu1 %v16606_v13  ;;  %v16626_v13 = vpack.c.bf16 %v690_v1, %v662_v0  ;;  %v942_v0 = vld [vmem:[#allocation5 + $0x18d0] sm:$0xff] }
 0x1b9   :  { %16609 = vmatprep.subr.bf16.mxu1 %v16608_v21  ;;  %v16628_v21 = vpack.c.bf16 %v747_v5, %v719_v4  ;;  %v970_v1 = vld [vmem:[#allocation5 + $0x19b0] sm:$0xff]  ;;  %v999_v4 = vld [vmem:[#allocation5 + $0x1a98] sm:$0xff] }
 0x1ba   :  { %17055 = vmatpush1.bf16.msra.mxu0 %v17054_v20  ;;  %v20226_v35 = vpop.f32.mrb[0].mxu1  ;;  %v17074_v20 = vpack.c.bf16 %v704_v46, %v676_v3  ;;  %v956_v3 = vld [vmem:[#allocation5 + $0x1940] sm:$0xff]  ;;  %v1027_v5 = vld [vmem:[#allocation5 + $0x1b78] sm:$0xff] }
 0x1bb   :  { %17057 = vmatprep.subr.bf16.mxu0 %v17056_v24  ;;  %v20228_v39 = vpop.f32.mrb[1].mxu1  ;;  %v17076_v24 = vpack.c.bf16 %v761_v9, %v733_v8  ;;  %v984_v46 = vld [vmem:[#allocation5 + $0x1a20] sm:$0xff]  ;;  %v1013_v8 = vld [vmem:[#allocation5 + $0x1b08] sm:$0xff]  ;;  %v16648_v19 = vpack.c.bf16 %v1027_v5, %v999_v4  ;;  %v555_v5 = vld [vmem:[#allocation5 + $0xcb8] sm:$0xff] }
 0x1bc   :  { %v20230_v42 = vpop.f32.mrb[0].mxu0  ;;  %16611 = vmatpush1.bf16.msra.mxu1 %v16610_v27  ;;  %v16630_v27 = vpack.c.bf16 %v746_v12, %v718_v11  ;;  %v1041_v9 = vld [vmem:[#allocation5 + $0x1be8] sm:$0xff]  ;;  %v998_v11 = vld [vmem:[#allocation5 + $0x1a90] sm:$0xff]  ;;  %v17094_v18 = vpack.c.bf16 %v984_v46, %v956_v3 }
 0x1bd   :  { %v20232_v15 = vpop.f32.mrb[1].mxu0  ;;  %16613 = vmatprep.subr.bf16.mxu1 %v16612_v30  ;;  %v831_v30 = vld [vmem:[#allocation5 + $0x1558] sm:$0xff]  ;;  %v1026_v12 = vld [vmem:[#allocation5 + $0x1b70] sm:$0xff]  ;;  %v17096_v22 = vpack.c.bf16 %v1041_v9, %v1013_v8 }
 0x1be   :  { %17059 = vmatpush1.bf16.msra.mxu0 %v17058_v29  ;;  %v816_v29 = vld [vmem:[#allocation5 + $0x14e0] sm:$0xff]  ;;  %v16636_v50 = vpack.c.bf16 %v859_v31, %v831_v30  ;;  %v16650_v23 = vpack.c.bf16 %v1026_v12, %v998_v11  ;;  %v498_v3 = vld [vmem:[#allocation5 + $0xaf0] sm:$0xff] }
 0x1bf   :  { %17061 = vmatprep.subr.bf16.mxu0 %v17060_v36  ;;  %v845_v36 = vld [vmem:[#allocation5 + $0x15c8] sm:$0xff]  ;;  %v17082_v49 = vpack.c.bf16 %v816_v29, %v788_v28  ;;  %v219_v28 = vld [vmem:[#allocation5 + $0x238] sm:$0xff]  ;;  %v526_v46 = vld [vmem:[#allocation5 + $0xbd0] sm:$0xff] }
 0x1c0   :  { %16615 = vmatpush1.bf16.msra.mxu1 %v16614_v43  ;;  %v16634_v43 = vpack.c.bf16 %v802_v26, %v774_v25  ;;  %v17084_v53 = vpack.c.bf16 %v873_v37, %v845_v36  ;;  %v190_v25 = vld [vmem:[#allocation5 + $0x150] sm:$0xff]  ;;  %v17098_v26 = vpack.c.bf16 %v1040_v17, %v1012_v14  ;;  %v247_v29 = vld [vmem:[#allocation5 + $0x318] sm:$0xff]  ;;  %v16742_v9 = vpack.c.bf16 %v526_v46, %v498_v3 }
 0x1c1   :  { %16617 = vmatprep.subr.bf16.mxu1 %v16616_v48  ;;  %v915_v48 = vld [vmem:[#allocation5 + $0x17f8] sm:$0xff]  ;;  %v16720_v31 = vpack.c.bf16 %v247_v29, %v219_v28  ;;  %v554_v12 = vld [vmem:[#allocation5 + $0xcb0] sm:$0xff] }
 0x1c2   :  { %17063 = vmatpush1.bf16.msra.mxu0 %v17062_v47  ;;  %v887_v47 = vld [vmem:[#allocation5 + $0x1718] sm:$0xff]  ;;  %v1030_v3 = vld [vmem:[#allocation5 + $0x1b90] sm:$0xff] }
 0x1c3   :  { %17065 = vmatprep.subr.bf16.mxu0 %v17064_v51  ;;  %v901_v51 = vld [vmem:[#allocation5 + $0x1788] sm:$0xff]  ;;  %v16640_v60 = vpack.c.bf16 %v915_v48, %v887_v47  ;;  %v275_v36 = vld [vmem:[#allocation5 + $0x3f8] sm:$0xff] }
 0x1c4   :  { %16619 = vmatpush1.bf16.msra.mxu1 %v16618_v33  ;;  %v16638_v33 = vpack.c.bf16 %v858_v41, %v830_v40  ;;  %v17088_v63 = vpack.c.bf16 %v929_v52, %v901_v51  ;;  %v303_v37 = vld [vmem:[#allocation5 + $0x4d8] sm:$0xff]  ;;  %v274_v41 = vld [vmem:[#allocation5 + $0x3f0] sm:$0xff] }
 0x1c5   :  { %16621 = vmatprep.subr.bf16.mxu1 %v16620_v16  ;;  %v971_v16 = vld [vmem:[#allocation5 + $0x19b8] sm:$0xff]  ;;  %v16724_v44 = vpack.c.bf16 %v303_v37, %v275_v36  ;;  %v358_v51 = vld [vmem:[#allocation5 + $0x690] sm:$0xff] }
 0x1c6   :  { %17067 = vmatpush1.bf16.msra.mxu0 %v17066_v58  ;;  %v943_v58 = vld [vmem:[#allocation5 + $0x18d8] sm:$0xff] }
 0x1c7   :  { %17069 = vmatprep.subr.bf16.mxu0 %v17068_v61  ;;  %v957_v61 = vld [vmem:[#allocation5 + $0x1948] sm:$0xff]  ;;  %v359_v47 = vld [vmem:[#allocation5 + $0x698] sm:$0xff] }
 0x1c8   :  { %16623 = vmatpush1.bf16.msra.mxu1 %v16622_v2  ;;  %v16642_v2 = vpack.c.bf16 %v914_v55, %v886_v54  ;;  %v20238_v48 = vld [vmem:[#allocation2 + $0x8] sm:$0xff]  ;;  %v16728_v52 = vpack.c.bf16 %v359_v47, %v331_v45 }
 0x1c9   :  { %16625 = vmatprep.subr.bf16.mxu1 %v16624_v7  ;;  %v16644_v7 = vpack.c.bf16 %v971_v16, %v943_v58  ;;  %v415_v54 = vld [vmem:[#allocation5 + $0x858] sm:$0xff] }
 0x1ca   :  { %17071 = vmatpush1.bf16.msra.mxu0 %v17070_v6  ;;  %v17090_v6 = vpack.c.bf16 %v928_v57, %v900_v56  ;;  %v414_v56 = vld [vmem:[#allocation5 + $0x850] sm:$0xff]  ;;  %v443_v58 = vld [vmem:[#allocation5 + $0x938] sm:$0xff] }
 0x1cb   :  { %17073 = vmatprep.subr.bf16.mxu0 %v17072_v10  ;;  %v17092_v10 = vpack.c.bf16 %v985_v62, %v957_v61  ;;  %v471_v16 = vld [vmem:[#allocation5 + $0xa18] sm:$0xff]  ;;  %v470_v61 = vld [vmem:[#allocation5 + $0xa10] sm:$0xff] }
 0x1cc   :  { %16627 = vmatpush1.bf16.msra.mxu1 %v16626_v13  ;;  %v16646_v13 = vpack.c.bf16 %v970_v1, %v942_v0  ;;  %v16736_v62 = vpack.c.bf16 %v471_v16, %v443_v58  ;;  %v527_v0 = vld [vmem:[#allocation5 + $0xbd8] sm:$0xff] }
 0x1cd   :  { %16629 = vmatprep.subr.bf16.mxu1 %v16628_v21  ;;  %v191_v21 = vld [vmem:[#allocation5 + $0x158] sm:$0xff] }
 0x1ce   :  { %17075 = vmatpush1.bf16.msra.mxu0 %v17074_v20  ;;  %v163_v20 = vld [vmem:[#allocation5 + $0x78] sm:$0xff] }
 0x1cf   :  { %17077 = vmatprep.subr.bf16.mxu0 %v17076_v24  ;;  %v162_v24 = vld [vmem:[#allocation5 + $0x70] sm:$0xff]  ;;  %v611_v14 = vld [vmem:[#allocation5 + $0xe78] sm:$0xff] }
 0x1d0   :  { %16631 = vmatpush1.bf16.msra.mxu1 %v16630_v27  ;;  %v16716_v27 = vpack.c.bf16 %v191_v21, %v163_v20  ;;  %v16718_v30 = vpack.c.bf16 %v190_v25, %v162_v24  ;;  %v639_v17 = vld [vmem:[#allocation5 + $0xf58] sm:$0xff]  ;;  %v610_v20 = vld [vmem:[#allocation5 + $0xe70] sm:$0xff] }
 0x1d1   :  { %16633 = vmatprep.subr.bf16.mxu1 %v16632_v34  ;;  %v246_v34 = vld [vmem:[#allocation5 + $0x310] sm:$0xff]  ;;  %v723_v28 = vld [vmem:[#allocation5 + $0x11f8] sm:$0xff] }
 0x1d2   :  { %17079 = vmatpush1.bf16.msra.mxu0 %v17078_v32  ;;  %v218_v32 = vld [vmem:[#allocation5 + $0x230] sm:$0xff]  ;;  %v751_v29 = vld [vmem:[#allocation5 + $0x12d8] sm:$0xff] }
 0x1d3   :  { %17081 = vmatprep.subr.bf16.mxu0 %v17080_v38  ;;  %v20234_v38 = vld [vmem:[#allocation2] sm:$0xff]  ;;  %v16722_v40 = vpack.c.bf16 %v246_v34, %v218_v32  ;;  %v16756_v34 = vpack.c.bf16 %v751_v29, %v723_v28  ;;  %v779_v36 = vld [vmem:[#allocation5 + $0x13b8] sm:$0xff] }
 0x1d4   :  { %16635 = vmatpush1.bf16.msra.mxu1 %v16634_v43  ;;  %v302_v43 = vld [vmem:[#allocation5 + $0x4d0] sm:$0xff]  ;;  %v807_v37 = vld [vmem:[#allocation5 + $0x1498] sm:$0xff] }
 0x1d5   :  { %16637 = vmatprep.subr.bf16.mxu1 %v16636_v50  ;;  %v330_v50 = vld [vmem:[#allocation5 + $0x5b0] sm:$0xff]  ;;  %v835_v45 = vld [vmem:[#allocation5 + $0x1578] sm:$0xff] }
 0x1d6   :  { %17083 = vmatpush1.bf16.msra.mxu0 %v17082_v49  ;;  %v16726_v49 = vpack.c.bf16 %v302_v43, %v274_v41  ;;  %v16730_v55 = vpack.c.bf16 %v358_v51, %v330_v50  ;;  %v638_v21 = vld [vmem:[#allocation5 + $0xf50] sm:$0xff]  ;;  %v863_v47 = vld [vmem:[#allocation5 + $0x1658] sm:$0xff] }
 0x1d7   :  { %17085 = vmatprep.subr.bf16.mxu0 %v17084_v53  ;;  %v387_v53 = vld [vmem:[#allocation5 + $0x778] sm:$0xff]  ;;  %v16750_v24 = vpack.c.bf16 %v638_v21, %v610_v20  ;;  %v666_v25 = vld [vmem:[#allocation5 + $0x1030] sm:$0xff] }
 0x1d8   :  { %16639 = vmatpush1.bf16.msra.mxu1 %v16638_v33  ;;  %v386_v33 = vld [vmem:[#allocation5 + $0x770] sm:$0xff]  ;;  %v16732_v57 = vpack.c.bf16 %v415_v54, %v387_v53  ;;  %v891_v53 = vld [vmem:[#allocation5 + $0x1738] sm:$0xff] }
 0x1d9   :  { %16641 = vmatprep.subr.bf16.mxu1 %v16640_v60  ;;  %v442_v60 = vld [vmem:[#allocation5 + $0x930] sm:$0xff]  ;;  %v919_v54 = vld [vmem:[#allocation5 + $0x1818] sm:$0xff] }
 0x1da   :  { %17087 = vmatpush1.bf16.msra.mxu0 %v17086_v59  ;;  %v16734_v59 = vpack.c.bf16 %v414_v56, %v386_v33  ;;  %v16738_v1 = vpack.c.bf16 %v470_v61, %v442_v60  ;;  %v750_v32 = vld [vmem:[#allocation5 + $0x12d0] sm:$0xff]  ;;  %v947_v58 = vld [vmem:[#allocation5 + $0x18f8] sm:$0xff] }
 0x1db   :  { %17089 = vmatprep.subr.bf16.mxu0 %v17088_v63  ;;  %v499_v63 = vld [vmem:[#allocation5 + $0xaf8] sm:$0xff]  ;;  %v778_v41 = vld [vmem:[#allocation5 + $0x13b0] sm:$0xff] }
 0x1dc   :  { %16643 = vmatpush1.bf16.msra.mxu1 %v16642_v2  ;;  %v16740_v2 = vpack.c.bf16 %v527_v0, %v499_v63  ;;  %v806_v43 = vld [vmem:[#allocation5 + $0x1490] sm:$0xff]  ;;  %v975_v16 = vld [vmem:[#allocation5 + $0x19d8] sm:$0xff] }
 0x1dd   :  { %16645 = vmatprep.subr.bf16.mxu1 %v16644_v7  ;;  %v834_v50 = vld [vmem:[#allocation5 + $0x1570] sm:$0xff]  ;;  %v1003_v63 = vld [vmem:[#allocation5 + $0x1ab8] sm:$0xff] }
 0x1de   :  { %17091 = vmatpush1.bf16.msra.mxu0 %v17090_v6  ;;  %v583_v6 = vld [vmem:[#allocation5 + $0xd98] sm:$0xff]  ;;  %v862_v51 = vld [vmem:[#allocation5 + $0x1650] sm:$0xff] }
 0x1df   :  { %17093 = vmatprep.subr.bf16.mxu0 %v17092_v10  ;;  %v16744_v11 = vpack.c.bf16 %v583_v6, %v555_v5  ;;  %v890_v33 = vld [vmem:[#allocation5 + $0x1730] sm:$0xff]  ;;  %v1031_v0 = vld [vmem:[#allocation5 + $0x1b98] sm:$0xff] }
 0x1e0   :  { %16647 = vmatpush1.bf16.msra.mxu1 %v16646_v13  ;;  %v582_v13 = vld [vmem:[#allocation5 + $0xd90] sm:$0xff]  ;;  %v16776_v46 = vpack.c.bf16 %v1031_v0, %v1003_v63  ;;  %v167_v5 = vld [vmem:[#allocation5 + $0x98] sm:$0xff] }
 0x1e1   :  { %16649 = vmatprep.subr.bf16.mxu1 %v16648_v19  ;;  %v16748_v19 = vpack.c.bf16 %v639_v17, %v611_v14  ;;  %v918_v56 = vld [vmem:[#allocation5 + $0x1810] sm:$0xff]  ;;  %v195_v6 = vld [vmem:[#allocation5 + $0x178] sm:$0xff] }
 0x1e2   :  { %17095 = vmatpush1.bf16.msra.mxu0 %v17094_v18  ;;  %v16746_v18 = vpack.c.bf16 %v582_v13, %v554_v12  ;;  %v946_v60 = vld [vmem:[#allocation5 + $0x18f0] sm:$0xff]  ;;  %v16844_v13 = vpack.c.bf16 %v195_v6, %v167_v5  ;;  %v223_v14 = vld [vmem:[#allocation5 + $0x258] sm:$0xff] }
 0x1e3   :  { %17097 = vmatprep.subr.bf16.mxu0 %v17096_v22  ;;  %v667_v22 = vld [vmem:[#allocation5 + $0x1038] sm:$0xff]  ;;  %v974_v61 = vld [vmem:[#allocation5 + $0x19d0] sm:$0xff] }
 0x1e4   :  { %16651 = vmatpush1.bf16.msra.mxu1 %v16650_v23  ;;  %v695_v23 = vld [vmem:[#allocation5 + $0x1118] sm:$0xff]  ;;  %v194_v12 = vld [vmem:[#allocation5 + $0x170] sm:$0xff] }
 0x1e5   :  { %16717 = vmatprep.subr.bf16.mxu1 %v16716_v27  ;;  %v16752_v27 = vpack.c.bf16 %v695_v23, %v667_v22  ;;  %v251_v17 = vld [vmem:[#allocation5 + $0x338] sm:$0xff]  ;;  %v222_v20 = vld [vmem:[#allocation5 + $0x250] sm:$0xff] }
 0x1e6   :  { %17099 = vmatpush1.bf16.msra.mxu0 %v17098_v26  ;;  %v694_v26 = vld [vmem:[#allocation5 + $0x1110] sm:$0xff]  ;;  %v279_v22 = vld [vmem:[#allocation5 + $0x418] sm:$0xff] }
 0x1e7   :  { %1612 = vmatmul.mubr.f32.vlgmr.msra.gmra.mrb[8].mxu1 %v20234_v38  ;;  %v250_v21 = vld [vmem:[#allocation5 + $0x330] sm:$0xff]  ;;  %v307_v23 = vld [vmem:[#allocation5 + $0x4f8] sm:$0xff] }
 0x1e8   :  { %16719 = vmatpush1.bf16.msra.mxu1 %v16718_v30  ;;  %1753 = vmatprep.mubr.f32.mxu1 %v20238_v48  ;;  %v16754_v30 = vpack.c.bf16 %v694_v26, %v666_v25  ;;  %v278_v25 = vld [vmem:[#allocation5 + $0x410] sm:$0xff]  ;;  %v335_v28 = vld [vmem:[#allocation5 + $0x5d8] sm:$0xff] }
 0x1e9   :  { %2109 = vmatmul.mubr.f32.vlgmr.msra.gmra.mrb[8].mxu0 %v20234_v38  ;;  %16721 = vmatprep.subr.bf16.mxu1 %v16720_v31  ;;  %v722_v31 = vld [vmem:[#allocation5 + $0x11f0] sm:$0xff]  ;;  %v363_v29 = vld [vmem:[#allocation5 + $0x6b8] sm:$0xff] }
 0x1ea   :  { %v306_v26 = vld [vmem:[#allocation5 + $0x4f0] sm:$0xff]  ;;  %v559_v5 = vld [vmem:[#allocation5 + $0xcd8] sm:$0xff] }
 0x1eb   :  { %v587_v6 = vld [vmem:[#allocation5 + $0xdb8] sm:$0xff] }
 0x1ec   :  { %16723 = vmatpush1.bf16.msra.mxu1 %v16722_v40  ;;  %v16758_v40 = vpack.c.bf16 %v750_v32, %v722_v31  ;;  %v16854_v31 = vpack.c.bf16 %v306_v26, %v278_v25  ;;  %v334_v32 = vld [vmem:[#allocation5 + $0x5d0] sm:$0xff] }
 0x1ed   :  { %16725 = vmatprep.subr.bf16.mxu1 %v16724_v44  ;;  %v16760_v44 = vpack.c.bf16 %v807_v37, %v779_v36  ;;  %v16856_v36 = vpack.c.bf16 %v363_v29, %v335_v28  ;;  %v391_v37 = vld [vmem:[#allocation5 + $0x798] sm:$0xff] }
 0x1f0   :  { %16727 = vmatpush1.bf16.msra.mxu1 %v16726_v49  ;;  %v16762_v49 = vpack.c.bf16 %v806_v43, %v778_v41  ;;  %v390_v43 = vld [vmem:[#allocation5 + $0x790] sm:$0xff] }
 0x1f1   :  { %16729 = vmatprep.subr.bf16.mxu1 %v16728_v52  ;;  %v16764_v52 = vpack.c.bf16 %v863_v47, %v835_v45  ;;  %v447_v45 = vld [vmem:[#allocation5 + $0x958] sm:$0xff] }
 0x1f2   :  { %v475_v47 = vld [vmem:[#allocation5 + $0xa38] sm:$0xff] }
 0x1f4   :  { %16731 = vmatpush1.bf16.msra.mxu1 %v16730_v55  ;;  %v16766_v55 = vpack.c.bf16 %v862_v51, %v834_v50  ;;  %v20256_v50 = vld [vmem:[#allocation7] sm:$0xff] }
 0x1f5   :  { %16733 = vmatprep.subr.bf16.mxu1 %v16732_v57  ;;  %v16768_v57 = vpack.c.bf16 %v919_v54, %v891_v53  ;;  %v446_v54 = vld [vmem:[#allocation5 + $0x950] sm:$0xff] }
 0x1f8   :  { %16735 = vmatpush1.bf16.msra.mxu1 %v16734_v59  ;;  %v16770_v59 = vpack.c.bf16 %v918_v56, %v890_v33  ;;  %v16864_v33 = vpack.c.bf16 %v475_v47, %v447_v45  ;;  %v503_v56 = vld [vmem:[#allocation5 + $0xb18] sm:$0xff]  ;;  %v17369_v47 = vld [vmem:[#allocation8 + $0x74] ss:$56 sps:$4 sm:$0xff]  }
 0x1f9   :  { %16737 = vmatprep.subr.bf16.mxu1 %v16736_v62  ;;  %v16772_v62 = vpack.c.bf16 %v975_v16, %v947_v58  ;;  %v755_v45 = vld [vmem:[#allocation5 + $0x12f8] sm:$0xff] }
 0x1fa   :  { %v20241_v4 = vpop.f32.mrb[2].mxu1 }
 0x1fb   :  { %v20243_v7 = vpop.f32.mrb[3].mxu1 }
 0x1fc   :  { %v20245_v8 = vpop.f32.mrb[2].mxu0  ;;  %16739 = vmatpush1.bf16.msra.mxu1 %v16738_v1  ;;  %v16774_v1 = vpack.c.bf16 %v974_v61, %v946_v60 }
 0x1fd   :  { %v20247_v10 = vpop.f32.mrb[3].mxu0  ;;  %16741 = vmatprep.subr.bf16.mxu1 %v16740_v2  ;;  %v1002_v2 = vld [vmem:[#allocation5 + $0x1ab0] sm:$0xff] }
 0x200   :  { %16743 = vmatpush1.bf16.msra.mxu1 %v16742_v9  ;;  %v16778_v9 = vpack.c.bf16 %v1030_v3, %v1002_v2  ;;  %v530_v2 = vld [vmem:[#allocation5 + $0xbf0] sm:$0xff] }
 0x201   :  { %16745 = vmatprep.subr.bf16.mxu1 %v16744_v11  ;;  %v166_v11 = vld [vmem:[#allocation5 + $0x90] sm:$0xff] }
 0x204   :  { %16747 = vmatpush1.bf16.msra.mxu1 %v16746_v18  ;;  %v16846_v18 = vpack.c.bf16 %v194_v12, %v166_v11 }
 0x205   :  { %16749 = vmatprep.subr.bf16.mxu1 %v16748_v19  ;;  %v16848_v19 = vpack.c.bf16 %v251_v17, %v223_v14 }
 0x208   :  { %16751 = vmatpush1.bf16.msra.mxu1 %v16750_v24  ;;  %v16850_v24 = vpack.c.bf16 %v250_v21, %v222_v20  ;;  %v558_v20 = vld [vmem:[#allocation5 + $0xcd0] sm:$0xff] }
 0x209   :  { %16753 = vmatprep.subr.bf16.mxu1 %v16752_v27  ;;  %v16852_v27 = vpack.c.bf16 %v307_v23, %v279_v22  ;;  %v586_v21 = vld [vmem:[#allocation5 + $0xdb0] sm:$0xff]  ;;  %v615_v23 = vld [vmem:[#allocation5 + $0xe98] sm:$0xff] }
 0x20c   :  { %16755 = vmatpush1.bf16.msra.mxu1 %v16754_v30  ;;  %v1052_v30 = vlaneseq }
 0x20d   :  { %16757 = vmatprep.subr.bf16.mxu1 %v16756_v34  ;;  %v362_v34 = vld [vmem:[#allocation5 + $0x6b0] sm:$0xff] }
 0x20e   :  { %v16858_v41 = vpack.c.bf16 %v362_v34, %v334_v32  ;;  %v671_v32 = vld [vmem:[#allocation5 + $0x1058] sm:$0xff] }
 0x20f   :  { %v699_v34 = vld [vmem:[#allocation5 + $0x1138] sm:$0xff] }
 0x210   :  { %16759 = vmatpush1.bf16.msra.mxu1 %v16758_v40  ;;  %v419_v40 = vld [vmem:[#allocation5 + $0x878] sm:$0xff] }
 0x211   :  { %16761 = vmatprep.subr.bf16.mxu1 %v16760_v44  ;;  %v418_v44 = vld [vmem:[#allocation5 + $0x870] sm:$0xff] }
 0x212   :  { %v16862_v53 = vpack.c.bf16 %v418_v44, %v390_v43  ;;  %v17364_v43 = vld [vmem:[#allocation8] ss:$56 sps:$4 sm:$0xff]   ;;  %v16880_v44 = vpack.c.bf16 %v699_v34, %v671_v32 }
 0x213   :  { %v1007_v34 = vld [vmem:[#allocation5 + $0x1ad8] sm:$0xff] }
 0x214   :  { %16763 = vmatpush1.bf16.msra.mxu1 %v16762_v49 }
 0x215   :  { %16765 = vmatprep.subr.bf16.mxu1 %v16764_v52  ;;  %v20261_v52 = vld [vmem:[#allocation7 + $0x10] sm:$0xff] }
 0x218   :  { %16767 = vmatpush1.bf16.msra.mxu1 %v16766_v55  ;;  %v474_v55 = vld [vmem:[#allocation5 + $0xa30] sm:$0xff] }
 0x219   :  { %16769 = vmatprep.subr.bf16.mxu1 %v16768_v57  ;;  %v531_v57 = vld [vmem:[#allocation5 + $0xbf8] sm:$0xff] }
 0x21a   :  { %v16868_v0 = vpack.c.bf16 %v531_v57, %v503_v56  ;;  %v783_v57 = vld [vmem:[#allocation5 + $0x13d8] sm:$0xff] }
 0x21c   :  { %16771 = vmatpush1.bf16.msra.mxu1 %v16770_v59 }
 0x21d   :  { %16773 = vmatprep.subr.bf16.mxu1 %v16772_v62  ;;  %v16866_v62 = vpack.c.bf16 %v474_v55, %v446_v54  ;;  %v726_v54 = vld [vmem:[#allocation5 + $0x1210] sm:$0xff] }
 0x21e   :  { %v754_v55 = vld [vmem:[#allocation5 + $0x12f0] sm:$0xff] }
 0x220   :  { %16775 = vmatpush1.bf16.msra.mxu1 %v16774_v1  ;;  %v502_v1 = vld [vmem:[#allocation5 + $0xb10] sm:$0xff] }
 0x221   :  { %16777 = vmatprep.subr.bf16.mxu1 %v16776_v46  ;;  %v16870_v17 = vpack.c.bf16 %v530_v2, %v502_v1  ;;  %v839_v2 = vld [vmem:[#allocation5 + $0x1598] sm:$0xff] }
 0x224   :  { %16779 = vmatpush1.bf16.msra.mxu1 %v16778_v9 }
 0x225   :  { %16845 = vmatprep.subr.bf16.mxu1 %v16844_v13 }
 0x227   :  { %1754 = vmatmul.mubr.f32.vlgmr.msra.gmra.mrb[10].mxu1 %v20234_v38  ;;  %v20251_v38 = vshrl.u32 %v1052_v30, 7  ;;  %v614_v30 = vld [vmem:[#allocation5 + $0xe90] sm:$0xff] }
 0x228   :  { %16847 = vmatpush1.bf16.msra.mxu1 %v16846_v18  ;;  %1895 = vmatprep.mubr.f32.mxu1 %v20238_v48  ;;  %v16860_v48 = vpack.c.bf16 %v419_v40, %v391_v37  ;;  %v670_v40 = vld [vmem:[#allocation5 + $0x1050] sm:$0xff] }
 0x229   :  { %16849 = vmatprep.subr.bf16.mxu1 %v16848_v19  ;;  %v20254_v49 = vsub.s32 2, %v20251_v38  ;;  %v20259_v51 = vsub.s32 3, %v20251_v38  ;;  %v20264_v58 = vsub.s32 0, %v20251_v38  ;;  %v20269_v59 = vsub.s32 1, %v20251_v38 }
 0x22a   :  { %v16872_v19 = vpack.c.bf16 %v587_v6, %v559_v5  ;;  %v17375_v5 = vld [vmem:[#allocation8 + $0x154] ss:$56 sps:$4 sm:$0xff]  }
 0x22b   :  { %v1063_v16 = vrot.slane %v20256_v50, %v20254_v49  ;;  %v1067_v60 = vrot.slane %v20256_v50, %v20259_v51  ;;  %v1119_v61 = vrot.slane %v20261_v52, %v20264_v58  ;;  %v1123_v63 = vrot.slane %v20261_v52, %v20269_v59 }
 0x22c   :  { %16851 = vmatpush1.bf16.msra.mxu1 %v16850_v24  ;;  %v643_v24 = vld [vmem:[#allocation5 + $0xf78] sm:$0xff] }
 0x22d   :  { %16853 = vmatprep.subr.bf16.mxu1 %v16852_v27  ;;  %v1330_v3 = vadd.f32 %v20241_v4, %v1063_v16  ;;  %v1332_v9 = vadd.f32 %v20243_v7, %v1067_v60  ;;  %v16874_v7 = vpack.c.bf16 %v586_v21, %v558_v20  ;;  %v16876_v29 = vpack.c.bf16 %v643_v24, %v615_v23  ;;  %v811_v16 = vld [vmem:[#allocation5 + $0x14b8] sm:$0xff]  ;;  %v894_v21 = vld [vmem:[#allocation5 + $0x1750] sm:$0xff] }
 0x22e   :  { %v17372_v60 = vld [vmem:[#allocation8 + $0xe4] ss:$56 sps:$4 sm:$0xff]   ;;  %v16888_v1 = vpack.c.bf16 %v811_v16, %v783_v57 }
 0x22f   :  { %v2188_v22 = vmax.f32 %v1330_v3, 0.0  ;;  %v2189_v25 = vmax.f32 %v1332_v9, 0.0  ;;  %v867_v3 = vld [vmem:[#allocation5 + $0x1678] sm:$0xff]  ;;  %v838_v9 = vld [vmem:[#allocation5 + $0x1590] sm:$0xff] }
 0x230   :  { %16855 = vmatpush1.bf16.msra.mxu1 %v16854_v31  ;;  %v642_v31 = vld [vmem:[#allocation5 + $0xf70] sm:$0xff]  ;;  %v951_v24 = vld [vmem:[#allocation5 + $0x1918] sm:$0xff] }
 0x231   :  { %16857 = vmatprep.subr.bf16.mxu1 %v16856_v36  ;;  %v17366_v36 = vld [vmem:[#allocation8 + $0x4] ss:$56 sps:$4 sm:$0xff]   ;;  %v16878_v37 = vpack.c.bf16 %v642_v31, %v614_v30  ;;  %v978_v30 = vld [vmem:[#allocation5 + $0x19f0] sm:$0xff]  ;;  %v17379_v31 = vld [vmem:[#allocation8 + $0x230] ss:$56 sps:$4 sm:$0xff]  }
 0x232   :  { %11724 = vmatprep.subr.bf16.mxu0 %v17366_v36  ;;  %v1035_v36 = vld [vmem:[#allocation5 + $0x1bb8] sm:$0xff] }
 0x233   :  { %11725 = vmatpush1.bf16.msra.mxu0 %v17364_v43  ;;  %v1034_v43 = vld [vmem:[#allocation5 + $0x1bb0] sm:$0xff]  ;;  %v227_v16 = vld [vmem:[#allocation5 + $0x278] sm:$0xff] }
 0x234   :  { %16859 = vmatpush1.bf16.msra.mxu1 %v16858_v41  ;;  %v698_v41 = vld [vmem:[#allocation5 + $0x1130] sm:$0xff]  ;;  %11726 = vmatprep.subr.bf16.mxu0 %v17369_v47  ;;  %v199_v47 = vld [vmem:[#allocation5 + $0x198] sm:$0xff] }
 0x235   :  { %16861 = vmatprep.subr.bf16.mxu1 %v16860_v48  ;;  %v727_v48 = vld [vmem:[#allocation5 + $0x1218] sm:$0xff] }
 0x236   :  { %v16884_v56 = vpack.c.bf16 %v755_v45, %v727_v48  ;;  %v16904_v48 = vpack.c.bf16 %v1035_v36, %v1007_v34  ;;  %v171_v45 = vld [vmem:[#allocation5 + $0xb8] sm:$0xff]  ;;  %v422_v34 = vld [vmem:[#allocation5 + $0x890] sm:$0xff] }
 0x237   :  { %v16972_v57 = vpack.c.bf16 %v199_v47, %v171_v45  ;;  %v450_v45 = vld [vmem:[#allocation5 + $0x970] sm:$0xff] }
 0x238   :  { %16863 = vmatpush1.bf16.msra.mxu1 %v16862_v53  ;;  %v16882_v53 = vpack.c.bf16 %v698_v41, %v670_v40  ;;  %v1006_v41 = vld [vmem:[#allocation5 + $0x1ad0] sm:$0xff] }
 0x239   :  { %16865 = vmatprep.subr.bf16.mxu1 %v16864_v33  ;;  %v17367_v33 = vld [vmem:[#allocation8 + $0x70] ss:$56 sps:$4 sm:$0xff]   ;;  %v478_v47 = vld [vmem:[#allocation5 + $0xa50] sm:$0xff] }
 0x23a   :  { %v20278_v46 = vpop.f32.mrb[4].mxu1  ;;  %11727 = vmatpush1.bf16.msra.mxu0 %v17367_v33  ;;  %v198_v33 = vld [vmem:[#allocation5 + $0x190] sm:$0xff] }
 0x23b   :  { %v20281_v12 = vpop.f32.mrb[5].mxu1  ;;  %11728 = vmatprep.subr.bf16.mxu0 %v17372_v60  ;;  %v255_v60 = vld [vmem:[#allocation5 + $0x358] sm:$0xff] }
 0x23c   :  { %v1826_v11 = vpop.f32.mrb[4].mxu0  ;;  %16867 = vmatpush1.bf16.msra.mxu1 %v16866_v62  ;;  %v782_v62 = vld [vmem:[#allocation5 + $0x13d0] sm:$0xff] }
 0x23d   :  { %v1827_v13 = vadd.f32 %v1826_v11, %v1119_v61  ;;  %v1828_v14 = vpop.f32.mrb[5].mxu0  ;;  %16869 = vmatprep.subr.bf16.mxu1 %v16868_v0  ;;  %v16886_v61 = vpack.c.bf16 %v754_v55, %v726_v54  ;;  %v17370_v0 = vld [vmem:[#allocation8 + $0xe0] ss:$56 sps:$4 sm:$0xff]   ;;  %v16906_v54 = vpack.c.bf16 %v1034_v43, %v1006_v41 }
 0x23e   :  { %v1829_v18 = vadd.f32 %v1828_v14, %v1123_v63  ;;  %v810_v63 = vld [vmem:[#allocation5 + $0x14b0] sm:$0xff]  ;;  %11729 = vmatpush1.bf16.msra.mxu0 %v17370_v0  ;;  %v16892_v14 = vpack.c.bf16 %v867_v3, %v839_v2  ;;  %v16976_v3 = vpack.c.bf16 %v255_v60, %v227_v16  ;;  %v20300_v60 = vsub.s32 4, %v20251_v38 }
 0x23f   :  { %v2202_v4 = vmax.f32 %v1827_v13, 0.0  ;;  %v16890_v6 = vpack.c.bf16 %v810_v63, %v782_v62  ;;  %v866_v11 = vld [vmem:[#allocation5 + $0x1670] sm:$0xff]  ;;  %v17373_v13 = vld [vmem:[#allocation8 + $0x150] ss:$56 sps:$4 sm:$0xff]   ;;  %11730 = vmatprep.subr.bf16.mxu0 %v17375_v5  ;;  %v17390_v63 = vld [vmem:[#allocation8 + $0x384] ss:$56 sps:$4 sm:$0xff]  }
 0x240   :  { %v2203_v26 = vmax.f32 %v1829_v18, 0.0  ;;  %16871 = vmatpush1.bf16.msra.mxu1 %v16870_v17  ;;  %v895_v17 = vld [vmem:[#allocation5 + $0x1758] sm:$0xff]  ;;  %v16894_v20 = vpack.c.bf16 %v866_v11, %v838_v9  ;;  %v170_v55 = vld [vmem:[#allocation5 + $0xb0] sm:$0xff] }
 0x241   :  { %v20283_v27 = vmax.f32 %v2188_v22, %v2202_v4  ;;  %16873 = vmatprep.subr.bf16.mxu1 %v16872_v19  ;;  %v923_v18 = vld [vmem:[#allocation5 + $0x1838] sm:$0xff]  ;;  %v922_v22 = vld [vmem:[#allocation5 + $0x1830] sm:$0xff]  ;;  %v16974_v0 = vpack.c.bf16 %v198_v33, %v170_v55 }
 0x242   :  { %v20285_v28 = vmax.f32 %v2189_v25, %v2203_v26  ;;  %11731 = vmatpush1.bf16.msra.mxu0 %v17373_v13  ;;  %v17378_v19 = vld [vmem:[#allocation8 + $0x1c4] ss:$56 sps:$4 sm:$0xff]   ;;  %v17376_v4 = vld [vmem:[#allocation8 + $0x1c0] ss:$56 sps:$4 sm:$0xff]   ;;  %v16896_v23 = vpack.c.bf16 %v923_v18, %v895_v17  ;;  %v17381_v26 = vld [vmem:[#allocation8 + $0x234] ss:$56 sps:$4 sm:$0xff]  }
 0x243   :  { %v979_v25 = vld [vmem:[#allocation5 + $0x19f8] sm:$0xff]  ;;  %11732 = vmatprep.subr.bf16.mxu0 %v17378_v19  ;;  %v254_v62 = vld [vmem:[#allocation5 + $0x350] sm:$0xff]  ;;  %v17394_v13 = vld [vmem:[#allocation8 + $0x3f0] ss:$56 sps:$4 sm:$0xff]  }
 0x244   :  { %16875 = vmatpush1.bf16.msra.mxu1 %v16874_v7  ;;  %v16898_v7 = vpack.c.bf16 %v922_v22, %v894_v21  ;;  %v16900_v32 = vpack.c.bf16 %v979_v25, %v951_v24  ;;  %v17388_v2 = vld [vmem:[#allocation8 + $0x380] ss:$56 sps:$4 sm:$0xff]   ;;  %v17420_v16 = vld [vmem:[#allocation8 + $0x5b4] ss:$56 sps:$4 sm:$0xff]  }
 0x245   :  { %16877 = vmatprep.subr.bf16.mxu1 %v16876_v29  ;;  %v950_v29 = vld [vmem:[#allocation5 + $0x1910] sm:$0xff]  ;;  %v311_v5 = vld [vmem:[#allocation5 + $0x518] sm:$0xff] }
 0x246   :  { %11733 = vmatpush1.bf16.msra.mxu0 %v17376_v4  ;;  %v16902_v40 = vpack.c.bf16 %v978_v30, %v950_v29  ;;  %v282_v9 = vld [vmem:[#allocation5 + $0x430] sm:$0xff]  ;;  %v339_v18 = vld [vmem:[#allocation5 + $0x5f8] sm:$0xff]  ;;  %v17406_v30 = vld [vmem:[#allocation8 + $0x4d0] ss:$56 sps:$4 sm:$0xff]  }
 0x247   :  { %11734 = vmatprep.subr.bf16.mxu0 %v17381_v26  ;;  %v310_v11 = vld [vmem:[#allocation5 + $0x510] sm:$0xff]  ;;  %v367_v19 = vld [vmem:[#allocation5 + $0x6d8] sm:$0xff] }
 0x248   :  { %16879 = vmatpush1.bf16.msra.mxu1 %v16878_v37  ;;  %v17384_v37 = vld [vmem:[#allocation8 + $0x2a4] ss:$56 sps:$4 sm:$0xff]   ;;  %v17400_v22 = vld [vmem:[#allocation8 + $0x460] ss:$56 sps:$4 sm:$0xff]   ;;  %v16982_v25 = vpack.c.bf16 %v310_v11, %v282_v9  ;;  %v16984_v29 = vpack.c.bf16 %v367_v19, %v339_v18 }
 0x249   :  { %16881 = vmatprep.subr.bf16.mxu1 %v16880_v44  ;;  %v17382_v44 = vld [vmem:[#allocation8 + $0x2a0] ss:$56 sps:$4 sm:$0xff]   ;;  %v17402_v4 = vld [vmem:[#allocation8 + $0x464] ss:$56 sps:$4 sm:$0xff]  }
 0x24a   :  { %11735 = vmatpush1.bf16.msra.mxu0 %v17379_v31  ;;  %v366_v24 = vld [vmem:[#allocation5 + $0x6d0] sm:$0xff]  ;;  %v395_v26 = vld [vmem:[#allocation5 + $0x7b8] sm:$0xff] }
 0x24b   :  { %11736 = vmatprep.subr.bf16.mxu0 %v17384_v37  ;;  %v17408_v31 = vld [vmem:[#allocation8 + $0x4d4] ss:$56 sps:$4 sm:$0xff]   ;;  %v451_v37 = vld [vmem:[#allocation5 + $0x978] sm:$0xff] }
 0x24c   :  { %16883 = vmatpush1.bf16.msra.mxu1 %v16882_v53  ;;  %v17387_v53 = vld [vmem:[#allocation8 + $0x314] ss:$56 sps:$4 sm:$0xff]   ;;  %v17412_v43 = vld [vmem:[#allocation8 + $0x540] ss:$56 sps:$4 sm:$0xff]  }
 0x24d   :  { %16885 = vmatprep.subr.bf16.mxu1 %v16884_v56  ;;  %v17385_v56 = vld [vmem:[#allocation8 + $0x310] ss:$56 sps:$4 sm:$0xff]   ;;  %v507_v55 = vld [vmem:[#allocation5 + $0xb38] sm:$0xff]  ;;  %v562_v19 = vld [vmem:[#allocation5 + $0xcf0] sm:$0xff] }
 0x24e   :  { %11737 = vmatpush1.bf16.msra.mxu0 %v17382_v44  ;;  %v17414_v44 = vld [vmem:[#allocation8 + $0x544] ss:$56 sps:$4 sm:$0xff]  }
 0x24f   :  { %11738 = vmatprep.subr.bf16.mxu0 %v17387_v53  ;;  %v535_v33 = vld [vmem:[#allocation5 + $0xc18] sm:$0xff] }
 0x250   :  { %16887 = vmatpush1.bf16.msra.mxu1 %v16886_v61  ;;  %v226_v61 = vld [vmem:[#allocation5 + $0x270] sm:$0xff] }
 0x251   :  { %16889 = vmatprep.subr.bf16.mxu1 %v16888_v1  ;;  %v283_v1 = vld [vmem:[#allocation5 + $0x438] sm:$0xff]  ;;  %v16978_v17 = vpack.c.bf16 %v254_v62, %v226_v61  ;;  %v20303_v61 = vsub.s32 5, %v20251_v38 }
 0x252   :  { %11739 = vmatpush1.bf16.msra.mxu0 %v17385_v56  ;;  %v16980_v21 = vpack.c.bf16 %v311_v5, %v283_v1  ;;  %v1135_v1 = vrot.slane %v20261_v52, %v20300_v60  ;;  %v563_v5 = vld [vmem:[#allocation5 + $0xcf8] sm:$0xff] }
 0x253   :  { %11740 = vmatprep.subr.bf16.mxu0 %v17390_v63  ;;  %v506_v63 = vld [vmem:[#allocation5 + $0xb30] sm:$0xff]  ;;  %v1139_v9 = vrot.slane %v20261_v52, %v20303_v61 }
 0x254   :  { %16891 = vmatpush1.bf16.msra.mxu1 %v16890_v6  ;;  %v20287_v6 = vld [vmem:[#allocation2] sm:$0xff] }
 0x255   :  { %16893 = vmatprep.subr.bf16.mxu1 %v16892_v14  ;;  %v17396_v14 = vld [vmem:[#allocation8 + $0x3f4] ss:$56 sps:$4 sm:$0xff]  }
 0x256   :  { %11741 = vmatpush1.bf16.msra.mxu0 %v17388_v2 }
 0x257   :  { %11742 = vmatprep.subr.bf16.mxu0 %v17396_v14 }
 0x258   :  { %16895 = vmatpush1.bf16.msra.mxu1 %v16894_v20  ;;  %v20290_v20 = vld [vmem:[#allocation2 + $0x8] sm:$0xff] }
 0x259   :  { %16897 = vmatprep.subr.bf16.mxu1 %v16896_v23  ;;  %v338_v23 = vld [vmem:[#allocation5 + $0x5f0] sm:$0xff] }
 0x25a   :  { %11743 = vmatpush1.bf16.msra.mxu0 %v17394_v13  ;;  %v16986_v36 = vpack.c.bf16 %v366_v24, %v338_v23  ;;  %v591_v13 = vld [vmem:[#allocation5 + $0xdd8] sm:$0xff] }
 0x25b   :  { %11744 = vmatprep.subr.bf16.mxu0 %v17402_v4 }
 0x25c   :  { %16899 = vmatpush1.bf16.msra.mxu1 %v16898_v7  ;;  %v423_v7 = vld [vmem:[#allocation5 + $0x898] sm:$0xff] }
 0x25d   :  { %16901 = vmatprep.subr.bf16.mxu1 %v16900_v32  ;;  %v394_v32 = vld [vmem:[#allocation5 + $0x7b0] sm:$0xff]  ;;  %v16988_v41 = vpack.c.bf16 %v423_v7, %v395_v26 }
 0x25e   :  { %11745 = vmatpush1.bf16.msra.mxu0 %v17400_v22  ;;  %v16990_v53 = vpack.c.bf16 %v422_v34, %v394_v32  ;;  %v17426_v22 = vld [vmem:[#allocation8 + $0x624] ss:$56 sps:$4 sm:$0xff]   ;;  %v17424_v26 = vld [vmem:[#allocation8 + $0x620] ss:$56 sps:$4 sm:$0xff]  }
 0x25f   :  { %11746 = vmatprep.subr.bf16.mxu0 %v17408_v31  ;;  %v647_v32 = vld [vmem:[#allocation5 + $0xf98] sm:$0xff] }
 0x260   :  { %16903 = vmatpush1.bf16.msra.mxu1 %v16902_v40  ;;  %v479_v40 = vld [vmem:[#allocation5 + $0xa58] sm:$0xff] }
 0x261   :  { %16905 = vmatprep.subr.bf16.mxu1 %v16904_v48  ;;  %v20294_v48 = vsub.s32 6, %v20251_v38  ;;  %v16992_v56 = vpack.c.bf16 %v479_v40, %v451_v37  ;;  %v646_v37 = vld [vmem:[#allocation5 + $0xf90] sm:$0xff] }
 0x262   :  { %11747 = vmatpush1.bf16.msra.mxu0 %v17406_v30  ;;  %v17432_v40 = vld [vmem:[#allocation8 + $0x694] ss:$56 sps:$4 sm:$0xff]  }
 0x263   :  { %11748 = vmatprep.subr.bf16.mxu0 %v17414_v44  ;;  %v1079_v62 = vrot.slane %v20256_v50, %v20294_v48  ;;  %v17430_v44 = vld [vmem:[#allocation8 + $0x690] ss:$56 sps:$4 sm:$0xff]  }
 0x264   :  { %16907 = vmatpush1.bf16.msra.mxu1 %v16906_v54  ;;  %v20297_v54 = vsub.s32 7, %v20251_v38  ;;  %v16996_v38 = vpack.c.bf16 %v535_v33, %v507_v55  ;;  %v703_v55 = vld [vmem:[#allocation5 + $0x1158] sm:$0xff]  ;;  %v674_v33 = vld [vmem:[#allocation5 + $0x1070] sm:$0xff] }
 0x265   :  { %16973 = vmatprep.subr.bf16.mxu1 %v16972_v57  ;;  %v17418_v57 = vld [vmem:[#allocation8 + $0x5b0] ss:$56 sps:$4 sm:$0xff]  }
 0x266   :  { %11749 = vmatpush1.bf16.msra.mxu0 %v17412_v43  ;;  %v1083_v2 = vrot.slane %v20256_v50, %v20297_v54 }
 0x267   :  { %1896 = vmatmul.mubr.f32.vlgmr.msra.gmra.mrb[12].mxu1 %v20287_v6  ;;  %11750 = vmatprep.subr.bf16.mxu0 %v17420_v16  ;;  %v702_v16 = vld [vmem:[#allocation5 + $0x1150] sm:$0xff] }
 0x268   :  { %16975 = vmatpush1.bf16.msra.mxu1 %v16974_v0  ;;  %2037 = vmatprep.mubr.f32.mxu1 %v20290_v20  ;;  %v534_v0 = vld [vmem:[#allocation5 + $0xc10] sm:$0xff] }
 0x269   :  { %16977 = vmatprep.subr.bf16.mxu1 %v16976_v3  ;;  %v16994_v3 = vpack.c.bf16 %v478_v47, %v450_v45  ;;  %v16998_v50 = vpack.c.bf16 %v534_v0, %v506_v63  ;;  %v731_v63 = vld [vmem:[#allocation5 + $0x1238] sm:$0xff] }
 0x26a   :  { %11751 = vmatpush1.bf16.msra.mxu0 %v17418_v57  ;;  %v759_v0 = vld [vmem:[#allocation5 + $0x1318] sm:$0xff] }
 0x26b   :  { %11752 = vmatprep.subr.bf16.mxu0 %v17426_v22  ;;  %v870_v22 = vld [vmem:[#allocation5 + $0x1690] sm:$0xff] }
 0x26c   :  { %16979 = vmatpush1.bf16.msra.mxu1 %v16978_v17 }
 0x26d   :  { %16981 = vmatprep.subr.bf16.mxu1 %v16980_v21  ;;  %v590_v21 = vld [vmem:[#allocation5 + $0xdd0] sm:$0xff] }
 0x26e   :  { %11753 = vmatpush1.bf16.msra.mxu0 %v17424_v26  ;;  %v17002_v43 = vpack.c.bf16 %v590_v21, %v562_v19  ;;  %v871_v19 = vld [vmem:[#allocation5 + $0x1698] sm:$0xff]  ;;  %v842_v21 = vld [vmem:[#allocation5 + $0x15b0] sm:$0xff] }
 0x26f   :  { %11754 = vmatprep.subr.bf16.mxu0 %v17432_v40  ;;  %v926_v26 = vld [vmem:[#allocation5 + $0x1850] sm:$0xff]  ;;  %v1039_v40 = vld [vmem:[#allocation5 + $0x1bd8] sm:$0xff] }
 0x270   :  { %16983 = vmatpush1.bf16.msra.mxu1 %v16982_v25  ;;  %v619_v25 = vld [vmem:[#allocation5 + $0xeb8] sm:$0xff] }
 0x271   :  { %16985 = vmatprep.subr.bf16.mxu1 %v16984_v29  ;;  %v17000_v29 = vpack.c.bf16 %v591_v13, %v563_v5  ;;  %v17004_v47 = vpack.c.bf16 %v647_v32, %v619_v25  ;;  %v17012_v5 = vpack.c.bf16 %v759_v0, %v731_v63  ;;  %v814_v13 = vld [vmem:[#allocation5 + $0x14d0] sm:$0xff]  ;;  %v231_v63 = vld [vmem:[#allocation5 + $0x298] sm:$0xff] }
 0x272   :  { %11755 = vmatpush1.bf16.msra.mxu0 %v17430_v44  ;;  %v898_v25 = vld [vmem:[#allocation5 + $0x1770] sm:$0xff]  ;;  %v259_v0 = vld [vmem:[#allocation5 + $0x378] sm:$0xff] }
 0x273   :  { %v982_v32 = vld [vmem:[#allocation5 + $0x1a10] sm:$0xff] }
 0x274   :  { %16987 = vmatpush1.bf16.msra.mxu1 %v16986_v36  ;;  %v618_v36 = vld [vmem:[#allocation5 + $0xeb0] sm:$0xff] }
 0x275   :  { %16989 = vmatprep.subr.bf16.mxu1 %v16988_v41  ;;  %v17006_v57 = vpack.c.bf16 %v646_v37, %v618_v36  ;;  %v1011_v37 = vld [vmem:[#allocation5 + $0x1af8] sm:$0xff]  ;;  %v1038_v44 = vld [vmem:[#allocation5 + $0x1bd0] sm:$0xff] }
 0x278   :  { %16991 = vmatpush1.bf16.msra.mxu1 %v16990_v53  ;;  %v675_v53 = vld [vmem:[#allocation5 + $0x1078] sm:$0xff] }
 0x279   :  { %16993 = vmatprep.subr.bf16.mxu1 %v16992_v56  ;;  %v17438_v56 = vld [vmem:[#allocation8 + $0x704] ss:$56 sps:$4 sm:$0xff]  }
 0x27a   :  { %v1471_v11 = vpop.f32.mrb[6].mxu1  ;;  %11765 = vmatprep.subr.bf16.mxu0 %v17438_v56  ;;  %v174_v56 = vld [vmem:[#allocation5 + $0xd0] sm:$0xff] }
 0x27b   :  { %v1472_v14 = vadd.f32 %v1471_v11, %v1079_v62  ;;  %v1473_v18 = vpop.f32.mrb[7].mxu1  ;;  %v17008_v62 = vpack.c.bf16 %v703_v55, %v675_v53  ;;  %v786_v11 = vld [vmem:[#allocation5 + $0x13f0] sm:$0xff]  ;;  %v17032_v53 = vpack.c.bf16 %v1039_v40, %v1011_v37  ;;  %v175_v55 = vld [vmem:[#allocation5 + $0xd8] sm:$0xff] }
 0x27c   :  { %v1968_v17 = vpop.f32.mrb[6].mxu0  ;;  %v1474_v23 = vadd.f32 %v1473_v18, %v1083_v2  ;;  %16995 = vmatpush1.bf16.msra.mxu1 %v16994_v3  ;;  %v758_v2 = vld [vmem:[#allocation5 + $0x1310] sm:$0xff]  ;;  %v17010_v3 = vpack.c.bf16 %v702_v16, %v674_v33  ;;  %v843_v18 = vld [vmem:[#allocation5 + $0x15b8] sm:$0xff] }
 0x27d   :  { %v1969_v4 = vadd.f32 %v1968_v17, %v1135_v1  ;;  %v1970_v24 = vpop.f32.mrb[7].mxu0  ;;  %v2192_v7 = vmax.f32 %v1472_v14, 0.0  ;;  %16997 = vmatprep.subr.bf16.mxu1 %v16996_v38  ;;  %v730_v1 = vld [vmem:[#allocation5 + $0x1230] sm:$0xff]  ;;  %v815_v38 = vld [vmem:[#allocation5 + $0x14d8] sm:$0xff] }
 0x27e   :  { %v1971_v52 = vadd.f32 %v1970_v24, %v1139_v9  ;;  %v2193_v31 = vmax.f32 %v1474_v23, 0.0  ;;  %v787_v9 = vld [vmem:[#allocation5 + $0x13f8] sm:$0xff]  ;;  %v17014_v14 = vpack.c.bf16 %v758_v2, %v730_v1  ;;  %v17020_v23 = vpack.c.bf16 %v871_v19, %v843_v18  ;;  %v230_v1 = vld [vmem:[#allocation5 + $0x290] sm:$0xff] }
 0x27f   :  { %v2206_v30 = vmax.f32 %v1969_v4, 0.0  ;;  %v17016_v17 = vpack.c.bf16 %v815_v38, %v787_v9  ;;  %v17018_v4 = vpack.c.bf16 %v814_v13, %v786_v11  ;;  %v899_v24 = vld [vmem:[#allocation5 + $0x1778] sm:$0xff]  ;;  %v258_v2 = vld [vmem:[#allocation5 + $0x370] sm:$0xff]  ;;  %v17104_v9 = vpack.c.bf16 %v259_v0, %v231_v63 }
 0x280   :  { %v2207_v34 = vmax.f32 %v1971_v52, 0.0  ;;  %16999 = vmatpush1.bf16.msra.mxu1 %v16998_v50  ;;  %v927_v50 = vld [vmem:[#allocation5 + $0x1858] sm:$0xff]  ;;  %v286_v11 = vld [vmem:[#allocation5 + $0x450] sm:$0xff] }
 0x281   :  { %v20313_v41 = vmax.f32 %v2192_v7, %v2206_v30  ;;  %17001 = vmatprep.subr.bf16.mxu1 %v17000_v29  ;;  %v17022_v7 = vpack.c.bf16 %v870_v22, %v842_v21  ;;  %v17024_v52 = vpack.c.bf16 %v927_v50, %v899_v24  ;;  %v955_v29 = vld [vmem:[#allocation5 + $0x1938] sm:$0xff]  ;;  %v314_v13 = vld [vmem:[#allocation5 + $0x530] sm:$0xff] }
 0x282   :  { %v20315_v45 = vmax.f32 %v2193_v31, %v2207_v34  ;;  %v983_v30 = vld [vmem:[#allocation5 + $0x1a18] sm:$0xff]  ;;  %v954_v31 = vld [vmem:[#allocation5 + $0x1930] sm:$0xff]  ;;  %v17026_v34 = vpack.c.bf16 %v926_v26, %v898_v25 }
 0x283   :  { %v17028_v36 = vpack.c.bf16 %v983_v30, %v955_v29  ;;  %v203_v33 = vld [vmem:[#allocation5 + $0x1b8] sm:$0xff]  ;;  %v342_v21 = vld [vmem:[#allocation5 + $0x610] sm:$0xff] }
 0x284   :  { %17003 = vmatpush1.bf16.msra.mxu1 %v17002_v43  ;;  %v1010_v43 = vld [vmem:[#allocation5 + $0x1af0] sm:$0xff]  ;;  %v315_v38 = vld [vmem:[#allocation5 + $0x538] sm:$0xff] }
 0x285   :  { %17005 = vmatprep.subr.bf16.mxu1 %v17004_v47  ;;  %v17030_v47 = vpack.c.bf16 %v982_v32, %v954_v31  ;;  %v17034_v16 = vpack.c.bf16 %v1038_v44, %v1010_v43  ;;  %v343_v18 = vld [vmem:[#allocation5 + $0x618] sm:$0xff]  ;;  %v370_v22 = vld [vmem:[#allocation5 + $0x6f0] sm:$0xff] }
 0x286   :  { %v371_v19 = vld [vmem:[#allocation5 + $0x6f8] sm:$0xff]  ;;  %v398_v25 = vld [vmem:[#allocation5 + $0x7d0] sm:$0xff]  ;;  %v17114_v26 = vpack.c.bf16 %v370_v22, %v342_v21 }
 0x287   :  { %v399_v24 = vld [vmem:[#allocation5 + $0x7d8] sm:$0xff]  ;;  %v454_v30 = vld [vmem:[#allocation5 + $0x990] sm:$0xff] }
 0x288   :  { %17007 = vmatpush1.bf16.msra.mxu1 %v17006_v57  ;;  %v202_v57 = vld [vmem:[#allocation5 + $0x1b0] sm:$0xff]  ;;  %v427_v50 = vld [vmem:[#allocation5 + $0x8b8] sm:$0xff] }
 0x289   :  { %17009 = vmatprep.subr.bf16.mxu1 %v17008_v62  ;;  %v17100_v62 = vpack.c.bf16 %v203_v33, %v175_v55  ;;  %v1047_v29 = vld [vmem:[#allocation7 + $0x18] sm:$0xf]  ;;  %v482_v31 = vld [vmem:[#allocation5 + $0xa70] sm:$0xff] }
 0x28a   :  { %v511_v37 = vld [vmem:[#allocation5 + $0xb58] sm:$0xff]  ;;  %v510_v44 = vld [vmem:[#allocation5 + $0xb50] sm:$0xff]  ;;  %v17122_v33 = vpack.c.bf16 %v482_v31, %v454_v30 }
 0x28b   :  { %v539_v40 = vld [vmem:[#allocation5 + $0xc38] sm:$0xff]  ;;  %v706_v31 = vld [vmem:[#allocation5 + $0x1170] sm:$0xff] }
 0x28c   :  { %17011 = vmatpush1.bf16.msra.mxu1 %v17010_v3  ;;  %v17102_v3 = vpack.c.bf16 %v202_v57, %v174_v56  ;;  %v567_v56 = vld [vmem:[#allocation5 + $0xd18] sm:$0xff]  ;;  %v1155_v57 = vrot.slane %v1047_v29, %v20269_v59 }
 0x28d   :  { %17013 = vmatprep.subr.bf16.mxu1 %v17012_v5  ;;  %v287_v5 = vld [vmem:[#allocation5 + $0x458] sm:$0xff] }
 0x28e   :  { %v595_v63 = vld [vmem:[#allocation5 + $0xdf8] sm:$0xff] }
 0x290   :  { %17015 = vmatpush1.bf16.msra.mxu1 %v17014_v14  ;;  %v17106_v14 = vpack.c.bf16 %v258_v2, %v230_v1 }
 0x291   :  { %17017 = vmatprep.subr.bf16.mxu1 %v17016_v17  ;;  %v17108_v17 = vpack.c.bf16 %v315_v38, %v287_v5  ;;  %v594_v5 = vld [vmem:[#allocation5 + $0xdf0] sm:$0xff] }
 0x294   :  { %17019 = vmatpush1.bf16.msra.mxu1 %v17018_v4  ;;  %v17110_v4 = vpack.c.bf16 %v314_v13, %v286_v11 }
 0x295   :  { %17021 = vmatprep.subr.bf16.mxu1 %v17020_v23  ;;  %v17112_v23 = vpack.c.bf16 %v371_v19, %v343_v18  ;;  %v17128_v19 = vpack.c.bf16 %v595_v63, %v567_v56  ;;  %v818_v56 = vld [vmem:[#allocation5 + $0x14f0] sm:$0xff]  ;;  %v875_v63 = vld [vmem:[#allocation5 + $0x16b8] sm:$0xff] }
 0x298   :  { %17023 = vmatpush1.bf16.msra.mxu1 %v17022_v7  ;;  %v17116_v7 = vpack.c.bf16 %v427_v50, %v399_v24  ;;  %v622_v24 = vld [vmem:[#allocation5 + $0xed0] sm:$0xff] }
 0x299   :  { %17025 = vmatprep.subr.bf16.mxu1 %v17024_v52  ;;  %v455_v52 = vld [vmem:[#allocation5 + $0x998] sm:$0xff] }
 0x29c   :  { %17027 = vmatpush1.bf16.msra.mxu1 %v17026_v34 }
 0x29d   :  { %17029 = vmatprep.subr.bf16.mxu1 %v17028_v36  ;;  %v20319_v36 = vld [vmem:[#allocation7 + $0x8] sm:$0xff] }
 0x29e   :  { %v1095_v43 = vrot.slane %v20319_v36, %v20254_v49  ;;  %v1099_v55 = vrot.slane %v20319_v36, %v20259_v51 }
 0x2a0   :  { %17031 = vmatpush1.bf16.msra.mxu1 %v17030_v47  ;;  %v538_v47 = vld [vmem:[#allocation5 + $0xc30] sm:$0xff] }
 0x2a1   :  { %17033 = vmatprep.subr.bf16.mxu1 %v17032_v53  ;;  %v1151_v53 = vrot.slane %v1047_v29, %v20264_v58  ;;  %v17126_v13 = vpack.c.bf16 %v538_v47, %v510_v44  ;;  %v678_v29 = vld [vmem:[#allocation5 + $0x1090] sm:$0xff] }
 0x2a2   :  { %v17138_v44 = vpack.c.bf16 %v706_v31, %v678_v29  ;;  %v17399_v31 = vld [vmem:[#allocation8 + $0x7c] ss:$56 sps:$4 sm:$0xff]  }
 0x2a4   :  { %17035 = vmatpush1.bf16.msra.mxu1 %v17034_v16  ;;  %v17124_v16 = vpack.c.bf16 %v539_v40, %v511_v37  ;;  %v763_v37 = vld [vmem:[#allocation5 + $0x1338] sm:$0xff]  ;;  %v734_v40 = vld [vmem:[#allocation5 + $0x1250] sm:$0xff] }
 0x2a5   :  { %17101 = vmatprep.subr.bf16.mxu1 %v17100_v62 }
 0x2a7   :  { %2038 = vmatmul.mubr.f32.vlgmr.msra.gmra.mrb[14].mxu1 %v20287_v6  ;;  %v426_v6 = vld [vmem:[#allocation5 + $0x8b0] sm:$0xff] }
 0x2a8   :  { %17103 = vmatpush1.bf16.msra.mxu1 %v17102_v3  ;;  %2179 = vmatprep.mubr.f32.mxu1 %v20290_v20  ;;  %v483_v20 = vld [vmem:[#allocation5 + $0xa78] sm:$0xff]  ;;  %v17118_v32 = vpack.c.bf16 %v426_v6, %v398_v25  ;;  %v566_v3 = vld [vmem:[#allocation5 + $0xd10] sm:$0xff] }
 0x2a9   :  { %17105 = vmatprep.subr.bf16.mxu1 %v17104_v9  ;;  %v17120_v34 = vpack.c.bf16 %v483_v20, %v455_v52  ;;  %v17130_v25 = vpack.c.bf16 %v594_v5, %v566_v3  ;;  %v650_v6 = vld [vmem:[#allocation5 + $0xfb0] sm:$0xff]  ;;  %v679_v52 = vld [vmem:[#allocation5 + $0x1098] sm:$0xff] }
 0x2aa   :  { %v707_v20 = vld [vmem:[#allocation5 + $0x1178] sm:$0xff]  ;;  %v17134_v30 = vpack.c.bf16 %v650_v6, %v622_v24  ;;  %v1042_v6 = vld [vmem:[#allocation5 + $0x1bf0] sm:$0xff] }
 0x2ab   :  { %v903_v5 = vld [vmem:[#allocation5 + $0x1798] sm:$0xff] }
 0x2ac   :  { %17107 = vmatpush1.bf16.msra.mxu1 %v17106_v14  ;;  %v623_v14 = vld [vmem:[#allocation5 + $0xed8] sm:$0xff] }
 0x2ad   :  { %17109 = vmatprep.subr.bf16.mxu1 %v17108_v17  ;;  %v1043_v24 = vld [vmem:[#allocation5 + $0x1bf8] sm:$0xff] }
 0x2b0   :  { %17111 = vmatpush1.bf16.msra.mxu1 %v17110_v4  ;;  %v651_v4 = vld [vmem:[#allocation5 + $0xfb8] sm:$0xff] }
 0x2b1   :  { %17113 = vmatprep.subr.bf16.mxu1 %v17112_v23 }
 0x2b4   :  { %17115 = vmatpush1.bf16.msra.mxu1 %v17114_v26 }
 0x2b5   :  { %17117 = vmatprep.subr.bf16.mxu1 %v17116_v7  ;;  %v17132_v7 = vpack.c.bf16 %v651_v4, %v623_v14 }
 0x2b8   :  { %17119 = vmatpush1.bf16.msra.mxu1 %v17118_v32  ;;  %v17136_v32 = vpack.c.bf16 %v707_v20, %v679_v52  ;;  %v17393_v20 = vld [vmem:[#allocation8 + $0xc] ss:$56 sps:$4 sm:$0xff]  }
 0x2b9   :  { %17121 = vmatprep.subr.bf16.mxu1 %v17120_v34  ;;  %v735_v34 = vld [vmem:[#allocation5 + $0x1258] sm:$0xff] }
 0x2ba   :  { %v1613_v62 = vpop.f32.mrb[8].mxu1  ;;  %v17140_v47 = vpack.c.bf16 %v763_v37, %v735_v34  ;;  %v17397_v34 = vld [vmem:[#allocation8 + $0x78] ss:$56 sps:$4 sm:$0xff]   ;;  %v17405_v37 = vld [vmem:[#allocation8 + $0xec] ss:$56 sps:$4 sm:$0xff]  }
 0x2bb   :  { %v1614_v0 = vadd.f32 %v1613_v62, %v1095_v43  ;;  %v1615_v2 = vpop.f32.mrb[9].mxu1  ;;  %v762_v43 = vld [vmem:[#allocation5 + $0x1330] sm:$0xff]  ;;  %v847_v62 = vld [vmem:[#allocation5 + $0x15d8] sm:$0xff] }
 0x2bc   :  { %v2110_v1 = vpop.f32.mrb[8].mxu0  ;;  %v1616_v38 = vadd.f32 %v1615_v2, %v1099_v55  ;;  %17123 = vmatpush1.bf16.msra.mxu1 %v17122_v33  ;;  %v819_v55 = vld [vmem:[#allocation5 + $0x14f8] sm:$0xff]  ;;  %v790_v33 = vld [vmem:[#allocation5 + $0x1410] sm:$0xff]  ;;  %v17148_v3 = vpack.c.bf16 %v875_v63, %v847_v62  ;;  %v1111_v62 = vrot.slane %v20319_v36, %v20294_v48  ;;  %v17429_v63 = vld [vmem:[#allocation8 + $0x2ac] ss:$56 sps:$4 sm:$0xff]  }
 0x2bd   :  { %v2111_v9 = vadd.f32 %v2110_v1, %v1151_v53  ;;  %v2112_v11 = vpop.f32.mrb[9].mxu0  ;;  %v2196_v17 = vmax.f32 %v1614_v0, 0.0  ;;  %17125 = vmatprep.subr.bf16.mxu1 %v17124_v16  ;;  %v791_v53 = vld [vmem:[#allocation5 + $0x1418] sm:$0xff]  ;;  %v846_v0 = vld [vmem:[#allocation5 + $0x15d0] sm:$0xff]  ;;  %v17146_v2 = vpack.c.bf16 %v818_v56, %v790_v33  ;;  %v20331_v33 = vld [vmem:[#allocation7] sm:$0xff] }
 0x2be   :  { %v2113_v18 = vadd.f32 %v2112_v11, %v1155_v57  ;;  %v2197_v22 = vmax.f32 %v1616_v38, 0.0  ;;  %v17142_v57 = vpack.c.bf16 %v762_v43, %v734_v40  ;;  %v17144_v16 = vpack.c.bf16 %v819_v55, %v791_v53  ;;  %v874_v1 = vld [vmem:[#allocation5 + $0x16b0] sm:$0xff]  ;;  %v17403_v40 = vld [vmem:[#allocation8 + $0xe8] ss:$56 sps:$4 sm:$0xff]  }
 0x2bf   :  { %v2210_v21 = vmax.f32 %v2111_v9, 0.0  ;;  %v931_v9 = vld [vmem:[#allocation5 + $0x1878] sm:$0xff]  ;;  %v902_v38 = vld [vmem:[#allocation5 + $0x1790] sm:$0xff]  ;;  %v1055_v56 = vrot.slane %v20331_v33, %v20264_v58 }
 0x2c0   :  { %v2211_v23 = vmax.f32 %v2113_v18, 0.0  ;;  %17127 = vmatpush1.bf16.msra.mxu1 %v17126_v13  ;;  %v930_v11 = vld [vmem:[#allocation5 + $0x1870] sm:$0xff]  ;;  %v17150_v13 = vpack.c.bf16 %v874_v1, %v846_v0  ;;  %v17152_v14 = vpack.c.bf16 %v931_v9, %v903_v5  ;;  %v987_v18 = vld [vmem:[#allocation5 + $0x1a38] sm:$0xff]  ;;  %v1115_v0 = vrot.slane %v20319_v36, %v20297_v54 }
 0x2c1   :  { %v20327_v50 = vmax.f32 %v2196_v17, %v2210_v21  ;;  %17129 = vmatprep.subr.bf16.mxu1 %v17128_v19  ;;  %v959_v17 = vld [vmem:[#allocation5 + $0x1958] sm:$0xff]  ;;  %v958_v19 = vld [vmem:[#allocation5 + $0x1950] sm:$0xff]  ;;  %v1259_v1 = vadd.f32 %v20226_v35, %v1055_v56 }
 0x2c2   :  { %v20329_v26 = vmax.f32 %v2197_v22, %v2211_v23  ;;  %v986_v21 = vld [vmem:[#allocation5 + $0x1a30] sm:$0xff]  ;;  %v17154_v22 = vpack.c.bf16 %v930_v11, %v902_v38  ;;  %v17156_v4 = vpack.c.bf16 %v987_v18, %v959_v17  ;;  %v1015_v23 = vld [vmem:[#allocation5 + $0x1b18] sm:$0xff] }
 0x2c3   :  { %v17160_v52 = vpack.c.bf16 %v1043_v24, %v1015_v23  ;;  %v17411_v43 = vld [vmem:[#allocation8 + $0x15c] ss:$56 sps:$4 sm:$0xff]   ;;  %v17415_v53 = vld [vmem:[#allocation8 + $0x1c8] ss:$56 sps:$4 sm:$0xff]   ;;  %v17441_v23 = vld [vmem:[#allocation8 + $0x38c] ss:$56 sps:$4 sm:$0xff]  }
 0x2c4   :  { %17131 = vmatpush1.bf16.msra.mxu1 %v17130_v25  ;;  %v1014_v25 = vld [vmem:[#allocation5 + $0x1b10] sm:$0xff]  ;;  %v17427_v38 = vld [vmem:[#allocation8 + $0x2a8] ss:$56 sps:$4 sm:$0xff]  }
 0x2c5   :  { %17133 = vmatprep.subr.bf16.mxu1 %v17132_v7  ;;  %v17158_v7 = vpack.c.bf16 %v986_v21, %v958_v19  ;;  %v17162_v29 = vpack.c.bf16 %v1042_v6, %v1014_v25  ;;  %v17423_v55 = vld [vmem:[#allocation8 + $0x23c] ss:$56 sps:$4 sm:$0xff]   ;;  %v17436_v35 = vld [vmem:[#allocation8 + $0x700] ss:$56 sps:$4 sm:$0xff]   ;;  %v20349_v6 = vpack.c.bf16 %v20285_v28, %v20285_v28 }
 0x2c6   :  { %v17444_v25 = vld [vmem:[#allocation8 + $0x774] ss:$56 sps:$4 sm:$0xff]   ;;  %v17448_v28 = vld [vmem:[#allocation8 + $0x7e0] ss:$56 sps:$4 sm:$0xff]  }
 0x2c7   :  { %v17471_v56 = vld [vmem:[#allocation8 + $0x5bc] ss:$56 sps:$4 sm:$0xff]  }
 0x2c8   :  { %17135 = vmatpush1.bf16.msra.mxu1 %v17134_v30  ;;  %v17391_v30 = vld [vmem:[#allocation8 + $0x8] ss:$56 sps:$4 sm:$0xff]  }
 0x2c9   :  { %17137 = vmatprep.subr.bf16.mxu1 %v17136_v32  ;;  %v19786_v32 = vld [vmem:[#allocation2] sm:$0xff] }
 0x2cc   :  { %17139 = vmatpush1.bf16.msra.mxu1 %v17138_v44  ;;  %v17409_v44 = vld [vmem:[#allocation8 + $0x158] ss:$56 sps:$4 sm:$0xff]  }
 0x2cd   :  { %17141 = vmatprep.subr.bf16.mxu1 %v17140_v47  ;;  %v17417_v47 = vld [vmem:[#allocation8 + $0x1cc] ss:$56 sps:$4 sm:$0xff]  }
 0x2d0   :  { %17143 = vmatpush1.bf16.msra.mxu1 %v17142_v57  ;;  %v1059_v57 = vrot.slane %v20331_v33, %v20269_v59 }
 0x2d1   :  { %17145 = vmatprep.subr.bf16.mxu1 %v17144_v16  ;;  %v17421_v16 = vld [vmem:[#allocation8 + $0x238] ss:$56 sps:$4 sm:$0xff]  }
 0x2d4   :  { %17147 = vmatpush1.bf16.msra.mxu1 %v17146_v2  ;;  %v1261_v2 = vadd.f32 %v20228_v39, %v1059_v57  ;;  %v17439_v39 = vld [vmem:[#allocation8 + $0x388] ss:$56 sps:$4 sm:$0xff]  }
 0x2d5   :  { %17149 = vmatprep.subr.bf16.mxu1 %v17148_v3  ;;  %v17466_v57 = vld [vmem:[#allocation8 + $0x930] ss:$56 sps:$4 sm:$0xff]  }
 0x2d6   :  { %v2187_v18 = vmax.f32 %v1261_v2, 0.0  ;;  %v17480_v2 = vld [vmem:[#allocation8 + $0xa14] ss:$56 sps:$4 sm:$0xff]  }
 0x2d8   :  { %17151 = vmatpush1.bf16.msra.mxu1 %v17150_v13  ;;  %v17435_v13 = vld [vmem:[#allocation8 + $0x31c] ss:$56 sps:$4 sm:$0xff]  }
 0x2d9   :  { %17153 = vmatprep.subr.bf16.mxu1 %v17152_v14  ;;  %v2186_v14 = vmax.f32 %v1259_v1, 0.0  ;;  %v17475_v1 = vld [vmem:[#allocation8 + $0x628] ss:$56 sps:$4 sm:$0xff]  }
 0x2dc   :  { %17155 = vmatpush1.bf16.msra.mxu1 %v17154_v22  ;;  %v17433_v22 = vld [vmem:[#allocation8 + $0x318] ss:$56 sps:$4 sm:$0xff]  }
 0x2dd   :  { %17157 = vmatprep.subr.bf16.mxu1 %v17156_v4 }
 0x2e0   :  { %17159 = vmatpush1.bf16.msra.mxu1 %v17158_v7  ;;  %v17447_v7 = vld [vmem:[#allocation8 + $0x3fc] ss:$56 sps:$4 sm:$0xff]  }
 0x2e1   :  { %17161 = vmatprep.subr.bf16.mxu1 %v17160_v52  ;;  %v17442_v52 = vld [vmem:[#allocation8 + $0x770] ss:$56 sps:$4 sm:$0xff]  }
 0x2e4   :  { %17163 = vmatpush1.bf16.msra.mxu1 %v17162_v29  ;;  %v17450_v29 = vld [vmem:[#allocation8 + $0x7e4] ss:$56 sps:$4 sm:$0xff]  }
 0x2e5   :  { %12011 = vmatprep.subr.bf16.mxu1 %v17393_v20  ;;  %v17445_v20 = vld [vmem:[#allocation8 + $0x3f8] ss:$56 sps:$4 sm:$0xff]  }
 0x2e7   :  { %2180 = vmatmul.mubr.f32.vlgmr.msra.gmra.mrb[16].mxu1 %v19786_v32  ;;  %v17456_v32 = vld [vmem:[#allocation8 + $0x854] ss:$56 sps:$4 sm:$0xff]  }
 0x2e8   :  { %12012 = vmatpush1.bf16.msra.mxu1 %v17391_v30  ;;  %v17453_v30 = vld [vmem:[#allocation8 + $0x46c] ss:$56 sps:$4 sm:$0xff]  }
 0x2e9   :  { %12013 = vmatprep.subr.bf16.mxu1 %v17399_v31  ;;  %v17451_v31 = vld [vmem:[#allocation8 + $0x468] ss:$56 sps:$4 sm:$0xff]  }
 0x2ec   :  { %12014 = vmatpush1.bf16.msra.mxu1 %v17397_v34  ;;  %v17459_v34 = vld [vmem:[#allocation8 + $0x4dc] ss:$56 sps:$4 sm:$0xff]  }
 0x2ed   :  { %12015 = vmatprep.subr.bf16.mxu1 %v17405_v37  ;;  %v17454_v37 = vld [vmem:[#allocation8 + $0x850] ss:$56 sps:$4 sm:$0xff]  }
 0x2f0   :  { %12016 = vmatpush1.bf16.msra.mxu1 %v17403_v40  ;;  %v17457_v40 = vld [vmem:[#allocation8 + $0x4d8] ss:$56 sps:$4 sm:$0xff]  }
 0x2f1   :  { %12017 = vmatprep.subr.bf16.mxu1 %v17411_v43  ;;  %v17462_v43 = vld [vmem:[#allocation8 + $0x8c4] ss:$56 sps:$4 sm:$0xff]  }
 0x2f4   :  { %12018 = vmatpush1.bf16.msra.mxu1 %v17409_v44  ;;  %v17465_v44 = vld [vmem:[#allocation8 + $0x54c] ss:$56 sps:$4 sm:$0xff]  }
 0x2f5   :  { %12019 = vmatprep.subr.bf16.mxu1 %v17417_v47  ;;  %v17460_v47 = vld [vmem:[#allocation8 + $0x8c0] ss:$56 sps:$4 sm:$0xff]  }
 0x2f8   :  { %12020 = vmatpush1.bf16.msra.mxu1 %v17415_v53  ;;  %v17463_v53 = vld [vmem:[#allocation8 + $0x548] ss:$56 sps:$4 sm:$0xff]  }
 0x2f9   :  { %12021 = vmatprep.subr.bf16.mxu1 %v17423_v55  ;;  %v17468_v55 = vld [vmem:[#allocation8 + $0x934] ss:$56 sps:$4 sm:$0xff]  }
 0x2fa   :  { %v1755_v3 = vpop.f32.mrb[10].mxu1 }
 0x2fb   :  { %v1756_v5 = vadd.f32 %v1755_v3, %v1111_v62  ;;  %v1757_v9 = vpop.f32.mrb[11].mxu1  ;;  %v17474_v62 = vld [vmem:[#allocation8 + $0x9a4] ss:$56 sps:$4 sm:$0xff]  }
 0x2fc   :  { %v1758_v11 = vadd.f32 %v1757_v9, %v1115_v0  ;;  %12022 = vmatpush1.bf16.msra.mxu1 %v17421_v16  ;;  %v17469_v16 = vld [vmem:[#allocation8 + $0x5b8] ss:$56 sps:$4 sm:$0xff]   ;;  %v17483_v3 = vld [vmem:[#allocation8 + $0x69c] ss:$56 sps:$4 sm:$0xff]  }
 0x2fd   :  { %v2200_v17 = vmax.f32 %v1756_v5, 0.0  ;;  %12023 = vmatprep.subr.bf16.mxu1 %v17429_v63  ;;  %v17477_v63 = vld [vmem:[#allocation8 + $0x62c] ss:$56 sps:$4 sm:$0xff]   ;;  %v17472_v0 = vld [vmem:[#allocation8 + $0x9a0] ss:$56 sps:$4 sm:$0xff]  }
 0x2fe   :  { %v2201_v19 = vmax.f32 %v1758_v11, 0.0  ;;  %v17478_v5 = vld [vmem:[#allocation8 + $0xa10] ss:$56 sps:$4 sm:$0xff]   ;;  %v17489_v11 = vld [vmem:[#allocation8 + $0x70c] ss:$56 sps:$4 sm:$0xff]  }
 0x2ff   :  { %v2214_v21 = vmax.f32 %v2186_v14, %v2200_v17  ;;  %v17481_v9 = vld [vmem:[#allocation8 + $0x698] ss:$56 sps:$4 sm:$0xff]   ;;  %v17487_v14 = vld [vmem:[#allocation8 + $0x708] ss:$56 sps:$4 sm:$0xff]   ;;  %v17492_v17 = vld [vmem:[#allocation8 + $0xaf4] ss:$56 sps:$4 sm:$0xff]  }
 0x300   :  { %v2215_v36 = vmax.f32 %v2187_v18, %v2201_v19  ;;  %12024 = vmatpush1.bf16.msra.mxu1 %v17427_v38  ;;  %v17486_v38 = vld [vmem:[#allocation8 + $0xa84] ss:$56 sps:$4 sm:$0xff]   ;;  %v17490_v19 = vld [vmem:[#allocation8 + $0xaf0] ss:$56 sps:$4 sm:$0xff]  }
 0x301   :  { %12025 = vmatprep.subr.bf16.mxu1 %v17435_v13  ;;  %v20345_v24 = vpack.c.bf16 %v2214_v21, %v2214_v21  ;;  %v17484_v13 = vld [vmem:[#allocation8 + $0xa80] ss:$56 sps:$4 sm:$0xff]   ;;  %v17495_v18 = vld [vmem:[#allocation8 + $0x77c] ss:$56 sps:$4 sm:$0xff]  }
 0x302   :  { %v20343_v4 = vpack.c.bf16 %v2215_v36, %v2215_v36  ;;  %v17493_v21 = vld [vmem:[#allocation8 + $0x778] ss:$56 sps:$4 sm:$0xff]   ;;  %v17501_v36 = vld [vmem:[#allocation8 + $0x7ec] ss:$56 sps:$4 sm:$0xff]  }
 0x304   :  { %11756 = vmatprep.mubr.bf16.mxu0 %v20343_v4  ;;  %12026 = vmatpush1.bf16.msra.mxu1 %v17433_v22  ;;  %v17498_v22 = vld [vmem:[#allocation8 + $0xb64] ss:$56 sps:$4 sm:$0xff]  }
 0x305   :  { %12043 = vmatprep.mubr.bf16.mxu1 %v20343_v4  ;;  %11757 = vmatmul.mubr.bf16.vlgmr.msra.gmra.mrb[12].mxu0 %v20345_v24 }
 0x306   :  { %11766 = vmatpush1.bf16.msra.mxu0 %v17436_v35  ;;  %11797 = vmatprep.mubr.bf16.mxu0 %v20349_v6  ;;  %v17496_v35 = vld [vmem:[#allocation8 + $0xb60] ss:$56 sps:$4 sm:$0xff]  }
 0x307   :  { %12027 = vmatprep.subr.bf16.mxu1 %v17441_v23  ;;  %11767 = vmatprep.subr.bf16.mxu0 %v17444_v25  ;;  %v17504_v23 = vld [vmem:[#allocation8 + $0xbd4] ss:$56 sps:$4 sm:$0xff]  }
 0x308   :  { %12028 = vmatpush1.bf16.msra.mxu1 %v17439_v39  ;;  %v17499_v39 = vld [vmem:[#allocation8 + $0x7e8] ss:$56 sps:$4 sm:$0xff]   ;;  %v17507_v25 = vld [vmem:[#allocation8 + $0x85c] ss:$56 sps:$4 sm:$0xff]  }
 0x309   :  { %12029 = vmatprep.subr.bf16.mxu1 %v17447_v7  ;;  %v17502_v7 = vld [vmem:[#allocation8 + $0xbd0] ss:$56 sps:$4 sm:$0xff]  }
 0x30a   :  { %11768 = vmatpush1.bf16.msra.mxu0 %v17442_v52  ;;  %v17505_v52 = vld [vmem:[#allocation8 + $0x858] ss:$56 sps:$4 sm:$0xff]  }
 0x30b   :  { %11769 = vmatprep.subr.bf16.mxu0 %v17450_v29  ;;  %v17513_v29 = vld [vmem:[#allocation8 + $0x8cc] ss:$56 sps:$4 sm:$0xff]  }
 0x30c   :  { %12030 = vmatpush1.bf16.msra.mxu1 %v17445_v20  ;;  %v17510_v20 = vld [vmem:[#allocation8 + $0xc44] ss:$56 sps:$4 sm:$0xff]  }
 0x30d   :  { %12031 = vmatprep.subr.bf16.mxu1 %v17453_v30  ;;  %v17508_v30 = vld [vmem:[#allocation8 + $0xc40] ss:$56 sps:$4 sm:$0xff]  }
 0x30e   :  { %11770 = vmatpush1.bf16.msra.mxu0 %v17448_v28  ;;  %v17511_v28 = vld [vmem:[#allocation8 + $0x8c8] ss:$56 sps:$4 sm:$0xff]  }
 0x30f   :  { %11771 = vmatprep.subr.bf16.mxu0 %v17456_v32  ;;  %v17519_v32 = vld [vmem:[#allocation8 + $0x93c] ss:$56 sps:$4 sm:$0xff]  }
 0x310   :  { %12032 = vmatpush1.bf16.msra.mxu1 %v17451_v31  ;;  %v17516_v31 = vld [vmem:[#allocation8 + $0xcb4] ss:$56 sps:$4 sm:$0xff]  }
 0x311   :  { %12033 = vmatprep.subr.bf16.mxu1 %v17459_v34  ;;  %v1071_v34 = vrot.slane %v20331_v33, %v20300_v60 }
 0x312   :  { %11772 = vmatpush1.bf16.msra.mxu0 %v17454_v37  ;;  %v1075_v37 = vrot.slane %v20331_v33, %v20303_v61 }
 0x313   :  { %11773 = vmatprep.subr.bf16.mxu0 %v17462_v43  ;;  %v17517_v43 = vld [vmem:[#allocation8 + $0x938] ss:$56 sps:$4 sm:$0xff]  }
 0x314   :  { %12034 = vmatpush1.bf16.msra.mxu1 %v17457_v40  ;;  %v17514_v40 = vld [vmem:[#allocation8 + $0xcb0] ss:$56 sps:$4 sm:$0xff]   ;;  %v1403_v33 = vadd.f32 %v20281_v12, %v1075_v37  ;;  %v17561_v37 = vld [vmem:[#allocation8 + $0xc4c] ss:$56 sps:$4 sm:$0xff]  }
 0x315   :  { %12035 = vmatprep.subr.bf16.mxu1 %v17465_v44  ;;  %v17522_v44 = vld [vmem:[#allocation8 + $0xd24] ss:$56 sps:$4 sm:$0xff]   ;;  %v17529_v12 = vld [vmem:[#allocation8 + $0xa18] ss:$56 sps:$4 sm:$0xff]  }
 0x316   :  { %11774 = vmatpush1.bf16.msra.mxu0 %v17460_v47  ;;  %v20361_v47 = vld [vmem:[#allocation7 + $0x10] sm:$0xff] }
 0x317   :  { %11775 = vmatprep.subr.bf16.mxu0 %v17468_v55  ;;  %v17525_v55 = vld [vmem:[#allocation8 + $0x9ac] ss:$56 sps:$4 sm:$0xff]  }
 0x318   :  { %12036 = vmatpush1.bf16.msra.mxu1 %v17463_v53  ;;  %v1127_v53 = vrot.slane %v20361_v47, %v20254_v49 }
 0x319   :  { %12037 = vmatprep.subr.bf16.mxu1 %v17471_v56  ;;  %v1131_v56 = vrot.slane %v20361_v47, %v20259_v51 }
 0x31a   :  { %11776 = vmatpush1.bf16.msra.mxu0 %v17466_v57  ;;  %v1401_v57 = vadd.f32 %v20278_v46, %v1071_v34  ;;  %v17526_v46 = vld [vmem:[#allocation8 + $0xd90] ss:$56 sps:$4 sm:$0xff]   ;;  %v17558_v34 = vld [vmem:[#allocation8 + $0xfc4] ss:$56 sps:$4 sm:$0xff]  }
 0x31b   :  { %11777 = vmatprep.subr.bf16.mxu0 %v17474_v62  ;;  %v17520_v62 = vld [vmem:[#allocation8 + $0xd20] ss:$56 sps:$4 sm:$0xff]  }
 0x31c   :  { %12038 = vmatpush1.bf16.msra.mxu1 %v17469_v16 }
 0x31d   :  { %12039 = vmatprep.subr.bf16.mxu1 %v17477_v63 }
 0x31e   :  { %11778 = vmatpush1.bf16.msra.mxu0 %v17472_v0 }
 0x31f   :  { %11779 = vmatprep.subr.bf16.mxu0 %v17480_v2  ;;  %v17528_v2 = vld [vmem:[#allocation8 + $0xd94] ss:$56 sps:$4 sm:$0xff]  }
 0x320   :  { %12040 = vmatpush1.bf16.msra.mxu1 %v17475_v1  ;;  %v17523_v1 = vld [vmem:[#allocation8 + $0x9a8] ss:$56 sps:$4 sm:$0xff]  }
 0x321   :  { %12041 = vmatprep.subr.bf16.mxu1 %v17483_v3 }
 0x322   :  { %11780 = vmatpush1.bf16.msra.mxu0 %v17478_v5  ;;  %v17531_v5 = vld [vmem:[#allocation8 + $0xa1c] ss:$56 sps:$4 sm:$0xff]  }
 0x323   :  { %11781 = vmatprep.subr.bf16.mxu0 %v17486_v38 }
 0x324   :  { %12042 = vmatpush1.bf16.msra.mxu1 %v17481_v9  ;;  %v2190_v9 = vmax.f32 %v1401_v57, 0.0  ;;  %v17570_v57 = vld [vmem:[#allocation8 + $0x10a4] ss:$56 sps:$4 sm:$0xff]  }
 0x325   :  { %12052 = vmatprep.subr.bf16.mxu1 %v17489_v11  ;;  %v2191_v11 = vmax.f32 %v1403_v33, 0.0  ;;  %v17573_v33 = vld [vmem:[#allocation8 + $0xd2c] ss:$56 sps:$4 sm:$0xff]  }
 0x326   :  { %11782 = vmatpush1.bf16.msra.mxu0 %v17484_v13 }
 0x327   :  { %12044 = vmatmul.mubr.bf16.vlgmr.msra.gmra.mrb[20].mxu1 %v20345_v24  ;;  %11783 = vmatprep.subr.bf16.mxu0 %v17492_v17  ;;  %v17534_v17 = vld [vmem:[#allocation8 + $0xe04] ss:$56 sps:$4 sm:$0xff]  }
 0x328   :  { %12053 = vmatpush1.bf16.msra.mxu1 %v17487_v14  ;;  %12084 = vmatprep.mubr.bf16.mxu1 %v20349_v6 }
 0x329   :  { %12054 = vmatprep.subr.bf16.mxu1 %v17495_v18 }
 0x32a   :  { %11784 = vmatpush1.bf16.msra.mxu0 %v17490_v19  ;;  %v17537_v19 = vld [vmem:[#allocation8 + $0xa8c] ss:$56 sps:$4 sm:$0xff]  }
 0x32b   :  { %11785 = vmatprep.subr.bf16.mxu0 %v17498_v22  ;;  %v17532_v22 = vld [vmem:[#allocation8 + $0xe00] ss:$56 sps:$4 sm:$0xff]  }
 0x32c   :  { %12055 = vmatpush1.bf16.msra.mxu1 %v17493_v21 }
 0x32d   :  { %12056 = vmatprep.subr.bf16.mxu1 %v17501_v36  ;;  %v17535_v36 = vld [vmem:[#allocation8 + $0xa88] ss:$56 sps:$4 sm:$0xff]  }
 0x32e   :  { %11786 = vmatpush1.bf16.msra.mxu0 %v17496_v35  ;;  %v20375_v35 = vpack.c.bf16 %v20283_v27, %v20283_v27  ;;  %v17544_v27 = vld [vmem:[#allocation8 + $0xee0] ss:$56 sps:$4 sm:$0xff]  }
 0x32f   :  { %11787 = vmatprep.subr.bf16.mxu0 %v17504_v23  ;;  %v17543_v23 = vld [vmem:[#allocation8 + $0xafc] ss:$56 sps:$4 sm:$0xff]  }
 0x330   :  { %12057 = vmatpush1.bf16.msra.mxu1 %v17499_v39  ;;  %v17540_v39 = vld [vmem:[#allocation8 + $0xe74] ss:$56 sps:$4 sm:$0xff]  }
 0x331   :  { %12058 = vmatprep.subr.bf16.mxu1 %v17507_v25  ;;  %v17538_v25 = vld [vmem:[#allocation8 + $0xe70] ss:$56 sps:$4 sm:$0xff]  }
 0x332   :  { %11788 = vmatpush1.bf16.msra.mxu0 %v17502_v7  ;;  %v17541_v7 = vld [vmem:[#allocation8 + $0xaf8] ss:$56 sps:$4 sm:$0xff]  }
 0x333   :  { %11789 = vmatprep.subr.bf16.mxu0 %v17510_v20  ;;  %v17549_v20 = vld [vmem:[#allocation8 + $0xb6c] ss:$56 sps:$4 sm:$0xff]  }
 0x334   :  { %12059 = vmatpush1.bf16.msra.mxu1 %v17505_v52  ;;  %v17546_v52 = vld [vmem:[#allocation8 + $0xee4] ss:$56 sps:$4 sm:$0xff]  }
 0x335   :  { %12060 = vmatprep.subr.bf16.mxu1 %v17513_v29  ;;  %v17547_v29 = vld [vmem:[#allocation8 + $0xb68] ss:$56 sps:$4 sm:$0xff]  }
 0x336   :  { %11790 = vmatpush1.bf16.msra.mxu0 %v17508_v30  ;;  %v17552_v30 = vld [vmem:[#allocation8 + $0xf54] ss:$56 sps:$4 sm:$0xff]  }
 0x337   :  { %11791 = vmatprep.subr.bf16.mxu0 %v17516_v31  ;;  %v17550_v31 = vld [vmem:[#allocation8 + $0xf50] ss:$56 sps:$4 sm:$0xff]  }
 0x338   :  { %12061 = vmatpush1.bf16.msra.mxu1 %v17511_v28  ;;  %v17555_v28 = vld [vmem:[#allocation8 + $0xbdc] ss:$56 sps:$4 sm:$0xff]  }
 0x339   :  { %12062 = vmatprep.subr.bf16.mxu1 %v17519_v32  ;;  %v17553_v32 = vld [vmem:[#allocation8 + $0xbd8] ss:$56 sps:$4 sm:$0xff]  }
 0x33a   :  { %11792 = vmatpush1.bf16.msra.mxu0 %v17514_v40  ;;  %v1897_v16 = vpop.f32.mrb[12].mxu1  ;;  %v17556_v40 = vld [vmem:[#allocation8 + $0xfc0] ss:$56 sps:$4 sm:$0xff]  }
 0x33b   :  { %v1898_v63 = vadd.f32 %v1897_v16, %v1127_v53  ;;  %v1899_v0 = vpop.f32.mrb[13].mxu1  ;;  %11793 = vmatprep.subr.bf16.mxu0 %v17522_v44  ;;  %v17564_v44 = vld [vmem:[#allocation8 + $0x1034] ss:$56 sps:$4 sm:$0xff]   ;;  %v17568_v16 = vld [vmem:[#allocation8 + $0x10a0] ss:$56 sps:$4 sm:$0xff]  }
 0x33c   :  { %v1900_v3 = vadd.f32 %v1899_v0, %v1131_v56  ;;  %12063 = vmatpush1.bf16.msra.mxu1 %v17517_v43  ;;  %v17559_v43 = vld [vmem:[#allocation8 + $0xc48] ss:$56 sps:$4 sm:$0xff]   ;;  %v17567_v53 = vld [vmem:[#allocation8 + $0xcbc] ss:$56 sps:$4 sm:$0xff]   ;;  %v17565_v56 = vld [vmem:[#allocation8 + $0xcb8] ss:$56 sps:$4 sm:$0xff]  }
 0x33d   :  { %v2204_v38 = vmax.f32 %v1898_v63, 0.0  ;;  %12064 = vmatprep.subr.bf16.mxu1 %v17525_v55  ;;  %v17562_v55 = vld [vmem:[#allocation8 + $0x1030] ss:$56 sps:$4 sm:$0xff]   ;;  %v17576_v63 = vld [vmem:[#allocation8 + $0x1114] ss:$56 sps:$4 sm:$0xff]  }
 0x33e   :  { %v2205_v13 = vmax.f32 %v1900_v3, 0.0  ;;  %11794 = vmatpush1.bf16.msra.mxu0 %v17520_v62  ;;  %v17571_v62 = vld [vmem:[#allocation8 + $0xd28] ss:$56 sps:$4 sm:$0xff]   ;;  %v17579_v0 = vld [vmem:[#allocation8 + $0xd9c] ss:$56 sps:$4 sm:$0xff]  }
 0x33f   :  { %v20369_v14 = vmax.f32 %v2190_v9, %v2204_v38  ;;  %11795 = vmatprep.subr.bf16.mxu0 %v17528_v2  ;;  %v17577_v2 = vld [vmem:[#allocation8 + $0xd98] ss:$56 sps:$4 sm:$0xff]   ;;  %v17582_v3 = vld [vmem:[#allocation8 + $0x1184] ss:$56 sps:$4 sm:$0xff]   ;;  %v17583_v38 = vld [vmem:[#allocation8 + $0xe08] ss:$56 sps:$4 sm:$0xff]  }
 0x340   :  { %v2219_v18 = vmax.f32 %v2191_v11, %v2205_v13  ;;  %12065 = vmatpush1.bf16.msra.mxu1 %v17523_v1  ;;  %v17574_v1 = vld [vmem:[#allocation8 + $0x1110] ss:$56 sps:$4 sm:$0xff]   ;;  %v17580_v9 = vld [vmem:[#allocation8 + $0x1180] ss:$56 sps:$4 sm:$0xff]   ;;  %v17588_v11 = vld [vmem:[#allocation8 + $0x11f4] ss:$56 sps:$4 sm:$0xff]  }
 0x341   :  { %12066 = vmatprep.subr.bf16.mxu1 %v17531_v5  ;;  %v17585_v5 = vld [vmem:[#allocation8 + $0xe0c] ss:$56 sps:$4 sm:$0xff]   ;;  %v17591_v13 = vld [vmem:[#allocation8 + $0xe7c] ss:$56 sps:$4 sm:$0xff]  }
 0x342   :  { %v20371_v21 = vpack.c.bf16 %v2219_v18, %v2219_v18  ;;  %11796 = vmatpush1.bf16.msra.mxu0 %v17526_v46  ;;  %v17586_v46 = vld [vmem:[#allocation8 + $0x11f0] ss:$56 sps:$4 sm:$0xff]   ;;  %v17597_v18 = vld [vmem:[#allocation8 + $0xeec] ss:$56 sps:$4 sm:$0xff]  }
 0x343   :  { %11806 = vmatprep.subr.bf16.mxu0 %v17534_v17  ;;  %v17594_v17 = vld [vmem:[#allocation8 + $0x1264] ss:$56 sps:$4 sm:$0xff]  }
 0x344   :  { %12067 = vmatpush1.bf16.msra.mxu1 %v17529_v12  ;;  %v17589_v12 = vld [vmem:[#allocation8 + $0xe78] ss:$56 sps:$4 sm:$0xff]  }
 0x345   :  { %11798 = vmatmul.mubr.bf16.vlgmr.msra.gmra.mrb[12].mxu0 %v20375_v35  ;;  %12068 = vmatprep.subr.bf16.mxu1 %v17537_v19  ;;  %v17592_v19 = vld [vmem:[#allocation8 + $0x1260] ss:$56 sps:$4 sm:$0xff]  }
 0x346   :  { %11807 = vmatpush1.bf16.msra.mxu0 %v17532_v22  ;;  %11838 = vmatprep.mubr.bf16.mxu0 %v20371_v21  ;;  %v17595_v22 = vld [vmem:[#allocation8 + $0xee8] ss:$56 sps:$4 sm:$0xff]  }
 0x347   :  { %11808 = vmatprep.subr.bf16.mxu0 %v17540_v39  ;;  %v17603_v39 = vld [vmem:[#allocation8 + $0xf5c] ss:$56 sps:$4 sm:$0xff]  }
 0x348   :  { %12069 = vmatpush1.bf16.msra.mxu1 %v17535_v36  ;;  %v17600_v36 = vld [vmem:[#allocation8 + $0x12d4] ss:$56 sps:$4 sm:$0xff]  }
 0x349   :  { %12070 = vmatprep.subr.bf16.mxu1 %v17543_v23  ;;  %v17598_v23 = vld [vmem:[#allocation8 + $0x12d0] ss:$56 sps:$4 sm:$0xff]  }
 0x34a   :  { %11809 = vmatpush1.bf16.msra.mxu0 %v17538_v25  ;;  %v17601_v25 = vld [vmem:[#allocation8 + $0xf58] ss:$56 sps:$4 sm:$0xff]  }
 0x34b   :  { %11810 = vmatprep.subr.bf16.mxu0 %v17546_v52  ;;  %v17609_v52 = vld [vmem:[#allocation8 + $0xfcc] ss:$56 sps:$4 sm:$0xff]  }
 0x34c   :  { %12071 = vmatpush1.bf16.msra.mxu1 %v17541_v7  ;;  %v17606_v7 = vld [vmem:[#allocation8 + $0x1344] ss:$56 sps:$4 sm:$0xff]  }
 0x34d   :  { %12072 = vmatprep.subr.bf16.mxu1 %v17549_v20  ;;  %v17604_v20 = vld [vmem:[#allocation8 + $0x1340] ss:$56 sps:$4 sm:$0xff]  }
 0x34e   :  { %11811 = vmatpush1.bf16.msra.mxu0 %v17544_v27  ;;  %v17607_v27 = vld [vmem:[#allocation8 + $0xfc8] ss:$56 sps:$4 sm:$0xff]  }
 0x34f   :  { %11812 = vmatprep.subr.bf16.mxu0 %v17552_v30  ;;  %v17615_v30 = vld [vmem:[#allocation8 + $0x103c] ss:$56 sps:$4 sm:$0xff]  }
 0x350   :  { %12073 = vmatpush1.bf16.msra.mxu1 %v17547_v29  ;;  %v17612_v29 = vld [vmem:[#allocation8 + $0x13b4] ss:$56 sps:$4 sm:$0xff]  }
 0x351   :  { %12074 = vmatprep.subr.bf16.mxu1 %v17555_v28  ;;  %v20381_v28 = vld [vmem:[#allocation7 + $0x8] sm:$0xff] }
 0x352   :  { %11813 = vmatpush1.bf16.msra.mxu0 %v17550_v31  ;;  %v1087_v31 = vrot.slane %v20381_v28, %v20264_v58 }
 0x353   :  { %11814 = vmatprep.subr.bf16.mxu0 %v17558_v34  ;;  %v17610_v34 = vld [vmem:[#allocation8 + $0x13b0] ss:$56 sps:$4 sm:$0xff]  }
 0x354   :  { %12075 = vmatpush1.bf16.msra.mxu1 %v17553_v32  ;;  %v1091_v32 = vrot.slane %v20381_v28, %v20269_v59 }
 0x355   :  { %12076 = vmatprep.subr.bf16.mxu1 %v17561_v37  ;;  %v17613_v37 = vld [vmem:[#allocation8 + $0x1038] ss:$56 sps:$4 sm:$0xff]  }
 0x356   :  { %11815 = vmatpush1.bf16.msra.mxu0 %v17556_v40  ;;  %v17618_v40 = vld [vmem:[#allocation8 + $0x1424] ss:$56 sps:$4 sm:$0xff]  }
 0x357   :  { %11816 = vmatprep.subr.bf16.mxu0 %v17564_v44  ;;  %v17621_v44 = vld [vmem:[#allocation8 + $0x10ac] ss:$56 sps:$4 sm:$0xff]  }
 0x358   :  { %12077 = vmatpush1.bf16.msra.mxu1 %v17559_v43  ;;  %v1143_v43 = vrot.slane %v20361_v47, %v20294_v48 }
 0x359   :  { %12078 = vmatprep.subr.bf16.mxu1 %v17567_v53  ;;  %v1147_v53 = vrot.slane %v20361_v47, %v20297_v54 }
 0x35a   :  { %11817 = vmatpush1.bf16.msra.mxu0 %v17562_v55  ;;  %v1543_v55 = vadd.f32 %v20230_v42, %v1087_v31  ;;  %v17622_v42 = vld [vmem:[#allocation8 + $0x1490] ss:$56 sps:$4 sm:$0xff]   ;;  %v17657_v31 = vld [vmem:[#allocation8 + $0x134c] ss:$56 sps:$4 sm:$0xff]  }
 0x35b   :  { %11818 = vmatprep.subr.bf16.mxu0 %v17570_v57 }
 0x35c   :  { %12079 = vmatpush1.bf16.msra.mxu1 %v17565_v56  ;;  %v1545_v56 = vadd.f32 %v20232_v15, %v1091_v32  ;;  %v17625_v15 = vld [vmem:[#allocation8 + $0x1118] ss:$56 sps:$4 sm:$0xff]  }
 0x35d   :  { %12080 = vmatprep.subr.bf16.mxu1 %v17573_v33  ;;  %v17616_v33 = vld [vmem:[#allocation8 + $0x1420] ss:$56 sps:$4 sm:$0xff]  }
 0x35e   :  { %11819 = vmatpush1.bf16.msra.mxu0 %v17568_v16  ;;  %v17619_v16 = vld [vmem:[#allocation8 + $0x10a8] ss:$56 sps:$4 sm:$0xff]  }
 0x35f   :  { %11820 = vmatprep.subr.bf16.mxu0 %v17576_v63  ;;  %v17652_v32 = vld [vmem:[#allocation8 + $0x16c0] ss:$56 sps:$4 sm:$0xff]  }
 0x360   :  { %12081 = vmatpush1.bf16.msra.mxu1 %v17571_v62 }
 0x361   :  { %12082 = vmatprep.subr.bf16.mxu1 %v17579_v0  ;;  %v17624_v0 = vld [vmem:[#allocation8 + $0x1494] ss:$56 sps:$4 sm:$0xff]  }
 0x362   :  { %11821 = vmatpush1.bf16.msra.mxu0 %v17574_v1  ;;  %v17627_v1 = vld [vmem:[#allocation8 + $0x111c] ss:$56 sps:$4 sm:$0xff]  }
 0x363   :  { %11822 = vmatprep.subr.bf16.mxu0 %v17582_v3  ;;  %v2194_v3 = vmax.f32 %v1543_v55, 0.0  ;;  %v17669_v55 = vld [vmem:[#allocation8 + $0x142c] ss:$56 sps:$4 sm:$0xff]  }
 0x364   :  { %12083 = vmatpush1.bf16.msra.mxu1 %v17577_v2 }
 0x365   :  { %12093 = vmatprep.subr.bf16.mxu1 %v17585_v5  ;;  %v2195_v5 = vmax.f32 %v1545_v56, 0.0  ;;  %v17664_v56 = vld [vmem:[#allocation8 + $0x17a0] ss:$56 sps:$4 sm:$0xff]  }
 0x366   :  { %11823 = vmatpush1.bf16.msra.mxu0 %v17580_v9 }
 0x367   :  { %12085 = vmatmul.mubr.bf16.vlgmr.msra.gmra.mrb[20].mxu1 %v20375_v35  ;;  %11824 = vmatprep.subr.bf16.mxu0 %v17588_v11  ;;  %v17630_v11 = vld [vmem:[#allocation8 + $0x1504] ss:$56 sps:$4 sm:$0xff]  }
 0x368   :  { %12094 = vmatpush1.bf16.msra.mxu1 %v17583_v38  ;;  %12125 = vmatprep.mubr.bf16.mxu1 %v20371_v21 }
 0x369   :  { %12095 = vmatprep.subr.bf16.mxu1 %v17591_v13  ;;  %v17633_v13 = vld [vmem:[#allocation8 + $0x118c] ss:$56 sps:$4 sm:$0xff]  }
 0x36a   :  { %11825 = vmatpush1.bf16.msra.mxu0 %v17586_v46 }
 0x36b   :  { %11826 = vmatprep.subr.bf16.mxu0 %v17594_v17  ;;  %v17631_v17 = vld [vmem:[#allocation8 + $0x1188] ss:$56 sps:$4 sm:$0xff]  }
 0x36c   :  { %12096 = vmatpush1.bf16.msra.mxu1 %v17589_v12  ;;  %v17628_v12 = vld [vmem:[#allocation8 + $0x1500] ss:$56 sps:$4 sm:$0xff]  }
 0x36d   :  { %12097 = vmatprep.subr.bf16.mxu1 %v17597_v18  ;;  %v20399_v18 = vpack.c.bf16 %v20369_v14, %v20369_v14  ;;  %v17645_v14 = vld [vmem:[#allocation8 + $0x126c] ss:$56 sps:$4 sm:$0xff]  }
 0x36e   :  { %11827 = vmatpush1.bf16.msra.mxu0 %v17592_v19  ;;  %v17636_v19 = vld [vmem:[#allocation8 + $0x1574] ss:$56 sps:$4 sm:$0xff]  }
 0x36f   :  { %11828 = vmatprep.subr.bf16.mxu0 %v17600_v36  ;;  %v17639_v36 = vld [vmem:[#allocation8 + $0x11fc] ss:$56 sps:$4 sm:$0xff]  }
 0x370   :  { %12098 = vmatpush1.bf16.msra.mxu1 %v17595_v22  ;;  %v20403_v22 = vpack.c.bf16 %v20315_v45, %v20315_v45  ;;  %v17648_v45 = vld [vmem:[#allocation8 + $0x1654] ss:$56 sps:$4 sm:$0xff]  }
 0x371   :  { %12099 = vmatprep.subr.bf16.mxu1 %v17603_v39  ;;  %v17634_v39 = vld [vmem:[#allocation8 + $0x1570] ss:$56 sps:$4 sm:$0xff]  }
 0x372   :  { %11829 = vmatpush1.bf16.msra.mxu0 %v17598_v23  ;;  %v17637_v23 = vld [vmem:[#allocation8 + $0x11f8] ss:$56 sps:$4 sm:$0xff]  }
 0x373   :  { %11830 = vmatprep.subr.bf16.mxu0 %v17606_v7  ;;  %v17640_v7 = vld [vmem:[#allocation8 + $0x15e0] ss:$56 sps:$4 sm:$0xff]  }
 0x374   :  { %12100 = vmatpush1.bf16.msra.mxu1 %v17601_v25  ;;  %v17642_v25 = vld [vmem:[#allocation8 + $0x15e4] ss:$56 sps:$4 sm:$0xff]  }
 0x375   :  { %12101 = vmatprep.subr.bf16.mxu1 %v17609_v52  ;;  %v17643_v52 = vld [vmem:[#allocation8 + $0x1268] ss:$56 sps:$4 sm:$0xff]  }
 0x376   :  { %11831 = vmatpush1.bf16.msra.mxu0 %v17604_v20  ;;  %v17651_v20 = vld [vmem:[#allocation8 + $0x12dc] ss:$56 sps:$4 sm:$0xff]  }
 0x377   :  { %11832 = vmatprep.subr.bf16.mxu0 %v17612_v29  ;;  %v17649_v29 = vld [vmem:[#allocation8 + $0x12d8] ss:$56 sps:$4 sm:$0xff]  }
 0x378   :  { %12102 = vmatpush1.bf16.msra.mxu1 %v17607_v27  ;;  %v17646_v27 = vld [vmem:[#allocation8 + $0x1650] ss:$56 sps:$4 sm:$0xff]  }
 0x379   :  { %12103 = vmatprep.subr.bf16.mxu1 %v17615_v30  ;;  %v17654_v30 = vld [vmem:[#allocation8 + $0x16c4] ss:$56 sps:$4 sm:$0xff]  }
 0x37a   :  { %11833 = vmatpush1.bf16.msra.mxu0 %v17610_v34  ;;  %v2039_v57 = vpop.f32.mrb[14].mxu1  ;;  %v17655_v34 = vld [vmem:[#allocation8 + $0x1348] ss:$56 sps:$4 sm:$0xff]  }
 0x37b   :  { %v2040_v62 = vadd.f32 %v2039_v57, %v1143_v43  ;;  %v2041_v63 = vpop.f32.mrb[15].mxu1  ;;  %11834 = vmatprep.subr.bf16.mxu0 %v17618_v40  ;;  %v17663_v40 = vld [vmem:[#allocation8 + $0x13bc] ss:$56 sps:$4 sm:$0xff]   ;;  %v17658_v43 = vld [vmem:[#allocation8 + $0x1730] ss:$56 sps:$4 sm:$0xff]  }
 0x37c   :  { %v2042_v2 = vadd.f32 %v2041_v63, %v1147_v53  ;;  %12104 = vmatpush1.bf16.msra.mxu1 %v17613_v37  ;;  %v17660_v37 = vld [vmem:[#allocation8 + $0x1734] ss:$56 sps:$4 sm:$0xff]   ;;  %v17666_v53 = vld [vmem:[#allocation8 + $0x17a4] ss:$56 sps:$4 sm:$0xff]   ;;  %v17667_v57 = vld [vmem:[#allocation8 + $0x1428] ss:$56 sps:$4 sm:$0xff]  }
 0x37d   :  { %v2208_v9 = vmax.f32 %v2040_v62, 0.0  ;;  %12105 = vmatprep.subr.bf16.mxu1 %v17621_v44  ;;  %v17661_v44 = vld [vmem:[#allocation8 + $0x13b8] ss:$56 sps:$4 sm:$0xff]  }
 0x37e   :  { %v2209_v47 = vmax.f32 %v2042_v2, 0.0  ;;  %11835 = vmatpush1.bf16.msra.mxu0 %v17616_v33  ;;  %v17672_v33 = vld [vmem:[#allocation8 + $0x1814] ss:$56 sps:$4 sm:$0xff]   ;;  %v17670_v62 = vld [vmem:[#allocation8 + $0x1810] ss:$56 sps:$4 sm:$0xff]  }
 0x37f   :  { %v20393_v38 = vmax.f32 %v2194_v3, %v2208_v9  ;;  %11836 = vmatprep.subr.bf16.mxu0 %v17624_v0  ;;  %v17673_v63 = vld [vmem:[#allocation8 + $0x1498] ss:$56 sps:$4 sm:$0xff]   ;;  %v17678_v0 = vld [vmem:[#allocation8 + $0x1884] ss:$56 sps:$4 sm:$0xff]   ;;  %v17679_v3 = vld [vmem:[#allocation8 + $0x1508] ss:$56 sps:$4 sm:$0xff]  }
 0x380   :  { %v20395_v46 = vmax.f32 %v2195_v5, %v2209_v47  ;;  %12106 = vmatpush1.bf16.msra.mxu1 %v17619_v16  ;;  %v17675_v16 = vld [vmem:[#allocation8 + $0x149c] ss:$56 sps:$4 sm:$0xff]   ;;  %v17676_v2 = vld [vmem:[#allocation8 + $0x1880] ss:$56 sps:$4 sm:$0xff]   ;;  %v17682_v47 = vld [vmem:[#allocation8 + $0x18f0] ss:$56 sps:$4 sm:$0xff]  }
 0x381   :  { %12107 = vmatprep.subr.bf16.mxu1 %v17627_v1  ;;  %v17681_v1 = vld [vmem:[#allocation8 + $0x150c] ss:$56 sps:$4 sm:$0xff]   ;;  %v17687_v9 = vld [vmem:[#allocation8 + $0x157c] ss:$56 sps:$4 sm:$0xff]  }
 0x382   :  { %11837 = vmatpush1.bf16.msra.mxu0 %v17622_v42  ;;  %v17684_v5 = vld [vmem:[#allocation8 + $0x18f4] ss:$56 sps:$4 sm:$0xff]   ;;  %v17685_v42 = vld [vmem:[#allocation8 + $0x1578] ss:$56 sps:$4 sm:$0xff]  }
 0x383   :  { %11847 = vmatprep.subr.bf16.mxu0 %v17630_v11  ;;  %v17693_v11 = vld [vmem:[#allocation8 + $0x15ec] ss:$56 sps:$4 sm:$0xff]  }
 0x384   :  { %12108 = vmatpush1.bf16.msra.mxu1 %v17625_v15  ;;  %v17690_v15 = vld [vmem:[#allocation8 + $0x1964] ss:$56 sps:$4 sm:$0xff]  }
 0x385   :  { %11839 = vmatmul.mubr.bf16.vlgmr.msra.gmra.mrb[12].mxu0 %v20399_v18  ;;  %12109 = vmatprep.subr.bf16.mxu1 %v17633_v13  ;;  %v17688_v13 = vld [vmem:[#allocation8 + $0x1960] ss:$56 sps:$4 sm:$0xff]  }
 0x386   :  { %11848 = vmatpush1.bf16.msra.mxu0 %v17628_v12  ;;  %11879 = vmatprep.mubr.bf16.mxu0 %v20403_v22  ;;  %v17691_v12 = vld [vmem:[#allocation8 + $0x15e8] ss:$56 sps:$4 sm:$0xff]  }
 0x387   :  { %11849 = vmatprep.subr.bf16.mxu0 %v17636_v19  ;;  %v17699_v19 = vld [vmem:[#allocation8 + $0x165c] ss:$56 sps:$4 sm:$0xff]  }
 0x388   :  { %12110 = vmatpush1.bf16.msra.mxu1 %v17631_v17  ;;  %v17696_v17 = vld [vmem:[#allocation8 + $0x19d4] ss:$56 sps:$4 sm:$0xff]  }
 0x389   :  { %12111 = vmatprep.subr.bf16.mxu1 %v17639_v36  ;;  %v17694_v36 = vld [vmem:[#allocation8 + $0x19d0] ss:$56 sps:$4 sm:$0xff]  }
 0x38a   :  { %11850 = vmatpush1.bf16.msra.mxu0 %v17634_v39  ;;  %v17697_v39 = vld [vmem:[#allocation8 + $0x1658] ss:$56 sps:$4 sm:$0xff]  }
 0x38b   :  { %11851 = vmatprep.subr.bf16.mxu0 %v17642_v25  ;;  %v17705_v25 = vld [vmem:[#allocation8 + $0x16cc] ss:$56 sps:$4 sm:$0xff]  }
 0x38c   :  { %12112 = vmatpush1.bf16.msra.mxu1 %v17637_v23  ;;  %v17702_v23 = vld [vmem:[#allocation8 + $0x1a44] ss:$56 sps:$4 sm:$0xff]  }
 0x38d   :  { %12113 = vmatprep.subr.bf16.mxu1 %v17645_v14  ;;  %v17700_v14 = vld [vmem:[#allocation8 + $0x1a40] ss:$56 sps:$4 sm:$0xff]  }
 0x38e   :  { %11852 = vmatpush1.bf16.msra.mxu0 %v17640_v7  ;;  %v17703_v7 = vld [vmem:[#allocation8 + $0x16c8] ss:$56 sps:$4 sm:$0xff]  }
 0x38f   :  { %11853 = vmatprep.subr.bf16.mxu0 %v17648_v45  ;;  %v17711_v45 = vld [vmem:[#allocation8 + $0x173c] ss:$56 sps:$4 sm:$0xff]  }
 0x390   :  { %12114 = vmatpush1.bf16.msra.mxu1 %v17643_v52  ;;  %v17708_v52 = vld [vmem:[#allocation8 + $0x1ab4] ss:$56 sps:$4 sm:$0xff]  }
 0x391   :  { %12115 = vmatprep.subr.bf16.mxu1 %v17651_v20  ;;  %v1103_v20 = vrot.slane %v20381_v28, %v20300_v60 }
 0x392   :  { %11854 = vmatpush1.bf16.msra.mxu0 %v17646_v27  ;;  %v1107_v27 = vrot.slane %v20381_v28, %v20303_v61 }
 0x393   :  { %11855 = vmatprep.subr.bf16.mxu0 %v17654_v30  ;;  %v17709_v30 = vld [vmem:[#allocation8 + $0x1738] ss:$56 sps:$4 sm:$0xff]  }
 0x394   :  { %12116 = vmatpush1.bf16.msra.mxu1 %v17649_v29  ;;  %v17706_v29 = vld [vmem:[#allocation8 + $0x1ab0] ss:$56 sps:$4 sm:$0xff]  }
 0x395   :  { %12117 = vmatprep.subr.bf16.mxu1 %v17657_v31  ;;  %v17714_v31 = vld [vmem:[#allocation8 + $0x1b24] ss:$56 sps:$4 sm:$0xff]  }
 0x396   :  { %11856 = vmatpush1.bf16.msra.mxu0 %v17652_v32  ;;  %v19790_v32 = vld [vmem:[#allocation7 + $0x18] sm:$0xf] }
 0x397   :  { %11857 = vmatprep.subr.bf16.mxu0 %v17660_v37  ;;  %v17717_v37 = vld [vmem:[#allocation8 + $0x17ac] ss:$56 sps:$4 sm:$0xff]  }
 0x398   :  { %12118 = vmatpush1.bf16.msra.mxu1 %v17655_v34  ;;  %v1159_v34 = vrot.slane %v19790_v32, %v20254_v49 }
 0x399   :  { %12119 = vmatprep.subr.bf16.mxu1 %v17663_v40  ;;  %v1163_v40 = vrot.slane %v19790_v32, %v20259_v51  ;;  %v17754_v32 = vld [vmem:[#allocation8 + $0x1e30] ss:$56 sps:$4 sm:$0xff]  }
 0x39a   :  { %11858 = vmatpush1.bf16.msra.mxu0 %v17658_v43  ;;  %v1685_v43 = vadd.f32 %v20245_v8, %v1103_v20  ;;  %v17718_v8 = vld [vmem:[#allocation8 + $0x1b90] ss:$56 sps:$4 sm:$0xff]   ;;  %v17753_v20 = vld [vmem:[#allocation8 + $0x1a4c] ss:$56 sps:$4 sm:$0xff]  }
 0x39b   :  { %11859 = vmatprep.subr.bf16.mxu0 %v17666_v53  ;;  %v17712_v53 = vld [vmem:[#allocation8 + $0x1b20] ss:$56 sps:$4 sm:$0xff]  }
 0x39c   :  { %12120 = vmatpush1.bf16.msra.mxu1 %v17661_v44  ;;  %v1687_v44 = vadd.f32 %v20247_v10, %v1107_v27  ;;  %v17721_v10 = vld [vmem:[#allocation8 + $0x1818] ss:$56 sps:$4 sm:$0xff]  }
 0x39d   :  { %12121 = vmatprep.subr.bf16.mxu1 %v17669_v55  ;;  %v17715_v55 = vld [vmem:[#allocation8 + $0x17a8] ss:$56 sps:$4 sm:$0xff]  }
 0x39e   :  { %11860 = vmatpush1.bf16.msra.mxu0 %v17664_v56  ;;  %v17748_v27 = vld [vmem:[#allocation8 + $0x1dc0] ss:$56 sps:$4 sm:$0xff]  }
 0x39f   :  { %11861 = vmatprep.subr.bf16.mxu0 %v17672_v33  ;;  %v17720_v33 = vld [vmem:[#allocation8 + $0x1b94] ss:$56 sps:$4 sm:$0xff]  }
 0x3a0   :  { %12122 = vmatpush1.bf16.msra.mxu1 %v17667_v57 }
 0x3a1   :  { %12123 = vmatprep.subr.bf16.mxu1 %v17675_v16  ;;  %v17723_v16 = vld [vmem:[#allocation8 + $0x181c] ss:$56 sps:$4 sm:$0xff]  }
 0x3a2   :  { %11862 = vmatpush1.bf16.msra.mxu0 %v17670_v62 }
 0x3a3   :  { %11863 = vmatprep.subr.bf16.mxu0 %v17678_v0  ;;  %v2199_v0 = vmax.f32 %v1687_v44, 0.0  ;;  %v17763_v44 = vld [vmem:[#allocation8 + $0x1b28] ss:$56 sps:$4 sm:$0xff]  }
 0x3a4   :  { %12124 = vmatpush1.bf16.msra.mxu1 %v17673_v63  ;;  %v2198_v63 = vmax.f32 %v1685_v43, 0.0  ;;  %v17760_v43 = vld [vmem:[#allocation8 + $0x1ea0] ss:$56 sps:$4 sm:$0xff]  }
 0x3a5   :  { %12134 = vmatprep.subr.bf16.mxu1 %v17681_v1 }
 0x3a6   :  { %11864 = vmatpush1.bf16.msra.mxu0 %v17676_v2 }
 0x3a7   :  { %12126 = vmatmul.mubr.bf16.vlgmr.msra.gmra.mrb[20].mxu1 %v20399_v18  ;;  %11865 = vmatprep.subr.bf16.mxu0 %v17684_v5  ;;  %v17726_v5 = vld [vmem:[#allocation8 + $0x1c04] ss:$56 sps:$4 sm:$0xff]  }
 0x3a8   :  { %12135 = vmatpush1.bf16.msra.mxu1 %v17679_v3  ;;  %12166 = vmatprep.mubr.bf16.mxu1 %v20403_v22 }
 0x3a9   :  { %12136 = vmatprep.subr.bf16.mxu1 %v17687_v9  ;;  %v17729_v9 = vld [vmem:[#allocation8 + $0x188c] ss:$56 sps:$4 sm:$0xff]  }
 0x3aa   :  { %11866 = vmatpush1.bf16.msra.mxu0 %v17682_v47 }
 0x3ab   :  { %11867 = vmatprep.subr.bf16.mxu0 %v17690_v15  ;;  %v17727_v15 = vld [vmem:[#allocation8 + $0x1888] ss:$56 sps:$4 sm:$0xff]  }
 0x3ac   :  { %12137 = vmatpush1.bf16.msra.mxu1 %v17685_v42  ;;  %v17724_v42 = vld [vmem:[#allocation8 + $0x1c00] ss:$56 sps:$4 sm:$0xff]  }
 0x3ad   :  { %12138 = vmatprep.subr.bf16.mxu1 %v17693_v11  ;;  %v20423_v11 = vpack.c.bf16 %v20313_v41, %v20313_v41  ;;  %v17741_v41 = vld [vmem:[#allocation8 + $0x196c] ss:$56 sps:$4 sm:$0xff]  }
 0x3ae   :  { %11868 = vmatpush1.bf16.msra.mxu0 %v17688_v13  ;;  %v17732_v13 = vld [vmem:[#allocation8 + $0x1c74] ss:$56 sps:$4 sm:$0xff]  }
 0x3af   :  { %11869 = vmatprep.subr.bf16.mxu0 %v17696_v17  ;;  %v17735_v17 = vld [vmem:[#allocation8 + $0x18fc] ss:$56 sps:$4 sm:$0xff]  }
 0x3b0   :  { %12139 = vmatpush1.bf16.msra.mxu1 %v17691_v12  ;;  %v20427_v12 = vpack.c.bf16 %v20395_v46, %v20395_v46  ;;  %v17744_v46 = vld [vmem:[#allocation8 + $0x1d54] ss:$56 sps:$4 sm:$0xff]  }
 0x3b1   :  { %12140 = vmatprep.subr.bf16.mxu1 %v17699_v19  ;;  %v17730_v19 = vld [vmem:[#allocation8 + $0x1c70] ss:$56 sps:$4 sm:$0xff]  }
 0x3b2   :  { %11870 = vmatpush1.bf16.msra.mxu0 %v17694_v36  ;;  %v17733_v36 = vld [vmem:[#allocation8 + $0x18f8] ss:$56 sps:$4 sm:$0xff]  }
 0x3b3   :  { %11871 = vmatprep.subr.bf16.mxu0 %v17702_v23  ;;  %v17736_v23 = vld [vmem:[#allocation8 + $0x1ce0] ss:$56 sps:$4 sm:$0xff]  }
 0x3b4   :  { %12141 = vmatpush1.bf16.msra.mxu1 %v17697_v39  ;;  %v17738_v39 = vld [vmem:[#allocation8 + $0x1ce4] ss:$56 sps:$4 sm:$0xff]  }
 0x3b5   :  { %12142 = vmatprep.subr.bf16.mxu1 %v17705_v25  ;;  %v17739_v25 = vld [vmem:[#allocation8 + $0x1968] ss:$56 sps:$4 sm:$0xff]  }
 0x3b6   :  { %11872 = vmatpush1.bf16.msra.mxu0 %v17700_v14  ;;  %v17747_v14 = vld [vmem:[#allocation8 + $0x19dc] ss:$56 sps:$4 sm:$0xff]  }
 0x3b7   :  { %11873 = vmatprep.subr.bf16.mxu0 %v17708_v52  ;;  %v17745_v52 = vld [vmem:[#allocation8 + $0x19d8] ss:$56 sps:$4 sm:$0xff]  }
 0x3b8   :  { %12143 = vmatpush1.bf16.msra.mxu1 %v17703_v7  ;;  %v17742_v7 = vld [vmem:[#allocation8 + $0x1d50] ss:$56 sps:$4 sm:$0xff]  }
 0x3b9   :  { %12144 = vmatprep.subr.bf16.mxu1 %v17711_v45  ;;  %v17750_v45 = vld [vmem:[#allocation8 + $0x1dc4] ss:$56 sps:$4 sm:$0xff]  }
 0x3ba   :  { %11874 = vmatpush1.bf16.msra.mxu0 %v17706_v29  ;;  %v2181_v28 = vpop.f32.mrb[16].mxu1  ;;  %v17751_v29 = vld [vmem:[#allocation8 + $0x1a48] ss:$56 sps:$4 sm:$0xff]  }
 0x3bb   :  { %v2182_v56 = vadd.f32 %v2181_v28, %v1159_v34  ;;  %v2183_v57 = vpop.f32.mrb[17].mxu1  ;;  %11875 = vmatprep.subr.bf16.mxu0 %v17714_v31  ;;  %v17759_v31 = vld [vmem:[#allocation8 + $0x1abc] ss:$56 sps:$4 sm:$0xff]   ;;  %v17757_v34 = vld [vmem:[#allocation8 + $0x1ab8] ss:$56 sps:$4 sm:$0xff]  }
 0x3bc   :  { %v2184_v62 = vadd.f32 %v2183_v57, %v1163_v40  ;;  %12145 = vmatpush1.bf16.msra.mxu1 %v17709_v30  ;;  %v17756_v30 = vld [vmem:[#allocation8 + $0x1e34] ss:$56 sps:$4 sm:$0xff]   ;;  %v17774_v57 = vld [vmem:[#allocation8 + $0x1f84] ss:$56 sps:$4 sm:$0xff]  }
 0x3bd   :  { %v2212_v1 = vmax.f32 %v2182_v56, 0.0  ;;  %12146 = vmatprep.subr.bf16.mxu1 %v17717_v37  ;;  %v17762_v37 = vld [vmem:[#allocation8 + $0x1ea4] ss:$56 sps:$4 sm:$0xff]   ;;  %v17768_v28 = vld [vmem:[#allocation8 + $0x1f14] ss:$56 sps:$4 sm:$0xff]  }
 0x3be   :  { %v2213_v2 = vmax.f32 %v2184_v62, 0.0  ;;  %11876 = vmatpush1.bf16.msra.mxu0 %v17712_v53  ;;  %v17765_v40 = vld [vmem:[#allocation8 + $0x1b2c] ss:$56 sps:$4 sm:$0xff]   ;;  %v17771_v53 = vld [vmem:[#allocation8 + $0x1b9c] ss:$56 sps:$4 sm:$0xff]  }
 0x3bf   :  { %v20417_v3 = vmax.f32 %v2198_v63, %v2212_v1  ;;  %11877 = vmatprep.subr.bf16.mxu0 %v17720_v33  ;;  %v17769_v56 = vld [vmem:[#allocation8 + $0x1b98] ss:$56 sps:$4 sm:$0xff]   ;;  %v17777_v33 = vld [vmem:[#allocation8 + $0x1c0c] ss:$56 sps:$4 sm:$0xff]   ;;  %v17775_v62 = vld [vmem:[#allocation8 + $0x1c08] ss:$56 sps:$4 sm:$0xff]  }
 0x3c0   :  { %v20419_v47 = vmax.f32 %v2199_v0, %v2213_v2  ;;  %12147 = vmatpush1.bf16.msra.mxu1 %v17715_v55  ;;  %v17766_v55 = vld [vmem:[#allocation8 + $0x1f10] ss:$56 sps:$4 sm:$0xff]   ;;  %v17780_v63 = vld [vmem:[#allocation8 + $0x1ff4] ss:$56 sps:$4 sm:$0xff]  }
 0x3c1   :  { %12148 = vmatprep.subr.bf16.mxu1 %v17723_v16  ;;  %v17772_v16 = vld [vmem:[#allocation8 + $0x1f80] ss:$56 sps:$4 sm:$0xff]   ;;  %v17783_v0 = vld [vmem:[#allocation8 + $0x1c7c] ss:$56 sps:$4 sm:$0xff]   ;;  %v17778_v1 = vld [vmem:[#allocation8 + $0x1ff0] ss:$56 sps:$4 sm:$0xff]  }
 0x3c2   :  { %11878 = vmatpush1.bf16.msra.mxu0 %v17718_v8  ;;  %v17781_v2 = vld [vmem:[#allocation8 + $0x1c78] ss:$56 sps:$4 sm:$0xff]   ;;  %v17786_v8 = vld [vmem:[#allocation8 + $0x2064] ss:$56 sps:$4 sm:$0xff]  }
 0x3c3   :  { %11888 = vmatprep.subr.bf16.mxu0 %v17726_v5  ;;  %v17784_v5 = vld [vmem:[#allocation8 + $0x2060] ss:$56 sps:$4 sm:$0xff]  }
 0x3c4   :  { %12149 = vmatpush1.bf16.msra.mxu1 %v17721_v10  ;;  %v17789_v10 = vld [vmem:[#allocation8 + $0x1cec] ss:$56 sps:$4 sm:$0xff]  }
 0x3c5   :  { %11880 = vmatmul.mubr.bf16.vlgmr.msra.gmra.mrb[12].mxu0 %v20423_v11  ;;  %12150 = vmatprep.subr.bf16.mxu1 %v17729_v9  ;;  %v17787_v9 = vld [vmem:[#allocation8 + $0x1ce8] ss:$56 sps:$4 sm:$0xff]  }
 0x3c6   :  { %11889 = vmatpush1.bf16.msra.mxu0 %v17724_v42  ;;  %11920 = vmatprep.mubr.bf16.mxu0 %v20427_v12  ;;  %v17792_v42 = vld [vmem:[#allocation8 + $0x20d4] ss:$56 sps:$4 sm:$0xff]  }
 0x3c7   :  { %11890 = vmatprep.subr.bf16.mxu0 %v17732_v13  ;;  %v17790_v13 = vld [vmem:[#allocation8 + $0x20d0] ss:$56 sps:$4 sm:$0xff]  }
 0x3c8   :  { %12151 = vmatpush1.bf16.msra.mxu1 %v17727_v15  ;;  %v17795_v15 = vld [vmem:[#allocation8 + $0x1d5c] ss:$56 sps:$4 sm:$0xff]  }
 0x3c9   :  { %12152 = vmatprep.subr.bf16.mxu1 %v17735_v17  ;;  %v17793_v17 = vld [vmem:[#allocation8 + $0x1d58] ss:$56 sps:$4 sm:$0xff]  }
 0x3ca   :  { %11891 = vmatpush1.bf16.msra.mxu0 %v17730_v19  ;;  %v17798_v19 = vld [vmem:[#allocation8 + $0x2144] ss:$56 sps:$4 sm:$0xff]  }
 0x3cb   :  { %11892 = vmatprep.subr.bf16.mxu0 %v17738_v39  ;;  %v17796_v39 = vld [vmem:[#allocation8 + $0x2140] ss:$56 sps:$4 sm:$0xff]  }
 0x3cc   :  { %12153 = vmatpush1.bf16.msra.mxu1 %v17733_v36  ;;  %v17801_v36 = vld [vmem:[#allocation8 + $0x1dcc] ss:$56 sps:$4 sm:$0xff]  }
 0x3cd   :  { %12154 = vmatprep.subr.bf16.mxu1 %v17741_v41  ;;  %v17799_v41 = vld [vmem:[#allocation8 + $0x1dc8] ss:$56 sps:$4 sm:$0xff]  }
 0x3ce   :  { %11893 = vmatpush1.bf16.msra.mxu0 %v17736_v23  ;;  %v17804_v23 = vld [vmem:[#allocation8 + $0x21b4] ss:$56 sps:$4 sm:$0xff]  }
 0x3cf   :  { %11894 = vmatprep.subr.bf16.mxu0 %v17744_v46  ;;  %v17802_v46 = vld [vmem:[#allocation8 + $0x21b0] ss:$56 sps:$4 sm:$0xff]  }
 0x3d0   :  { %12155 = vmatpush1.bf16.msra.mxu1 %v17739_v25  ;;  %v17807_v25 = vld [vmem:[#allocation8 + $0x1e3c] ss:$56 sps:$4 sm:$0xff]  }
 0x3d1   :  { %12156 = vmatprep.subr.bf16.mxu1 %v17747_v14  ;;  %v17805_v14 = vld [vmem:[#allocation8 + $0x1e38] ss:$56 sps:$4 sm:$0xff]  }
 0x3d2   :  { %11895 = vmatpush1.bf16.msra.mxu0 %v17742_v7  ;;  %v17810_v7 = vld [vmem:[#allocation8 + $0x2224] ss:$56 sps:$4 sm:$0xff]  }
 0x3d3   :  { %11896 = vmatprep.subr.bf16.mxu0 %v17750_v45  ;;  %v17808_v45 = vld [vmem:[#allocation8 + $0x2220] ss:$56 sps:$4 sm:$0xff]  }
 0x3d4   :  { %12157 = vmatpush1.bf16.msra.mxu1 %v17745_v52  ;;  %v17813_v52 = vld [vmem:[#allocation8 + $0x1eac] ss:$56 sps:$4 sm:$0xff]  }
 0x3d5   :  { %12158 = vmatprep.subr.bf16.mxu1 %v17753_v20  ;;  %v17811_v20 = vld [vmem:[#allocation8 + $0x1ea8] ss:$56 sps:$4 sm:$0xff]  }
 0x3d6   :  { %11897 = vmatpush1.bf16.msra.mxu0 %v17748_v27  ;;  %v17816_v27 = vld [vmem:[#allocation8 + $0x2294] ss:$56 sps:$4 sm:$0xff]  }
 0x3d7   :  { %11898 = vmatprep.subr.bf16.mxu0 %v17756_v30  ;;  %v17814_v30 = vld [vmem:[#allocation8 + $0x2290] ss:$56 sps:$4 sm:$0xff]  }
 0x3d8   :  { %12159 = vmatpush1.bf16.msra.mxu1 %v17751_v29  ;;  %v17819_v29 = vld [vmem:[#allocation8 + $0x1f1c] ss:$56 sps:$4 sm:$0xff]  }
 0x3d9   :  { %12160 = vmatprep.subr.bf16.mxu1 %v17759_v31  ;;  %v17817_v31 = vld [vmem:[#allocation8 + $0x1f18] ss:$56 sps:$4 sm:$0xff]  }
 0x3da   :  { %11899 = vmatpush1.bf16.msra.mxu0 %v17754_v32  ;;  %v17822_v32 = vld [vmem:[#allocation8 + $0x2304] ss:$56 sps:$4 sm:$0xff]  }
 0x3db   :  { %11900 = vmatprep.subr.bf16.mxu0 %v17762_v37  ;;  %v17820_v37 = vld [vmem:[#allocation8 + $0x2300] ss:$56 sps:$4 sm:$0xff]  }
 0x3dc   :  { %12161 = vmatpush1.bf16.msra.mxu1 %v17757_v34  ;;  %v17825_v34 = vld [vmem:[#allocation8 + $0x1f8c] ss:$56 sps:$4 sm:$0xff]  }
 0x3dd   :  { %12162 = vmatprep.subr.bf16.mxu1 %v17765_v40  ;;  %v17823_v40 = vld [vmem:[#allocation8 + $0x1f88] ss:$56 sps:$4 sm:$0xff]  }
 0x3de   :  { %11901 = vmatpush1.bf16.msra.mxu0 %v17760_v43  ;;  %v20435_v43 = vpack.c.bf16 %v20393_v38, %v20393_v38  ;;  %v17837_v38 = vld [vmem:[#allocation8 + $0x206c] ss:$56 sps:$4 sm:$0xff]  }
 0x3df   :  { %11902 = vmatprep.subr.bf16.mxu0 %v17768_v28  ;;  %v20439_v28 = vpack.c.bf16 %v20329_v26, %v20329_v26  ;;  %v17840_v26 = vld [vmem:[#allocation8 + $0x2454] ss:$56 sps:$4 sm:$0xff]  }
 0x3e0   :  { %12163 = vmatpush1.bf16.msra.mxu1 %v17763_v44  ;;  %v17828_v44 = vld [vmem:[#allocation8 + $0x2374] ss:$56 sps:$4 sm:$0xff]  }
 0x3e1   :  { %12164 = vmatprep.subr.bf16.mxu1 %v17771_v53  ;;  %v17831_v53 = vld [vmem:[#allocation8 + $0x1ffc] ss:$56 sps:$4 sm:$0xff]  }
 0x3e2   :  { %11903 = vmatpush1.bf16.msra.mxu0 %v17766_v55  ;;  %v17826_v55 = vld [vmem:[#allocation8 + $0x2370] ss:$56 sps:$4 sm:$0xff]  }
 0x3e3   :  { %11904 = vmatprep.subr.bf16.mxu0 %v17774_v57  ;;  %v17834_v57 = vld [vmem:[#allocation8 + $0x23e4] ss:$56 sps:$4 sm:$0xff]  }
 0x3e4   :  { %12165 = vmatpush1.bf16.msra.mxu1 %v17769_v56  ;;  %v17829_v56 = vld [vmem:[#allocation8 + $0x1ff8] ss:$56 sps:$4 sm:$0xff]  }
 0x3e5   :  { %12175 = vmatprep.subr.bf16.mxu1 %v17777_v33  ;;  %v17832_v33 = vld [vmem:[#allocation8 + $0x23e0] ss:$56 sps:$4 sm:$0xff]  }
 0x3e6   :  { %11905 = vmatpush1.bf16.msra.mxu0 %v17772_v16  ;;  %v17835_v16 = vld [vmem:[#allocation8 + $0x2068] ss:$56 sps:$4 sm:$0xff]  }
 0x3e7   :  { %12167 = vmatmul.mubr.bf16.vlgmr.msra.gmra.mrb[20].mxu1 %v20423_v11  ;;  %11906 = vmatprep.subr.bf16.mxu0 %v17780_v63  ;;  %v17838_v63 = vld [vmem:[#allocation8 + $0x2450] ss:$56 sps:$4 sm:$0xff]  }
 0x3e8   :  { %12176 = vmatpush1.bf16.msra.mxu1 %v17775_v62  ;;  %12207 = vmatprep.mubr.bf16.mxu1 %v20427_v12  ;;  %v17843_v62 = vld [vmem:[#allocation8 + $0x20dc] ss:$56 sps:$4 sm:$0xff]  }
 0x3e9   :  { %12177 = vmatprep.subr.bf16.mxu1 %v17783_v0  ;;  %v17841_v0 = vld [vmem:[#allocation8 + $0x20d8] ss:$56 sps:$4 sm:$0xff]  }
 0x3ea   :  { %11907 = vmatpush1.bf16.msra.mxu0 %v17778_v1  ;;  %v17846_v1 = vld [vmem:[#allocation8 + $0x24c4] ss:$56 sps:$4 sm:$0xff]  }
 0x3eb   :  { %11908 = vmatprep.subr.bf16.mxu0 %v17786_v8  ;;  %v17844_v8 = vld [vmem:[#allocation8 + $0x24c0] ss:$56 sps:$4 sm:$0xff]  }
 0x3ec   :  { %12178 = vmatpush1.bf16.msra.mxu1 %v17781_v2  ;;  %v17849_v2 = vld [vmem:[#allocation8 + $0x214c] ss:$56 sps:$4 sm:$0xff]  }
 0x3ed   :  { %12179 = vmatprep.subr.bf16.mxu1 %v17789_v10  ;;  %v17847_v10 = vld [vmem:[#allocation8 + $0x2148] ss:$56 sps:$4 sm:$0xff]  }
 0x3ee   :  { %11909 = vmatpush1.bf16.msra.mxu0 %v17784_v5  ;;  %v17852_v5 = vld [vmem:[#allocation8 + $0x2534] ss:$56 sps:$4 sm:$0xff]  }
 0x3ef   :  { %11910 = vmatprep.subr.bf16.mxu0 %v17792_v42  ;;  %v17850_v42 = vld [vmem:[#allocation8 + $0x2530] ss:$56 sps:$4 sm:$0xff]  }
 0x3f0   :  { %12180 = vmatpush1.bf16.msra.mxu1 %v17787_v9  ;;  %v17855_v9 = vld [vmem:[#allocation8 + $0x21bc] ss:$56 sps:$4 sm:$0xff]  }
 0x3f1   :  { %12181 = vmatprep.subr.bf16.mxu1 %v17795_v15  ;;  %v17853_v15 = vld [vmem:[#allocation8 + $0x21b8] ss:$56 sps:$4 sm:$0xff]  }
 0x3f2   :  { %11911 = vmatpush1.bf16.msra.mxu0 %v17790_v13  ;;  %v17858_v13 = vld [vmem:[#allocation8 + $0x25a4] ss:$56 sps:$4 sm:$0xff]  }
 0x3f3   :  { %11912 = vmatprep.subr.bf16.mxu0 %v17798_v19  ;;  %v17856_v19 = vld [vmem:[#allocation8 + $0x25a0] ss:$56 sps:$4 sm:$0xff]  }
 0x3f4   :  { %12182 = vmatpush1.bf16.msra.mxu1 %v17793_v17  ;;  %v17861_v17 = vld [vmem:[#allocation8 + $0x222c] ss:$56 sps:$4 sm:$0xff]  }
 0x3f5   :  { %12183 = vmatprep.subr.bf16.mxu1 %v17801_v36  ;;  %v17859_v36 = vld [vmem:[#allocation8 + $0x2228] ss:$56 sps:$4 sm:$0xff]  }
 0x3f6   :  { %11913 = vmatpush1.bf16.msra.mxu0 %v17796_v39  ;;  %v17864_v39 = vld [vmem:[#allocation8 + $0x2614] ss:$56 sps:$4 sm:$0xff]  }
 0x3f7   :  { %11914 = vmatprep.subr.bf16.mxu0 %v17804_v23  ;;  %v17862_v23 = vld [vmem:[#allocation8 + $0x2610] ss:$56 sps:$4 sm:$0xff]  }
 0x3f8   :  { %12184 = vmatpush1.bf16.msra.mxu1 %v17799_v41  ;;  %v17867_v41 = vld [vmem:[#allocation8 + $0x229c] ss:$56 sps:$4 sm:$0xff]  }
 0x3f9   :  { %12185 = vmatprep.subr.bf16.mxu1 %v17807_v25  ;;  %v17865_v25 = vld [vmem:[#allocation8 + $0x2298] ss:$56 sps:$4 sm:$0xff]  }
 0x3fa   :  { %11915 = vmatpush1.bf16.msra.mxu0 %v17802_v46  ;;  %v17870_v46 = vld [vmem:[#allocation8 + $0x2684] ss:$56 sps:$4 sm:$0xff]  }
 0x3fb   :  { %11916 = vmatprep.subr.bf16.mxu0 %v17810_v7  ;;  %v17868_v7 = vld [vmem:[#allocation8 + $0x2680] ss:$56 sps:$4 sm:$0xff]  }
 0x3fc   :  { %12186 = vmatpush1.bf16.msra.mxu1 %v17805_v14  ;;  %v17873_v14 = vld [vmem:[#allocation8 + $0x230c] ss:$56 sps:$4 sm:$0xff]  }
 0x3fd   :  { %12187 = vmatprep.subr.bf16.mxu1 %v17813_v52  ;;  %v17871_v52 = vld [vmem:[#allocation8 + $0x2308] ss:$56 sps:$4 sm:$0xff]  }
 0x3fe   :  { %11917 = vmatpush1.bf16.msra.mxu0 %v17808_v45  ;;  %v17876_v45 = vld [vmem:[#allocation8 + $0x26f4] ss:$56 sps:$4 sm:$0xff]  }
 0x3ff   :  { %11918 = vmatprep.subr.bf16.mxu0 %v17816_v27  ;;  %v17874_v27 = vld [vmem:[#allocation8 + $0x26f0] ss:$56 sps:$4 sm:$0xff]  }
 0x400   :  { %12188 = vmatpush1.bf16.msra.mxu1 %v17811_v20  ;;  %v17879_v20 = vld [vmem:[#allocation8 + $0x237c] ss:$56 sps:$4 sm:$0xff]  }
 0x401   :  { %12189 = vmatprep.subr.bf16.mxu1 %v17819_v29  ;;  %v17877_v29 = vld [vmem:[#allocation8 + $0x2378] ss:$56 sps:$4 sm:$0xff]  }
 0x402   :  { %11919 = vmatpush1.bf16.msra.mxu0 %v17814_v30  ;;  %v17882_v30 = vld [vmem:[#allocation8 + $0x2764] ss:$56 sps:$4 sm:$0xff]  }
 0x403   :  { %11929 = vmatprep.subr.bf16.mxu0 %v17822_v32  ;;  %v17880_v32 = vld [vmem:[#allocation8 + $0x2760] ss:$56 sps:$4 sm:$0xff]  }
 0x404   :  { %12190 = vmatpush1.bf16.msra.mxu1 %v17817_v31  ;;  %v17885_v31 = vld [vmem:[#allocation8 + $0x23ec] ss:$56 sps:$4 sm:$0xff]  }
 0x405   :  { %11921 = vmatmul.mubr.bf16.vlgmr.msra.gmra.mrb[12].mxu0 %v20435_v43  ;;  %12191 = vmatprep.subr.bf16.mxu1 %v17825_v34  ;;  %v17883_v34 = vld [vmem:[#allocation8 + $0x23e8] ss:$56 sps:$4 sm:$0xff]  }
 0x406   :  { %11930 = vmatpush1.bf16.msra.mxu0 %v17820_v37  ;;  %11961 = vmatprep.mubr.bf16.mxu0 %v20439_v28  ;;  %v17888_v37 = vld [vmem:[#allocation8 + $0x27d4] ss:$56 sps:$4 sm:$0xff]  }
 0x407   :  { %11931 = vmatprep.subr.bf16.mxu0 %v17828_v44  ;;  %v17886_v44 = vld [vmem:[#allocation8 + $0x27d0] ss:$56 sps:$4 sm:$0xff]  }
 0x408   :  { %12192 = vmatpush1.bf16.msra.mxu1 %v17823_v40  ;;  %v17891_v40 = vld [vmem:[#allocation8 + $0x245c] ss:$56 sps:$4 sm:$0xff]  }
 0x409   :  { %12193 = vmatprep.subr.bf16.mxu1 %v17831_v53  ;;  %v17889_v53 = vld [vmem:[#allocation8 + $0x2458] ss:$56 sps:$4 sm:$0xff]  }
 0x40a   :  { %11932 = vmatpush1.bf16.msra.mxu0 %v17826_v55  ;;  %v17894_v55 = vld [vmem:[#allocation8 + $0x2844] ss:$56 sps:$4 sm:$0xff]  }
 0x40b   :  { %11933 = vmatprep.subr.bf16.mxu0 %v17834_v57  ;;  %v17892_v57 = vld [vmem:[#allocation8 + $0x2840] ss:$56 sps:$4 sm:$0xff]  }
 0x40c   :  { %12194 = vmatpush1.bf16.msra.mxu1 %v17829_v56  ;;  %v17897_v56 = vld [vmem:[#allocation8 + $0x24cc] ss:$56 sps:$4 sm:$0xff]  }
 0x40d   :  { %12195 = vmatprep.subr.bf16.mxu1 %v17837_v38  ;;  %v17895_v38 = vld [vmem:[#allocation8 + $0x24c8] ss:$56 sps:$4 sm:$0xff]  }
 0x40e   :  { %11934 = vmatpush1.bf16.msra.mxu0 %v17832_v33  ;;  %v17900_v33 = vld [vmem:[#allocation8 + $0x28b4] ss:$56 sps:$4 sm:$0xff]  }
 0x40f   :  { %11935 = vmatprep.subr.bf16.mxu0 %v17840_v26  ;;  %v17898_v26 = vld [vmem:[#allocation8 + $0x28b0] ss:$56 sps:$4 sm:$0xff]  }
 0x410   :  { %12196 = vmatpush1.bf16.msra.mxu1 %v17835_v16  ;;  %v17903_v16 = vld [vmem:[#allocation8 + $0x253c] ss:$56 sps:$4 sm:$0xff]  }
 0x411   :  { %12197 = vmatprep.subr.bf16.mxu1 %v17843_v62  ;;  %v17901_v62 = vld [vmem:[#allocation8 + $0x2538] ss:$56 sps:$4 sm:$0xff]  }
 0x412   :  { %11936 = vmatpush1.bf16.msra.mxu0 %v17838_v63  ;;  %v17906_v63 = vld [vmem:[#allocation8 + $0x2924] ss:$56 sps:$4 sm:$0xff]  }
 0x413   :  { %11937 = vmatprep.subr.bf16.mxu0 %v17846_v1  ;;  %v17904_v1 = vld [vmem:[#allocation8 + $0x2920] ss:$56 sps:$4 sm:$0xff]  }
 0x414   :  { %12198 = vmatpush1.bf16.msra.mxu1 %v17841_v0  ;;  %v17909_v0 = vld [vmem:[#allocation8 + $0x25ac] ss:$56 sps:$4 sm:$0xff]  }
 0x415   :  { %12199 = vmatprep.subr.bf16.mxu1 %v17849_v2  ;;  %v17907_v2 = vld [vmem:[#allocation8 + $0x25a8] ss:$56 sps:$4 sm:$0xff]  }
 0x416   :  { %11938 = vmatpush1.bf16.msra.mxu0 %v17844_v8  ;;  %v17912_v8 = vld [vmem:[#allocation8 + $0x2994] ss:$56 sps:$4 sm:$0xff]  }
 0x417   :  { %11939 = vmatprep.subr.bf16.mxu0 %v17852_v5  ;;  %v17910_v5 = vld [vmem:[#allocation8 + $0x2990] ss:$56 sps:$4 sm:$0xff]  }
 0x418   :  { %12200 = vmatpush1.bf16.msra.mxu1 %v17847_v10  ;;  %v17915_v10 = vld [vmem:[#allocation8 + $0x261c] ss:$56 sps:$4 sm:$0xff]  }
 0x419   :  { %12201 = vmatprep.subr.bf16.mxu1 %v17855_v9  ;;  %v17913_v9 = vld [vmem:[#allocation8 + $0x2618] ss:$56 sps:$4 sm:$0xff]  }
 0x41a   :  { %11940 = vmatpush1.bf16.msra.mxu0 %v17850_v42  ;;  %v17918_v42 = vld [vmem:[#allocation8 + $0x2a04] ss:$56 sps:$4 sm:$0xff]  }
 0x41b   :  { %11941 = vmatprep.subr.bf16.mxu0 %v17858_v13  ;;  %v17916_v13 = vld [vmem:[#allocation8 + $0x2a00] ss:$56 sps:$4 sm:$0xff]  }
 0x41c   :  { %12202 = vmatpush1.bf16.msra.mxu1 %v17853_v15  ;;  %v17921_v15 = vld [vmem:[#allocation8 + $0x268c] ss:$56 sps:$4 sm:$0xff]  }
 0x41d   :  { %12203 = vmatprep.subr.bf16.mxu1 %v17861_v17  ;;  %v17919_v17 = vld [vmem:[#allocation8 + $0x2688] ss:$56 sps:$4 sm:$0xff]  }
 0x41e   :  { %11942 = vmatpush1.bf16.msra.mxu0 %v17856_v19  ;;  %v20447_v19 = vpack.c.bf16 %v20327_v50, %v20327_v50  ;;  %v17933_v50 = vld [vmem:[#allocation8 + $0x276c] ss:$56 sps:$4 sm:$0xff]  }
 0x41f   :  { %11943 = vmatprep.subr.bf16.mxu0 %v17864_v39  ;;  %v20451_v39 = vpack.c.bf16 %v20419_v47, %v20419_v47  ;;  %v17936_v47 = vld [vmem:[#allocation8 + $0x2b54] ss:$56 sps:$4 sm:$0xff]  }
 0x420   :  { %12204 = vmatpush1.bf16.msra.mxu1 %v17859_v36  ;;  %v17924_v36 = vld [vmem:[#allocation8 + $0x2a74] ss:$56 sps:$4 sm:$0xff]  }
 0x421   :  { %12205 = vmatprep.subr.bf16.mxu1 %v17867_v41  ;;  %v17927_v41 = vld [vmem:[#allocation8 + $0x26fc] ss:$56 sps:$4 sm:$0xff]  }
 0x422   :  { %11944 = vmatpush1.bf16.msra.mxu0 %v17862_v23  ;;  %v17922_v23 = vld [vmem:[#allocation8 + $0x2a70] ss:$56 sps:$4 sm:$0xff]  }
 0x423   :  { %11945 = vmatprep.subr.bf16.mxu0 %v17870_v46  ;;  %v17930_v46 = vld [vmem:[#allocation8 + $0x2ae4] ss:$56 sps:$4 sm:$0xff]  }
 0x424   :  { %12206 = vmatpush1.bf16.msra.mxu1 %v17865_v25  ;;  %v17925_v25 = vld [vmem:[#allocation8 + $0x26f8] ss:$56 sps:$4 sm:$0xff]  }
 0x425   :  { %12216 = vmatprep.subr.bf16.mxu1 %v17873_v14  ;;  %v17928_v14 = vld [vmem:[#allocation8 + $0x2ae0] ss:$56 sps:$4 sm:$0xff]  }
 0x426   :  { %11946 = vmatpush1.bf16.msra.mxu0 %v17868_v7  ;;  %v17931_v7 = vld [vmem:[#allocation8 + $0x2768] ss:$56 sps:$4 sm:$0xff]  }
 0x427   :  { %12208 = vmatmul.mubr.bf16.vlgmr.msra.gmra.mrb[20].mxu1 %v20435_v43  ;;  %11947 = vmatprep.subr.bf16.mxu0 %v17876_v45  ;;  %v17934_v45 = vld [vmem:[#allocation8 + $0x2b50] ss:$56 sps:$4 sm:$0xff]  }
 0x428   :  { %12217 = vmatpush1.bf16.msra.mxu1 %v17871_v52  ;;  %12248 = vmatprep.mubr.bf16.mxu1 %v20439_v28  ;;  %v17939_v52 = vld [vmem:[#allocation8 + $0x27dc] ss:$56 sps:$4 sm:$0xff]  }
 0x429   :  { %12218 = vmatprep.subr.bf16.mxu1 %v17879_v20  ;;  %v17937_v20 = vld [vmem:[#allocation8 + $0x27d8] ss:$56 sps:$4 sm:$0xff]  }
 0x42a   :  { %11948 = vmatpush1.bf16.msra.mxu0 %v17874_v27  ;;  %v17942_v27 = vld [vmem:[#allocation8 + $0x2bc4] ss:$56 sps:$4 sm:$0xff]  }
 0x42b   :  { %11949 = vmatprep.subr.bf16.mxu0 %v17882_v30  ;;  %v17940_v30 = vld [vmem:[#allocation8 + $0x2bc0] ss:$56 sps:$4 sm:$0xff]  }
 0x42c   :  { %12219 = vmatpush1.bf16.msra.mxu1 %v17877_v29  ;;  %v17945_v29 = vld [vmem:[#allocation8 + $0x284c] ss:$56 sps:$4 sm:$0xff]  }
 0x42d   :  { %12220 = vmatprep.subr.bf16.mxu1 %v17885_v31  ;;  %v17943_v31 = vld [vmem:[#allocation8 + $0x2848] ss:$56 sps:$4 sm:$0xff]  }
 0x42e   :  { %11950 = vmatpush1.bf16.msra.mxu0 %v17880_v32  ;;  %v17948_v32 = vld [vmem:[#allocation8 + $0x2c34] ss:$56 sps:$4 sm:$0xff]  }
 0x42f   :  { %11951 = vmatprep.subr.bf16.mxu0 %v17888_v37  ;;  %v17946_v37 = vld [vmem:[#allocation8 + $0x2c30] ss:$56 sps:$4 sm:$0xff]  }
 0x430   :  { %12221 = vmatpush1.bf16.msra.mxu1 %v17883_v34  ;;  %v17951_v34 = vld [vmem:[#allocation8 + $0x28bc] ss:$56 sps:$4 sm:$0xff]  }
 0x431   :  { %12222 = vmatprep.subr.bf16.mxu1 %v17891_v40  ;;  %v17949_v40 = vld [vmem:[#allocation8 + $0x28b8] ss:$56 sps:$4 sm:$0xff]  }
 0x432   :  { %11952 = vmatpush1.bf16.msra.mxu0 %v17886_v44  ;;  %v17954_v44 = vld [vmem:[#allocation8 + $0x2ca4] ss:$56 sps:$4 sm:$0xff]  }
 0x433   :  { %11953 = vmatprep.subr.bf16.mxu0 %v17894_v55  ;;  %v17952_v55 = vld [vmem:[#allocation8 + $0x2ca0] ss:$56 sps:$4 sm:$0xff]  }
 0x434   :  { %12223 = vmatpush1.bf16.msra.mxu1 %v17889_v53  ;;  %v17957_v53 = vld [vmem:[#allocation8 + $0x292c] ss:$56 sps:$4 sm:$0xff]  }
 0x435   :  { %12224 = vmatprep.subr.bf16.mxu1 %v17897_v56  ;;  %v17955_v56 = vld [vmem:[#allocation8 + $0x2928] ss:$56 sps:$4 sm:$0xff]  }
 0x436   :  { %11954 = vmatpush1.bf16.msra.mxu0 %v17892_v57  ;;  %v17960_v57 = vld [vmem:[#allocation8 + $0x2d14] ss:$56 sps:$4 sm:$0xff]  }
 0x437   :  { %11955 = vmatprep.subr.bf16.mxu0 %v17900_v33  ;;  %v17958_v33 = vld [vmem:[#allocation8 + $0x2d10] ss:$56 sps:$4 sm:$0xff]  }
 0x438   :  { %12225 = vmatpush1.bf16.msra.mxu1 %v17895_v38  ;;  %v17963_v38 = vld [vmem:[#allocation8 + $0x299c] ss:$56 sps:$4 sm:$0xff]  }
 0x439   :  { %12226 = vmatprep.subr.bf16.mxu1 %v17903_v16  ;;  %v17961_v16 = vld [vmem:[#allocation8 + $0x2998] ss:$56 sps:$4 sm:$0xff]  }
 0x43a   :  { %11956 = vmatpush1.bf16.msra.mxu0 %v17898_v26  ;;  %v17966_v26 = vld [vmem:[#allocation8 + $0x2d84] ss:$56 sps:$4 sm:$0xff]  }
 0x43b   :  { %11957 = vmatprep.subr.bf16.mxu0 %v17906_v63  ;;  %v17964_v63 = vld [vmem:[#allocation8 + $0x2d80] ss:$56 sps:$4 sm:$0xff]  }
 0x43c   :  { %12227 = vmatpush1.bf16.msra.mxu1 %v17901_v62  ;;  %v17969_v62 = vld [vmem:[#allocation8 + $0x2a0c] ss:$56 sps:$4 sm:$0xff]  }
 0x43d   :  { %12228 = vmatprep.subr.bf16.mxu1 %v17909_v0  ;;  %v17967_v0 = vld [vmem:[#allocation8 + $0x2a08] ss:$56 sps:$4 sm:$0xff]  }
 0x43e   :  { %11958 = vmatpush1.bf16.msra.mxu0 %v17904_v1  ;;  %v17972_v1 = vld [vmem:[#allocation8 + $0x2df4] ss:$56 sps:$4 sm:$0xff]  }
 0x43f   :  { %11959 = vmatprep.subr.bf16.mxu0 %v17912_v8  ;;  %v17970_v8 = vld [vmem:[#allocation8 + $0x2df0] ss:$56 sps:$4 sm:$0xff]  }
 0x440   :  { %12229 = vmatpush1.bf16.msra.mxu1 %v17907_v2  ;;  %v17975_v2 = vld [vmem:[#allocation8 + $0x2a7c] ss:$56 sps:$4 sm:$0xff]  }
 0x441   :  { %12230 = vmatprep.subr.bf16.mxu1 %v17915_v10  ;;  %v17973_v10 = vld [vmem:[#allocation8 + $0x2a78] ss:$56 sps:$4 sm:$0xff]  }
 0x442   :  { %11960 = vmatpush1.bf16.msra.mxu0 %v17910_v5  ;;  %v17978_v5 = vld [vmem:[#allocation8 + $0x2e64] ss:$56 sps:$4 sm:$0xff]  }
 0x443   :  { %11970 = vmatprep.subr.bf16.mxu0 %v17918_v42  ;;  %v17976_v42 = vld [vmem:[#allocation8 + $0x2e60] ss:$56 sps:$4 sm:$0xff]  }
 0x444   :  { %12231 = vmatpush1.bf16.msra.mxu1 %v17913_v9  ;;  %v17981_v9 = vld [vmem:[#allocation8 + $0x2aec] ss:$56 sps:$4 sm:$0xff]  }
 0x445   :  { %11962 = vmatmul.mubr.bf16.vlgmr.msra.gmra.mrb[12].mxu0 %v20447_v19  ;;  %12232 = vmatprep.subr.bf16.mxu1 %v17921_v15  ;;  %v17979_v15 = vld [vmem:[#allocation8 + $0x2ae8] ss:$56 sps:$4 sm:$0xff]  }
 0x446   :  { %11971 = vmatpush1.bf16.msra.mxu0 %v17916_v13  ;;  %12002 = vmatprep.mubr.bf16.mxu0 %v20451_v39  ;;  %v17984_v13 = vld [vmem:[#allocation8 + $0x2ed4] ss:$56 sps:$4 sm:$0xff]  }
 0x447   :  { %11972 = vmatprep.subr.bf16.mxu0 %v17924_v36  ;;  %v17982_v36 = vld [vmem:[#allocation8 + $0x2ed0] ss:$56 sps:$4 sm:$0xff]  }
 0x448   :  { %12233 = vmatpush1.bf16.msra.mxu1 %v17919_v17  ;;  %v17987_v17 = vld [vmem:[#allocation8 + $0x2b5c] ss:$56 sps:$4 sm:$0xff]  }
 0x449   :  { %12234 = vmatprep.subr.bf16.mxu1 %v17927_v41  ;;  %v17985_v41 = vld [vmem:[#allocation8 + $0x2b58] ss:$56 sps:$4 sm:$0xff]  }
 0x44a   :  { %11973 = vmatpush1.bf16.msra.mxu0 %v17922_v23  ;;  %v17990_v23 = vld [vmem:[#allocation8 + $0x2f44] ss:$56 sps:$4 sm:$0xff]  }
 0x44b   :  { %11974 = vmatprep.subr.bf16.mxu0 %v17930_v46  ;;  %v17988_v46 = vld [vmem:[#allocation8 + $0x2f40] ss:$56 sps:$4 sm:$0xff]  }
 0x44c   :  { %12235 = vmatpush1.bf16.msra.mxu1 %v17925_v25  ;;  %v17993_v25 = vld [vmem:[#allocation8 + $0x2bcc] ss:$56 sps:$4 sm:$0xff]  }
 0x44d   :  { %12236 = vmatprep.subr.bf16.mxu1 %v17933_v50  ;;  %v17991_v50 = vld [vmem:[#allocation8 + $0x2bc8] ss:$56 sps:$4 sm:$0xff]  }
 0x44e   :  { %11975 = vmatpush1.bf16.msra.mxu0 %v17928_v14  ;;  %v17996_v14 = vld [vmem:[#allocation8 + $0x2fb4] ss:$56 sps:$4 sm:$0xff]  }
 0x44f   :  { %11976 = vmatprep.subr.bf16.mxu0 %v17936_v47  ;;  %v17994_v47 = vld [vmem:[#allocation8 + $0x2fb0] ss:$56 sps:$4 sm:$0xff]  }
 0x450   :  { %12237 = vmatpush1.bf16.msra.mxu1 %v17931_v7  ;;  %v17999_v7 = vld [vmem:[#allocation8 + $0x2c3c] ss:$56 sps:$4 sm:$0xff]  }
 0x451   :  { %12238 = vmatprep.subr.bf16.mxu1 %v17939_v52  ;;  %v17997_v52 = vld [vmem:[#allocation8 + $0x2c38] ss:$56 sps:$4 sm:$0xff]  }
 0x452   :  { %11977 = vmatpush1.bf16.msra.mxu0 %v17934_v45  ;;  %v18002_v45 = vld [vmem:[#allocation8 + $0x3024] ss:$56 sps:$4 sm:$0xff]  }
 0x453   :  { %11978 = vmatprep.subr.bf16.mxu0 %v17942_v27  ;;  %v18000_v27 = vld [vmem:[#allocation8 + $0x3020] ss:$56 sps:$4 sm:$0xff]  }
 0x454   :  { %12239 = vmatpush1.bf16.msra.mxu1 %v17937_v20  ;;  %v18005_v20 = vld [vmem:[#allocation8 + $0x2cac] ss:$56 sps:$4 sm:$0xff]  }
 0x455   :  { %12240 = vmatprep.subr.bf16.mxu1 %v17945_v29  ;;  %v18003_v29 = vld [vmem:[#allocation8 + $0x2ca8] ss:$56 sps:$4 sm:$0xff]  }
 0x456   :  { %11979 = vmatpush1.bf16.msra.mxu0 %v17940_v30  ;;  %v18008_v30 = vld [vmem:[#allocation8 + $0x3094] ss:$56 sps:$4 sm:$0xff]  }
 0x457   :  { %11980 = vmatprep.subr.bf16.mxu0 %v17948_v32  ;;  %v18006_v32 = vld [vmem:[#allocation8 + $0x3090] ss:$56 sps:$4 sm:$0xff]  }
 0x458   :  { %12241 = vmatpush1.bf16.msra.mxu1 %v17943_v31  ;;  %v18011_v31 = vld [vmem:[#allocation8 + $0x2d1c] ss:$56 sps:$4 sm:$0xff]  }
 0x459   :  { %12242 = vmatprep.subr.bf16.mxu1 %v17951_v34  ;;  %v18009_v34 = vld [vmem:[#allocation8 + $0x2d18] ss:$56 sps:$4 sm:$0xff]  }
 0x45a   :  { %11981 = vmatpush1.bf16.msra.mxu0 %v17946_v37  ;;  %v18014_v37 = vld [vmem:[#allocation8 + $0x14] ss:$56 sps:$4 sm:$0xff]  }
 0x45b   :  { %11982 = vmatprep.subr.bf16.mxu0 %v17954_v44  ;;  %v18012_v44 = vld [vmem:[#allocation8 + $0x10] ss:$56 sps:$4 sm:$0xff]  }
 0x45c   :  { %12243 = vmatpush1.bf16.msra.mxu1 %v17949_v40  ;;  %v18017_v40 = vld [vmem:[#allocation8 + $0x2d8c] ss:$56 sps:$4 sm:$0xff]  }
 0x45d   :  { %12244 = vmatprep.subr.bf16.mxu1 %v17957_v53  ;;  %v18015_v53 = vld [vmem:[#allocation8 + $0x2d88] ss:$56 sps:$4 sm:$0xff]  }
 0x45e   :  { %11983 = vmatpush1.bf16.msra.mxu0 %v17952_v55  ;;  %v20459_v55 = vpack.c.bf16 %v20417_v3, %v20417_v3  ;;  %v18024_v3 = vld [vmem:[#allocation8 + $0xf0] ss:$56 sps:$4 sm:$0xff]  }
 0x45f   :  { %11984 = vmatprep.subr.bf16.mxu0 %v17960_v57  ;;  %v18023_v57 = vld [vmem:[#allocation8 + $0x2dfc] ss:$56 sps:$4 sm:$0xff]  }
 0x460   :  { %12245 = vmatpush1.bf16.msra.mxu1 %v17955_v56  ;;  %v18020_v56 = vld [vmem:[#allocation8 + $0x84] ss:$56 sps:$4 sm:$0xff]  }
 0x461   :  { %12246 = vmatprep.subr.bf16.mxu1 %v17963_v38  ;;  %v18018_v38 = vld [vmem:[#allocation8 + $0x80] ss:$56 sps:$4 sm:$0xff]  }
 0x462   :  { %11985 = vmatpush1.bf16.msra.mxu0 %v17958_v33  ;;  %v18021_v33 = vld [vmem:[#allocation8 + $0x2df8] ss:$56 sps:$4 sm:$0xff]  }
 0x463   :  { %11986 = vmatprep.subr.bf16.mxu0 %v17966_v26  ;;  %v18029_v26 = vld [vmem:[#allocation8 + $0x2e6c] ss:$56 sps:$4 sm:$0xff]  }
 0x464   :  { %12247 = vmatpush1.bf16.msra.mxu1 %v17961_v16  ;;  %v18026_v16 = vld [vmem:[#allocation8 + $0xf4] ss:$56 sps:$4 sm:$0xff]  }
 0x465   :  { %12257 = vmatprep.subr.bf16.mxu1 %v17969_v62  ;;  %v18027_v62 = vld [vmem:[#allocation8 + $0x2e68] ss:$56 sps:$4 sm:$0xff]  }
 0x466   :  { %11987 = vmatpush1.bf16.msra.mxu0 %v17964_v63  ;;  %v18032_v63 = vld [vmem:[#allocation8 + $0x164] ss:$56 sps:$4 sm:$0xff]  }
 0x467   :  { %12249 = vmatmul.mubr.bf16.vlgmr.msra.gmra.mrb[20].mxu1 %v20447_v19  ;;  %11988 = vmatprep.subr.bf16.mxu0 %v17972_v1  ;;  %v18030_v1 = vld [vmem:[#allocation8 + $0x160] ss:$56 sps:$4 sm:$0xff]  }
 0x468   :  { %12258 = vmatpush1.bf16.msra.mxu1 %v17967_v0  ;;  %12289 = vmatprep.mubr.bf16.mxu1 %v20451_v39  ;;  %v18035_v0 = vld [vmem:[#allocation8 + $0x2edc] ss:$56 sps:$4 sm:$0xff]  }
 0x469   :  { %12259 = vmatprep.subr.bf16.mxu1 %v17975_v2  ;;  %v18033_v2 = vld [vmem:[#allocation8 + $0x2ed8] ss:$56 sps:$4 sm:$0xff]  }
 0x46a   :  { %11989 = vmatpush1.bf16.msra.mxu0 %v17970_v8  ;;  %v18038_v8 = vld [vmem:[#allocation8 + $0x1d4] ss:$56 sps:$4 sm:$0xff]  }
 0x46b   :  { %11990 = vmatprep.subr.bf16.mxu0 %v17978_v5  ;;  %v18036_v5 = vld [vmem:[#allocation8 + $0x1d0] ss:$56 sps:$4 sm:$0xff]  }
 0x46c   :  { %12260 = vmatpush1.bf16.msra.mxu1 %v17973_v10  ;;  %v18041_v10 = vld [vmem:[#allocation8 + $0x2f4c] ss:$56 sps:$4 sm:$0xff]  }
 0x46d   :  { %12261 = vmatprep.subr.bf16.mxu1 %v17981_v9  ;;  %v18039_v9 = vld [vmem:[#allocation8 + $0x2f48] ss:$56 sps:$4 sm:$0xff]  }
 0x46e   :  { %11991 = vmatpush1.bf16.msra.mxu0 %v17976_v42  ;;  %v18044_v42 = vld [vmem:[#allocation8 + $0x244] ss:$56 sps:$4 sm:$0xff]  }
 0x46f   :  { %11992 = vmatprep.subr.bf16.mxu0 %v17984_v13  ;;  %v18042_v13 = vld [vmem:[#allocation8 + $0x240] ss:$56 sps:$4 sm:$0xff]  }
 0x470   :  { %12262 = vmatpush1.bf16.msra.mxu1 %v17979_v15  ;;  %v18047_v15 = vld [vmem:[#allocation8 + $0x2fbc] ss:$56 sps:$4 sm:$0xff]  }
 0x471   :  { %12263 = vmatprep.subr.bf16.mxu1 %v17987_v17  ;;  %v18045_v17 = vld [vmem:[#allocation8 + $0x2fb8] ss:$56 sps:$4 sm:$0xff]  }
 0x472   :  { %11993 = vmatpush1.bf16.msra.mxu0 %v17982_v36  ;;  %v18050_v36 = vld [vmem:[#allocation8 + $0x2b4] ss:$56 sps:$4 sm:$0xff]  }
 0x473   :  { %11994 = vmatprep.subr.bf16.mxu0 %v17990_v23  ;;  %v18048_v23 = vld [vmem:[#allocation8 + $0x2b0] ss:$56 sps:$4 sm:$0xff]  }
 0x474   :  { %12264 = vmatpush1.bf16.msra.mxu1 %v17985_v41  ;;  %v18053_v41 = vld [vmem:[#allocation8 + $0x302c] ss:$56 sps:$4 sm:$0xff]  }
 0x475   :  { %12265 = vmatprep.subr.bf16.mxu1 %v17993_v25  ;;  %v18051_v25 = vld [vmem:[#allocation8 + $0x3028] ss:$56 sps:$4 sm:$0xff]  }
 0x476   :  { %11995 = vmatpush1.bf16.msra.mxu0 %v17988_v46  ;;  %v18056_v46 = vld [vmem:[#allocation8 + $0x324] ss:$56 sps:$4 sm:$0xff]  }
 0x477   :  { %11996 = vmatprep.subr.bf16.mxu0 %v17996_v14  ;;  %v18054_v14 = vld [vmem:[#allocation8 + $0x320] ss:$56 sps:$4 sm:$0xff]  }
 0x478   :  { %12266 = vmatpush1.bf16.msra.mxu1 %v17991_v50  ;;  %v18059_v50 = vld [vmem:[#allocation8 + $0x309c] ss:$56 sps:$4 sm:$0xff]  }
 0x479   :  { %12267 = vmatprep.subr.bf16.mxu1 %v17999_v7  ;;  %v18057_v7 = vld [vmem:[#allocation8 + $0x3098] ss:$56 sps:$4 sm:$0xff]  }
 0x47a   :  { %11997 = vmatpush1.bf16.msra.mxu0 %v17994_v47  ;;  %v18062_v47 = vld [vmem:[#allocation8 + $0x394] ss:$56 sps:$4 sm:$0xff]  }
 0x47b   :  { %11998 = vmatprep.subr.bf16.mxu0 %v18002_v45  ;;  %v18060_v45 = vld [vmem:[#allocation8 + $0x390] ss:$56 sps:$4 sm:$0xff]  }
 0x47c   :  { %12268 = vmatpush1.bf16.msra.mxu1 %v17997_v52  ;;  %v18065_v52 = vld [vmem:[#allocation8 + $0x1c] ss:$56 sps:$4 sm:$0xff]  }
 0x47d   :  { %12269 = vmatprep.subr.bf16.mxu1 %v18005_v20  ;;  %v18063_v20 = vld [vmem:[#allocation8 + $0x18] ss:$56 sps:$4 sm:$0xff]  }
 0x47e   :  { %11999 = vmatpush1.bf16.msra.mxu0 %v18000_v27  ;;  %v18068_v27 = vld [vmem:[#allocation8 + $0x404] ss:$56 sps:$4 sm:$0xff]  }
 0x47f   :  { %12000 = vmatprep.subr.bf16.mxu0 %v18008_v30  ;;  %v18066_v30 = vld [vmem:[#allocation8 + $0x400] ss:$56 sps:$4 sm:$0xff]  }
 0x480   :  { %12270 = vmatpush1.bf16.msra.mxu1 %v18003_v29  ;;  %v18071_v29 = vld [vmem:[#allocation8 + $0x8c] ss:$56 sps:$4 sm:$0xff]  }
 0x481   :  { %12271 = vmatprep.subr.bf16.mxu1 %v18011_v31  ;;  %v18069_v31 = vld [vmem:[#allocation8 + $0x88] ss:$56 sps:$4 sm:$0xff]  }
 0x482   :  { %12001 = vmatpush1.bf16.msra.mxu0 %v18006_v32  ;;  %v18074_v32 = vld [vmem:[#allocation8 + $0x474] ss:$56 sps:$4 sm:$0xff]  }
 0x483   :  { %12298 = vmatprep.subr.bf16.mxu0 %v18014_v37  ;;  %v18072_v37 = vld [vmem:[#allocation8 + $0x470] ss:$56 sps:$4 sm:$0xff]  }
 0x484   :  { %12272 = vmatpush1.bf16.msra.mxu1 %v18009_v34  ;;  %v18077_v34 = vld [vmem:[#allocation8 + $0xfc] ss:$56 sps:$4 sm:$0xff]  }
 0x485   :  { %12003 = vmatmul.mubr.bf16.vlgmr.msra.gmra.mrb[12].mxu0 %v20459_v55  ;;  %12273 = vmatprep.subr.bf16.mxu1 %v18017_v40  ;;  %v18075_v40 = vld [vmem:[#allocation8 + $0xf8] ss:$56 sps:$4 sm:$0xff]  }
 0x486   :  { %12299 = vmatpush1.bf16.msra.mxu0 %v18012_v44  ;;  %12330 = vmatprep.mubr.bf16.mxu0 %v20343_v4  ;;  %v18080_v44 = vld [vmem:[#allocation8 + $0x4e4] ss:$56 sps:$4 sm:$0xff]  }
 0x487   :  { %12300 = vmatprep.subr.bf16.mxu0 %v18020_v56  ;;  %v18078_v56 = vld [vmem:[#allocation8 + $0x4e0] ss:$56 sps:$4 sm:$0xff]  }
 0x488   :  { %12274 = vmatpush1.bf16.msra.mxu1 %v18015_v53  ;;  %v18083_v53 = vld [vmem:[#allocation8 + $0x16c] ss:$56 sps:$4 sm:$0xff]  }
 0x489   :  { %12275 = vmatprep.subr.bf16.mxu1 %v18023_v57  ;;  %v18081_v57 = vld [vmem:[#allocation8 + $0x168] ss:$56 sps:$4 sm:$0xff]  }
 0x48a   :  { %12301 = vmatpush1.bf16.msra.mxu0 %v18018_v38  ;;  %v18086_v38 = vld [vmem:[#allocation8 + $0x554] ss:$56 sps:$4 sm:$0xff]  }
 0x48b   :  { %12302 = vmatprep.subr.bf16.mxu0 %v18026_v16  ;;  %v18084_v16 = vld [vmem:[#allocation8 + $0x550] ss:$56 sps:$4 sm:$0xff]  }
 0x48c   :  { %12276 = vmatpush1.bf16.msra.mxu1 %v18021_v33  ;;  %v18089_v33 = vld [vmem:[#allocation8 + $0x1dc] ss:$56 sps:$4 sm:$0xff]  }
 0x48d   :  { %12277 = vmatprep.subr.bf16.mxu1 %v18029_v26  ;;  %v18087_v26 = vld [vmem:[#allocation8 + $0x1d8] ss:$56 sps:$4 sm:$0xff]  }
 0x48e   :  { %12303 = vmatpush1.bf16.msra.mxu0 %v18024_v3  ;;  %v18092_v3 = vld [vmem:[#allocation8 + $0x5c4] ss:$56 sps:$4 sm:$0xff]  }
 0x48f   :  { %12304 = vmatprep.subr.bf16.mxu0 %v18032_v63  ;;  %v18090_v63 = vld [vmem:[#allocation8 + $0x5c0] ss:$56 sps:$4 sm:$0xff]  }
 0x490   :  { %12278 = vmatpush1.bf16.msra.mxu1 %v18027_v62  ;;  %v18095_v62 = vld [vmem:[#allocation8 + $0x24c] ss:$56 sps:$4 sm:$0xff]  }
 0x491   :  { %12279 = vmatprep.subr.bf16.mxu1 %v18035_v0  ;;  %v18093_v0 = vld [vmem:[#allocation8 + $0x248] ss:$56 sps:$4 sm:$0xff]  }
 0x492   :  { %12305 = vmatpush1.bf16.msra.mxu0 %v18030_v1  ;;  %v18098_v1 = vld [vmem:[#allocation8 + $0x634] ss:$56 sps:$4 sm:$0xff]  }
 0x493   :  { %12306 = vmatprep.subr.bf16.mxu0 %v18038_v8  ;;  %v18096_v8 = vld [vmem:[#allocation8 + $0x630] ss:$56 sps:$4 sm:$0xff]  }
 0x494   :  { %12280 = vmatpush1.bf16.msra.mxu1 %v18033_v2  ;;  %v18101_v2 = vld [vmem:[#allocation8 + $0x2bc] ss:$56 sps:$4 sm:$0xff]  }
 0x495   :  { %12281 = vmatprep.subr.bf16.mxu1 %v18041_v10  ;;  %v18099_v10 = vld [vmem:[#allocation8 + $0x2b8] ss:$56 sps:$4 sm:$0xff]  }
 0x496   :  { %12307 = vmatpush1.bf16.msra.mxu0 %v18036_v5  ;;  %v18104_v5 = vld [vmem:[#allocation8 + $0x6a4] ss:$56 sps:$4 sm:$0xff]  }
 0x497   :  { %12308 = vmatprep.subr.bf16.mxu0 %v18044_v42  ;;  %v18102_v42 = vld [vmem:[#allocation8 + $0x6a0] ss:$56 sps:$4 sm:$0xff]  }
 0x498   :  { %12282 = vmatpush1.bf16.msra.mxu1 %v18039_v9  ;;  %v18107_v9 = vld [vmem:[#allocation8 + $0x32c] ss:$56 sps:$4 sm:$0xff]  }
 0x499   :  { %12283 = vmatprep.subr.bf16.mxu1 %v18047_v15  ;;  %v18105_v15 = vld [vmem:[#allocation8 + $0x328] ss:$56 sps:$4 sm:$0xff]  }
 0x49a   :  { %12309 = vmatpush1.bf16.msra.mxu0 %v18042_v13  ;;  %v18110_v13 = vld [vmem:[#allocation8 + $0x714] ss:$56 sps:$4 sm:$0xff]  }
 0x49b   :  { %12310 = vmatprep.subr.bf16.mxu0 %v18050_v36  ;;  %v18108_v36 = vld [vmem:[#allocation8 + $0x710] ss:$56 sps:$4 sm:$0xff]  }
 0x49c   :  { %12284 = vmatpush1.bf16.msra.mxu1 %v18045_v17  ;;  %v18113_v17 = vld [vmem:[#allocation8 + $0x39c] ss:$56 sps:$4 sm:$0xff]  }
 0x49d   :  { %12285 = vmatprep.subr.bf16.mxu1 %v18053_v41  ;;  %v18111_v41 = vld [vmem:[#allocation8 + $0x398] ss:$56 sps:$4 sm:$0xff]  }
 0x49e   :  { %12311 = vmatpush1.bf16.msra.mxu0 %v18048_v23  ;;  %v18116_v23 = vld [vmem:[#allocation8 + $0x784] ss:$56 sps:$4 sm:$0xff]  }
 0x49f   :  { %12312 = vmatprep.subr.bf16.mxu0 %v18056_v46  ;;  %v18114_v46 = vld [vmem:[#allocation8 + $0x780] ss:$56 sps:$4 sm:$0xff]  }
 0x4a0   :  { %12286 = vmatpush1.bf16.msra.mxu1 %v18051_v25  ;;  %v18119_v25 = vld [vmem:[#allocation8 + $0x40c] ss:$56 sps:$4 sm:$0xff]  }
 0x4a1   :  { %12287 = vmatprep.subr.bf16.mxu1 %v18059_v50  ;;  %v18117_v50 = vld [vmem:[#allocation8 + $0x408] ss:$56 sps:$4 sm:$0xff]  }
 0x4a2   :  { %12313 = vmatpush1.bf16.msra.mxu0 %v18054_v14  ;;  %v18122_v14 = vld [vmem:[#allocation8 + $0x7f4] ss:$56 sps:$4 sm:$0xff]  }
 0x4a3   :  { %12314 = vmatprep.subr.bf16.mxu0 %v18062_v47  ;;  %v18120_v47 = vld [vmem:[#allocation8 + $0x7f0] ss:$56 sps:$4 sm:$0xff]  }
 0x4a4   :  { %12288 = vmatpush1.bf16.msra.mxu1 %v18057_v7  ;;  %v18125_v7 = vld [vmem:[#allocation8 + $0x47c] ss:$56 sps:$4 sm:$0xff]  }
 0x4a5   :  { %12585 = vmatprep.subr.bf16.mxu1 %v18065_v52  ;;  %v18123_v52 = vld [vmem:[#allocation8 + $0x478] ss:$56 sps:$4 sm:$0xff]  }
 0x4a6   :  { %12315 = vmatpush1.bf16.msra.mxu0 %v18060_v45  ;;  %v18128_v45 = vld [vmem:[#allocation8 + $0x864] ss:$56 sps:$4 sm:$0xff]  }
 0x4a7   :  { %12290 = vmatmul.mubr.bf16.vlgmr.msra.gmra.mrb[20].mxu1 %v20459_v55  ;;  %12316 = vmatprep.subr.bf16.mxu0 %v18068_v27  ;;  %v18126_v27 = vld [vmem:[#allocation8 + $0x860] ss:$56 sps:$4 sm:$0xff]  }
 0x4a8   :  { %12586 = vmatpush1.bf16.msra.mxu1 %v18063_v20  ;;  %12617 = vmatprep.mubr.bf16.mxu1 %v20343_v4  ;;  %v18131_v20 = vld [vmem:[#allocation8 + $0x4ec] ss:$56 sps:$4 sm:$0xff]  }
 0x4a9   :  { %12587 = vmatprep.subr.bf16.mxu1 %v18071_v29  ;;  %v18129_v29 = vld [vmem:[#allocation8 + $0x4e8] ss:$56 sps:$4 sm:$0xff]  }
 0x4aa   :  { %12317 = vmatpush1.bf16.msra.mxu0 %v18066_v30  ;;  %v18134_v30 = vld [vmem:[#allocation8 + $0x8d4] ss:$56 sps:$4 sm:$0xff]  }
 0x4ab   :  { %12318 = vmatprep.subr.bf16.mxu0 %v18074_v32  ;;  %v18132_v32 = vld [vmem:[#allocation8 + $0x8d0] ss:$56 sps:$4 sm:$0xff]  }
 0x4ac   :  { %12588 = vmatpush1.bf16.msra.mxu1 %v18069_v31  ;;  %v18137_v31 = vld [vmem:[#allocation8 + $0x55c] ss:$56 sps:$4 sm:$0xff]  }
 0x4ad   :  { %12589 = vmatprep.subr.bf16.mxu1 %v18077_v34  ;;  %v18135_v34 = vld [vmem:[#allocation8 + $0x558] ss:$56 sps:$4 sm:$0xff]  }
 0x4ae   :  { %12319 = vmatpush1.bf16.msra.mxu0 %v18072_v37  ;;  %v18140_v37 = vld [vmem:[#allocation8 + $0x944] ss:$56 sps:$4 sm:$0xff]  }
 0x4af   :  { %12320 = vmatprep.subr.bf16.mxu0 %v18080_v44  ;;  %v18138_v44 = vld [vmem:[#allocation8 + $0x940] ss:$56 sps:$4 sm:$0xff]  }
 0x4b0   :  { %12590 = vmatpush1.bf16.msra.mxu1 %v18075_v40  ;;  %v18143_v40 = vld [vmem:[#allocation8 + $0x5cc] ss:$56 sps:$4 sm:$0xff]  }
 0x4b1   :  { %12591 = vmatprep.subr.bf16.mxu1 %v18083_v53  ;;  %v18141_v53 = vld [vmem:[#allocation8 + $0x5c8] ss:$56 sps:$4 sm:$0xff]  }
 0x4b2   :  { %12321 = vmatpush1.bf16.msra.mxu0 %v18078_v56  ;;  %v18146_v56 = vld [vmem:[#allocation8 + $0x9b4] ss:$56 sps:$4 sm:$0xff]  }
 0x4b3   :  { %12322 = vmatprep.subr.bf16.mxu0 %v18086_v38  ;;  %v18144_v38 = vld [vmem:[#allocation8 + $0x9b0] ss:$56 sps:$4 sm:$0xff]  }
 0x4b4   :  { %12592 = vmatpush1.bf16.msra.mxu1 %v18081_v57  ;;  %v18149_v57 = vld [vmem:[#allocation8 + $0x63c] ss:$56 sps:$4 sm:$0xff]  }
 0x4b5   :  { %12593 = vmatprep.subr.bf16.mxu1 %v18089_v33  ;;  %v18147_v33 = vld [vmem:[#allocation8 + $0x638] ss:$56 sps:$4 sm:$0xff]  }
 0x4b6   :  { %12323 = vmatpush1.bf16.msra.mxu0 %v18084_v16  ;;  %v18152_v16 = vld [vmem:[#allocation8 + $0xa24] ss:$56 sps:$4 sm:$0xff]  }
 0x4b7   :  { %12324 = vmatprep.subr.bf16.mxu0 %v18092_v3  ;;  %v18150_v3 = vld [vmem:[#allocation8 + $0xa20] ss:$56 sps:$4 sm:$0xff]  }
 0x4b8   :  { %12594 = vmatpush1.bf16.msra.mxu1 %v18087_v26  ;;  %v18155_v26 = vld [vmem:[#allocation8 + $0x6ac] ss:$56 sps:$4 sm:$0xff]  }
 0x4b9   :  { %12595 = vmatprep.subr.bf16.mxu1 %v18095_v62  ;;  %v18153_v62 = vld [vmem:[#allocation8 + $0x6a8] ss:$56 sps:$4 sm:$0xff]  }
 0x4ba   :  { %12325 = vmatpush1.bf16.msra.mxu0 %v18090_v63  ;;  %v18158_v63 = vld [vmem:[#allocation8 + $0xa94] ss:$56 sps:$4 sm:$0xff]  }
 0x4bb   :  { %12326 = vmatprep.subr.bf16.mxu0 %v18098_v1  ;;  %v18156_v1 = vld [vmem:[#allocation8 + $0xa90] ss:$56 sps:$4 sm:$0xff]  }
 0x4bc   :  { %12596 = vmatpush1.bf16.msra.mxu1 %v18093_v0  ;;  %v18161_v0 = vld [vmem:[#allocation8 + $0x71c] ss:$56 sps:$4 sm:$0xff]  }
 0x4bd   :  { %12597 = vmatprep.subr.bf16.mxu1 %v18101_v2  ;;  %v18164_v2 = vld [vmem:[#allocation8 + $0xb04] ss:$56 sps:$4 sm:$0xff]  }
 0x4be   :  { %12327 = vmatpush1.bf16.msra.mxu0 %v18096_v8  ;;  %v18159_v8 = vld [vmem:[#allocation8 + $0x718] ss:$56 sps:$4 sm:$0xff]  }
 0x4bf   :  { %12328 = vmatprep.subr.bf16.mxu0 %v18104_v5  ;;  %v18162_v5 = vld [vmem:[#allocation8 + $0xb00] ss:$56 sps:$4 sm:$0xff]  }
 0x4c0   :  { %12598 = vmatpush1.bf16.msra.mxu1 %v18099_v10  ;;  %v18167_v10 = vld [vmem:[#allocation8 + $0x78c] ss:$56 sps:$4 sm:$0xff]  }
 0x4c1   :  { %12599 = vmatprep.subr.bf16.mxu1 %v18107_v9  ;;  %v18170_v9 = vld [vmem:[#allocation8 + $0xb74] ss:$56 sps:$4 sm:$0xff]  }
 0x4c2   :  { %12329 = vmatpush1.bf16.msra.mxu0 %v18102_v42  ;;  %v18165_v42 = vld [vmem:[#allocation8 + $0x788] ss:$56 sps:$4 sm:$0xff]  }
 0x4c3   :  { %12339 = vmatprep.subr.bf16.mxu0 %v18110_v13  ;;  %v18168_v13 = vld [vmem:[#allocation8 + $0xb70] ss:$56 sps:$4 sm:$0xff]  }
 0x4c4   :  { %12600 = vmatpush1.bf16.msra.mxu1 %v18105_v15  ;;  %v18173_v15 = vld [vmem:[#allocation8 + $0x7fc] ss:$56 sps:$4 sm:$0xff]  }
 0x4c5   :  { %12331 = vmatmul.mubr.bf16.vlgmr.msra.gmra.mrb[16].mxu0 %v20345_v24  ;;  %12601 = vmatprep.subr.bf16.mxu1 %v18113_v17  ;;  %v18176_v17 = vld [vmem:[#allocation8 + $0xbe4] ss:$56 sps:$4 sm:$0xff]  }
 0x4c6   :  { %12340 = vmatpush1.bf16.msra.mxu0 %v18108_v36  ;;  %12371 = vmatprep.mubr.bf16.mxu0 %v20349_v6  ;;  %v18171_v36 = vld [vmem:[#allocation8 + $0x7f8] ss:$56 sps:$4 sm:$0xff]  }
 0x4c7   :  { %12341 = vmatprep.subr.bf16.mxu0 %v18116_v23  ;;  %v18174_v23 = vld [vmem:[#allocation8 + $0xbe0] ss:$56 sps:$4 sm:$0xff]  }
 0x4c8   :  { %12602 = vmatpush1.bf16.msra.mxu1 %v18111_v41  ;;  %v18179_v41 = vld [vmem:[#allocation8 + $0x86c] ss:$56 sps:$4 sm:$0xff]  }
 0x4c9   :  { %12603 = vmatprep.subr.bf16.mxu1 %v18119_v25  ;;  %v18182_v25 = vld [vmem:[#allocation8 + $0xc54] ss:$56 sps:$4 sm:$0xff]  }
 0x4ca   :  { %12342 = vmatpush1.bf16.msra.mxu0 %v18114_v46  ;;  %v18177_v46 = vld [vmem:[#allocation8 + $0x868] ss:$56 sps:$4 sm:$0xff]  }
 0x4cb   :  { %12343 = vmatprep.subr.bf16.mxu0 %v18122_v14  ;;  %v18180_v14 = vld [vmem:[#allocation8 + $0xc50] ss:$56 sps:$4 sm:$0xff]  }
 0x4cc   :  { %12604 = vmatpush1.bf16.msra.mxu1 %v18117_v50  ;;  %v18185_v50 = vld [vmem:[#allocation8 + $0x8dc] ss:$56 sps:$4 sm:$0xff]  }
 0x4cd   :  { %12605 = vmatprep.subr.bf16.mxu1 %v18125_v7  ;;  %v18188_v7 = vld [vmem:[#allocation8 + $0xcc4] ss:$56 sps:$4 sm:$0xff]  }
 0x4ce   :  { %12344 = vmatpush1.bf16.msra.mxu0 %v18120_v47  ;;  %v18183_v47 = vld [vmem:[#allocation8 + $0x8d8] ss:$56 sps:$4 sm:$0xff]  }
 0x4cf   :  { %12345 = vmatprep.subr.bf16.mxu0 %v18128_v45  ;;  %v18186_v45 = vld [vmem:[#allocation8 + $0xcc0] ss:$56 sps:$4 sm:$0xff]  }
 0x4d0   :  { %12606 = vmatpush1.bf16.msra.mxu1 %v18123_v52  ;;  %v18191_v52 = vld [vmem:[#allocation8 + $0x94c] ss:$56 sps:$4 sm:$0xff]  }
 0x4d1   :  { %12607 = vmatprep.subr.bf16.mxu1 %v18131_v20  ;;  %v18194_v20 = vld [vmem:[#allocation8 + $0xd34] ss:$56 sps:$4 sm:$0xff]  }
 0x4d2   :  { %12346 = vmatpush1.bf16.msra.mxu0 %v18126_v27  ;;  %v18189_v27 = vld [vmem:[#allocation8 + $0x948] ss:$56 sps:$4 sm:$0xff]  }
 0x4d3   :  { %12347 = vmatprep.subr.bf16.mxu0 %v18134_v30  ;;  %v18192_v30 = vld [vmem:[#allocation8 + $0xd30] ss:$56 sps:$4 sm:$0xff]  }
 0x4d4   :  { %12608 = vmatpush1.bf16.msra.mxu1 %v18129_v29  ;;  %v18197_v29 = vld [vmem:[#allocation8 + $0x9bc] ss:$56 sps:$4 sm:$0xff]  }
 0x4d5   :  { %12609 = vmatprep.subr.bf16.mxu1 %v18137_v31  ;;  %v18200_v31 = vld [vmem:[#allocation8 + $0xda4] ss:$56 sps:$4 sm:$0xff]  }
 0x4d6   :  { %12348 = vmatpush1.bf16.msra.mxu0 %v18132_v32  ;;  %v18195_v32 = vld [vmem:[#allocation8 + $0x9b8] ss:$56 sps:$4 sm:$0xff]  }
 0x4d7   :  { %12349 = vmatprep.subr.bf16.mxu0 %v18140_v37  ;;  %v18198_v37 = vld [vmem:[#allocation8 + $0xda0] ss:$56 sps:$4 sm:$0xff]  }
 0x4d8   :  { %12610 = vmatpush1.bf16.msra.mxu1 %v18135_v34  ;;  %v18203_v34 = vld [vmem:[#allocation8 + $0xa2c] ss:$56 sps:$4 sm:$0xff]  }
 0x4d9   :  { %12611 = vmatprep.subr.bf16.mxu1 %v18143_v40  ;;  %v18206_v40 = vld [vmem:[#allocation8 + $0xe14] ss:$56 sps:$4 sm:$0xff]  }
 0x4da   :  { %12350 = vmatpush1.bf16.msra.mxu0 %v18138_v44  ;;  %v18201_v44 = vld [vmem:[#allocation8 + $0xa28] ss:$56 sps:$4 sm:$0xff]  }
 0x4db   :  { %12351 = vmatprep.subr.bf16.mxu0 %v18146_v56  ;;  %v18204_v56 = vld [vmem:[#allocation8 + $0xe10] ss:$56 sps:$4 sm:$0xff]  }
 0x4dc   :  { %12612 = vmatpush1.bf16.msra.mxu1 %v18141_v53  ;;  %v18209_v53 = vld [vmem:[#allocation8 + $0xa9c] ss:$56 sps:$4 sm:$0xff]  }
 0x4dd   :  { %12613 = vmatprep.subr.bf16.mxu1 %v18149_v57  ;;  %v18212_v57 = vld [vmem:[#allocation8 + $0xe84] ss:$56 sps:$4 sm:$0xff]  }
 0x4de   :  { %12352 = vmatpush1.bf16.msra.mxu0 %v18144_v38  ;;  %v18207_v38 = vld [vmem:[#allocation8 + $0xa98] ss:$56 sps:$4 sm:$0xff]  }
 0x4df   :  { %12353 = vmatprep.subr.bf16.mxu0 %v18152_v16  ;;  %v18210_v16 = vld [vmem:[#allocation8 + $0xe80] ss:$56 sps:$4 sm:$0xff]  }
 0x4e0   :  { %12614 = vmatpush1.bf16.msra.mxu1 %v18147_v33  ;;  %v18215_v33 = vld [vmem:[#allocation8 + $0xb0c] ss:$56 sps:$4 sm:$0xff]  }
 0x4e1   :  { %12615 = vmatprep.subr.bf16.mxu1 %v18155_v26  ;;  %v18218_v26 = vld [vmem:[#allocation8 + $0xef4] ss:$56 sps:$4 sm:$0xff]  }
 0x4e2   :  { %12354 = vmatpush1.bf16.msra.mxu0 %v18150_v3  ;;  %v18213_v3 = vld [vmem:[#allocation8 + $0xb08] ss:$56 sps:$4 sm:$0xff]  }
 0x4e3   :  { %12355 = vmatprep.subr.bf16.mxu0 %v18158_v63  ;;  %v18216_v63 = vld [vmem:[#allocation8 + $0xef0] ss:$56 sps:$4 sm:$0xff]  }
 0x4e4   :  { %12616 = vmatpush1.bf16.msra.mxu1 %v18153_v62  ;;  %v18221_v62 = vld [vmem:[#allocation8 + $0xb7c] ss:$56 sps:$4 sm:$0xff]  }
 0x4e5   :  { %12626 = vmatprep.subr.bf16.mxu1 %v18161_v0  ;;  %v18224_v0 = vld [vmem:[#allocation8 + $0xf64] ss:$56 sps:$4 sm:$0xff]  }
 0x4e6   :  { %12356 = vmatpush1.bf16.msra.mxu0 %v18156_v1  ;;  %v18219_v1 = vld [vmem:[#allocation8 + $0xb78] ss:$56 sps:$4 sm:$0xff]  }
 0x4e7   :  { %12618 = vmatmul.mubr.bf16.vlgmr.msra.gmra.mrb[24].mxu1 %v20345_v24  ;;  %12357 = vmatprep.subr.bf16.mxu0 %v18164_v2  ;;  %v18227_v2 = vld [vmem:[#allocation8 + $0xbec] ss:$56 sps:$4 sm:$0xff]  }
 0x4e8   :  { %12627 = vmatpush1.bf16.msra.mxu1 %v18159_v8  ;;  %12658 = vmatprep.mubr.bf16.mxu1 %v20349_v6  ;;  %v18222_v8 = vld [vmem:[#allocation8 + $0xf60] ss:$56 sps:$4 sm:$0xff]  }
 0x4e9   :  { %12628 = vmatprep.subr.bf16.mxu1 %v18167_v10  ;;  %v18230_v10 = vld [vmem:[#allocation8 + $0xfd4] ss:$56 sps:$4 sm:$0xff]  }
 0x4ea   :  { %12358 = vmatpush1.bf16.msra.mxu0 %v18162_v5  ;;  %v18225_v5 = vld [vmem:[#allocation8 + $0xbe8] ss:$56 sps:$4 sm:$0xff]  }
 0x4eb   :  { %12359 = vmatprep.subr.bf16.mxu0 %v18170_v9  ;;  %v18233_v9 = vld [vmem:[#allocation8 + $0xc5c] ss:$56 sps:$4 sm:$0xff]  }
 0x4ec   :  { %12629 = vmatpush1.bf16.msra.mxu1 %v18165_v42  ;;  %v18228_v42 = vld [vmem:[#allocation8 + $0xfd0] ss:$56 sps:$4 sm:$0xff]  }
 0x4ed   :  { %12630 = vmatprep.subr.bf16.mxu1 %v18173_v15  ;;  %v18236_v15 = vld [vmem:[#allocation8 + $0x1044] ss:$56 sps:$4 sm:$0xff]  }
 0x4ee   :  { %12360 = vmatpush1.bf16.msra.mxu0 %v18168_v13  ;;  %v18231_v13 = vld [vmem:[#allocation8 + $0xc58] ss:$56 sps:$4 sm:$0xff]  }
 0x4ef   :  { %12361 = vmatprep.subr.bf16.mxu0 %v18176_v17  ;;  %v18239_v17 = vld [vmem:[#allocation8 + $0xccc] ss:$56 sps:$4 sm:$0xff]  }
 0x4f0   :  { %12631 = vmatpush1.bf16.msra.mxu1 %v18171_v36  ;;  %v18234_v36 = vld [vmem:[#allocation8 + $0x1040] ss:$56 sps:$4 sm:$0xff]  }
 0x4f1   :  { %12632 = vmatprep.subr.bf16.mxu1 %v18179_v41  ;;  %v18242_v41 = vld [vmem:[#allocation8 + $0x10b4] ss:$56 sps:$4 sm:$0xff]  }
 0x4f2   :  { %12362 = vmatpush1.bf16.msra.mxu0 %v18174_v23  ;;  %v18237_v23 = vld [vmem:[#allocation8 + $0xcc8] ss:$56 sps:$4 sm:$0xff]  }
 0x4f3   :  { %12363 = vmatprep.subr.bf16.mxu0 %v18182_v25  ;;  %v18245_v25 = vld [vmem:[#allocation8 + $0xd3c] ss:$56 sps:$4 sm:$0xff]  }
 0x4f4   :  { %12633 = vmatpush1.bf16.msra.mxu1 %v18177_v46  ;;  %v18240_v46 = vld [vmem:[#allocation8 + $0x10b0] ss:$56 sps:$4 sm:$0xff]  }
 0x4f5   :  { %12634 = vmatprep.subr.bf16.mxu1 %v18185_v50  ;;  %v18248_v50 = vld [vmem:[#allocation8 + $0x1124] ss:$56 sps:$4 sm:$0xff]  }
 0x4f6   :  { %12364 = vmatpush1.bf16.msra.mxu0 %v18180_v14  ;;  %v18243_v14 = vld [vmem:[#allocation8 + $0xd38] ss:$56 sps:$4 sm:$0xff]  }
 0x4f7   :  { %12365 = vmatprep.subr.bf16.mxu0 %v18188_v7  ;;  %v18251_v7 = vld [vmem:[#allocation8 + $0xdac] ss:$56 sps:$4 sm:$0xff]  }
 0x4f8   :  { %12635 = vmatpush1.bf16.msra.mxu1 %v18183_v47  ;;  %v18246_v47 = vld [vmem:[#allocation8 + $0x1120] ss:$56 sps:$4 sm:$0xff]  }
 0x4f9   :  { %12636 = vmatprep.subr.bf16.mxu1 %v18191_v52  ;;  %v18254_v52 = vld [vmem:[#allocation8 + $0x1194] ss:$56 sps:$4 sm:$0xff]  }
 0x4fa   :  { %12366 = vmatpush1.bf16.msra.mxu0 %v18186_v45  ;;  %v18249_v45 = vld [vmem:[#allocation8 + $0xda8] ss:$56 sps:$4 sm:$0xff]  }
 0x4fb   :  { %12367 = vmatprep.subr.bf16.mxu0 %v18194_v20  ;;  %v18257_v20 = vld [vmem:[#allocation8 + $0xe1c] ss:$56 sps:$4 sm:$0xff]  }
 0x4fc   :  { %12637 = vmatpush1.bf16.msra.mxu1 %v18189_v27  ;;  %v18252_v27 = vld [vmem:[#allocation8 + $0x1190] ss:$56 sps:$4 sm:$0xff]  }
 0x4fd   :  { %12638 = vmatprep.subr.bf16.mxu1 %v18197_v29  ;;  %v18260_v29 = vld [vmem:[#allocation8 + $0x1204] ss:$56 sps:$4 sm:$0xff]  }
 0x4fe   :  { %12368 = vmatpush1.bf16.msra.mxu0 %v18192_v30  ;;  %v18255_v30 = vld [vmem:[#allocation8 + $0xe18] ss:$56 sps:$4 sm:$0xff]  }
 0x4ff   :  { %12369 = vmatprep.subr.bf16.mxu0 %v18200_v31  ;;  %v18263_v31 = vld [vmem:[#allocation8 + $0xe8c] ss:$56 sps:$4 sm:$0xff]  }
 0x500   :  { %12639 = vmatpush1.bf16.msra.mxu1 %v18195_v32  ;;  %v18258_v32 = vld [vmem:[#allocation8 + $0x1200] ss:$56 sps:$4 sm:$0xff]  }
 0x501   :  { %12640 = vmatprep.subr.bf16.mxu1 %v18203_v34  ;;  %v18266_v34 = vld [vmem:[#allocation8 + $0x1274] ss:$56 sps:$4 sm:$0xff]  }
 0x502   :  { %12370 = vmatpush1.bf16.msra.mxu0 %v18198_v37  ;;  %v18261_v37 = vld [vmem:[#allocation8 + $0xe88] ss:$56 sps:$4 sm:$0xff]  }
 0x503   :  { %12380 = vmatprep.subr.bf16.mxu0 %v18206_v40  ;;  %v18269_v40 = vld [vmem:[#allocation8 + $0xefc] ss:$56 sps:$4 sm:$0xff]  }
 0x504   :  { %12641 = vmatpush1.bf16.msra.mxu1 %v18201_v44  ;;  %v18264_v44 = vld [vmem:[#allocation8 + $0x1270] ss:$56 sps:$4 sm:$0xff]  }
 0x505   :  { %12372 = vmatmul.mubr.bf16.vlgmr.msra.gmra.mrb[16].mxu0 %v20375_v35  ;;  %12642 = vmatprep.subr.bf16.mxu1 %v18209_v53  ;;  %v18272_v53 = vld [vmem:[#allocation8 + $0x12e4] ss:$56 sps:$4 sm:$0xff]  }
 0x506   :  { %12381 = vmatpush1.bf16.msra.mxu0 %v18204_v56  ;;  %12412 = vmatprep.mubr.bf16.mxu0 %v20371_v21  ;;  %v18267_v56 = vld [vmem:[#allocation8 + $0xef8] ss:$56 sps:$4 sm:$0xff]  }
 0x507   :  { %12382 = vmatprep.subr.bf16.mxu0 %v18212_v57  ;;  %v18275_v57 = vld [vmem:[#allocation8 + $0xf6c] ss:$56 sps:$4 sm:$0xff]  }
 0x508   :  { %12643 = vmatpush1.bf16.msra.mxu1 %v18207_v38  ;;  %v18270_v38 = vld [vmem:[#allocation8 + $0x12e0] ss:$56 sps:$4 sm:$0xff]  }
 0x509   :  { %12644 = vmatprep.subr.bf16.mxu1 %v18215_v33  ;;  %v18278_v33 = vld [vmem:[#allocation8 + $0x1354] ss:$56 sps:$4 sm:$0xff]  }
 0x50a   :  { %12383 = vmatpush1.bf16.msra.mxu0 %v18210_v16  ;;  %v18273_v16 = vld [vmem:[#allocation8 + $0xf68] ss:$56 sps:$4 sm:$0xff]  }
 0x50b   :  { %12384 = vmatprep.subr.bf16.mxu0 %v18218_v26  ;;  %v18281_v26 = vld [vmem:[#allocation8 + $0xfdc] ss:$56 sps:$4 sm:$0xff]  }
 0x50c   :  { %12645 = vmatpush1.bf16.msra.mxu1 %v18213_v3  ;;  %v18276_v3 = vld [vmem:[#allocation8 + $0x1350] ss:$56 sps:$4 sm:$0xff]  }
 0x50d   :  { %12646 = vmatprep.subr.bf16.mxu1 %v18221_v62  ;;  %v18284_v62 = vld [vmem:[#allocation8 + $0x13c4] ss:$56 sps:$4 sm:$0xff]  }
 0x50e   :  { %12385 = vmatpush1.bf16.msra.mxu0 %v18216_v63  ;;  %v18279_v63 = vld [vmem:[#allocation8 + $0xfd8] ss:$56 sps:$4 sm:$0xff]  }
 0x50f   :  { %12386 = vmatprep.subr.bf16.mxu0 %v18224_v0  ;;  %v18287_v0 = vld [vmem:[#allocation8 + $0x104c] ss:$56 sps:$4 sm:$0xff]  }
 0x510   :  { %12647 = vmatpush1.bf16.msra.mxu1 %v18219_v1  ;;  %v18282_v1 = vld [vmem:[#allocation8 + $0x13c0] ss:$56 sps:$4 sm:$0xff]  }
 0x511   :  { %12648 = vmatprep.subr.bf16.mxu1 %v18227_v2  ;;  %v18290_v2 = vld [vmem:[#allocation8 + $0x1434] ss:$56 sps:$4 sm:$0xff]  }
 0x512   :  { %12387 = vmatpush1.bf16.msra.mxu0 %v18222_v8  ;;  %v18285_v8 = vld [vmem:[#allocation8 + $0x1048] ss:$56 sps:$4 sm:$0xff]  }
 0x513   :  { %12388 = vmatprep.subr.bf16.mxu0 %v18230_v10  ;;  %v18293_v10 = vld [vmem:[#allocation8 + $0x10bc] ss:$56 sps:$4 sm:$0xff]  }
 0x514   :  { %12649 = vmatpush1.bf16.msra.mxu1 %v18225_v5  ;;  %v18288_v5 = vld [vmem:[#allocation8 + $0x1430] ss:$56 sps:$4 sm:$0xff]  }
 0x515   :  { %12650 = vmatprep.subr.bf16.mxu1 %v18233_v9  ;;  %v18296_v9 = vld [vmem:[#allocation8 + $0x14a4] ss:$56 sps:$4 sm:$0xff]  }
 0x516   :  { %12389 = vmatpush1.bf16.msra.mxu0 %v18228_v42  ;;  %v18291_v42 = vld [vmem:[#allocation8 + $0x10b8] ss:$56 sps:$4 sm:$0xff]  }
 0x517   :  { %12390 = vmatprep.subr.bf16.mxu0 %v18236_v15  ;;  %v18299_v15 = vld [vmem:[#allocation8 + $0x112c] ss:$56 sps:$4 sm:$0xff]  }
 0x518   :  { %12651 = vmatpush1.bf16.msra.mxu1 %v18231_v13  ;;  %v18294_v13 = vld [vmem:[#allocation8 + $0x14a0] ss:$56 sps:$4 sm:$0xff]  }
 0x519   :  { %12652 = vmatprep.subr.bf16.mxu1 %v18239_v17  ;;  %v18302_v17 = vld [vmem:[#allocation8 + $0x1514] ss:$56 sps:$4 sm:$0xff]  }
 0x51a   :  { %12391 = vmatpush1.bf16.msra.mxu0 %v18234_v36  ;;  %v18297_v36 = vld [vmem:[#allocation8 + $0x1128] ss:$56 sps:$4 sm:$0xff]  }
 0x51b   :  { %12392 = vmatprep.subr.bf16.mxu0 %v18242_v41  ;;  %v18305_v41 = vld [vmem:[#allocation8 + $0x119c] ss:$56 sps:$4 sm:$0xff]  }
 0x51c   :  { %12653 = vmatpush1.bf16.msra.mxu1 %v18237_v23  ;;  %v18300_v23 = vld [vmem:[#allocation8 + $0x1510] ss:$56 sps:$4 sm:$0xff]  }
 0x51d   :  { %12654 = vmatprep.subr.bf16.mxu1 %v18245_v25  ;;  %v18308_v25 = vld [vmem:[#allocation8 + $0x1584] ss:$56 sps:$4 sm:$0xff]  }
 0x51e   :  { %12393 = vmatpush1.bf16.msra.mxu0 %v18240_v46  ;;  %v18303_v46 = vld [vmem:[#allocation8 + $0x1198] ss:$56 sps:$4 sm:$0xff]  }
 0x51f   :  { %12394 = vmatprep.subr.bf16.mxu0 %v18248_v50  ;;  %v18311_v50 = vld [vmem:[#allocation8 + $0x120c] ss:$56 sps:$4 sm:$0xff]  }
 0x520   :  { %12655 = vmatpush1.bf16.msra.mxu1 %v18243_v14  ;;  %v18306_v14 = vld [vmem:[#allocation8 + $0x1580] ss:$56 sps:$4 sm:$0xff]  }
 0x521   :  { %12656 = vmatprep.subr.bf16.mxu1 %v18251_v7  ;;  %v18314_v7 = vld [vmem:[#allocation8 + $0x15f4] ss:$56 sps:$4 sm:$0xff]  }
 0x522   :  { %12395 = vmatpush1.bf16.msra.mxu0 %v18246_v47  ;;  %v18309_v47 = vld [vmem:[#allocation8 + $0x1208] ss:$56 sps:$4 sm:$0xff]  }
 0x523   :  { %12396 = vmatprep.subr.bf16.mxu0 %v18254_v52  ;;  %v18317_v52 = vld [vmem:[#allocation8 + $0x127c] ss:$56 sps:$4 sm:$0xff]  }
 0x524   :  { %12657 = vmatpush1.bf16.msra.mxu1 %v18249_v45  ;;  %v18312_v45 = vld [vmem:[#allocation8 + $0x15f0] ss:$56 sps:$4 sm:$0xff]  }
 0x525   :  { %12667 = vmatprep.subr.bf16.mxu1 %v18257_v20  ;;  %v18320_v20 = vld [vmem:[#allocation8 + $0x1664] ss:$56 sps:$4 sm:$0xff]  }
 0x526   :  { %12397 = vmatpush1.bf16.msra.mxu0 %v18252_v27  ;;  %v18315_v27 = vld [vmem:[#allocation8 + $0x1278] ss:$56 sps:$4 sm:$0xff]  }
 0x527   :  { %12659 = vmatmul.mubr.bf16.vlgmr.msra.gmra.mrb[24].mxu1 %v20375_v35  ;;  %12398 = vmatprep.subr.bf16.mxu0 %v18260_v29  ;;  %v18323_v29 = vld [vmem:[#allocation8 + $0x12ec] ss:$56 sps:$4 sm:$0xff]  }
 0x528   :  { %12668 = vmatpush1.bf16.msra.mxu1 %v18255_v30  ;;  %12699 = vmatprep.mubr.bf16.mxu1 %v20371_v21  ;;  %v18318_v30 = vld [vmem:[#allocation8 + $0x1660] ss:$56 sps:$4 sm:$0xff]  }
 0x529   :  { %12669 = vmatprep.subr.bf16.mxu1 %v18263_v31  ;;  %v18326_v31 = vld [vmem:[#allocation8 + $0x16d4] ss:$56 sps:$4 sm:$0xff]  }
 0x52a   :  { %12399 = vmatpush1.bf16.msra.mxu0 %v18258_v32  ;;  %v18321_v32 = vld [vmem:[#allocation8 + $0x12e8] ss:$56 sps:$4 sm:$0xff]  }
 0x52b   :  { %12400 = vmatprep.subr.bf16.mxu0 %v18266_v34  ;;  %v18329_v34 = vld [vmem:[#allocation8 + $0x135c] ss:$56 sps:$4 sm:$0xff]  }
 0x52c   :  { %12670 = vmatpush1.bf16.msra.mxu1 %v18261_v37  ;;  %v18324_v37 = vld [vmem:[#allocation8 + $0x16d0] ss:$56 sps:$4 sm:$0xff]  }
 0x52d   :  { %12671 = vmatprep.subr.bf16.mxu1 %v18269_v40  ;;  %v18332_v40 = vld [vmem:[#allocation8 + $0x1744] ss:$56 sps:$4 sm:$0xff]  }
 0x52e   :  { %12401 = vmatpush1.bf16.msra.mxu0 %v18264_v44  ;;  %v18327_v44 = vld [vmem:[#allocation8 + $0x1358] ss:$56 sps:$4 sm:$0xff]  }
 0x52f   :  { %12402 = vmatprep.subr.bf16.mxu0 %v18272_v53  ;;  %v18335_v53 = vld [vmem:[#allocation8 + $0x13cc] ss:$56 sps:$4 sm:$0xff]  }
 0x530   :  { %12672 = vmatpush1.bf16.msra.mxu1 %v18267_v56  ;;  %v18330_v56 = vld [vmem:[#allocation8 + $0x1740] ss:$56 sps:$4 sm:$0xff]  }
 0x531   :  { %12673 = vmatprep.subr.bf16.mxu1 %v18275_v57  ;;  %v18338_v57 = vld [vmem:[#allocation8 + $0x17b4] ss:$56 sps:$4 sm:$0xff]  }
 0x532   :  { %12403 = vmatpush1.bf16.msra.mxu0 %v18270_v38 }
 0x533   :  { %12404 = vmatprep.subr.bf16.mxu0 %v18278_v33  ;;  %v18333_v33 = vld [vmem:[#allocation8 + $0x13c8] ss:$56 sps:$4 sm:$0xff]  }
 0x534   :  { %12674 = vmatpush1.bf16.msra.mxu1 %v18273_v16 }
 0x535   :  { %12675 = vmatprep.subr.bf16.mxu1 %v18281_v26  ;;  %v18341_v26 = vld [vmem:[#allocation8 + $0x143c] ss:$56 sps:$4 sm:$0xff]  }
 0x536   :  { %12405 = vmatpush1.bf16.msra.mxu0 %v18276_v3 }
 0x537   :  { %12406 = vmatprep.subr.bf16.mxu0 %v18284_v62  ;;  %v18336_v62 = vld [vmem:[#allocation8 + $0x17b0] ss:$56 sps:$4 sm:$0xff]  }
 0x538   :  { %12676 = vmatpush1.bf16.msra.mxu1 %v18279_v63 }
 0x539   :  { %12677 = vmatprep.subr.bf16.mxu1 %v18287_v0  ;;  %v18344_v0 = vld [vmem:[#allocation8 + $0x1824] ss:$56 sps:$4 sm:$0xff]  }
 0x53a   :  { %12407 = vmatpush1.bf16.msra.mxu0 %v18282_v1  ;;  %v18339_v1 = vld [vmem:[#allocation8 + $0x1438] ss:$56 sps:$4 sm:$0xff]  }
 0x53b   :  { %12408 = vmatprep.subr.bf16.mxu0 %v18290_v2  ;;  %v18347_v2 = vld [vmem:[#allocation8 + $0x14ac] ss:$56 sps:$4 sm:$0xff]  }
 0x53c   :  { %12678 = vmatpush1.bf16.msra.mxu1 %v18285_v8  ;;  %v18342_v8 = vld [vmem:[#allocation8 + $0x1820] ss:$56 sps:$4 sm:$0xff]  }
 0x53d   :  { %12679 = vmatprep.subr.bf16.mxu1 %v18293_v10  ;;  %v18350_v10 = vld [vmem:[#allocation8 + $0x1894] ss:$56 sps:$4 sm:$0xff]  }
 0x53e   :  { %12409 = vmatpush1.bf16.msra.mxu0 %v18288_v5  ;;  %v18345_v5 = vld [vmem:[#allocation8 + $0x14a8] ss:$56 sps:$4 sm:$0xff]  }
 0x53f   :  { %12410 = vmatprep.subr.bf16.mxu0 %v18296_v9  ;;  %v18353_v9 = vld [vmem:[#allocation8 + $0x151c] ss:$56 sps:$4 sm:$0xff]  }
 0x540   :  { %12680 = vmatpush1.bf16.msra.mxu1 %v18291_v42  ;;  %v18348_v42 = vld [vmem:[#allocation8 + $0x1890] ss:$56 sps:$4 sm:$0xff]  }
 0x541   :  { %12681 = vmatprep.subr.bf16.mxu1 %v18299_v15  ;;  %v18356_v15 = vld [vmem:[#allocation8 + $0x1904] ss:$56 sps:$4 sm:$0xff]  }
 0x542   :  { %12411 = vmatpush1.bf16.msra.mxu0 %v18294_v13  ;;  %v18351_v13 = vld [vmem:[#allocation8 + $0x1518] ss:$56 sps:$4 sm:$0xff]  }
 0x543   :  { %12421 = vmatprep.subr.bf16.mxu0 %v18302_v17  ;;  %v18359_v17 = vld [vmem:[#allocation8 + $0x158c] ss:$56 sps:$4 sm:$0xff]  }
 0x544   :  { %12682 = vmatpush1.bf16.msra.mxu1 %v18297_v36  ;;  %v18354_v36 = vld [vmem:[#allocation8 + $0x1900] ss:$56 sps:$4 sm:$0xff]  }
 0x545   :  { %12413 = vmatmul.mubr.bf16.vlgmr.msra.gmra.mrb[16].mxu0 %v20399_v18  ;;  %12683 = vmatprep.subr.bf16.mxu1 %v18305_v41  ;;  %v18362_v41 = vld [vmem:[#allocation8 + $0x1974] ss:$56 sps:$4 sm:$0xff]  }
 0x546   :  { %12422 = vmatpush1.bf16.msra.mxu0 %v18300_v23  ;;  %12453 = vmatprep.mubr.bf16.mxu0 %v20403_v22  ;;  %v18357_v23 = vld [vmem:[#allocation8 + $0x1588] ss:$56 sps:$4 sm:$0xff]  }
 0x547   :  { %12423 = vmatprep.subr.bf16.mxu0 %v18308_v25  ;;  %v18365_v25 = vld [vmem:[#allocation8 + $0x15fc] ss:$56 sps:$4 sm:$0xff]  }
 0x548   :  { %12684 = vmatpush1.bf16.msra.mxu1 %v18303_v46  ;;  %v18360_v46 = vld [vmem:[#allocation8 + $0x1970] ss:$56 sps:$4 sm:$0xff]  }
 0x549   :  { %12685 = vmatprep.subr.bf16.mxu1 %v18311_v50  ;;  %v18368_v50 = vld [vmem:[#allocation8 + $0x19e4] ss:$56 sps:$4 sm:$0xff]  }
 0x54a   :  { %12424 = vmatpush1.bf16.msra.mxu0 %v18306_v14  ;;  %v18363_v14 = vld [vmem:[#allocation8 + $0x15f8] ss:$56 sps:$4 sm:$0xff]  }
 0x54b   :  { %12425 = vmatprep.subr.bf16.mxu0 %v18314_v7  ;;  %v18371_v7 = vld [vmem:[#allocation8 + $0x166c] ss:$56 sps:$4 sm:$0xff]  }
 0x54c   :  { %12686 = vmatpush1.bf16.msra.mxu1 %v18309_v47  ;;  %v18366_v47 = vld [vmem:[#allocation8 + $0x19e0] ss:$56 sps:$4 sm:$0xff]  }
 0x54d   :  { %12687 = vmatprep.subr.bf16.mxu1 %v18317_v52  ;;  %v18374_v52 = vld [vmem:[#allocation8 + $0x1a54] ss:$56 sps:$4 sm:$0xff]  }
 0x54e   :  { %12426 = vmatpush1.bf16.msra.mxu0 %v18312_v45  ;;  %v18369_v45 = vld [vmem:[#allocation8 + $0x1668] ss:$56 sps:$4 sm:$0xff]  }
 0x54f   :  { %12427 = vmatprep.subr.bf16.mxu0 %v18320_v20  ;;  %v18377_v20 = vld [vmem:[#allocation8 + $0x16dc] ss:$56 sps:$4 sm:$0xff]  }
 0x550   :  { %12688 = vmatpush1.bf16.msra.mxu1 %v18315_v27  ;;  %v18372_v27 = vld [vmem:[#allocation8 + $0x1a50] ss:$56 sps:$4 sm:$0xff]  }
 0x551   :  { %12689 = vmatprep.subr.bf16.mxu1 %v18323_v29  ;;  %v18380_v29 = vld [vmem:[#allocation8 + $0x1ac4] ss:$56 sps:$4 sm:$0xff]  }
 0x552   :  { %12428 = vmatpush1.bf16.msra.mxu0 %v18318_v30  ;;  %v18375_v30 = vld [vmem:[#allocation8 + $0x16d8] ss:$56 sps:$4 sm:$0xff]  }
 0x553   :  { %12429 = vmatprep.subr.bf16.mxu0 %v18326_v31  ;;  %v18383_v31 = vld [vmem:[#allocation8 + $0x174c] ss:$56 sps:$4 sm:$0xff]  }
 0x554   :  { %12690 = vmatpush1.bf16.msra.mxu1 %v18321_v32  ;;  %v18378_v32 = vld [vmem:[#allocation8 + $0x1ac0] ss:$56 sps:$4 sm:$0xff]  }
 0x555   :  { %12691 = vmatprep.subr.bf16.mxu1 %v18329_v34  ;;  %v18386_v34 = vld [vmem:[#allocation8 + $0x1b34] ss:$56 sps:$4 sm:$0xff]  }
 0x556   :  { %12430 = vmatpush1.bf16.msra.mxu0 %v18324_v37  ;;  %v18381_v37 = vld [vmem:[#allocation8 + $0x1748] ss:$56 sps:$4 sm:$0xff]  }
 0x557   :  { %12431 = vmatprep.subr.bf16.mxu0 %v18332_v40  ;;  %v18389_v40 = vld [vmem:[#allocation8 + $0x17bc] ss:$56 sps:$4 sm:$0xff]  }
 0x558   :  { %v20475_v38 = vpop.f32.mrb[12].mxu0  ;;  %12692 = vmatpush1.bf16.msra.mxu1 %v18327_v44 }
 0x559   :  { %v20477_v16 = vpop.f32.mrb[13].mxu0  ;;  %12693 = vmatprep.subr.bf16.mxu1 %v18335_v53  ;;  %v18384_v53 = vld [vmem:[#allocation8 + $0x1b30] ss:$56 sps:$4 sm:$0xff]  }
 0x55a   :  { %v12008_v3 = vpop.f32.mrb[14].mxu0  ;;  %12432 = vmatpush1.bf16.msra.mxu0 %v18330_v56 }
 0x55b   :  { %v12009_v63 = vpop.f32.mrb[15].mxu0  ;;  %12433 = vmatprep.subr.bf16.mxu0 %v18338_v57  ;;  %v18392_v57 = vld [vmem:[#allocation8 + $0x1ba4] ss:$56 sps:$4 sm:$0xff]  }
 0x55c   :  { %12694 = vmatpush1.bf16.msra.mxu1 %v18333_v33  ;;  %v18390_v63 = vld [vmem:[#allocation8 + $0x1ba0] ss:$56 sps:$4 sm:$0xff]  }
 0x55d   :  { %12695 = vmatprep.subr.bf16.mxu1 %v18341_v26  ;;  %v18387_v26 = vld [vmem:[#allocation8 + $0x17b8] ss:$56 sps:$4 sm:$0xff]  }
 0x55e   :  { %12434 = vmatpush1.bf16.msra.mxu0 %v18336_v62  ;;  %v18395_v62 = vld [vmem:[#allocation8 + $0x182c] ss:$56 sps:$4 sm:$0xff]  }
 0x55f   :  { %12435 = vmatprep.subr.bf16.mxu0 %v18344_v0  ;;  %v18398_v0 = vld [vmem:[#allocation8 + $0x1c14] ss:$56 sps:$4 sm:$0xff]  }
 0x560   :  { %12696 = vmatpush1.bf16.msra.mxu1 %v18339_v1  ;;  %v18393_v1 = vld [vmem:[#allocation8 + $0x1828] ss:$56 sps:$4 sm:$0xff]  }
 0x561   :  { %12697 = vmatprep.subr.bf16.mxu1 %v18347_v2  ;;  %v18401_v2 = vld [vmem:[#allocation8 + $0x189c] ss:$56 sps:$4 sm:$0xff]  }
 0x562   :  { %12436 = vmatpush1.bf16.msra.mxu0 %v18342_v8  ;;  %v18396_v8 = vld [vmem:[#allocation8 + $0x1c10] ss:$56 sps:$4 sm:$0xff]  }
 0x563   :  { %12437 = vmatprep.subr.bf16.mxu0 %v18350_v10  ;;  %v18404_v10 = vld [vmem:[#allocation8 + $0x1c84] ss:$56 sps:$4 sm:$0xff]  }
 0x564   :  { %12698 = vmatpush1.bf16.msra.mxu1 %v18345_v5  ;;  %v18399_v5 = vld [vmem:[#allocation8 + $0x1898] ss:$56 sps:$4 sm:$0xff]  }
 0x565   :  { %12708 = vmatprep.subr.bf16.mxu1 %v18353_v9  ;;  %v18407_v9 = vld [vmem:[#allocation8 + $0x190c] ss:$56 sps:$4 sm:$0xff]  }
 0x566   :  { %12438 = vmatpush1.bf16.msra.mxu0 %v18348_v42  ;;  %v18402_v42 = vld [vmem:[#allocation8 + $0x1c80] ss:$56 sps:$4 sm:$0xff]  }
 0x567   :  { %12700 = vmatmul.mubr.bf16.vlgmr.msra.gmra.mrb[24].mxu1 %v20399_v18  ;;  %12439 = vmatprep.subr.bf16.mxu0 %v18356_v15  ;;  %v18410_v15 = vld [vmem:[#allocation8 + $0x1cf4] ss:$56 sps:$4 sm:$0xff]  }
 0x568   :  { %12709 = vmatpush1.bf16.msra.mxu1 %v18351_v13  ;;  %12740 = vmatprep.mubr.bf16.mxu1 %v20403_v22  ;;  %v18405_v13 = vld [vmem:[#allocation8 + $0x1908] ss:$56 sps:$4 sm:$0xff]  }
 0x569   :  { %12710 = vmatprep.subr.bf16.mxu1 %v18359_v17  ;;  %v18413_v17 = vld [vmem:[#allocation8 + $0x197c] ss:$56 sps:$4 sm:$0xff]  }
 0x56a   :  { %12440 = vmatpush1.bf16.msra.mxu0 %v18354_v36  ;;  %v18408_v36 = vld [vmem:[#allocation8 + $0x1cf0] ss:$56 sps:$4 sm:$0xff]  }
 0x56b   :  { %12441 = vmatprep.subr.bf16.mxu0 %v18362_v41  ;;  %v18416_v41 = vld [vmem:[#allocation8 + $0x1d64] ss:$56 sps:$4 sm:$0xff]  }
 0x56c   :  { %12711 = vmatpush1.bf16.msra.mxu1 %v18357_v23  ;;  %v18411_v23 = vld [vmem:[#allocation8 + $0x1978] ss:$56 sps:$4 sm:$0xff]  }
 0x56d   :  { %12712 = vmatprep.subr.bf16.mxu1 %v18365_v25  ;;  %v18419_v25 = vld [vmem:[#allocation8 + $0x19ec] ss:$56 sps:$4 sm:$0xff]  }
 0x56e   :  { %12442 = vmatpush1.bf16.msra.mxu0 %v18360_v46  ;;  %v18414_v46 = vld [vmem:[#allocation8 + $0x1d60] ss:$56 sps:$4 sm:$0xff]  }
 0x56f   :  { %12443 = vmatprep.subr.bf16.mxu0 %v18368_v50  ;;  %v18422_v50 = vld [vmem:[#allocation8 + $0x1dd4] ss:$56 sps:$4 sm:$0xff]  }
 0x570   :  { %12713 = vmatpush1.bf16.msra.mxu1 %v18363_v14  ;;  %v18417_v14 = vld [vmem:[#allocation8 + $0x19e8] ss:$56 sps:$4 sm:$0xff]  }
 0x571   :  { %12714 = vmatprep.subr.bf16.mxu1 %v18371_v7  ;;  %v18425_v7 = vld [vmem:[#allocation8 + $0x1a5c] ss:$56 sps:$4 sm:$0xff]  }
 0x572   :  { %12444 = vmatpush1.bf16.msra.mxu0 %v18366_v47  ;;  %v18420_v47 = vld [vmem:[#allocation8 + $0x1dd0] ss:$56 sps:$4 sm:$0xff]  }
 0x573   :  { %12445 = vmatprep.subr.bf16.mxu0 %v18374_v52  ;;  %v18428_v52 = vld [vmem:[#allocation8 + $0x1e44] ss:$56 sps:$4 sm:$0xff]  }
 0x574   :  { %12715 = vmatpush1.bf16.msra.mxu1 %v18369_v45  ;;  %v18423_v45 = vld [vmem:[#allocation8 + $0x1a58] ss:$56 sps:$4 sm:$0xff]  }
 0x575   :  { %12716 = vmatprep.subr.bf16.mxu1 %v18377_v20  ;;  %v18431_v20 = vld [vmem:[#allocation8 + $0x1acc] ss:$56 sps:$4 sm:$0xff]  }
 0x576   :  { %12446 = vmatpush1.bf16.msra.mxu0 %v18372_v27  ;;  %v18426_v27 = vld [vmem:[#allocation8 + $0x1e40] ss:$56 sps:$4 sm:$0xff]  }
 0x577   :  { %12447 = vmatprep.subr.bf16.mxu0 %v18380_v29  ;;  %v18434_v29 = vld [vmem:[#allocation8 + $0x1eb4] ss:$56 sps:$4 sm:$0xff]  }
 0x578   :  { %12717 = vmatpush1.bf16.msra.mxu1 %v18375_v30  ;;  %v18429_v30 = vld [vmem:[#allocation8 + $0x1ac8] ss:$56 sps:$4 sm:$0xff]  }
 0x579   :  { %12718 = vmatprep.subr.bf16.mxu1 %v18383_v31  ;;  %v18437_v31 = vld [vmem:[#allocation8 + $0x1b3c] ss:$56 sps:$4 sm:$0xff]  }
 0x57a   :  { %12448 = vmatpush1.bf16.msra.mxu0 %v18378_v32  ;;  %v20481_v44 = vpop.f32.mrb[20].mxu1  ;;  %v18432_v32 = vld [vmem:[#allocation8 + $0x1eb0] ss:$56 sps:$4 sm:$0xff]  }
 0x57b   :  { %v20483_v56 = vpop.f32.mrb[21].mxu1  ;;  %12449 = vmatprep.subr.bf16.mxu0 %v18386_v34  ;;  %v18440_v34 = vld [vmem:[#allocation8 + $0x1f24] ss:$56 sps:$4 sm:$0xff]  }
 0x57c   :  { %v12295_v33 = vpop.f32.mrb[22].mxu1  ;;  %12719 = vmatpush1.bf16.msra.mxu1 %v18381_v37  ;;  %v18435_v37 = vld [vmem:[#allocation8 + $0x1b38] ss:$56 sps:$4 sm:$0xff]  }
 0x57d   :  { %v12296_v3 = vpop.f32.mrb[23].mxu1  ;;  %12720 = vmatprep.subr.bf16.mxu1 %v18389_v40  ;;  %v18443_v40 = vld [vmem:[#allocation8 + $0x1bac] ss:$56 sps:$4 sm:$0xff]   ;;  %v18441_v33 = vld [vmem:[#allocation8 + $0x1ba8] ss:$56 sps:$4 sm:$0xff]  }
 0x57e   :  { %12450 = vmatpush1.bf16.msra.mxu0 %v18384_v53  ;;  %v18438_v53 = vld [vmem:[#allocation8 + $0x1f20] ss:$56 sps:$4 sm:$0xff]   ;;  %v18444_v3 = vld [vmem:[#allocation8 + $0x1f90] ss:$56 sps:$4 sm:$0xff]  }
 0x57f   :  { %12451 = vmatprep.subr.bf16.mxu0 %v18392_v57  ;;  %v18446_v57 = vld [vmem:[#allocation8 + $0x1f94] ss:$56 sps:$4 sm:$0xff]  }
 0x580   :  { %12721 = vmatpush1.bf16.msra.mxu1 %v18387_v26  ;;  %v18449_v26 = vld [vmem:[#allocation8 + $0x1c1c] ss:$56 sps:$4 sm:$0xff]  }
 0x581   :  { %12722 = vmatprep.subr.bf16.mxu1 %v18395_v62  ;;  %v18452_v62 = vld [vmem:[#allocation8 + $0x2004] ss:$56 sps:$4 sm:$0xff]  }
 0x582   :  { %12452 = vmatpush1.bf16.msra.mxu0 %v18390_v63  ;;  %v18447_v63 = vld [vmem:[#allocation8 + $0x1c18] ss:$56 sps:$4 sm:$0xff]  }
 0x583   :  { %12462 = vmatprep.subr.bf16.mxu0 %v18398_v0  ;;  %v18455_v0 = vld [vmem:[#allocation8 + $0x1c8c] ss:$56 sps:$4 sm:$0xff]  }
 0x584   :  { %12723 = vmatpush1.bf16.msra.mxu1 %v18393_v1  ;;  %v18450_v1 = vld [vmem:[#allocation8 + $0x2000] ss:$56 sps:$4 sm:$0xff]  }
 0x585   :  { %12454 = vmatmul.mubr.bf16.vlgmr.msra.gmra.mrb[16].mxu0 %v20423_v11  ;;  %12724 = vmatprep.subr.bf16.mxu1 %v18401_v2  ;;  %v18458_v2 = vld [vmem:[#allocation8 + $0x2074] ss:$56 sps:$4 sm:$0xff]  }
 0x586   :  { %12463 = vmatpush1.bf16.msra.mxu0 %v18396_v8  ;;  %12494 = vmatprep.mubr.bf16.mxu0 %v20427_v12  ;;  %v18453_v8 = vld [vmem:[#allocation8 + $0x1c88] ss:$56 sps:$4 sm:$0xff]  }
 0x587   :  { %12464 = vmatprep.subr.bf16.mxu0 %v18404_v10  ;;  %v18461_v10 = vld [vmem:[#allocation8 + $0x1cfc] ss:$56 sps:$4 sm:$0xff]  }
 0x588   :  { %12725 = vmatpush1.bf16.msra.mxu1 %v18399_v5  ;;  %v18456_v5 = vld [vmem:[#allocation8 + $0x2070] ss:$56 sps:$4 sm:$0xff]  }
 0x589   :  { %12726 = vmatprep.subr.bf16.mxu1 %v18407_v9  ;;  %v18464_v9 = vld [vmem:[#allocation8 + $0x20e4] ss:$56 sps:$4 sm:$0xff]  }
 0x58a   :  { %12465 = vmatpush1.bf16.msra.mxu0 %v18402_v42  ;;  %v18459_v42 = vld [vmem:[#allocation8 + $0x1cf8] ss:$56 sps:$4 sm:$0xff]  }
 0x58b   :  { %12466 = vmatprep.subr.bf16.mxu0 %v18410_v15  ;;  %v18467_v15 = vld [vmem:[#allocation8 + $0x1d6c] ss:$56 sps:$4 sm:$0xff]  }
 0x58c   :  { %12727 = vmatpush1.bf16.msra.mxu1 %v18405_v13  ;;  %v18462_v13 = vld [vmem:[#allocation8 + $0x20e0] ss:$56 sps:$4 sm:$0xff]  }
 0x58d   :  { %12728 = vmatprep.subr.bf16.mxu1 %v18413_v17  ;;  %v18470_v17 = vld [vmem:[#allocation8 + $0x2154] ss:$56 sps:$4 sm:$0xff]  }
 0x58e   :  { %12467 = vmatpush1.bf16.msra.mxu0 %v18408_v36  ;;  %v18465_v36 = vld [vmem:[#allocation8 + $0x1d68] ss:$56 sps:$4 sm:$0xff]  }
 0x58f   :  { %12468 = vmatprep.subr.bf16.mxu0 %v18416_v41  ;;  %v18473_v41 = vld [vmem:[#allocation8 + $0x1ddc] ss:$56 sps:$4 sm:$0xff]  }
 0x590   :  { %12729 = vmatpush1.bf16.msra.mxu1 %v18411_v23  ;;  %v18468_v23 = vld [vmem:[#allocation8 + $0x2150] ss:$56 sps:$4 sm:$0xff]  }
 0x591   :  { %12730 = vmatprep.subr.bf16.mxu1 %v18419_v25  ;;  %v18476_v25 = vld [vmem:[#allocation8 + $0x21c4] ss:$56 sps:$4 sm:$0xff]  }
 0x592   :  { %12469 = vmatpush1.bf16.msra.mxu0 %v18414_v46  ;;  %v18471_v46 = vld [vmem:[#allocation8 + $0x1dd8] ss:$56 sps:$4 sm:$0xff]  }
 0x593   :  { %12470 = vmatprep.subr.bf16.mxu0 %v18422_v50  ;;  %v18479_v50 = vld [vmem:[#allocation8 + $0x1e4c] ss:$56 sps:$4 sm:$0xff]  }
 0x594   :  { %12731 = vmatpush1.bf16.msra.mxu1 %v18417_v14  ;;  %v18474_v14 = vld [vmem:[#allocation8 + $0x21c0] ss:$56 sps:$4 sm:$0xff]  }
 0x595   :  { %12732 = vmatprep.subr.bf16.mxu1 %v18425_v7  ;;  %v18482_v7 = vld [vmem:[#allocation8 + $0x2234] ss:$56 sps:$4 sm:$0xff]  }
 0x596   :  { %12471 = vmatpush1.bf16.msra.mxu0 %v18420_v47  ;;  %v18477_v47 = vld [vmem:[#allocation8 + $0x1e48] ss:$56 sps:$4 sm:$0xff]  }
 0x597   :  { %12472 = vmatprep.subr.bf16.mxu0 %v18428_v52  ;;  %v18485_v52 = vld [vmem:[#allocation8 + $0x1ebc] ss:$56 sps:$4 sm:$0xff]  }
 0x598   :  { %12733 = vmatpush1.bf16.msra.mxu1 %v18423_v45  ;;  %v18480_v45 = vld [vmem:[#allocation8 + $0x2230] ss:$56 sps:$4 sm:$0xff]  }
 0x599   :  { %12734 = vmatprep.subr.bf16.mxu1 %v18431_v20  ;;  %v18488_v20 = vld [vmem:[#allocation8 + $0x22a4] ss:$56 sps:$4 sm:$0xff]  }
 0x59a   :  { %12473 = vmatpush1.bf16.msra.mxu0 %v18426_v27  ;;  %v18483_v27 = vld [vmem:[#allocation8 + $0x1eb8] ss:$56 sps:$4 sm:$0xff]  }
 0x59b   :  { %12474 = vmatprep.subr.bf16.mxu0 %v18434_v29  ;;  %v18491_v29 = vld [vmem:[#allocation8 + $0x1f2c] ss:$56 sps:$4 sm:$0xff]  }
 0x59c   :  { %12735 = vmatpush1.bf16.msra.mxu1 %v18429_v30  ;;  %v18486_v30 = vld [vmem:[#allocation8 + $0x22a0] ss:$56 sps:$4 sm:$0xff]  }
 0x59d   :  { %12736 = vmatprep.subr.bf16.mxu1 %v18437_v31  ;;  %v18494_v31 = vld [vmem:[#allocation8 + $0x2314] ss:$56 sps:$4 sm:$0xff]  }
 0x59e   :  { %12475 = vmatpush1.bf16.msra.mxu0 %v18432_v32  ;;  %v18489_v32 = vld [vmem:[#allocation8 + $0x1f28] ss:$56 sps:$4 sm:$0xff]  }
 0x59f   :  { %12476 = vmatprep.subr.bf16.mxu0 %v18440_v34  ;;  %v18497_v34 = vld [vmem:[#allocation8 + $0x1f9c] ss:$56 sps:$4 sm:$0xff]  }
 0x5a0   :  { %12737 = vmatpush1.bf16.msra.mxu1 %v18435_v37  ;;  %v18492_v37 = vld [vmem:[#allocation8 + $0x2310] ss:$56 sps:$4 sm:$0xff]  }
 0x5a1   :  { %12738 = vmatprep.subr.bf16.mxu1 %v18443_v40  ;;  %v18500_v40 = vld [vmem:[#allocation8 + $0x2384] ss:$56 sps:$4 sm:$0xff]  }
 0x5a2   :  { %12477 = vmatpush1.bf16.msra.mxu0 %v18438_v53  ;;  %v18495_v53 = vld [vmem:[#allocation8 + $0x1f98] ss:$56 sps:$4 sm:$0xff]  }
 0x5a3   :  { %12478 = vmatprep.subr.bf16.mxu0 %v18446_v57  ;;  %v18503_v57 = vld [vmem:[#allocation8 + $0x200c] ss:$56 sps:$4 sm:$0xff]  }
 0x5a4   :  { %12739 = vmatpush1.bf16.msra.mxu1 %v18441_v33  ;;  %v18498_v33 = vld [vmem:[#allocation8 + $0x2380] ss:$56 sps:$4 sm:$0xff]  }
 0x5a5   :  { %12749 = vmatprep.subr.bf16.mxu1 %v18449_v26  ;;  %v18506_v26 = vld [vmem:[#allocation8 + $0x23f4] ss:$56 sps:$4 sm:$0xff]  }
 0x5a6   :  { %12479 = vmatpush1.bf16.msra.mxu0 %v18444_v3  ;;  %v18501_v3 = vld [vmem:[#allocation8 + $0x2008] ss:$56 sps:$4 sm:$0xff]  }
 0x5a7   :  { %12741 = vmatmul.mubr.bf16.vlgmr.msra.gmra.mrb[24].mxu1 %v20423_v11  ;;  %12480 = vmatprep.subr.bf16.mxu0 %v18452_v62  ;;  %v18509_v62 = vld [vmem:[#allocation8 + $0x207c] ss:$56 sps:$4 sm:$0xff]  }
 0x5a8   :  { %12750 = vmatpush1.bf16.msra.mxu1 %v18447_v63  ;;  %12781 = vmatprep.mubr.bf16.mxu1 %v20427_v12  ;;  %v18504_v63 = vld [vmem:[#allocation8 + $0x23f0] ss:$56 sps:$4 sm:$0xff]  }
 0x5a9   :  { %12751 = vmatprep.subr.bf16.mxu1 %v18455_v0  ;;  %v18512_v0 = vld [vmem:[#allocation8 + $0x2464] ss:$56 sps:$4 sm:$0xff]  }
 0x5aa   :  { %12481 = vmatpush1.bf16.msra.mxu0 %v18450_v1  ;;  %v18507_v1 = vld [vmem:[#allocation8 + $0x2078] ss:$56 sps:$4 sm:$0xff]  }
 0x5ab   :  { %12482 = vmatprep.subr.bf16.mxu0 %v18458_v2  ;;  %v18515_v2 = vld [vmem:[#allocation8 + $0x20ec] ss:$56 sps:$4 sm:$0xff]  }
 0x5ac   :  { %12752 = vmatpush1.bf16.msra.mxu1 %v18453_v8  ;;  %v18510_v8 = vld [vmem:[#allocation8 + $0x2460] ss:$56 sps:$4 sm:$0xff]  }
 0x5ad   :  { %12753 = vmatprep.subr.bf16.mxu1 %v18461_v10  ;;  %v18518_v10 = vld [vmem:[#allocation8 + $0x24d4] ss:$56 sps:$4 sm:$0xff]  }
 0x5ae   :  { %12483 = vmatpush1.bf16.msra.mxu0 %v18456_v5  ;;  %v18513_v5 = vld [vmem:[#allocation8 + $0x20e8] ss:$56 sps:$4 sm:$0xff]  }
 0x5af   :  { %12484 = vmatprep.subr.bf16.mxu0 %v18464_v9  ;;  %v18521_v9 = vld [vmem:[#allocation8 + $0x215c] ss:$56 sps:$4 sm:$0xff]  }
 0x5b0   :  { %12754 = vmatpush1.bf16.msra.mxu1 %v18459_v42  ;;  %v18516_v42 = vld [vmem:[#allocation8 + $0x24d0] ss:$56 sps:$4 sm:$0xff]  }
 0x5b1   :  { %12755 = vmatprep.subr.bf16.mxu1 %v18467_v15  ;;  %v18524_v15 = vld [vmem:[#allocation8 + $0x2544] ss:$56 sps:$4 sm:$0xff]  }
 0x5b2   :  { %12485 = vmatpush1.bf16.msra.mxu0 %v18462_v13  ;;  %v18519_v13 = vld [vmem:[#allocation8 + $0x2158] ss:$56 sps:$4 sm:$0xff]  }
 0x5b3   :  { %12486 = vmatprep.subr.bf16.mxu0 %v18470_v17  ;;  %v18527_v17 = vld [vmem:[#allocation8 + $0x21cc] ss:$56 sps:$4 sm:$0xff]  }
 0x5b4   :  { %12756 = vmatpush1.bf16.msra.mxu1 %v18465_v36  ;;  %v18522_v36 = vld [vmem:[#allocation8 + $0x2540] ss:$56 sps:$4 sm:$0xff]  }
 0x5b5   :  { %12757 = vmatprep.subr.bf16.mxu1 %v18473_v41  ;;  %v18530_v41 = vld [vmem:[#allocation8 + $0x25b4] ss:$56 sps:$4 sm:$0xff]  }
 0x5b6   :  { %12487 = vmatpush1.bf16.msra.mxu0 %v18468_v23  ;;  %v18525_v23 = vld [vmem:[#allocation8 + $0x21c8] ss:$56 sps:$4 sm:$0xff]  }
 0x5b7   :  { %12488 = vmatprep.subr.bf16.mxu0 %v18476_v25  ;;  %v18533_v25 = vld [vmem:[#allocation8 + $0x223c] ss:$56 sps:$4 sm:$0xff]  }
 0x5b8   :  { %12758 = vmatpush1.bf16.msra.mxu1 %v18471_v46  ;;  %v18528_v46 = vld [vmem:[#allocation8 + $0x25b0] ss:$56 sps:$4 sm:$0xff]  }
 0x5b9   :  { %12759 = vmatprep.subr.bf16.mxu1 %v18479_v50  ;;  %v18536_v50 = vld [vmem:[#allocation8 + $0x2624] ss:$56 sps:$4 sm:$0xff]  }
 0x5ba   :  { %12489 = vmatpush1.bf16.msra.mxu0 %v18474_v14  ;;  %v18531_v14 = vld [vmem:[#allocation8 + $0x2238] ss:$56 sps:$4 sm:$0xff]  }
 0x5bb   :  { %12490 = vmatprep.subr.bf16.mxu0 %v18482_v7  ;;  %v18539_v7 = vld [vmem:[#allocation8 + $0x22ac] ss:$56 sps:$4 sm:$0xff]  }
 0x5bc   :  { %12760 = vmatpush1.bf16.msra.mxu1 %v18477_v47  ;;  %v18534_v47 = vld [vmem:[#allocation8 + $0x2620] ss:$56 sps:$4 sm:$0xff]  }
 0x5bd   :  { %12761 = vmatprep.subr.bf16.mxu1 %v18485_v52  ;;  %v18542_v52 = vld [vmem:[#allocation8 + $0x2694] ss:$56 sps:$4 sm:$0xff]  }
 0x5be   :  { %12491 = vmatpush1.bf16.msra.mxu0 %v18480_v45  ;;  %v18537_v45 = vld [vmem:[#allocation8 + $0x22a8] ss:$56 sps:$4 sm:$0xff]  }
 0x5bf   :  { %12492 = vmatprep.subr.bf16.mxu0 %v18488_v20  ;;  %v18545_v20 = vld [vmem:[#allocation8 + $0x231c] ss:$56 sps:$4 sm:$0xff]  }
 0x5c0   :  { %12762 = vmatpush1.bf16.msra.mxu1 %v18483_v27  ;;  %v18540_v27 = vld [vmem:[#allocation8 + $0x2690] ss:$56 sps:$4 sm:$0xff]  }
 0x5c1   :  { %12763 = vmatprep.subr.bf16.mxu1 %v18491_v29  ;;  %v18548_v29 = vld [vmem:[#allocation8 + $0x2704] ss:$56 sps:$4 sm:$0xff]  }
 0x5c2   :  { %12493 = vmatpush1.bf16.msra.mxu0 %v18486_v30  ;;  %v18543_v30 = vld [vmem:[#allocation8 + $0x2318] ss:$56 sps:$4 sm:$0xff]  }
 0x5c3   :  { %12503 = vmatprep.subr.bf16.mxu0 %v18494_v31  ;;  %v18551_v31 = vld [vmem:[#allocation8 + $0x238c] ss:$56 sps:$4 sm:$0xff]  }
 0x5c4   :  { %12764 = vmatpush1.bf16.msra.mxu1 %v18489_v32  ;;  %v18546_v32 = vld [vmem:[#allocation8 + $0x2700] ss:$56 sps:$4 sm:$0xff]  }
 0x5c5   :  { %12495 = vmatmul.mubr.bf16.vlgmr.msra.gmra.mrb[16].mxu0 %v20435_v43  ;;  %12765 = vmatprep.subr.bf16.mxu1 %v18497_v34  ;;  %v18554_v34 = vld [vmem:[#allocation8 + $0x2774] ss:$56 sps:$4 sm:$0xff]  }
 0x5c6   :  { %12504 = vmatpush1.bf16.msra.mxu0 %v18492_v37  ;;  %12535 = vmatprep.mubr.bf16.mxu0 %v20439_v28  ;;  %v18549_v37 = vld [vmem:[#allocation8 + $0x2388] ss:$56 sps:$4 sm:$0xff]  }
 0x5c7   :  { %12505 = vmatprep.subr.bf16.mxu0 %v18500_v40  ;;  %v18557_v40 = vld [vmem:[#allocation8 + $0x23fc] ss:$56 sps:$4 sm:$0xff]  }
 0x5c8   :  { %12766 = vmatpush1.bf16.msra.mxu1 %v18495_v53  ;;  %v18552_v53 = vld [vmem:[#allocation8 + $0x2770] ss:$56 sps:$4 sm:$0xff]  }
 0x5c9   :  { %12767 = vmatprep.subr.bf16.mxu1 %v18503_v57  ;;  %v18560_v57 = vld [vmem:[#allocation8 + $0x27e4] ss:$56 sps:$4 sm:$0xff]  }
 0x5ca   :  { %12506 = vmatpush1.bf16.msra.mxu0 %v18498_v33  ;;  %v18555_v33 = vld [vmem:[#allocation8 + $0x23f8] ss:$56 sps:$4 sm:$0xff]  }
 0x5cb   :  { %12507 = vmatprep.subr.bf16.mxu0 %v18506_v26  ;;  %v18563_v26 = vld [vmem:[#allocation8 + $0x246c] ss:$56 sps:$4 sm:$0xff]  }
 0x5cc   :  { %12768 = vmatpush1.bf16.msra.mxu1 %v18501_v3  ;;  %v18558_v3 = vld [vmem:[#allocation8 + $0x27e0] ss:$56 sps:$4 sm:$0xff]  }
 0x5cd   :  { %12769 = vmatprep.subr.bf16.mxu1 %v18509_v62  ;;  %v18566_v62 = vld [vmem:[#allocation8 + $0x2854] ss:$56 sps:$4 sm:$0xff]  }
 0x5ce   :  { %12508 = vmatpush1.bf16.msra.mxu0 %v18504_v63  ;;  %v18561_v63 = vld [vmem:[#allocation8 + $0x2468] ss:$56 sps:$4 sm:$0xff]  }
 0x5cf   :  { %12509 = vmatprep.subr.bf16.mxu0 %v18512_v0  ;;  %v18569_v0 = vld [vmem:[#allocation8 + $0x24dc] ss:$56 sps:$4 sm:$0xff]  }
 0x5d0   :  { %12770 = vmatpush1.bf16.msra.mxu1 %v18507_v1  ;;  %v18564_v1 = vld [vmem:[#allocation8 + $0x2850] ss:$56 sps:$4 sm:$0xff]  }
 0x5d1   :  { %12771 = vmatprep.subr.bf16.mxu1 %v18515_v2  ;;  %v18572_v2 = vld [vmem:[#allocation8 + $0x28c4] ss:$56 sps:$4 sm:$0xff]  }
 0x5d2   :  { %12510 = vmatpush1.bf16.msra.mxu0 %v18510_v8  ;;  %v18567_v8 = vld [vmem:[#allocation8 + $0x24d8] ss:$56 sps:$4 sm:$0xff]  }
 0x5d3   :  { %12511 = vmatprep.subr.bf16.mxu0 %v18518_v10  ;;  %v18575_v10 = vld [vmem:[#allocation8 + $0x254c] ss:$56 sps:$4 sm:$0xff]  }
 0x5d4   :  { %12772 = vmatpush1.bf16.msra.mxu1 %v18513_v5  ;;  %v18570_v5 = vld [vmem:[#allocation8 + $0x28c0] ss:$56 sps:$4 sm:$0xff]  }
 0x5d5   :  { %12773 = vmatprep.subr.bf16.mxu1 %v18521_v9  ;;  %v18578_v9 = vld [vmem:[#allocation8 + $0x2934] ss:$56 sps:$4 sm:$0xff]  }
 0x5d6   :  { %12512 = vmatpush1.bf16.msra.mxu0 %v18516_v42  ;;  %v18573_v42 = vld [vmem:[#allocation8 + $0x2548] ss:$56 sps:$4 sm:$0xff]  }
 0x5d7   :  { %12513 = vmatprep.subr.bf16.mxu0 %v18524_v15  ;;  %v18581_v15 = vld [vmem:[#allocation8 + $0x25bc] ss:$56 sps:$4 sm:$0xff]  }
 0x5d8   :  { %12774 = vmatpush1.bf16.msra.mxu1 %v18519_v13  ;;  %v18576_v13 = vld [vmem:[#allocation8 + $0x2930] ss:$56 sps:$4 sm:$0xff]  }
 0x5d9   :  { %12775 = vmatprep.subr.bf16.mxu1 %v18527_v17  ;;  %v18584_v17 = vld [vmem:[#allocation8 + $0x29a4] ss:$56 sps:$4 sm:$0xff]  }
 0x5da   :  { %12514 = vmatpush1.bf16.msra.mxu0 %v18522_v36  ;;  %v18579_v36 = vld [vmem:[#allocation8 + $0x25b8] ss:$56 sps:$4 sm:$0xff]  }
 0x5db   :  { %12515 = vmatprep.subr.bf16.mxu0 %v18530_v41  ;;  %v18587_v41 = vld [vmem:[#allocation8 + $0x262c] ss:$56 sps:$4 sm:$0xff]  }
 0x5dc   :  { %12776 = vmatpush1.bf16.msra.mxu1 %v18525_v23  ;;  %v18582_v23 = vld [vmem:[#allocation8 + $0x29a0] ss:$56 sps:$4 sm:$0xff]  }
 0x5dd   :  { %12777 = vmatprep.subr.bf16.mxu1 %v18533_v25  ;;  %v18590_v25 = vld [vmem:[#allocation8 + $0x2a14] ss:$56 sps:$4 sm:$0xff]  }
 0x5de   :  { %12516 = vmatpush1.bf16.msra.mxu0 %v18528_v46  ;;  %v18585_v46 = vld [vmem:[#allocation8 + $0x2628] ss:$56 sps:$4 sm:$0xff]  }
 0x5df   :  { %12517 = vmatprep.subr.bf16.mxu0 %v18536_v50  ;;  %v18593_v50 = vld [vmem:[#allocation8 + $0x269c] ss:$56 sps:$4 sm:$0xff]  }
 0x5e0   :  { %12778 = vmatpush1.bf16.msra.mxu1 %v18531_v14  ;;  %v18588_v14 = vld [vmem:[#allocation8 + $0x2a10] ss:$56 sps:$4 sm:$0xff]  }
 0x5e1   :  { %12779 = vmatprep.subr.bf16.mxu1 %v18539_v7  ;;  %v18596_v7 = vld [vmem:[#allocation8 + $0x2a84] ss:$56 sps:$4 sm:$0xff]  }
 0x5e2   :  { %12518 = vmatpush1.bf16.msra.mxu0 %v18534_v47  ;;  %v18591_v47 = vld [vmem:[#allocation8 + $0x2698] ss:$56 sps:$4 sm:$0xff]  }
 0x5e3   :  { %12519 = vmatprep.subr.bf16.mxu0 %v18542_v52  ;;  %v18599_v52 = vld [vmem:[#allocation8 + $0x270c] ss:$56 sps:$4 sm:$0xff]  }
 0x5e4   :  { %12780 = vmatpush1.bf16.msra.mxu1 %v18537_v45  ;;  %v18594_v45 = vld [vmem:[#allocation8 + $0x2a80] ss:$56 sps:$4 sm:$0xff]  }
 0x5e5   :  { %12790 = vmatprep.subr.bf16.mxu1 %v18545_v20  ;;  %v18602_v20 = vld [vmem:[#allocation8 + $0x2af4] ss:$56 sps:$4 sm:$0xff]  }
 0x5e6   :  { %12520 = vmatpush1.bf16.msra.mxu0 %v18540_v27  ;;  %v18597_v27 = vld [vmem:[#allocation8 + $0x2708] ss:$56 sps:$4 sm:$0xff]  }
 0x5e7   :  { %12782 = vmatmul.mubr.bf16.vlgmr.msra.gmra.mrb[24].mxu1 %v20435_v43  ;;  %12521 = vmatprep.subr.bf16.mxu0 %v18548_v29  ;;  %v18605_v29 = vld [vmem:[#allocation8 + $0x277c] ss:$56 sps:$4 sm:$0xff]  }
 0x5e8   :  { %12791 = vmatpush1.bf16.msra.mxu1 %v18543_v30  ;;  %12822 = vmatprep.mubr.bf16.mxu1 %v20439_v28  ;;  %v18600_v30 = vld [vmem:[#allocation8 + $0x2af0] ss:$56 sps:$4 sm:$0xff]  }
 0x5e9   :  { %12792 = vmatprep.subr.bf16.mxu1 %v18551_v31  ;;  %v18608_v31 = vld [vmem:[#allocation8 + $0x2b64] ss:$56 sps:$4 sm:$0xff]  }
 0x5ea   :  { %12522 = vmatpush1.bf16.msra.mxu0 %v18546_v32  ;;  %v18603_v32 = vld [vmem:[#allocation8 + $0x2778] ss:$56 sps:$4 sm:$0xff]  }
 0x5eb   :  { %12523 = vmatprep.subr.bf16.mxu0 %v18554_v34  ;;  %v18611_v34 = vld [vmem:[#allocation8 + $0x27ec] ss:$56 sps:$4 sm:$0xff]  }
 0x5ec   :  { %12793 = vmatpush1.bf16.msra.mxu1 %v18549_v37  ;;  %v18606_v37 = vld [vmem:[#allocation8 + $0x2b60] ss:$56 sps:$4 sm:$0xff]  }
 0x5ed   :  { %12794 = vmatprep.subr.bf16.mxu1 %v18557_v40  ;;  %v18614_v40 = vld [vmem:[#allocation8 + $0x2bd4] ss:$56 sps:$4 sm:$0xff]  }
 0x5ee   :  { %12524 = vmatpush1.bf16.msra.mxu0 %v18552_v53  ;;  %v18609_v53 = vld [vmem:[#allocation8 + $0x27e8] ss:$56 sps:$4 sm:$0xff]  }
 0x5ef   :  { %12525 = vmatprep.subr.bf16.mxu0 %v18560_v57  ;;  %v18617_v57 = vld [vmem:[#allocation8 + $0x285c] ss:$56 sps:$4 sm:$0xff]  }
 0x5f0   :  { %12795 = vmatpush1.bf16.msra.mxu1 %v18555_v33  ;;  %v18612_v33 = vld [vmem:[#allocation8 + $0x2bd0] ss:$56 sps:$4 sm:$0xff]  }
 0x5f1   :  { %12796 = vmatprep.subr.bf16.mxu1 %v18563_v26  ;;  %v18620_v26 = vld [vmem:[#allocation8 + $0x2c44] ss:$56 sps:$4 sm:$0xff]  }
 0x5f2   :  { %12526 = vmatpush1.bf16.msra.mxu0 %v18558_v3  ;;  %v18615_v3 = vld [vmem:[#allocation8 + $0x2858] ss:$56 sps:$4 sm:$0xff]  }
 0x5f3   :  { %12527 = vmatprep.subr.bf16.mxu0 %v18566_v62  ;;  %v18623_v62 = vld [vmem:[#allocation8 + $0x28cc] ss:$56 sps:$4 sm:$0xff]  }
 0x5f4   :  { %12797 = vmatpush1.bf16.msra.mxu1 %v18561_v63  ;;  %v18618_v63 = vld [vmem:[#allocation8 + $0x2c40] ss:$56 sps:$4 sm:$0xff]  }
 0x5f5   :  { %12798 = vmatprep.subr.bf16.mxu1 %v18569_v0  ;;  %v18626_v0 = vld [vmem:[#allocation8 + $0x2cb4] ss:$56 sps:$4 sm:$0xff]  }
 0x5f6   :  { %12528 = vmatpush1.bf16.msra.mxu0 %v18564_v1  ;;  %v18621_v1 = vld [vmem:[#allocation8 + $0x28c8] ss:$56 sps:$4 sm:$0xff]  }
 0x5f7   :  { %12529 = vmatprep.subr.bf16.mxu0 %v18572_v2  ;;  %v18629_v2 = vld [vmem:[#allocation8 + $0x293c] ss:$56 sps:$4 sm:$0xff]  }
 0x5f8   :  { %12799 = vmatpush1.bf16.msra.mxu1 %v18567_v8  ;;  %v18624_v8 = vld [vmem:[#allocation8 + $0x2cb0] ss:$56 sps:$4 sm:$0xff]  }
 0x5f9   :  { %12800 = vmatprep.subr.bf16.mxu1 %v18575_v10  ;;  %v18632_v10 = vld [vmem:[#allocation8 + $0x2d24] ss:$56 sps:$4 sm:$0xff]  }
 0x5fa   :  { %12530 = vmatpush1.bf16.msra.mxu0 %v18570_v5  ;;  %v18627_v5 = vld [vmem:[#allocation8 + $0x2938] ss:$56 sps:$4 sm:$0xff]  }
 0x5fb   :  { %12531 = vmatprep.subr.bf16.mxu0 %v18578_v9  ;;  %v18635_v9 = vld [vmem:[#allocation8 + $0x29ac] ss:$56 sps:$4 sm:$0xff]  }
 0x5fc   :  { %12801 = vmatpush1.bf16.msra.mxu1 %v18573_v42  ;;  %v18630_v42 = vld [vmem:[#allocation8 + $0x2d20] ss:$56 sps:$4 sm:$0xff]  }
 0x5fd   :  { %12802 = vmatprep.subr.bf16.mxu1 %v18581_v15  ;;  %v18638_v15 = vld [vmem:[#allocation8 + $0x2d94] ss:$56 sps:$4 sm:$0xff]  }
 0x5fe   :  { %12532 = vmatpush1.bf16.msra.mxu0 %v18576_v13  ;;  %v18633_v13 = vld [vmem:[#allocation8 + $0x29a8] ss:$56 sps:$4 sm:$0xff]  }
 0x5ff   :  { %12533 = vmatprep.subr.bf16.mxu0 %v18584_v17  ;;  %v18641_v17 = vld [vmem:[#allocation8 + $0x2a1c] ss:$56 sps:$4 sm:$0xff]  }
 0x600   :  { %12803 = vmatpush1.bf16.msra.mxu1 %v18579_v36  ;;  %v18636_v36 = vld [vmem:[#allocation8 + $0x2d90] ss:$56 sps:$4 sm:$0xff]  }
 0x601   :  { %12804 = vmatprep.subr.bf16.mxu1 %v18587_v41  ;;  %v18644_v41 = vld [vmem:[#allocation8 + $0x2e04] ss:$56 sps:$4 sm:$0xff]  }
 0x602   :  { %12534 = vmatpush1.bf16.msra.mxu0 %v18582_v23  ;;  %v18639_v23 = vld [vmem:[#allocation8 + $0x2a18] ss:$56 sps:$4 sm:$0xff]  }
 0x603   :  { %12544 = vmatprep.subr.bf16.mxu0 %v18590_v25  ;;  %v18647_v25 = vld [vmem:[#allocation8 + $0x2a8c] ss:$56 sps:$4 sm:$0xff]  }
 0x604   :  { %12805 = vmatpush1.bf16.msra.mxu1 %v18585_v46  ;;  %v18642_v46 = vld [vmem:[#allocation8 + $0x2e00] ss:$56 sps:$4 sm:$0xff]  }
 0x605   :  { %12536 = vmatmul.mubr.bf16.vlgmr.msra.gmra.mrb[16].mxu0 %v20447_v19  ;;  %12806 = vmatprep.subr.bf16.mxu1 %v18593_v50  ;;  %v18650_v50 = vld [vmem:[#allocation8 + $0x2e74] ss:$56 sps:$4 sm:$0xff]  }
 0x606   :  { %12545 = vmatpush1.bf16.msra.mxu0 %v18588_v14  ;;  %12576 = vmatprep.mubr.bf16.mxu0 %v20451_v39  ;;  %v18645_v14 = vld [vmem:[#allocation8 + $0x2a88] ss:$56 sps:$4 sm:$0xff]  }
 0x607   :  { %12546 = vmatprep.subr.bf16.mxu0 %v18596_v7  ;;  %v18653_v7 = vld [vmem:[#allocation8 + $0x2afc] ss:$56 sps:$4 sm:$0xff]  }
 0x608   :  { %12807 = vmatpush1.bf16.msra.mxu1 %v18591_v47  ;;  %v18648_v47 = vld [vmem:[#allocation8 + $0x2e70] ss:$56 sps:$4 sm:$0xff]  }
 0x609   :  { %12808 = vmatprep.subr.bf16.mxu1 %v18599_v52  ;;  %v18656_v52 = vld [vmem:[#allocation8 + $0x2ee4] ss:$56 sps:$4 sm:$0xff]  }
 0x60a   :  { %12547 = vmatpush1.bf16.msra.mxu0 %v18594_v45  ;;  %v18651_v45 = vld [vmem:[#allocation8 + $0x2af8] ss:$56 sps:$4 sm:$0xff]  }
 0x60b   :  { %12548 = vmatprep.subr.bf16.mxu0 %v18602_v20  ;;  %v18659_v20 = vld [vmem:[#allocation8 + $0x2b6c] ss:$56 sps:$4 sm:$0xff]  }
 0x60c   :  { %12809 = vmatpush1.bf16.msra.mxu1 %v18597_v27  ;;  %v18654_v27 = vld [vmem:[#allocation8 + $0x2ee0] ss:$56 sps:$4 sm:$0xff]  }
 0x60d   :  { %12810 = vmatprep.subr.bf16.mxu1 %v18605_v29  ;;  %v18662_v29 = vld [vmem:[#allocation8 + $0x2f54] ss:$56 sps:$4 sm:$0xff]  }
 0x60e   :  { %12549 = vmatpush1.bf16.msra.mxu0 %v18600_v30  ;;  %v18657_v30 = vld [vmem:[#allocation8 + $0x2b68] ss:$56 sps:$4 sm:$0xff]  }
 0x60f   :  { %12550 = vmatprep.subr.bf16.mxu0 %v18608_v31  ;;  %v18665_v31 = vld [vmem:[#allocation8 + $0x2bdc] ss:$56 sps:$4 sm:$0xff]  }
 0x610   :  { %12811 = vmatpush1.bf16.msra.mxu1 %v18603_v32  ;;  %v18660_v32 = vld [vmem:[#allocation8 + $0x2f50] ss:$56 sps:$4 sm:$0xff]  }
 0x611   :  { %12812 = vmatprep.subr.bf16.mxu1 %v18611_v34  ;;  %v18668_v34 = vld [vmem:[#allocation8 + $0x2fc4] ss:$56 sps:$4 sm:$0xff]  }
 0x612   :  { %12551 = vmatpush1.bf16.msra.mxu0 %v18606_v37  ;;  %v18663_v37 = vld [vmem:[#allocation8 + $0x2bd8] ss:$56 sps:$4 sm:$0xff]  }
 0x613   :  { %12552 = vmatprep.subr.bf16.mxu0 %v18614_v40  ;;  %v18671_v40 = vld [vmem:[#allocation8 + $0x2c4c] ss:$56 sps:$4 sm:$0xff]  }
 0x614   :  { %12813 = vmatpush1.bf16.msra.mxu1 %v18609_v53  ;;  %v18666_v53 = vld [vmem:[#allocation8 + $0x2fc0] ss:$56 sps:$4 sm:$0xff]  }
 0x615   :  { %12814 = vmatprep.subr.bf16.mxu1 %v18617_v57  ;;  %v18674_v57 = vld [vmem:[#allocation8 + $0x3034] ss:$56 sps:$4 sm:$0xff]  }
 0x616   :  { %12553 = vmatpush1.bf16.msra.mxu0 %v18612_v33  ;;  %v18669_v33 = vld [vmem:[#allocation8 + $0x2c48] ss:$56 sps:$4 sm:$0xff]  }
 0x617   :  { %12554 = vmatprep.subr.bf16.mxu0 %v18620_v26  ;;  %v18677_v26 = vld [vmem:[#allocation8 + $0x2cbc] ss:$56 sps:$4 sm:$0xff]  }
 0x618   :  { %12815 = vmatpush1.bf16.msra.mxu1 %v18615_v3  ;;  %v18672_v3 = vld [vmem:[#allocation8 + $0x3030] ss:$56 sps:$4 sm:$0xff]  }
 0x619   :  { %12816 = vmatprep.subr.bf16.mxu1 %v18623_v62  ;;  %v18680_v62 = vld [vmem:[#allocation8 + $0x30a4] ss:$56 sps:$4 sm:$0xff]  }
 0x61a   :  { %12555 = vmatpush1.bf16.msra.mxu0 %v18618_v63  ;;  %v18675_v63 = vld [vmem:[#allocation8 + $0x2cb8] ss:$56 sps:$4 sm:$0xff]  }
 0x61b   :  { %12556 = vmatprep.subr.bf16.mxu0 %v18626_v0  ;;  %v18683_v0 = vld [vmem:[#allocation8 + $0x2d2c] ss:$56 sps:$4 sm:$0xff]  }
 0x61c   :  { %12817 = vmatpush1.bf16.msra.mxu1 %v18621_v1  ;;  %v18678_v1 = vld [vmem:[#allocation8 + $0x30a0] ss:$56 sps:$4 sm:$0xff]  }
 0x61d   :  { %12818 = vmatprep.subr.bf16.mxu1 %v18629_v2  ;;  %v18686_v2 = vld [vmem:[#allocation8 + $0x24] ss:$56 sps:$4 sm:$0xff]  }
 0x61e   :  { %12557 = vmatpush1.bf16.msra.mxu0 %v18624_v8  ;;  %v18681_v8 = vld [vmem:[#allocation8 + $0x2d28] ss:$56 sps:$4 sm:$0xff]  }
 0x61f   :  { %12558 = vmatprep.subr.bf16.mxu0 %v18632_v10  ;;  %v18689_v10 = vld [vmem:[#allocation8 + $0x2d9c] ss:$56 sps:$4 sm:$0xff]  }
 0x620   :  { %12819 = vmatpush1.bf16.msra.mxu1 %v18627_v5  ;;  %v18684_v5 = vld [vmem:[#allocation8 + $0x20] ss:$56 sps:$4 sm:$0xff]  }
 0x621   :  { %12820 = vmatprep.subr.bf16.mxu1 %v18635_v9  ;;  %v18692_v9 = vld [vmem:[#allocation8 + $0x94] ss:$56 sps:$4 sm:$0xff]  }
 0x622   :  { %12559 = vmatpush1.bf16.msra.mxu0 %v18630_v42  ;;  %v18687_v42 = vld [vmem:[#allocation8 + $0x2d98] ss:$56 sps:$4 sm:$0xff]  }
 0x623   :  { %12560 = vmatprep.subr.bf16.mxu0 %v18638_v15  ;;  %v18695_v15 = vld [vmem:[#allocation8 + $0x2e0c] ss:$56 sps:$4 sm:$0xff]  }
 0x624   :  { %12821 = vmatpush1.bf16.msra.mxu1 %v18633_v13  ;;  %v18690_v13 = vld [vmem:[#allocation8 + $0x90] ss:$56 sps:$4 sm:$0xff]  }
 0x625   :  { %12831 = vmatprep.subr.bf16.mxu1 %v18641_v17  ;;  %v18698_v17 = vld [vmem:[#allocation8 + $0x104] ss:$56 sps:$4 sm:$0xff]  }
 0x626   :  { %12561 = vmatpush1.bf16.msra.mxu0 %v18636_v36  ;;  %v18693_v36 = vld [vmem:[#allocation8 + $0x2e08] ss:$56 sps:$4 sm:$0xff]  }
 0x627   :  { %12823 = vmatmul.mubr.bf16.vlgmr.msra.gmra.mrb[24].mxu1 %v20447_v19  ;;  %12562 = vmatprep.subr.bf16.mxu0 %v18644_v41  ;;  %v18701_v41 = vld [vmem:[#allocation8 + $0x2e7c] ss:$56 sps:$4 sm:$0xff]  }
 0x628   :  { %12832 = vmatpush1.bf16.msra.mxu1 %v18639_v23  ;;  %12863 = vmatprep.mubr.bf16.mxu1 %v20451_v39  ;;  %v18696_v23 = vld [vmem:[#allocation8 + $0x100] ss:$56 sps:$4 sm:$0xff]  }
 0x629   :  { %12833 = vmatprep.subr.bf16.mxu1 %v18647_v25  ;;  %v18704_v25 = vld [vmem:[#allocation8 + $0x174] ss:$56 sps:$4 sm:$0xff]  }
 0x62a   :  { %12563 = vmatpush1.bf16.msra.mxu0 %v18642_v46  ;;  %v18699_v46 = vld [vmem:[#allocation8 + $0x2e78] ss:$56 sps:$4 sm:$0xff]  }
 0x62b   :  { %12564 = vmatprep.subr.bf16.mxu0 %v18650_v50  ;;  %v18707_v50 = vld [vmem:[#allocation8 + $0x2eec] ss:$56 sps:$4 sm:$0xff]  }
 0x62c   :  { %12834 = vmatpush1.bf16.msra.mxu1 %v18645_v14  ;;  %v18702_v14 = vld [vmem:[#allocation8 + $0x170] ss:$56 sps:$4 sm:$0xff]  }
 0x62d   :  { %12835 = vmatprep.subr.bf16.mxu1 %v18653_v7  ;;  %v18710_v7 = vld [vmem:[#allocation8 + $0x1e4] ss:$56 sps:$4 sm:$0xff]  }
 0x62e   :  { %12565 = vmatpush1.bf16.msra.mxu0 %v18648_v47  ;;  %v18705_v47 = vld [vmem:[#allocation8 + $0x2ee8] ss:$56 sps:$4 sm:$0xff]  }
 0x62f   :  { %12566 = vmatprep.subr.bf16.mxu0 %v18656_v52  ;;  %v18713_v52 = vld [vmem:[#allocation8 + $0x2f5c] ss:$56 sps:$4 sm:$0xff]  }
 0x630   :  { %12836 = vmatpush1.bf16.msra.mxu1 %v18651_v45  ;;  %v18708_v45 = vld [vmem:[#allocation8 + $0x1e0] ss:$56 sps:$4 sm:$0xff]  }
 0x631   :  { %12837 = vmatprep.subr.bf16.mxu1 %v18659_v20  ;;  %v18716_v20 = vld [vmem:[#allocation8 + $0x254] ss:$56 sps:$4 sm:$0xff]  }
 0x632   :  { %12567 = vmatpush1.bf16.msra.mxu0 %v18654_v27  ;;  %v18711_v27 = vld [vmem:[#allocation8 + $0x2f58] ss:$56 sps:$4 sm:$0xff]  }
 0x633   :  { %12568 = vmatprep.subr.bf16.mxu0 %v18662_v29  ;;  %v18719_v29 = vld [vmem:[#allocation8 + $0x2fcc] ss:$56 sps:$4 sm:$0xff]  }
 0x634   :  { %12838 = vmatpush1.bf16.msra.mxu1 %v18657_v30  ;;  %v18714_v30 = vld [vmem:[#allocation8 + $0x250] ss:$56 sps:$4 sm:$0xff]  }
 0x635   :  { %12839 = vmatprep.subr.bf16.mxu1 %v18665_v31  ;;  %v18722_v31 = vld [vmem:[#allocation8 + $0x2c4] ss:$56 sps:$4 sm:$0xff]  }
 0x636   :  { %12569 = vmatpush1.bf16.msra.mxu0 %v18660_v32  ;;  %v18717_v32 = vld [vmem:[#allocation8 + $0x2fc8] ss:$56 sps:$4 sm:$0xff]  }
 0x637   :  { %12570 = vmatprep.subr.bf16.mxu0 %v18668_v34  ;;  %v18725_v34 = vld [vmem:[#allocation8 + $0x303c] ss:$56 sps:$4 sm:$0xff]  }
 0x638   :  { %12840 = vmatpush1.bf16.msra.mxu1 %v18663_v37  ;;  %v18720_v37 = vld [vmem:[#allocation8 + $0x2c0] ss:$56 sps:$4 sm:$0xff]  }
 0x639   :  { %12841 = vmatprep.subr.bf16.mxu1 %v18671_v40  ;;  %v18728_v40 = vld [vmem:[#allocation8 + $0x334] ss:$56 sps:$4 sm:$0xff]  }
 0x63a   :  { %12571 = vmatpush1.bf16.msra.mxu0 %v18666_v53  ;;  %v18723_v53 = vld [vmem:[#allocation8 + $0x3038] ss:$56 sps:$4 sm:$0xff]  }
 0x63b   :  { %12572 = vmatprep.subr.bf16.mxu0 %v18674_v57  ;;  %v18731_v57 = vld [vmem:[#allocation8 + $0x30ac] ss:$56 sps:$4 sm:$0xff]  }
 0x63c   :  { %12842 = vmatpush1.bf16.msra.mxu1 %v18669_v33  ;;  %v18726_v33 = vld [vmem:[#allocation8 + $0x330] ss:$56 sps:$4 sm:$0xff]  }
 0x63d   :  { %12843 = vmatprep.subr.bf16.mxu1 %v18677_v26  ;;  %v18734_v26 = vld [vmem:[#allocation8 + $0x3a4] ss:$56 sps:$4 sm:$0xff]  }
 0x63e   :  { %12573 = vmatpush1.bf16.msra.mxu0 %v18672_v3  ;;  %v18729_v3 = vld [vmem:[#allocation8 + $0x30a8] ss:$56 sps:$4 sm:$0xff]  }
 0x63f   :  { %12574 = vmatprep.subr.bf16.mxu0 %v18680_v62  ;;  %v18737_v62 = vld [vmem:[#allocation8 + $0x2c] ss:$56 sps:$4 sm:$0xff]  }
 0x640   :  { %12844 = vmatpush1.bf16.msra.mxu1 %v18675_v63  ;;  %v18732_v63 = vld [vmem:[#allocation8 + $0x3a0] ss:$56 sps:$4 sm:$0xff]  }
 0x641   :  { %12845 = vmatprep.subr.bf16.mxu1 %v18683_v0  ;;  %v18740_v0 = vld [vmem:[#allocation8 + $0x414] ss:$56 sps:$4 sm:$0xff]  }
 0x642   :  { %12575 = vmatpush1.bf16.msra.mxu0 %v18678_v1  ;;  %v18735_v1 = vld [vmem:[#allocation8 + $0x28] ss:$56 sps:$4 sm:$0xff]  }
 0x643   :  { %12872 = vmatprep.subr.bf16.mxu0 %v18686_v2  ;;  %v18743_v2 = vld [vmem:[#allocation8 + $0x9c] ss:$56 sps:$4 sm:$0xff]  }
 0x644   :  { %12846 = vmatpush1.bf16.msra.mxu1 %v18681_v8  ;;  %v18738_v8 = vld [vmem:[#allocation8 + $0x410] ss:$56 sps:$4 sm:$0xff]  }
 0x645   :  { %12577 = vmatmul.mubr.bf16.vlgmr.msra.gmra.mrb[16].mxu0 %v20459_v55  ;;  %12847 = vmatprep.subr.bf16.mxu1 %v18689_v10  ;;  %v18746_v10 = vld [vmem:[#allocation8 + $0x484] ss:$56 sps:$4 sm:$0xff]  }
 0x646   :  { %12873 = vmatpush1.bf16.msra.mxu0 %v18684_v5  ;;  %12904 = vmatprep.mubr.bf16.mxu0 %v20343_v4  ;;  %v18741_v5 = vld [vmem:[#allocation8 + $0x98] ss:$56 sps:$4 sm:$0xff]  }
 0x647   :  { %12874 = vmatprep.subr.bf16.mxu0 %v18692_v9  ;;  %v18749_v9 = vld [vmem:[#allocation8 + $0x10c] ss:$56 sps:$4 sm:$0xff]  }
 0x648   :  { %12848 = vmatpush1.bf16.msra.mxu1 %v18687_v42  ;;  %v18744_v42 = vld [vmem:[#allocation8 + $0x480] ss:$56 sps:$4 sm:$0xff]  }
 0x649   :  { %12849 = vmatprep.subr.bf16.mxu1 %v18695_v15  ;;  %v18752_v15 = vld [vmem:[#allocation8 + $0x4f4] ss:$56 sps:$4 sm:$0xff]  }
 0x64a   :  { %12875 = vmatpush1.bf16.msra.mxu0 %v18690_v13  ;;  %v18747_v13 = vld [vmem:[#allocation8 + $0x108] ss:$56 sps:$4 sm:$0xff]  }
 0x64b   :  { %12876 = vmatprep.subr.bf16.mxu0 %v18698_v17  ;;  %v18755_v17 = vld [vmem:[#allocation8 + $0x17c] ss:$56 sps:$4 sm:$0xff]  }
 0x64c   :  { %12850 = vmatpush1.bf16.msra.mxu1 %v18693_v36  ;;  %v18750_v36 = vld [vmem:[#allocation8 + $0x4f0] ss:$56 sps:$4 sm:$0xff]  }
 0x64d   :  { %12851 = vmatprep.subr.bf16.mxu1 %v18701_v41  ;;  %v18758_v41 = vld [vmem:[#allocation8 + $0x564] ss:$56 sps:$4 sm:$0xff]  }
 0x64e   :  { %12877 = vmatpush1.bf16.msra.mxu0 %v18696_v23  ;;  %v18753_v23 = vld [vmem:[#allocation8 + $0x178] ss:$56 sps:$4 sm:$0xff]  }
 0x64f   :  { %12878 = vmatprep.subr.bf16.mxu0 %v18704_v25  ;;  %v18761_v25 = vld [vmem:[#allocation8 + $0x1ec] ss:$56 sps:$4 sm:$0xff]  }
 0x650   :  { %12852 = vmatpush1.bf16.msra.mxu1 %v18699_v46  ;;  %v18756_v46 = vld [vmem:[#allocation8 + $0x560] ss:$56 sps:$4 sm:$0xff]  }
 0x651   :  { %12853 = vmatprep.subr.bf16.mxu1 %v18707_v50  ;;  %v18764_v50 = vld [vmem:[#allocation8 + $0x5d4] ss:$56 sps:$4 sm:$0xff]  }
 0x652   :  { %12879 = vmatpush1.bf16.msra.mxu0 %v18702_v14  ;;  %v18759_v14 = vld [vmem:[#allocation8 + $0x1e8] ss:$56 sps:$4 sm:$0xff]  }
 0x653   :  { %12880 = vmatprep.subr.bf16.mxu0 %v18710_v7  ;;  %v18767_v7 = vld [vmem:[#allocation8 + $0x25c] ss:$56 sps:$4 sm:$0xff]  }
 0x654   :  { %12854 = vmatpush1.bf16.msra.mxu1 %v18705_v47  ;;  %v18762_v47 = vld [vmem:[#allocation8 + $0x5d0] ss:$56 sps:$4 sm:$0xff]  }
 0x655   :  { %12855 = vmatprep.subr.bf16.mxu1 %v18713_v52  ;;  %v18770_v52 = vld [vmem:[#allocation8 + $0x644] ss:$56 sps:$4 sm:$0xff]  }
 0x656   :  { %12881 = vmatpush1.bf16.msra.mxu0 %v18708_v45  ;;  %v18765_v45 = vld [vmem:[#allocation8 + $0x258] ss:$56 sps:$4 sm:$0xff]  }
 0x657   :  { %12882 = vmatprep.subr.bf16.mxu0 %v18716_v20  ;;  %v18773_v20 = vld [vmem:[#allocation8 + $0x2cc] ss:$56 sps:$4 sm:$0xff]  }
 0x658   :  { %12856 = vmatpush1.bf16.msra.mxu1 %v18711_v27  ;;  %v18768_v27 = vld [vmem:[#allocation8 + $0x640] ss:$56 sps:$4 sm:$0xff]  }
 0x659   :  { %12857 = vmatprep.subr.bf16.mxu1 %v18719_v29  ;;  %v18776_v29 = vld [vmem:[#allocation8 + $0x6b4] ss:$56 sps:$4 sm:$0xff]  }
 0x65a   :  { %12883 = vmatpush1.bf16.msra.mxu0 %v18714_v30  ;;  %v18771_v30 = vld [vmem:[#allocation8 + $0x2c8] ss:$56 sps:$4 sm:$0xff]  }
 0x65b   :  { %12884 = vmatprep.subr.bf16.mxu0 %v18722_v31  ;;  %v18779_v31 = vld [vmem:[#allocation8 + $0x33c] ss:$56 sps:$4 sm:$0xff]  }
 0x65c   :  { %12858 = vmatpush1.bf16.msra.mxu1 %v18717_v32  ;;  %v18774_v32 = vld [vmem:[#allocation8 + $0x6b0] ss:$56 sps:$4 sm:$0xff]  }
 0x65d   :  { %12859 = vmatprep.subr.bf16.mxu1 %v18725_v34  ;;  %v18782_v34 = vld [vmem:[#allocation8 + $0x724] ss:$56 sps:$4 sm:$0xff]  }
 0x65e   :  { %12885 = vmatpush1.bf16.msra.mxu0 %v18720_v37  ;;  %v18777_v37 = vld [vmem:[#allocation8 + $0x338] ss:$56 sps:$4 sm:$0xff]  }
 0x65f   :  { %12886 = vmatprep.subr.bf16.mxu0 %v18728_v40  ;;  %v18785_v40 = vld [vmem:[#allocation8 + $0x3ac] ss:$56 sps:$4 sm:$0xff]  }
 0x660   :  { %12860 = vmatpush1.bf16.msra.mxu1 %v18723_v53  ;;  %v18780_v53 = vld [vmem:[#allocation8 + $0x720] ss:$56 sps:$4 sm:$0xff]  }
 0x661   :  { %12861 = vmatprep.subr.bf16.mxu1 %v18731_v57  ;;  %v18788_v57 = vld [vmem:[#allocation8 + $0x794] ss:$56 sps:$4 sm:$0xff]  }
 0x662   :  { %12887 = vmatpush1.bf16.msra.mxu0 %v18726_v33  ;;  %v18783_v33 = vld [vmem:[#allocation8 + $0x3a8] ss:$56 sps:$4 sm:$0xff]  }
 0x663   :  { %12888 = vmatprep.subr.bf16.mxu0 %v18734_v26  ;;  %v18791_v26 = vld [vmem:[#allocation8 + $0x41c] ss:$56 sps:$4 sm:$0xff]  }
 0x664   :  { %12862 = vmatpush1.bf16.msra.mxu1 %v18729_v3  ;;  %v18786_v3 = vld [vmem:[#allocation8 + $0x790] ss:$56 sps:$4 sm:$0xff]  }
 0x665   :  { %13159 = vmatprep.subr.bf16.mxu1 %v18737_v62  ;;  %v18794_v62 = vld [vmem:[#allocation8 + $0x804] ss:$56 sps:$4 sm:$0xff]  }
 0x666   :  { %12889 = vmatpush1.bf16.msra.mxu0 %v18732_v63  ;;  %v18789_v63 = vld [vmem:[#allocation8 + $0x418] ss:$56 sps:$4 sm:$0xff]  }
 0x667   :  { %12864 = vmatmul.mubr.bf16.vlgmr.msra.gmra.mrb[24].mxu1 %v20459_v55  ;;  %12890 = vmatprep.subr.bf16.mxu0 %v18740_v0  ;;  %v18797_v0 = vld [vmem:[#allocation8 + $0x48c] ss:$56 sps:$4 sm:$0xff]  }
 0x668   :  { %13160 = vmatpush1.bf16.msra.mxu1 %v18735_v1  ;;  %13191 = vmatprep.mubr.bf16.mxu1 %v20343_v4  ;;  %v18792_v1 = vld [vmem:[#allocation8 + $0x800] ss:$56 sps:$4 sm:$0xff]  }
 0x669   :  { %13161 = vmatprep.subr.bf16.mxu1 %v18743_v2  ;;  %v18800_v2 = vld [vmem:[#allocation8 + $0x874] ss:$56 sps:$4 sm:$0xff]  }
 0x66a   :  { %12891 = vmatpush1.bf16.msra.mxu0 %v18738_v8  ;;  %v18795_v8 = vld [vmem:[#allocation8 + $0x488] ss:$56 sps:$4 sm:$0xff]  }
 0x66b   :  { %12892 = vmatprep.subr.bf16.mxu0 %v18746_v10  ;;  %v18803_v10 = vld [vmem:[#allocation8 + $0x4fc] ss:$56 sps:$4 sm:$0xff]  }
 0x66c   :  { %13162 = vmatpush1.bf16.msra.mxu1 %v18741_v5  ;;  %v18798_v5 = vld [vmem:[#allocation8 + $0x870] ss:$56 sps:$4 sm:$0xff]  }
 0x66d   :  { %13163 = vmatprep.subr.bf16.mxu1 %v18749_v9  ;;  %v18806_v9 = vld [vmem:[#allocation8 + $0x8e4] ss:$56 sps:$4 sm:$0xff]  }
 0x66e   :  { %12893 = vmatpush1.bf16.msra.mxu0 %v18744_v42  ;;  %v18801_v42 = vld [vmem:[#allocation8 + $0x4f8] ss:$56 sps:$4 sm:$0xff]  }
 0x66f   :  { %12894 = vmatprep.subr.bf16.mxu0 %v18752_v15  ;;  %v18809_v15 = vld [vmem:[#allocation8 + $0x56c] ss:$56 sps:$4 sm:$0xff]  }
 0x670   :  { %13164 = vmatpush1.bf16.msra.mxu1 %v18747_v13  ;;  %v18804_v13 = vld [vmem:[#allocation8 + $0x8e0] ss:$56 sps:$4 sm:$0xff]  }
 0x671   :  { %13165 = vmatprep.subr.bf16.mxu1 %v18755_v17  ;;  %v18812_v17 = vld [vmem:[#allocation8 + $0x954] ss:$56 sps:$4 sm:$0xff]  }
 0x672   :  { %12895 = vmatpush1.bf16.msra.mxu0 %v18750_v36  ;;  %v18807_v36 = vld [vmem:[#allocation8 + $0x568] ss:$56 sps:$4 sm:$0xff]  }
 0x673   :  { %12896 = vmatprep.subr.bf16.mxu0 %v18758_v41  ;;  %v18815_v41 = vld [vmem:[#allocation8 + $0x5dc] ss:$56 sps:$4 sm:$0xff]  }
 0x674   :  { %13166 = vmatpush1.bf16.msra.mxu1 %v18753_v23  ;;  %v18810_v23 = vld [vmem:[#allocation8 + $0x950] ss:$56 sps:$4 sm:$0xff]  }
 0x675   :  { %13167 = vmatprep.subr.bf16.mxu1 %v18761_v25  ;;  %v18818_v25 = vld [vmem:[#allocation8 + $0x9c4] ss:$56 sps:$4 sm:$0xff]  }
 0x676   :  { %12897 = vmatpush1.bf16.msra.mxu0 %v18756_v46  ;;  %v18813_v46 = vld [vmem:[#allocation8 + $0x5d8] ss:$56 sps:$4 sm:$0xff]  }
 0x677   :  { %12898 = vmatprep.subr.bf16.mxu0 %v18764_v50  ;;  %v18821_v50 = vld [vmem:[#allocation8 + $0x64c] ss:$56 sps:$4 sm:$0xff]  }
 0x678   :  { %13168 = vmatpush1.bf16.msra.mxu1 %v18759_v14  ;;  %v18816_v14 = vld [vmem:[#allocation8 + $0x9c0] ss:$56 sps:$4 sm:$0xff]  }
 0x679   :  { %13169 = vmatprep.subr.bf16.mxu1 %v18767_v7  ;;  %v18824_v7 = vld [vmem:[#allocation8 + $0xa34] ss:$56 sps:$4 sm:$0xff]  }
 0x67a   :  { %12899 = vmatpush1.bf16.msra.mxu0 %v18762_v47  ;;  %v18819_v47 = vld [vmem:[#allocation8 + $0x648] ss:$56 sps:$4 sm:$0xff]  }
 0x67b   :  { %12900 = vmatprep.subr.bf16.mxu0 %v18770_v52  ;;  %v18827_v52 = vld [vmem:[#allocation8 + $0x6bc] ss:$56 sps:$4 sm:$0xff]  }
 0x67c   :  { %13170 = vmatpush1.bf16.msra.mxu1 %v18765_v45  ;;  %v18822_v45 = vld [vmem:[#allocation8 + $0xa30] ss:$56 sps:$4 sm:$0xff]  }
 0x67d   :  { %13171 = vmatprep.subr.bf16.mxu1 %v18773_v20  ;;  %v18830_v20 = vld [vmem:[#allocation8 + $0xaa4] ss:$56 sps:$4 sm:$0xff]  }
 0x67e   :  { %12901 = vmatpush1.bf16.msra.mxu0 %v18768_v27  ;;  %v18825_v27 = vld [vmem:[#allocation8 + $0x6b8] ss:$56 sps:$4 sm:$0xff]  }
 0x67f   :  { %12902 = vmatprep.subr.bf16.mxu0 %v18776_v29  ;;  %v18833_v29 = vld [vmem:[#allocation8 + $0x72c] ss:$56 sps:$4 sm:$0xff]  }
 0x680   :  { %13172 = vmatpush1.bf16.msra.mxu1 %v18771_v30  ;;  %v18828_v30 = vld [vmem:[#allocation8 + $0xaa0] ss:$56 sps:$4 sm:$0xff]  }
 0x681   :  { %13173 = vmatprep.subr.bf16.mxu1 %v18779_v31  ;;  %v18836_v31 = vld [vmem:[#allocation8 + $0xb14] ss:$56 sps:$4 sm:$0xff]  }
 0x682   :  { %12903 = vmatpush1.bf16.msra.mxu0 %v18774_v32  ;;  %v18831_v32 = vld [vmem:[#allocation8 + $0x728] ss:$56 sps:$4 sm:$0xff]  }
 0x683   :  { %12913 = vmatprep.subr.bf16.mxu0 %v18782_v34  ;;  %v18839_v34 = vld [vmem:[#allocation8 + $0x79c] ss:$56 sps:$4 sm:$0xff]  }
 0x684   :  { %13174 = vmatpush1.bf16.msra.mxu1 %v18777_v37  ;;  %v18834_v37 = vld [vmem:[#allocation8 + $0xb10] ss:$56 sps:$4 sm:$0xff]  }
 0x685   :  { %12905 = vmatmul.mubr.bf16.vlgmr.msra.gmra.mrb[20].mxu0 %v20345_v24  ;;  %13175 = vmatprep.subr.bf16.mxu1 %v18785_v40  ;;  %v18842_v40 = vld [vmem:[#allocation8 + $0xb84] ss:$56 sps:$4 sm:$0xff]  }
 0x686   :  { %12914 = vmatpush1.bf16.msra.mxu0 %v18780_v53  ;;  %12945 = vmatprep.mubr.bf16.mxu0 %v20349_v6  ;;  %v18837_v53 = vld [vmem:[#allocation8 + $0x798] ss:$56 sps:$4 sm:$0xff]  }
 0x687   :  { %12915 = vmatprep.subr.bf16.mxu0 %v18788_v57  ;;  %v18845_v57 = vld [vmem:[#allocation8 + $0x80c] ss:$56 sps:$4 sm:$0xff]  }
 0x688   :  { %13176 = vmatpush1.bf16.msra.mxu1 %v18783_v33  ;;  %v18840_v33 = vld [vmem:[#allocation8 + $0xb80] ss:$56 sps:$4 sm:$0xff]  }
 0x689   :  { %13177 = vmatprep.subr.bf16.mxu1 %v18791_v26  ;;  %v18848_v26 = vld [vmem:[#allocation8 + $0xbf4] ss:$56 sps:$4 sm:$0xff]  }
 0x68a   :  { %12916 = vmatpush1.bf16.msra.mxu0 %v18786_v3  ;;  %v18843_v3 = vld [vmem:[#allocation8 + $0x808] ss:$56 sps:$4 sm:$0xff]  }
 0x68b   :  { %12917 = vmatprep.subr.bf16.mxu0 %v18794_v62  ;;  %v18851_v62 = vld [vmem:[#allocation8 + $0x87c] ss:$56 sps:$4 sm:$0xff]  }
 0x68c   :  { %13178 = vmatpush1.bf16.msra.mxu1 %v18789_v63  ;;  %v18846_v63 = vld [vmem:[#allocation8 + $0xbf0] ss:$56 sps:$4 sm:$0xff]  }
 0x68d   :  { %13179 = vmatprep.subr.bf16.mxu1 %v18797_v0  ;;  %v18854_v0 = vld [vmem:[#allocation8 + $0xc64] ss:$56 sps:$4 sm:$0xff]  }
 0x68e   :  { %12918 = vmatpush1.bf16.msra.mxu0 %v18792_v1  ;;  %v18849_v1 = vld [vmem:[#allocation8 + $0x878] ss:$56 sps:$4 sm:$0xff]  }
 0x68f   :  { %12919 = vmatprep.subr.bf16.mxu0 %v18800_v2  ;;  %v18857_v2 = vld [vmem:[#allocation8 + $0x8ec] ss:$56 sps:$4 sm:$0xff]  }
 0x690   :  { %13180 = vmatpush1.bf16.msra.mxu1 %v18795_v8  ;;  %v18852_v8 = vld [vmem:[#allocation8 + $0xc60] ss:$56 sps:$4 sm:$0xff]  }
 0x691   :  { %13181 = vmatprep.subr.bf16.mxu1 %v18803_v10  ;;  %v18860_v10 = vld [vmem:[#allocation8 + $0xcd4] ss:$56 sps:$4 sm:$0xff]  }
 0x692   :  { %12920 = vmatpush1.bf16.msra.mxu0 %v18798_v5  ;;  %v18855_v5 = vld [vmem:[#allocation8 + $0x8e8] ss:$56 sps:$4 sm:$0xff]  }
 0x693   :  { %12921 = vmatprep.subr.bf16.mxu0 %v18806_v9  ;;  %v18863_v9 = vld [vmem:[#allocation8 + $0x95c] ss:$56 sps:$4 sm:$0xff]  }
 0x694   :  { %13182 = vmatpush1.bf16.msra.mxu1 %v18801_v42  ;;  %v18858_v42 = vld [vmem:[#allocation8 + $0xcd0] ss:$56 sps:$4 sm:$0xff]  }
 0x695   :  { %13183 = vmatprep.subr.bf16.mxu1 %v18809_v15  ;;  %v18866_v15 = vld [vmem:[#allocation8 + $0xd44] ss:$56 sps:$4 sm:$0xff]  }
 0x696   :  { %12922 = vmatpush1.bf16.msra.mxu0 %v18804_v13  ;;  %v18861_v13 = vld [vmem:[#allocation8 + $0x958] ss:$56 sps:$4 sm:$0xff]  }
 0x697   :  { %12923 = vmatprep.subr.bf16.mxu0 %v18812_v17  ;;  %v18869_v17 = vld [vmem:[#allocation8 + $0x9cc] ss:$56 sps:$4 sm:$0xff]  }
 0x698   :  { %13184 = vmatpush1.bf16.msra.mxu1 %v18807_v36  ;;  %v18864_v36 = vld [vmem:[#allocation8 + $0xd40] ss:$56 sps:$4 sm:$0xff]  }
 0x699   :  { %13185 = vmatprep.subr.bf16.mxu1 %v18815_v41  ;;  %v18872_v41 = vld [vmem:[#allocation8 + $0xdb4] ss:$56 sps:$4 sm:$0xff]  }
 0x69a   :  { %12924 = vmatpush1.bf16.msra.mxu0 %v18810_v23  ;;  %v18867_v23 = vld [vmem:[#allocation8 + $0x9c8] ss:$56 sps:$4 sm:$0xff]  }
 0x69b   :  { %12925 = vmatprep.subr.bf16.mxu0 %v18818_v25  ;;  %v18875_v25 = vld [vmem:[#allocation8 + $0xa3c] ss:$56 sps:$4 sm:$0xff]  }
 0x69c   :  { %13186 = vmatpush1.bf16.msra.mxu1 %v18813_v46  ;;  %v18870_v46 = vld [vmem:[#allocation8 + $0xdb0] ss:$56 sps:$4 sm:$0xff]  }
 0x69d   :  { %13187 = vmatprep.subr.bf16.mxu1 %v18821_v50  ;;  %v18878_v50 = vld [vmem:[#allocation8 + $0xe24] ss:$56 sps:$4 sm:$0xff]  }
 0x69e   :  { %12926 = vmatpush1.bf16.msra.mxu0 %v18816_v14  ;;  %v18873_v14 = vld [vmem:[#allocation8 + $0xa38] ss:$56 sps:$4 sm:$0xff]  }
 0x69f   :  { %12927 = vmatprep.subr.bf16.mxu0 %v18824_v7  ;;  %v18881_v7 = vld [vmem:[#allocation8 + $0xaac] ss:$56 sps:$4 sm:$0xff]  }
 0x6a0   :  { %13188 = vmatpush1.bf16.msra.mxu1 %v18819_v47  ;;  %v18876_v47 = vld [vmem:[#allocation8 + $0xe20] ss:$56 sps:$4 sm:$0xff]  }
 0x6a1   :  { %13189 = vmatprep.subr.bf16.mxu1 %v18827_v52  ;;  %v18884_v52 = vld [vmem:[#allocation8 + $0xe94] ss:$56 sps:$4 sm:$0xff]  }
 0x6a2   :  { %12928 = vmatpush1.bf16.msra.mxu0 %v18822_v45  ;;  %v18879_v45 = vld [vmem:[#allocation8 + $0xaa8] ss:$56 sps:$4 sm:$0xff]  }
 0x6a3   :  { %12929 = vmatprep.subr.bf16.mxu0 %v18830_v20  ;;  %v18887_v20 = vld [vmem:[#allocation8 + $0xb1c] ss:$56 sps:$4 sm:$0xff]  }
 0x6a4   :  { %13190 = vmatpush1.bf16.msra.mxu1 %v18825_v27  ;;  %v18882_v27 = vld [vmem:[#allocation8 + $0xe90] ss:$56 sps:$4 sm:$0xff]  }
 0x6a5   :  { %13200 = vmatprep.subr.bf16.mxu1 %v18833_v29  ;;  %v18890_v29 = vld [vmem:[#allocation8 + $0xf04] ss:$56 sps:$4 sm:$0xff]  }
 0x6a6   :  { %12930 = vmatpush1.bf16.msra.mxu0 %v18828_v30  ;;  %v18885_v30 = vld [vmem:[#allocation8 + $0xb18] ss:$56 sps:$4 sm:$0xff]  }
 0x6a7   :  { %13192 = vmatmul.mubr.bf16.vlgmr.msra.gmra.mrb[28].mxu1 %v20345_v24  ;;  %12931 = vmatprep.subr.bf16.mxu0 %v18836_v31  ;;  %v18893_v31 = vld [vmem:[#allocation8 + $0xb8c] ss:$56 sps:$4 sm:$0xff]  }
 0x6a8   :  { %13201 = vmatpush1.bf16.msra.mxu1 %v18831_v32  ;;  %13232 = vmatprep.mubr.bf16.mxu1 %v20349_v6  ;;  %v18888_v32 = vld [vmem:[#allocation8 + $0xf00] ss:$56 sps:$4 sm:$0xff]  }
 0x6a9   :  { %13202 = vmatprep.subr.bf16.mxu1 %v18839_v34  ;;  %v18896_v34 = vld [vmem:[#allocation8 + $0xf74] ss:$56 sps:$4 sm:$0xff]  }
 0x6aa   :  { %12932 = vmatpush1.bf16.msra.mxu0 %v18834_v37  ;;  %v18891_v37 = vld [vmem:[#allocation8 + $0xb88] ss:$56 sps:$4 sm:$0xff]  }
 0x6ab   :  { %12933 = vmatprep.subr.bf16.mxu0 %v18842_v40  ;;  %v18899_v40 = vld [vmem:[#allocation8 + $0xbfc] ss:$56 sps:$4 sm:$0xff]  }
 0x6ac   :  { %13203 = vmatpush1.bf16.msra.mxu1 %v18837_v53  ;;  %v18894_v53 = vld [vmem:[#allocation8 + $0xf70] ss:$56 sps:$4 sm:$0xff]  }
 0x6ad   :  { %13204 = vmatprep.subr.bf16.mxu1 %v18845_v57  ;;  %v18902_v57 = vld [vmem:[#allocation8 + $0xfe4] ss:$56 sps:$4 sm:$0xff]  }
 0x6ae   :  { %12934 = vmatpush1.bf16.msra.mxu0 %v18840_v33  ;;  %v18897_v33 = vld [vmem:[#allocation8 + $0xbf8] ss:$56 sps:$4 sm:$0xff]  }
 0x6af   :  { %12935 = vmatprep.subr.bf16.mxu0 %v18848_v26  ;;  %v18905_v26 = vld [vmem:[#allocation8 + $0xc6c] ss:$56 sps:$4 sm:$0xff]  }
 0x6b0   :  { %13205 = vmatpush1.bf16.msra.mxu1 %v18843_v3  ;;  %v18900_v3 = vld [vmem:[#allocation8 + $0xfe0] ss:$56 sps:$4 sm:$0xff]  }
 0x6b1   :  { %13206 = vmatprep.subr.bf16.mxu1 %v18851_v62  ;;  %v18908_v62 = vld [vmem:[#allocation8 + $0x1054] ss:$56 sps:$4 sm:$0xff]  }
 0x6b2   :  { %12936 = vmatpush1.bf16.msra.mxu0 %v18846_v63  ;;  %v18903_v63 = vld [vmem:[#allocation8 + $0xc68] ss:$56 sps:$4 sm:$0xff]  }
 0x6b3   :  { %12937 = vmatprep.subr.bf16.mxu0 %v18854_v0  ;;  %v18911_v0 = vld [vmem:[#allocation8 + $0xcdc] ss:$56 sps:$4 sm:$0xff]  }
 0x6b4   :  { %13207 = vmatpush1.bf16.msra.mxu1 %v18849_v1  ;;  %v18906_v1 = vld [vmem:[#allocation8 + $0x1050] ss:$56 sps:$4 sm:$0xff]  }
 0x6b5   :  { %13208 = vmatprep.subr.bf16.mxu1 %v18857_v2  ;;  %v18914_v2 = vld [vmem:[#allocation8 + $0x10c4] ss:$56 sps:$4 sm:$0xff]  }
 0x6b6   :  { %12938 = vmatpush1.bf16.msra.mxu0 %v18852_v8  ;;  %v18909_v8 = vld [vmem:[#allocation8 + $0xcd8] ss:$56 sps:$4 sm:$0xff]  }
 0x6b7   :  { %12939 = vmatprep.subr.bf16.mxu0 %v18860_v10  ;;  %v18917_v10 = vld [vmem:[#allocation8 + $0xd4c] ss:$56 sps:$4 sm:$0xff]  }
 0x6b8   :  { %13209 = vmatpush1.bf16.msra.mxu1 %v18855_v5  ;;  %v18912_v5 = vld [vmem:[#allocation8 + $0x10c0] ss:$56 sps:$4 sm:$0xff]  }
 0x6b9   :  { %13210 = vmatprep.subr.bf16.mxu1 %v18863_v9  ;;  %v18920_v9 = vld [vmem:[#allocation8 + $0x1134] ss:$56 sps:$4 sm:$0xff]  }
 0x6ba   :  { %12940 = vmatpush1.bf16.msra.mxu0 %v18858_v42  ;;  %v18915_v42 = vld [vmem:[#allocation8 + $0xd48] ss:$56 sps:$4 sm:$0xff]  }
 0x6bb   :  { %12941 = vmatprep.subr.bf16.mxu0 %v18866_v15  ;;  %v18923_v15 = vld [vmem:[#allocation8 + $0xdbc] ss:$56 sps:$4 sm:$0xff]  }
 0x6bc   :  { %13211 = vmatpush1.bf16.msra.mxu1 %v18861_v13  ;;  %v18918_v13 = vld [vmem:[#allocation8 + $0x1130] ss:$56 sps:$4 sm:$0xff]  }
 0x6bd   :  { %13212 = vmatprep.subr.bf16.mxu1 %v18869_v17  ;;  %v18926_v17 = vld [vmem:[#allocation8 + $0x11a4] ss:$56 sps:$4 sm:$0xff]  }
 0x6be   :  { %12942 = vmatpush1.bf16.msra.mxu0 %v18864_v36  ;;  %v18921_v36 = vld [vmem:[#allocation8 + $0xdb8] ss:$56 sps:$4 sm:$0xff]  }
 0x6bf   :  { %12943 = vmatprep.subr.bf16.mxu0 %v18872_v41  ;;  %v18929_v41 = vld [vmem:[#allocation8 + $0xe2c] ss:$56 sps:$4 sm:$0xff]  }
 0x6c0   :  { %13213 = vmatpush1.bf16.msra.mxu1 %v18867_v23  ;;  %v18924_v23 = vld [vmem:[#allocation8 + $0x11a0] ss:$56 sps:$4 sm:$0xff]  }
 0x6c1   :  { %13214 = vmatprep.subr.bf16.mxu1 %v18875_v25  ;;  %v18932_v25 = vld [vmem:[#allocation8 + $0x1214] ss:$56 sps:$4 sm:$0xff]  }
 0x6c2   :  { %12944 = vmatpush1.bf16.msra.mxu0 %v18870_v46  ;;  %v18927_v46 = vld [vmem:[#allocation8 + $0xe28] ss:$56 sps:$4 sm:$0xff]  }
 0x6c3   :  { %12954 = vmatprep.subr.bf16.mxu0 %v18878_v50  ;;  %v18935_v50 = vld [vmem:[#allocation8 + $0xe9c] ss:$56 sps:$4 sm:$0xff]  }
 0x6c4   :  { %13215 = vmatpush1.bf16.msra.mxu1 %v18873_v14  ;;  %v18930_v14 = vld [vmem:[#allocation8 + $0x1210] ss:$56 sps:$4 sm:$0xff]  }
 0x6c5   :  { %12946 = vmatmul.mubr.bf16.vlgmr.msra.gmra.mrb[20].mxu0 %v20375_v35  ;;  %13216 = vmatprep.subr.bf16.mxu1 %v18881_v7  ;;  %v18938_v7 = vld [vmem:[#allocation8 + $0x1284] ss:$56 sps:$4 sm:$0xff]  }
 0x6c6   :  { %12955 = vmatpush1.bf16.msra.mxu0 %v18876_v47  ;;  %12986 = vmatprep.mubr.bf16.mxu0 %v20371_v21  ;;  %v18933_v47 = vld [vmem:[#allocation8 + $0xe98] ss:$56 sps:$4 sm:$0xff]  }
 0x6c7   :  { %12956 = vmatprep.subr.bf16.mxu0 %v18884_v52  ;;  %v18941_v52 = vld [vmem:[#allocation8 + $0xf0c] ss:$56 sps:$4 sm:$0xff]  }
 0x6c8   :  { %13217 = vmatpush1.bf16.msra.mxu1 %v18879_v45  ;;  %v18936_v45 = vld [vmem:[#allocation8 + $0x1280] ss:$56 sps:$4 sm:$0xff]  }
 0x6c9   :  { %13218 = vmatprep.subr.bf16.mxu1 %v18887_v20  ;;  %v18944_v20 = vld [vmem:[#allocation8 + $0x12f4] ss:$56 sps:$4 sm:$0xff]  }
 0x6ca   :  { %12957 = vmatpush1.bf16.msra.mxu0 %v18882_v27  ;;  %v18939_v27 = vld [vmem:[#allocation8 + $0xf08] ss:$56 sps:$4 sm:$0xff]  }
 0x6cb   :  { %12958 = vmatprep.subr.bf16.mxu0 %v18890_v29  ;;  %v18947_v29 = vld [vmem:[#allocation8 + $0xf7c] ss:$56 sps:$4 sm:$0xff]  }
 0x6cc   :  { %13219 = vmatpush1.bf16.msra.mxu1 %v18885_v30  ;;  %v18942_v30 = vld [vmem:[#allocation8 + $0x12f0] ss:$56 sps:$4 sm:$0xff]  }
 0x6cd   :  { %13220 = vmatprep.subr.bf16.mxu1 %v18893_v31  ;;  %v18950_v31 = vld [vmem:[#allocation8 + $0x1364] ss:$56 sps:$4 sm:$0xff]  }
 0x6ce   :  { %12959 = vmatpush1.bf16.msra.mxu0 %v18888_v32  ;;  %v18945_v32 = vld [vmem:[#allocation8 + $0xf78] ss:$56 sps:$4 sm:$0xff]  }
 0x6cf   :  { %12960 = vmatprep.subr.bf16.mxu0 %v18896_v34  ;;  %v18953_v34 = vld [vmem:[#allocation8 + $0xfec] ss:$56 sps:$4 sm:$0xff]  }
 0x6d0   :  { %13221 = vmatpush1.bf16.msra.mxu1 %v18891_v37  ;;  %v18948_v37 = vld [vmem:[#allocation8 + $0x1360] ss:$56 sps:$4 sm:$0xff]  }
 0x6d1   :  { %13222 = vmatprep.subr.bf16.mxu1 %v18899_v40  ;;  %v18956_v40 = vld [vmem:[#allocation8 + $0x13d4] ss:$56 sps:$4 sm:$0xff]  }
 0x6d2   :  { %12961 = vmatpush1.bf16.msra.mxu0 %v18894_v53  ;;  %v18951_v53 = vld [vmem:[#allocation8 + $0xfe8] ss:$56 sps:$4 sm:$0xff]  }
 0x6d3   :  { %12962 = vmatprep.subr.bf16.mxu0 %v18902_v57  ;;  %v18959_v57 = vld [vmem:[#allocation8 + $0x105c] ss:$56 sps:$4 sm:$0xff]  }
 0x6d4   :  { %13223 = vmatpush1.bf16.msra.mxu1 %v18897_v33  ;;  %v18954_v33 = vld [vmem:[#allocation8 + $0x13d0] ss:$56 sps:$4 sm:$0xff]  }
 0x6d5   :  { %13224 = vmatprep.subr.bf16.mxu1 %v18905_v26  ;;  %v18962_v26 = vld [vmem:[#allocation8 + $0x1444] ss:$56 sps:$4 sm:$0xff]  }
 0x6d6   :  { %12963 = vmatpush1.bf16.msra.mxu0 %v18900_v3  ;;  %v18957_v3 = vld [vmem:[#allocation8 + $0x1058] ss:$56 sps:$4 sm:$0xff]  }
 0x6d7   :  { %12964 = vmatprep.subr.bf16.mxu0 %v18908_v62  ;;  %v18965_v62 = vld [vmem:[#allocation8 + $0x10cc] ss:$56 sps:$4 sm:$0xff]  }
 0x6d8   :  { %13225 = vmatpush1.bf16.msra.mxu1 %v18903_v63  ;;  %v18960_v63 = vld [vmem:[#allocation8 + $0x1440] ss:$56 sps:$4 sm:$0xff]  }
 0x6d9   :  { %13226 = vmatprep.subr.bf16.mxu1 %v18911_v0  ;;  %v18968_v0 = vld [vmem:[#allocation8 + $0x14b4] ss:$56 sps:$4 sm:$0xff]  }
 0x6da   :  { %12965 = vmatpush1.bf16.msra.mxu0 %v18906_v1  ;;  %v18963_v1 = vld [vmem:[#allocation8 + $0x10c8] ss:$56 sps:$4 sm:$0xff]  }
 0x6db   :  { %12966 = vmatprep.subr.bf16.mxu0 %v18914_v2  ;;  %v18971_v2 = vld [vmem:[#allocation8 + $0x113c] ss:$56 sps:$4 sm:$0xff]  }
 0x6dc   :  { %13227 = vmatpush1.bf16.msra.mxu1 %v18909_v8  ;;  %v18966_v8 = vld [vmem:[#allocation8 + $0x14b0] ss:$56 sps:$4 sm:$0xff]  }
 0x6dd   :  { %13228 = vmatprep.subr.bf16.mxu1 %v18917_v10  ;;  %v18974_v10 = vld [vmem:[#allocation8 + $0x1524] ss:$56 sps:$4 sm:$0xff]  }
 0x6de   :  { %12967 = vmatpush1.bf16.msra.mxu0 %v18912_v5  ;;  %v18969_v5 = vld [vmem:[#allocation8 + $0x1138] ss:$56 sps:$4 sm:$0xff]  }
 0x6df   :  { %12968 = vmatprep.subr.bf16.mxu0 %v18920_v9  ;;  %v18977_v9 = vld [vmem:[#allocation8 + $0x11ac] ss:$56 sps:$4 sm:$0xff]  }
 0x6e0   :  { %13229 = vmatpush1.bf16.msra.mxu1 %v18915_v42  ;;  %v18972_v42 = vld [vmem:[#allocation8 + $0x1520] ss:$56 sps:$4 sm:$0xff]  }
 0x6e1   :  { %13230 = vmatprep.subr.bf16.mxu1 %v18923_v15  ;;  %v18980_v15 = vld [vmem:[#allocation8 + $0x1594] ss:$56 sps:$4 sm:$0xff]  }
 0x6e2   :  { %12969 = vmatpush1.bf16.msra.mxu0 %v18918_v13  ;;  %v18975_v13 = vld [vmem:[#allocation8 + $0x11a8] ss:$56 sps:$4 sm:$0xff]  }
 0x6e3   :  { %12970 = vmatprep.subr.bf16.mxu0 %v18926_v17  ;;  %v18983_v17 = vld [vmem:[#allocation8 + $0x121c] ss:$56 sps:$4 sm:$0xff]  }
 0x6e4   :  { %13231 = vmatpush1.bf16.msra.mxu1 %v18921_v36  ;;  %v18978_v36 = vld [vmem:[#allocation8 + $0x1590] ss:$56 sps:$4 sm:$0xff]  }
 0x6e5   :  { %13241 = vmatprep.subr.bf16.mxu1 %v18929_v41  ;;  %v18986_v41 = vld [vmem:[#allocation8 + $0x1604] ss:$56 sps:$4 sm:$0xff]  }
 0x6e6   :  { %12971 = vmatpush1.bf16.msra.mxu0 %v18924_v23  ;;  %v18981_v23 = vld [vmem:[#allocation8 + $0x1218] ss:$56 sps:$4 sm:$0xff]  }
 0x6e7   :  { %13233 = vmatmul.mubr.bf16.vlgmr.msra.gmra.mrb[28].mxu1 %v20375_v35  ;;  %12972 = vmatprep.subr.bf16.mxu0 %v18932_v25  ;;  %v18989_v25 = vld [vmem:[#allocation8 + $0x128c] ss:$56 sps:$4 sm:$0xff]  }
 0x6e8   :  { %13242 = vmatpush1.bf16.msra.mxu1 %v18927_v46  ;;  %13273 = vmatprep.mubr.bf16.mxu1 %v20371_v21  ;;  %v18984_v46 = vld [vmem:[#allocation8 + $0x1600] ss:$56 sps:$4 sm:$0xff]  }
 0x6e9   :  { %13243 = vmatprep.subr.bf16.mxu1 %v18935_v50  ;;  %v18992_v50 = vld [vmem:[#allocation8 + $0x1674] ss:$56 sps:$4 sm:$0xff]  }
 0x6ea   :  { %12973 = vmatpush1.bf16.msra.mxu0 %v18930_v14  ;;  %v18987_v14 = vld [vmem:[#allocation8 + $0x1288] ss:$56 sps:$4 sm:$0xff]  }
 0x6eb   :  { %12974 = vmatprep.subr.bf16.mxu0 %v18938_v7  ;;  %v18995_v7 = vld [vmem:[#allocation8 + $0x12fc] ss:$56 sps:$4 sm:$0xff]  }
 0x6ec   :  { %13244 = vmatpush1.bf16.msra.mxu1 %v18933_v47  ;;  %v18990_v47 = vld [vmem:[#allocation8 + $0x1670] ss:$56 sps:$4 sm:$0xff]  }
 0x6ed   :  { %13245 = vmatprep.subr.bf16.mxu1 %v18941_v52  ;;  %v18998_v52 = vld [vmem:[#allocation8 + $0x16e4] ss:$56 sps:$4 sm:$0xff]  }
 0x6ee   :  { %12975 = vmatpush1.bf16.msra.mxu0 %v18936_v45  ;;  %v18993_v45 = vld [vmem:[#allocation8 + $0x12f8] ss:$56 sps:$4 sm:$0xff]  }
 0x6ef   :  { %12976 = vmatprep.subr.bf16.mxu0 %v18944_v20  ;;  %v19001_v20 = vld [vmem:[#allocation8 + $0x136c] ss:$56 sps:$4 sm:$0xff]  }
 0x6f0   :  { %13246 = vmatpush1.bf16.msra.mxu1 %v18939_v27  ;;  %v18996_v27 = vld [vmem:[#allocation8 + $0x16e0] ss:$56 sps:$4 sm:$0xff]  }
 0x6f1   :  { %13247 = vmatprep.subr.bf16.mxu1 %v18947_v29  ;;  %v19004_v29 = vld [vmem:[#allocation8 + $0x1754] ss:$56 sps:$4 sm:$0xff]  }
 0x6f2   :  { %12977 = vmatpush1.bf16.msra.mxu0 %v18942_v30  ;;  %v18999_v30 = vld [vmem:[#allocation8 + $0x1368] ss:$56 sps:$4 sm:$0xff]  }
 0x6f3   :  { %12978 = vmatprep.subr.bf16.mxu0 %v18950_v31  ;;  %v19007_v31 = vld [vmem:[#allocation8 + $0x13dc] ss:$56 sps:$4 sm:$0xff]  }
 0x6f4   :  { %13248 = vmatpush1.bf16.msra.mxu1 %v18945_v32  ;;  %v19002_v32 = vld [vmem:[#allocation8 + $0x1750] ss:$56 sps:$4 sm:$0xff]  }
 0x6f5   :  { %13249 = vmatprep.subr.bf16.mxu1 %v18953_v34  ;;  %v19010_v34 = vld [vmem:[#allocation8 + $0x17c4] ss:$56 sps:$4 sm:$0xff]  }
 0x6f6   :  { %12979 = vmatpush1.bf16.msra.mxu0 %v18948_v37 }
 0x6f7   :  { %12980 = vmatprep.subr.bf16.mxu0 %v18956_v40  ;;  %v19005_v40 = vld [vmem:[#allocation8 + $0x13d8] ss:$56 sps:$4 sm:$0xff]  }
 0x6f8   :  { %13250 = vmatpush1.bf16.msra.mxu1 %v18951_v53 }
 0x6f9   :  { %13251 = vmatprep.subr.bf16.mxu1 %v18959_v57  ;;  %v19013_v57 = vld [vmem:[#allocation8 + $0x144c] ss:$56 sps:$4 sm:$0xff]  }
 0x6fa   :  { %12981 = vmatpush1.bf16.msra.mxu0 %v18954_v33 }
 0x6fb   :  { %12982 = vmatprep.subr.bf16.mxu0 %v18962_v26  ;;  %v19008_v26 = vld [vmem:[#allocation8 + $0x17c0] ss:$56 sps:$4 sm:$0xff]  }
 0x6fc   :  { %13252 = vmatpush1.bf16.msra.mxu1 %v18957_v3 }
 0x6fd   :  { %13253 = vmatprep.subr.bf16.mxu1 %v18965_v62  ;;  %v19016_v62 = vld [vmem:[#allocation8 + $0x1834] ss:$56 sps:$4 sm:$0xff]  }
 0x6fe   :  { %12983 = vmatpush1.bf16.msra.mxu0 %v18960_v63  ;;  %v19011_v63 = vld [vmem:[#allocation8 + $0x1448] ss:$56 sps:$4 sm:$0xff]  }
 0x6ff   :  { %12984 = vmatprep.subr.bf16.mxu0 %v18968_v0  ;;  %v19019_v0 = vld [vmem:[#allocation8 + $0x14bc] ss:$56 sps:$4 sm:$0xff]  }
 0x700   :  { %13254 = vmatpush1.bf16.msra.mxu1 %v18963_v1  ;;  %v19014_v1 = vld [vmem:[#allocation8 + $0x1830] ss:$56 sps:$4 sm:$0xff]  }
 0x701   :  { %13255 = vmatprep.subr.bf16.mxu1 %v18971_v2  ;;  %v19022_v2 = vld [vmem:[#allocation8 + $0x18a4] ss:$56 sps:$4 sm:$0xff]  }
 0x702   :  { %12985 = vmatpush1.bf16.msra.mxu0 %v18966_v8  ;;  %v19017_v8 = vld [vmem:[#allocation8 + $0x14b8] ss:$56 sps:$4 sm:$0xff]  }
 0x703   :  { %12995 = vmatprep.subr.bf16.mxu0 %v18974_v10  ;;  %v19025_v10 = vld [vmem:[#allocation8 + $0x152c] ss:$56 sps:$4 sm:$0xff]  }
 0x704   :  { %13256 = vmatpush1.bf16.msra.mxu1 %v18969_v5  ;;  %v19020_v5 = vld [vmem:[#allocation8 + $0x18a0] ss:$56 sps:$4 sm:$0xff]  }
 0x705   :  { %12987 = vmatmul.mubr.bf16.vlgmr.msra.gmra.mrb[20].mxu0 %v20399_v18  ;;  %13257 = vmatprep.subr.bf16.mxu1 %v18977_v9  ;;  %v19028_v9 = vld [vmem:[#allocation8 + $0x1914] ss:$56 sps:$4 sm:$0xff]  }
 0x706   :  { %12996 = vmatpush1.bf16.msra.mxu0 %v18972_v42  ;;  %13027 = vmatprep.mubr.bf16.mxu0 %v20403_v22  ;;  %v19023_v42 = vld [vmem:[#allocation8 + $0x1528] ss:$56 sps:$4 sm:$0xff]  }
 0x707   :  { %12997 = vmatprep.subr.bf16.mxu0 %v18980_v15  ;;  %v19031_v15 = vld [vmem:[#allocation8 + $0x159c] ss:$56 sps:$4 sm:$0xff]  }
 0x708   :  { %13258 = vmatpush1.bf16.msra.mxu1 %v18975_v13  ;;  %v19026_v13 = vld [vmem:[#allocation8 + $0x1910] ss:$56 sps:$4 sm:$0xff]  }
 0x709   :  { %13259 = vmatprep.subr.bf16.mxu1 %v18983_v17  ;;  %v19034_v17 = vld [vmem:[#allocation8 + $0x1984] ss:$56 sps:$4 sm:$0xff]  }
 0x70a   :  { %12998 = vmatpush1.bf16.msra.mxu0 %v18978_v36  ;;  %v19029_v36 = vld [vmem:[#allocation8 + $0x1598] ss:$56 sps:$4 sm:$0xff]  }
 0x70b   :  { %12999 = vmatprep.subr.bf16.mxu0 %v18986_v41  ;;  %v19037_v41 = vld [vmem:[#allocation8 + $0x160c] ss:$56 sps:$4 sm:$0xff]  }
 0x70c   :  { %13260 = vmatpush1.bf16.msra.mxu1 %v18981_v23  ;;  %v19032_v23 = vld [vmem:[#allocation8 + $0x1980] ss:$56 sps:$4 sm:$0xff]  }
 0x70d   :  { %13261 = vmatprep.subr.bf16.mxu1 %v18989_v25  ;;  %v19040_v25 = vld [vmem:[#allocation8 + $0x19f4] ss:$56 sps:$4 sm:$0xff]  }
 0x70e   :  { %13000 = vmatpush1.bf16.msra.mxu0 %v18984_v46  ;;  %v19035_v46 = vld [vmem:[#allocation8 + $0x1608] ss:$56 sps:$4 sm:$0xff]  }
 0x70f   :  { %13001 = vmatprep.subr.bf16.mxu0 %v18992_v50  ;;  %v19043_v50 = vld [vmem:[#allocation8 + $0x167c] ss:$56 sps:$4 sm:$0xff]  }
 0x710   :  { %13262 = vmatpush1.bf16.msra.mxu1 %v18987_v14  ;;  %v19038_v14 = vld [vmem:[#allocation8 + $0x19f0] ss:$56 sps:$4 sm:$0xff]  }
 0x711   :  { %13263 = vmatprep.subr.bf16.mxu1 %v18995_v7  ;;  %v19046_v7 = vld [vmem:[#allocation8 + $0x1a64] ss:$56 sps:$4 sm:$0xff]  }
 0x712   :  { %13002 = vmatpush1.bf16.msra.mxu0 %v18990_v47  ;;  %v19041_v47 = vld [vmem:[#allocation8 + $0x1678] ss:$56 sps:$4 sm:$0xff]  }
 0x713   :  { %13003 = vmatprep.subr.bf16.mxu0 %v18998_v52  ;;  %v19049_v52 = vld [vmem:[#allocation8 + $0x16ec] ss:$56 sps:$4 sm:$0xff]  }
 0x714   :  { %13264 = vmatpush1.bf16.msra.mxu1 %v18993_v45  ;;  %v19044_v45 = vld [vmem:[#allocation8 + $0x1a60] ss:$56 sps:$4 sm:$0xff]  }
 0x715   :  { %13265 = vmatprep.subr.bf16.mxu1 %v19001_v20  ;;  %v3810_v20 = vld [vmem:[#allocation10] sm:$0xff] }
 0x716   :  { %13004 = vmatpush1.bf16.msra.mxu0 %v18996_v27  ;;  %v19052_v27 = vld [vmem:[#allocation8 + $0x1ad4] ss:$56 sps:$4 sm:$0xff]  }
 0x717   :  { %13005 = vmatprep.subr.bf16.mxu0 %v19004_v29  ;;  %v19047_v29 = vld [vmem:[#allocation8 + $0x16e8] ss:$56 sps:$4 sm:$0xff]  }
 0x718   :  { %v20511_v37 = vpop.f32.mrb[16].mxu0  ;;  %13266 = vmatpush1.bf16.msra.mxu1 %v18999_v30  ;;  %v19055_v30 = vld [vmem:[#allocation8 + $0x175c] ss:$56 sps:$4 sm:$0xff]  }
 0x719   :  { %v20513_v53 = vpop.f32.mrb[17].mxu0  ;;  %13267 = vmatprep.subr.bf16.mxu1 %v19007_v31  ;;  %v3817_v31 = vrot.slane %v3810_v20, %v20264_v58 }
 0x71a   :  { %v12582_v33 = vpop.f32.mrb[18].mxu0  ;;  %13006 = vmatpush1.bf16.msra.mxu0 %v19002_v32  ;;  %v19050_v32 = vld [vmem:[#allocation8 + $0x1ad0] ss:$56 sps:$4 sm:$0xff]  }
 0x71b   :  { %v12583_v3 = vpop.f32.mrb[19].mxu0  ;;  %13007 = vmatprep.subr.bf16.mxu0 %v19010_v34  ;;  %v19058_v34 = vld [vmem:[#allocation8 + $0x1b44] ss:$56 sps:$4 sm:$0xff]  }
 0x71c   :  { %13268 = vmatpush1.bf16.msra.mxu1 %v19005_v40  ;;  %v3845_v40 = vrot.slane %v3810_v20, %v20297_v54  ;;  %v19061_v33 = vld [vmem:[#allocation8 + $0x17cc] ss:$56 sps:$4 sm:$0xff]   ;;  %v19091_v20 = vld [vmem:[#allocation8 + $0x19fc] ss:$56 sps:$4 sm:$0xff]  }
 0x71d   :  { %13269 = vmatprep.subr.bf16.mxu1 %v19013_v57  ;;  %v19053_v57 = vld [vmem:[#allocation8 + $0x1758] ss:$56 sps:$4 sm:$0xff]  }
 0x71e   :  { %13008 = vmatpush1.bf16.msra.mxu0 %v19008_v26  ;;  %v17164_v26 = vadd.f32 %v20475_v38, %v3817_v31  ;;  %v19070_v38 = vld [vmem:[#allocation8 + $0x1c24] ss:$56 sps:$4 sm:$0xff]  }
 0x71f   :  { %13009 = vmatprep.subr.bf16.mxu0 %v19016_v62  ;;  %v19056_v62 = vld [vmem:[#allocation8 + $0x1b40] ss:$56 sps:$4 sm:$0xff]   ;;  %v19097_v31 = vld [vmem:[#allocation8 + $0x1a6c] ss:$56 sps:$4 sm:$0xff]  }
 0x720   :  { %13270 = vmatpush1.bf16.msra.mxu1 %v19011_v63  ;;  %v13733_v54 = vmax.f32 %v17164_v26, 0.0  ;;  %v19106_v26 = vld [vmem:[#allocation8 + $0x1ec4] ss:$56 sps:$4 sm:$0xff]  }
 0x721   :  { %13271 = vmatprep.subr.bf16.mxu1 %v19019_v0  ;;  %v19064_v0 = vld [vmem:[#allocation8 + $0x1bb4] ss:$56 sps:$4 sm:$0xff]  }
 0x722   :  { %13010 = vmatpush1.bf16.msra.mxu0 %v19014_v1 }
 0x723   :  { %13011 = vmatprep.subr.bf16.mxu0 %v19022_v2 }
 0x724   :  { %13272 = vmatpush1.bf16.msra.mxu1 %v19017_v8  ;;  %v19059_v8 = vld [vmem:[#allocation8 + $0x17c8] ss:$56 sps:$4 sm:$0xff]  }
 0x725   :  { %13282 = vmatprep.subr.bf16.mxu1 %v19025_v10 }
 0x726   :  { %13012 = vmatpush1.bf16.msra.mxu0 %v19020_v5  ;;  %v19067_v5 = vld [vmem:[#allocation8 + $0x183c] ss:$56 sps:$4 sm:$0xff]  }
 0x727   :  { %13274 = vmatmul.mubr.bf16.vlgmr.msra.gmra.mrb[28].mxu1 %v20399_v18  ;;  %13013 = vmatprep.subr.bf16.mxu0 %v19028_v9 }
 0x728   :  { %13283 = vmatpush1.bf16.msra.mxu1 %v19023_v42  ;;  %13314 = vmatprep.mubr.bf16.mxu1 %v20403_v22  ;;  %v19062_v42 = vld [vmem:[#allocation8 + $0x1bb0] ss:$56 sps:$4 sm:$0xff]  }
 0x729   :  { %13284 = vmatprep.subr.bf16.mxu1 %v19031_v15 }
 0x72a   :  { %13014 = vmatpush1.bf16.msra.mxu0 %v19026_v13  ;;  %v19065_v13 = vld [vmem:[#allocation8 + $0x1838] ss:$56 sps:$4 sm:$0xff]  }
 0x72b   :  { %13015 = vmatprep.subr.bf16.mxu0 %v19034_v17  ;;  %v19073_v17 = vld [vmem:[#allocation8 + $0x18ac] ss:$56 sps:$4 sm:$0xff]  }
 0x72c   :  { %13285 = vmatpush1.bf16.msra.mxu1 %v19029_v36  ;;  %v19068_v36 = vld [vmem:[#allocation8 + $0x1c20] ss:$56 sps:$4 sm:$0xff]  }
 0x72d   :  { %13286 = vmatprep.subr.bf16.mxu1 %v19037_v41  ;;  %v19076_v41 = vld [vmem:[#allocation8 + $0x1c94] ss:$56 sps:$4 sm:$0xff]  }
 0x72e   :  { %13016 = vmatpush1.bf16.msra.mxu0 %v19032_v23  ;;  %v19071_v23 = vld [vmem:[#allocation8 + $0x18a8] ss:$56 sps:$4 sm:$0xff]  }
 0x72f   :  { %13017 = vmatprep.subr.bf16.mxu0 %v19040_v25  ;;  %v19079_v25 = vld [vmem:[#allocation8 + $0x191c] ss:$56 sps:$4 sm:$0xff]  }
 0x730   :  { %13287 = vmatpush1.bf16.msra.mxu1 %v19035_v46  ;;  %v19074_v46 = vld [vmem:[#allocation8 + $0x1c90] ss:$56 sps:$4 sm:$0xff]  }
 0x731   :  { %13288 = vmatprep.subr.bf16.mxu1 %v19043_v50  ;;  %v19082_v50 = vld [vmem:[#allocation8 + $0x1d04] ss:$56 sps:$4 sm:$0xff]  }
 0x732   :  { %13018 = vmatpush1.bf16.msra.mxu0 %v19038_v14  ;;  %v19077_v14 = vld [vmem:[#allocation8 + $0x1918] ss:$56 sps:$4 sm:$0xff]  }
 0x733   :  { %13019 = vmatprep.subr.bf16.mxu0 %v19046_v7  ;;  %v19085_v7 = vld [vmem:[#allocation8 + $0x198c] ss:$56 sps:$4 sm:$0xff]  }
 0x734   :  { %13289 = vmatpush1.bf16.msra.mxu1 %v19041_v47  ;;  %v19080_v47 = vld [vmem:[#allocation8 + $0x1d00] ss:$56 sps:$4 sm:$0xff]  }
 0x735   :  { %13290 = vmatprep.subr.bf16.mxu1 %v19049_v52  ;;  %v19088_v52 = vld [vmem:[#allocation8 + $0x1d74] ss:$56 sps:$4 sm:$0xff]  }
 0x736   :  { %13020 = vmatpush1.bf16.msra.mxu0 %v19044_v45  ;;  %v19083_v45 = vld [vmem:[#allocation8 + $0x1988] ss:$56 sps:$4 sm:$0xff]  }
 0x737   :  { %13021 = vmatprep.subr.bf16.mxu0 %v19052_v27  ;;  %v19086_v27 = vld [vmem:[#allocation8 + $0x1d70] ss:$56 sps:$4 sm:$0xff]  }
 0x738   :  { %13291 = vmatpush1.bf16.msra.mxu1 %v19047_v29  ;;  %v19094_v29 = vld [vmem:[#allocation8 + $0x1de4] ss:$56 sps:$4 sm:$0xff]  }
 0x739   :  { %13292 = vmatprep.subr.bf16.mxu1 %v19055_v30  ;;  %v19089_v30 = vld [vmem:[#allocation8 + $0x19f8] ss:$56 sps:$4 sm:$0xff]  }
 0x73a   :  { %13022 = vmatpush1.bf16.msra.mxu0 %v19050_v32  ;;  %v20520_v3 = vpop.f32.mrb[24].mxu1  ;;  %v19092_v32 = vld [vmem:[#allocation8 + $0x1de0] ss:$56 sps:$4 sm:$0xff]  }
 0x73b   :  { %v12867_v63 = vpop.f32.mrb[25].mxu1  ;;  %13023 = vmatprep.subr.bf16.mxu0 %v19058_v34  ;;  %v19100_v34 = vld [vmem:[#allocation8 + $0x1e54] ss:$56 sps:$4 sm:$0xff]  }
 0x73c   :  { %v17171_v1 = vadd.f32 %v12867_v63, %v3845_v40  ;;  %v12869_v2 = vpop.f32.mrb[26].mxu1  ;;  %13293 = vmatpush1.bf16.msra.mxu1 %v19053_v57  ;;  %v19095_v40 = vld [vmem:[#allocation8 + $0x1a68] ss:$56 sps:$4 sm:$0xff]   ;;  %v19103_v57 = vld [vmem:[#allocation8 + $0x1adc] ss:$56 sps:$4 sm:$0xff]  }
 0x73d   :  { %v12870_v10 = vpop.f32.mrb[27].mxu1  ;;  %13294 = vmatprep.subr.bf16.mxu1 %v19061_v33  ;;  %v19098_v33 = vld [vmem:[#allocation8 + $0x1e50] ss:$56 sps:$4 sm:$0xff]   ;;  %v19109_v63 = vld [vmem:[#allocation8 + $0x1b4c] ss:$56 sps:$4 sm:$0xff]  }
 0x73e   :  { %v13740_v9 = vmax.f32 %v17171_v1, 0.0  ;;  %13024 = vmatpush1.bf16.msra.mxu0 %v19056_v62  ;;  %v19101_v62 = vld [vmem:[#allocation8 + $0x1ad8] ss:$56 sps:$4 sm:$0xff]   ;;  %v19112_v1 = vld [vmem:[#allocation8 + $0x1f34] ss:$56 sps:$4 sm:$0xff]  }
 0x73f   :  { %13025 = vmatprep.subr.bf16.mxu0 %v19064_v0  ;;  %v19104_v0 = vld [vmem:[#allocation8 + $0x1ec0] ss:$56 sps:$4 sm:$0xff]   ;;  %v19110_v10 = vld [vmem:[#allocation8 + $0x1f30] ss:$56 sps:$4 sm:$0xff]  }
 0x740   :  { %v20522_v15 = vmax.f32 %v13733_v54, %v13740_v9  ;;  %13295 = vmatpush1.bf16.msra.mxu1 %v19059_v8  ;;  %v19107_v2 = vld [vmem:[#allocation8 + $0x1b48] ss:$56 sps:$4 sm:$0xff]   ;;  %v19115_v8 = vld [vmem:[#allocation8 + $0x1bbc] ss:$56 sps:$4 sm:$0xff]   ;;  %v19113_v54 = vld [vmem:[#allocation8 + $0x1bb8] ss:$56 sps:$4 sm:$0xff]  }
 0x741   :  { %13296 = vmatprep.subr.bf16.mxu1 %v19067_v5  ;;  %v19118_v5 = vld [vmem:[#allocation8 + $0x1fa4] ss:$56 sps:$4 sm:$0xff]  }
 0x742   :  { %13026 = vmatpush1.bf16.msra.mxu0 %v19062_v42  ;;  %v19121_v9 = vld [vmem:[#allocation8 + $0x1c2c] ss:$56 sps:$4 sm:$0xff]   ;;  %v19116_v42 = vld [vmem:[#allocation8 + $0x1fa0] ss:$56 sps:$4 sm:$0xff]  }
 0x743   :  { %13036 = vmatprep.subr.bf16.mxu0 %v19070_v38  ;;  %v19124_v38 = vld [vmem:[#allocation8 + $0x2014] ss:$56 sps:$4 sm:$0xff]  }
 0x744   :  { %13297 = vmatpush1.bf16.msra.mxu1 %v19065_v13  ;;  %v19119_v13 = vld [vmem:[#allocation8 + $0x1c28] ss:$56 sps:$4 sm:$0xff]  }
 0x745   :  { %13028 = vmatmul.mubr.bf16.vlgmr.msra.gmra.mrb[20].mxu0 %v20423_v11  ;;  %13298 = vmatprep.subr.bf16.mxu1 %v19073_v17  ;;  %v19127_v17 = vld [vmem:[#allocation8 + $0x1c9c] ss:$56 sps:$4 sm:$0xff]  }
 0x746   :  { %13037 = vmatpush1.bf16.msra.mxu0 %v19068_v36  ;;  %13068 = vmatprep.mubr.bf16.mxu0 %v20427_v12  ;;  %v19122_v36 = vld [vmem:[#allocation8 + $0x2010] ss:$56 sps:$4 sm:$0xff]  }
 0x747   :  { %13038 = vmatprep.subr.bf16.mxu0 %v19076_v41  ;;  %v19130_v41 = vld [vmem:[#allocation8 + $0x2084] ss:$56 sps:$4 sm:$0xff]  }
 0x748   :  { %13299 = vmatpush1.bf16.msra.mxu1 %v19071_v23  ;;  %v19125_v23 = vld [vmem:[#allocation8 + $0x1c98] ss:$56 sps:$4 sm:$0xff]  }
 0x749   :  { %13300 = vmatprep.subr.bf16.mxu1 %v19079_v25  ;;  %v19133_v25 = vld [vmem:[#allocation8 + $0x1d0c] ss:$56 sps:$4 sm:$0xff]  }
 0x74a   :  { %13039 = vmatpush1.bf16.msra.mxu0 %v19074_v46  ;;  %v19128_v46 = vld [vmem:[#allocation8 + $0x2080] ss:$56 sps:$4 sm:$0xff]  }
 0x74b   :  { %13040 = vmatprep.subr.bf16.mxu0 %v19082_v50  ;;  %v19136_v50 = vld [vmem:[#allocation8 + $0x20f4] ss:$56 sps:$4 sm:$0xff]  }
 0x74c   :  { %13301 = vmatpush1.bf16.msra.mxu1 %v19077_v14  ;;  %v19131_v14 = vld [vmem:[#allocation8 + $0x1d08] ss:$56 sps:$4 sm:$0xff]  }
 0x74d   :  { %13302 = vmatprep.subr.bf16.mxu1 %v19085_v7  ;;  %v19139_v7 = vld [vmem:[#allocation8 + $0x1d7c] ss:$56 sps:$4 sm:$0xff]  }
 0x74e   :  { %13041 = vmatpush1.bf16.msra.mxu0 %v19080_v47  ;;  %v19134_v47 = vld [vmem:[#allocation8 + $0x20f0] ss:$56 sps:$4 sm:$0xff]  }
 0x74f   :  { %13042 = vmatprep.subr.bf16.mxu0 %v19088_v52  ;;  %v19142_v52 = vld [vmem:[#allocation8 + $0x2164] ss:$56 sps:$4 sm:$0xff]  }
 0x750   :  { %13303 = vmatpush1.bf16.msra.mxu1 %v19083_v45  ;;  %v19137_v45 = vld [vmem:[#allocation8 + $0x1d78] ss:$56 sps:$4 sm:$0xff]  }
 0x751   :  { %13304 = vmatprep.subr.bf16.mxu1 %v19091_v20  ;;  %v19145_v20 = vld [vmem:[#allocation8 + $0x1dec] ss:$56 sps:$4 sm:$0xff]  }
 0x752   :  { %13043 = vmatpush1.bf16.msra.mxu0 %v19086_v27  ;;  %v19140_v27 = vld [vmem:[#allocation8 + $0x2160] ss:$56 sps:$4 sm:$0xff]  }
 0x753   :  { %13044 = vmatprep.subr.bf16.mxu0 %v19094_v29  ;;  %v19148_v29 = vld [vmem:[#allocation8 + $0x21d4] ss:$56 sps:$4 sm:$0xff]  }
 0x754   :  { %13305 = vmatpush1.bf16.msra.mxu1 %v19089_v30  ;;  %v19143_v30 = vld [vmem:[#allocation8 + $0x1de8] ss:$56 sps:$4 sm:$0xff]  }
 0x755   :  { %13306 = vmatprep.subr.bf16.mxu1 %v19097_v31  ;;  %v19151_v31 = vld [vmem:[#allocation8 + $0x1e5c] ss:$56 sps:$4 sm:$0xff]  }
 0x756   :  { %13045 = vmatpush1.bf16.msra.mxu0 %v19092_v32  ;;  %v19146_v32 = vld [vmem:[#allocation8 + $0x21d0] ss:$56 sps:$4 sm:$0xff]  }
 0x757   :  { %13046 = vmatprep.subr.bf16.mxu0 %v19100_v34  ;;  %v19154_v34 = vld [vmem:[#allocation8 + $0x2244] ss:$56 sps:$4 sm:$0xff]  }
 0x758   :  { %13307 = vmatpush1.bf16.msra.mxu1 %v19095_v40  ;;  %v19149_v40 = vld [vmem:[#allocation8 + $0x1e58] ss:$56 sps:$4 sm:$0xff]  }
 0x759   :  { %13308 = vmatprep.subr.bf16.mxu1 %v19103_v57  ;;  %v19157_v57 = vld [vmem:[#allocation8 + $0x1ecc] ss:$56 sps:$4 sm:$0xff]  }
 0x75a   :  { %13047 = vmatpush1.bf16.msra.mxu0 %v19098_v33  ;;  %v19152_v33 = vld [vmem:[#allocation8 + $0x2240] ss:$56 sps:$4 sm:$0xff]  }
 0x75b   :  { %13048 = vmatprep.subr.bf16.mxu0 %v19106_v26  ;;  %v19160_v26 = vld [vmem:[#allocation8 + $0x22b4] ss:$56 sps:$4 sm:$0xff]  }
 0x75c   :  { %13309 = vmatpush1.bf16.msra.mxu1 %v19101_v62  ;;  %v19155_v62 = vld [vmem:[#allocation8 + $0x1ec8] ss:$56 sps:$4 sm:$0xff]  }
 0x75d   :  { %13310 = vmatprep.subr.bf16.mxu1 %v19109_v63  ;;  %v19163_v63 = vld [vmem:[#allocation8 + $0x1f3c] ss:$56 sps:$4 sm:$0xff]  }
 0x75e   :  { %13049 = vmatpush1.bf16.msra.mxu0 %v19104_v0  ;;  %v19158_v0 = vld [vmem:[#allocation8 + $0x22b0] ss:$56 sps:$4 sm:$0xff]  }
 0x75f   :  { %13050 = vmatprep.subr.bf16.mxu0 %v19112_v1  ;;  %v19166_v1 = vld [vmem:[#allocation8 + $0x2324] ss:$56 sps:$4 sm:$0xff]  }
 0x760   :  { %13311 = vmatpush1.bf16.msra.mxu1 %v19107_v2  ;;  %v19161_v2 = vld [vmem:[#allocation8 + $0x1f38] ss:$56 sps:$4 sm:$0xff]  }
 0x761   :  { %13312 = vmatprep.subr.bf16.mxu1 %v19115_v8  ;;  %v19169_v8 = vld [vmem:[#allocation8 + $0x1fac] ss:$56 sps:$4 sm:$0xff]  }
 0x762   :  { %13051 = vmatpush1.bf16.msra.mxu0 %v19110_v10  ;;  %v19164_v10 = vld [vmem:[#allocation8 + $0x2320] ss:$56 sps:$4 sm:$0xff]  }
 0x763   :  { %13052 = vmatprep.subr.bf16.mxu0 %v19118_v5  ;;  %v19172_v5 = vld [vmem:[#allocation8 + $0x2394] ss:$56 sps:$4 sm:$0xff]  }
 0x764   :  { %13313 = vmatpush1.bf16.msra.mxu1 %v19113_v54  ;;  %v19167_v54 = vld [vmem:[#allocation8 + $0x1fa8] ss:$56 sps:$4 sm:$0xff]  }
 0x765   :  { %13323 = vmatprep.subr.bf16.mxu1 %v19121_v9  ;;  %v19175_v9 = vld [vmem:[#allocation8 + $0x201c] ss:$56 sps:$4 sm:$0xff]  }
 0x766   :  { %13053 = vmatpush1.bf16.msra.mxu0 %v19116_v42  ;;  %v19170_v42 = vld [vmem:[#allocation8 + $0x2390] ss:$56 sps:$4 sm:$0xff]  }
 0x767   :  { %13315 = vmatmul.mubr.bf16.vlgmr.msra.gmra.mrb[28].mxu1 %v20423_v11  ;;  %13054 = vmatprep.subr.bf16.mxu0 %v19124_v38  ;;  %v19178_v38 = vld [vmem:[#allocation8 + $0x2404] ss:$56 sps:$4 sm:$0xff]  }
 0x768   :  { %13324 = vmatpush1.bf16.msra.mxu1 %v19119_v13  ;;  %13355 = vmatprep.mubr.bf16.mxu1 %v20427_v12  ;;  %v19173_v13 = vld [vmem:[#allocation8 + $0x2018] ss:$56 sps:$4 sm:$0xff]  }
 0x769   :  { %13325 = vmatprep.subr.bf16.mxu1 %v19127_v17  ;;  %v19181_v17 = vld [vmem:[#allocation8 + $0x208c] ss:$56 sps:$4 sm:$0xff]  }
 0x76a   :  { %13055 = vmatpush1.bf16.msra.mxu0 %v19122_v36  ;;  %v19176_v36 = vld [vmem:[#allocation8 + $0x2400] ss:$56 sps:$4 sm:$0xff]  }
 0x76b   :  { %13056 = vmatprep.subr.bf16.mxu0 %v19130_v41  ;;  %v19184_v41 = vld [vmem:[#allocation8 + $0x2474] ss:$56 sps:$4 sm:$0xff]  }
 0x76c   :  { %13326 = vmatpush1.bf16.msra.mxu1 %v19125_v23  ;;  %v19179_v23 = vld [vmem:[#allocation8 + $0x2088] ss:$56 sps:$4 sm:$0xff]  }
 0x76d   :  { %13327 = vmatprep.subr.bf16.mxu1 %v19133_v25  ;;  %v19187_v25 = vld [vmem:[#allocation8 + $0x20fc] ss:$56 sps:$4 sm:$0xff]  }
 0x76e   :  { %13057 = vmatpush1.bf16.msra.mxu0 %v19128_v46  ;;  %v19182_v46 = vld [vmem:[#allocation8 + $0x2470] ss:$56 sps:$4 sm:$0xff]  }
 0x76f   :  { %13058 = vmatprep.subr.bf16.mxu0 %v19136_v50  ;;  %v19190_v50 = vld [vmem:[#allocation8 + $0x24e4] ss:$56 sps:$4 sm:$0xff]  }
 0x770   :  { %13328 = vmatpush1.bf16.msra.mxu1 %v19131_v14  ;;  %v19185_v14 = vld [vmem:[#allocation8 + $0x20f8] ss:$56 sps:$4 sm:$0xff]  }
 0x771   :  { %13329 = vmatprep.subr.bf16.mxu1 %v19139_v7  ;;  %v19193_v7 = vld [vmem:[#allocation8 + $0x216c] ss:$56 sps:$4 sm:$0xff]  }
 0x772   :  { %13059 = vmatpush1.bf16.msra.mxu0 %v19134_v47  ;;  %v19188_v47 = vld [vmem:[#allocation8 + $0x24e0] ss:$56 sps:$4 sm:$0xff]  }
 0x773   :  { %13060 = vmatprep.subr.bf16.mxu0 %v19142_v52  ;;  %v19196_v52 = vld [vmem:[#allocation8 + $0x2554] ss:$56 sps:$4 sm:$0xff]  }
 0x774   :  { %13330 = vmatpush1.bf16.msra.mxu1 %v19137_v45  ;;  %v19191_v45 = vld [vmem:[#allocation8 + $0x2168] ss:$56 sps:$4 sm:$0xff]  }
 0x775   :  { %13331 = vmatprep.subr.bf16.mxu1 %v19145_v20  ;;  %v19199_v20 = vld [vmem:[#allocation8 + $0x21dc] ss:$56 sps:$4 sm:$0xff]  }
 0x776   :  { %13061 = vmatpush1.bf16.msra.mxu0 %v19140_v27  ;;  %v19194_v27 = vld [vmem:[#allocation8 + $0x2550] ss:$56 sps:$4 sm:$0xff]  }
 0x777   :  { %13062 = vmatprep.subr.bf16.mxu0 %v19148_v29  ;;  %v19202_v29 = vld [vmem:[#allocation8 + $0x25c4] ss:$56 sps:$4 sm:$0xff]  }
 0x778   :  { %13332 = vmatpush1.bf16.msra.mxu1 %v19143_v30  ;;  %v19197_v30 = vld [vmem:[#allocation8 + $0x21d8] ss:$56 sps:$4 sm:$0xff]  }
 0x779   :  { %13333 = vmatprep.subr.bf16.mxu1 %v19151_v31  ;;  %v19205_v31 = vld [vmem:[#allocation8 + $0x224c] ss:$56 sps:$4 sm:$0xff]  }
 0x77a   :  { %13063 = vmatpush1.bf16.msra.mxu0 %v19146_v32  ;;  %v19200_v32 = vld [vmem:[#allocation8 + $0x25c0] ss:$56 sps:$4 sm:$0xff]  }
 0x77b   :  { %13064 = vmatprep.subr.bf16.mxu0 %v19154_v34  ;;  %v19208_v34 = vld [vmem:[#allocation8 + $0x2634] ss:$56 sps:$4 sm:$0xff]  }
 0x77c   :  { %13334 = vmatpush1.bf16.msra.mxu1 %v19149_v40  ;;  %v19203_v40 = vld [vmem:[#allocation8 + $0x2248] ss:$56 sps:$4 sm:$0xff]  }
 0x77d   :  { %13335 = vmatprep.subr.bf16.mxu1 %v19157_v57  ;;  %v19211_v57 = vld [vmem:[#allocation8 + $0x22bc] ss:$56 sps:$4 sm:$0xff]  }
 0x77e   :  { %13065 = vmatpush1.bf16.msra.mxu0 %v19152_v33  ;;  %v19206_v33 = vld [vmem:[#allocation8 + $0x2630] ss:$56 sps:$4 sm:$0xff]  }
 0x77f   :  { %13066 = vmatprep.subr.bf16.mxu0 %v19160_v26  ;;  %v19214_v26 = vld [vmem:[#allocation8 + $0x26a4] ss:$56 sps:$4 sm:$0xff]  }
 0x780   :  { %13336 = vmatpush1.bf16.msra.mxu1 %v19155_v62  ;;  %v19209_v62 = vld [vmem:[#allocation8 + $0x22b8] ss:$56 sps:$4 sm:$0xff]  }
 0x781   :  { %13337 = vmatprep.subr.bf16.mxu1 %v19163_v63  ;;  %v19217_v63 = vld [vmem:[#allocation8 + $0x232c] ss:$56 sps:$4 sm:$0xff]  }
 0x782   :  { %13067 = vmatpush1.bf16.msra.mxu0 %v19158_v0  ;;  %v19212_v0 = vld [vmem:[#allocation8 + $0x26a0] ss:$56 sps:$4 sm:$0xff]  }
 0x783   :  { %13077 = vmatprep.subr.bf16.mxu0 %v19166_v1  ;;  %v19220_v1 = vld [vmem:[#allocation8 + $0x2714] ss:$56 sps:$4 sm:$0xff]  }
 0x784   :  { %13338 = vmatpush1.bf16.msra.mxu1 %v19161_v2  ;;  %v19215_v2 = vld [vmem:[#allocation8 + $0x2328] ss:$56 sps:$4 sm:$0xff]  }
 0x785   :  { %13069 = vmatmul.mubr.bf16.vlgmr.msra.gmra.mrb[20].mxu0 %v20435_v43  ;;  %13339 = vmatprep.subr.bf16.mxu1 %v19169_v8  ;;  %v19223_v8 = vld [vmem:[#allocation8 + $0x239c] ss:$56 sps:$4 sm:$0xff]  }
 0x786   :  { %13078 = vmatpush1.bf16.msra.mxu0 %v19164_v10  ;;  %13109 = vmatprep.mubr.bf16.mxu0 %v20439_v28  ;;  %v19218_v10 = vld [vmem:[#allocation8 + $0x2710] ss:$56 sps:$4 sm:$0xff]  }
 0x787   :  { %13079 = vmatprep.subr.bf16.mxu0 %v19172_v5  ;;  %v19226_v5 = vld [vmem:[#allocation8 + $0x2784] ss:$56 sps:$4 sm:$0xff]  }
 0x788   :  { %13340 = vmatpush1.bf16.msra.mxu1 %v19167_v54  ;;  %v19221_v54 = vld [vmem:[#allocation8 + $0x2398] ss:$56 sps:$4 sm:$0xff]  }
 0x789   :  { %13341 = vmatprep.subr.bf16.mxu1 %v19175_v9  ;;  %v19229_v9 = vld [vmem:[#allocation8 + $0x240c] ss:$56 sps:$4 sm:$0xff]  }
 0x78a   :  { %13080 = vmatpush1.bf16.msra.mxu0 %v19170_v42  ;;  %v19224_v42 = vld [vmem:[#allocation8 + $0x2780] ss:$56 sps:$4 sm:$0xff]  }
 0x78b   :  { %13081 = vmatprep.subr.bf16.mxu0 %v19178_v38  ;;  %v19232_v38 = vld [vmem:[#allocation8 + $0x27f4] ss:$56 sps:$4 sm:$0xff]  }
 0x78c   :  { %13342 = vmatpush1.bf16.msra.mxu1 %v19173_v13  ;;  %v19227_v13 = vld [vmem:[#allocation8 + $0x2408] ss:$56 sps:$4 sm:$0xff]  }
 0x78d   :  { %13343 = vmatprep.subr.bf16.mxu1 %v19181_v17  ;;  %v19235_v17 = vld [vmem:[#allocation8 + $0x247c] ss:$56 sps:$4 sm:$0xff]  }
 0x78e   :  { %13082 = vmatpush1.bf16.msra.mxu0 %v19176_v36  ;;  %v19230_v36 = vld [vmem:[#allocation8 + $0x27f0] ss:$56 sps:$4 sm:$0xff]  }
 0x78f   :  { %13083 = vmatprep.subr.bf16.mxu0 %v19184_v41  ;;  %v19238_v41 = vld [vmem:[#allocation8 + $0x2864] ss:$56 sps:$4 sm:$0xff]  }
 0x790   :  { %13344 = vmatpush1.bf16.msra.mxu1 %v19179_v23  ;;  %v19233_v23 = vld [vmem:[#allocation8 + $0x2478] ss:$56 sps:$4 sm:$0xff]  }
 0x791   :  { %13345 = vmatprep.subr.bf16.mxu1 %v19187_v25  ;;  %v19241_v25 = vld [vmem:[#allocation8 + $0x24ec] ss:$56 sps:$4 sm:$0xff]  }
 0x792   :  { %13084 = vmatpush1.bf16.msra.mxu0 %v19182_v46  ;;  %v19236_v46 = vld [vmem:[#allocation8 + $0x2860] ss:$56 sps:$4 sm:$0xff]  }
 0x793   :  { %13085 = vmatprep.subr.bf16.mxu0 %v19190_v50  ;;  %v19244_v50 = vld [vmem:[#allocation8 + $0x28d4] ss:$56 sps:$4 sm:$0xff]  }
 0x794   :  { %13346 = vmatpush1.bf16.msra.mxu1 %v19185_v14  ;;  %v19239_v14 = vld [vmem:[#allocation8 + $0x24e8] ss:$56 sps:$4 sm:$0xff]  }
 0x795   :  { %13347 = vmatprep.subr.bf16.mxu1 %v19193_v7  ;;  %v19247_v7 = vld [vmem:[#allocation8 + $0x255c] ss:$56 sps:$4 sm:$0xff]  }
 0x796   :  { %13086 = vmatpush1.bf16.msra.mxu0 %v19188_v47  ;;  %v19242_v47 = vld [vmem:[#allocation8 + $0x28d0] ss:$56 sps:$4 sm:$0xff]  }
 0x797   :  { %13087 = vmatprep.subr.bf16.mxu0 %v19196_v52  ;;  %v19250_v52 = vld [vmem:[#allocation8 + $0x2944] ss:$56 sps:$4 sm:$0xff]  }
 0x798   :  { %13348 = vmatpush1.bf16.msra.mxu1 %v19191_v45  ;;  %v19245_v45 = vld [vmem:[#allocation8 + $0x2558] ss:$56 sps:$4 sm:$0xff]  }
 0x799   :  { %13349 = vmatprep.subr.bf16.mxu1 %v19199_v20  ;;  %v19253_v20 = vld [vmem:[#allocation8 + $0x25cc] ss:$56 sps:$4 sm:$0xff]  }
 0x79a   :  { %13088 = vmatpush1.bf16.msra.mxu0 %v19194_v27  ;;  %v19248_v27 = vld [vmem:[#allocation8 + $0x2940] ss:$56 sps:$4 sm:$0xff]  }
 0x79b   :  { %13089 = vmatprep.subr.bf16.mxu0 %v19202_v29  ;;  %v19256_v29 = vld [vmem:[#allocation8 + $0x29b4] ss:$56 sps:$4 sm:$0xff]  }
 0x79c   :  { %13350 = vmatpush1.bf16.msra.mxu1 %v19197_v30  ;;  %v19251_v30 = vld [vmem:[#allocation8 + $0x25c8] ss:$56 sps:$4 sm:$0xff]  }
 0x79d   :  { %13351 = vmatprep.subr.bf16.mxu1 %v19205_v31  ;;  %v19259_v31 = vld [vmem:[#allocation8 + $0x263c] ss:$56 sps:$4 sm:$0xff]  }
 0x79e   :  { %13090 = vmatpush1.bf16.msra.mxu0 %v19200_v32  ;;  %v19254_v32 = vld [vmem:[#allocation8 + $0x29b0] ss:$56 sps:$4 sm:$0xff]  }
 0x79f   :  { %13091 = vmatprep.subr.bf16.mxu0 %v19208_v34  ;;  %v19262_v34 = vld [vmem:[#allocation8 + $0x2a24] ss:$56 sps:$4 sm:$0xff]  }
 0x7a0   :  { %13352 = vmatpush1.bf16.msra.mxu1 %v19203_v40  ;;  %v19257_v40 = vld [vmem:[#allocation8 + $0x2638] ss:$56 sps:$4 sm:$0xff]  }
 0x7a1   :  { %13353 = vmatprep.subr.bf16.mxu1 %v19211_v57  ;;  %v19265_v57 = vld [vmem:[#allocation8 + $0x26ac] ss:$56 sps:$4 sm:$0xff]  }
 0x7a2   :  { %13092 = vmatpush1.bf16.msra.mxu0 %v19206_v33  ;;  %v19260_v33 = vld [vmem:[#allocation8 + $0x2a20] ss:$56 sps:$4 sm:$0xff]  }
 0x7a3   :  { %13093 = vmatprep.subr.bf16.mxu0 %v19214_v26  ;;  %v19268_v26 = vld [vmem:[#allocation8 + $0x2a94] ss:$56 sps:$4 sm:$0xff]  }
 0x7a4   :  { %13354 = vmatpush1.bf16.msra.mxu1 %v19209_v62  ;;  %v19263_v62 = vld [vmem:[#allocation8 + $0x26a8] ss:$56 sps:$4 sm:$0xff]  }
 0x7a5   :  { %13364 = vmatprep.subr.bf16.mxu1 %v19217_v63  ;;  %v19271_v63 = vld [vmem:[#allocation8 + $0x271c] ss:$56 sps:$4 sm:$0xff]  }
 0x7a6   :  { %13094 = vmatpush1.bf16.msra.mxu0 %v19212_v0  ;;  %v19266_v0 = vld [vmem:[#allocation8 + $0x2a90] ss:$56 sps:$4 sm:$0xff]  }
 0x7a7   :  { %13356 = vmatmul.mubr.bf16.vlgmr.msra.gmra.mrb[28].mxu1 %v20435_v43  ;;  %13095 = vmatprep.subr.bf16.mxu0 %v19220_v1  ;;  %v19274_v1 = vld [vmem:[#allocation8 + $0x2b04] ss:$56 sps:$4 sm:$0xff]  }
 0x7a8   :  { %13365 = vmatpush1.bf16.msra.mxu1 %v19215_v2  ;;  %13396 = vmatprep.mubr.bf16.mxu1 %v20439_v28  ;;  %v19269_v2 = vld [vmem:[#allocation8 + $0x2718] ss:$56 sps:$4 sm:$0xff]  }
 0x7a9   :  { %13366 = vmatprep.subr.bf16.mxu1 %v19223_v8  ;;  %v19277_v8 = vld [vmem:[#allocation8 + $0x278c] ss:$56 sps:$4 sm:$0xff]  }
 0x7aa   :  { %13096 = vmatpush1.bf16.msra.mxu0 %v19218_v10  ;;  %v19272_v10 = vld [vmem:[#allocation8 + $0x2b00] ss:$56 sps:$4 sm:$0xff]  }
 0x7ab   :  { %13097 = vmatprep.subr.bf16.mxu0 %v19226_v5  ;;  %v19280_v5 = vld [vmem:[#allocation8 + $0x2b74] ss:$56 sps:$4 sm:$0xff]  }
 0x7ac   :  { %13367 = vmatpush1.bf16.msra.mxu1 %v19221_v54  ;;  %v19275_v54 = vld [vmem:[#allocation8 + $0x2788] ss:$56 sps:$4 sm:$0xff]  }
 0x7ad   :  { %13368 = vmatprep.subr.bf16.mxu1 %v19229_v9  ;;  %v19283_v9 = vld [vmem:[#allocation8 + $0x27fc] ss:$56 sps:$4 sm:$0xff]  }
 0x7ae   :  { %13098 = vmatpush1.bf16.msra.mxu0 %v19224_v42  ;;  %v19278_v42 = vld [vmem:[#allocation8 + $0x2b70] ss:$56 sps:$4 sm:$0xff]  }
 0x7af   :  { %13099 = vmatprep.subr.bf16.mxu0 %v19232_v38  ;;  %v19286_v38 = vld [vmem:[#allocation8 + $0x2be4] ss:$56 sps:$4 sm:$0xff]  }
 0x7b0   :  { %13369 = vmatpush1.bf16.msra.mxu1 %v19227_v13  ;;  %v19281_v13 = vld [vmem:[#allocation8 + $0x27f8] ss:$56 sps:$4 sm:$0xff]  }
 0x7b1   :  { %13370 = vmatprep.subr.bf16.mxu1 %v19235_v17  ;;  %v19289_v17 = vld [vmem:[#allocation8 + $0x286c] ss:$56 sps:$4 sm:$0xff]  }
 0x7b2   :  { %13100 = vmatpush1.bf16.msra.mxu0 %v19230_v36  ;;  %v19284_v36 = vld [vmem:[#allocation8 + $0x2be0] ss:$56 sps:$4 sm:$0xff]  }
 0x7b3   :  { %13101 = vmatprep.subr.bf16.mxu0 %v19238_v41  ;;  %v19292_v41 = vld [vmem:[#allocation8 + $0x2c54] ss:$56 sps:$4 sm:$0xff]  }
 0x7b4   :  { %13371 = vmatpush1.bf16.msra.mxu1 %v19233_v23  ;;  %v19287_v23 = vld [vmem:[#allocation8 + $0x2868] ss:$56 sps:$4 sm:$0xff]  }
 0x7b5   :  { %13372 = vmatprep.subr.bf16.mxu1 %v19241_v25  ;;  %v19295_v25 = vld [vmem:[#allocation8 + $0x28dc] ss:$56 sps:$4 sm:$0xff]  }
 0x7b6   :  { %13102 = vmatpush1.bf16.msra.mxu0 %v19236_v46  ;;  %v19290_v46 = vld [vmem:[#allocation8 + $0x2c50] ss:$56 sps:$4 sm:$0xff]  }
 0x7b7   :  { %13103 = vmatprep.subr.bf16.mxu0 %v19244_v50  ;;  %v19298_v50 = vld [vmem:[#allocation8 + $0x2cc4] ss:$56 sps:$4 sm:$0xff]  }
 0x7b8   :  { %13373 = vmatpush1.bf16.msra.mxu1 %v19239_v14  ;;  %v19293_v14 = vld [vmem:[#allocation8 + $0x28d8] ss:$56 sps:$4 sm:$0xff]  }
 0x7b9   :  { %13374 = vmatprep.subr.bf16.mxu1 %v19247_v7  ;;  %v19301_v7 = vld [vmem:[#allocation8 + $0x294c] ss:$56 sps:$4 sm:$0xff]  }
 0x7ba   :  { %13104 = vmatpush1.bf16.msra.mxu0 %v19242_v47  ;;  %v19296_v47 = vld [vmem:[#allocation8 + $0x2cc0] ss:$56 sps:$4 sm:$0xff]  }
 0x7bb   :  { %13105 = vmatprep.subr.bf16.mxu0 %v19250_v52  ;;  %v19304_v52 = vld [vmem:[#allocation8 + $0x2d34] ss:$56 sps:$4 sm:$0xff]  }
 0x7bc   :  { %13375 = vmatpush1.bf16.msra.mxu1 %v19245_v45  ;;  %v19299_v45 = vld [vmem:[#allocation8 + $0x2948] ss:$56 sps:$4 sm:$0xff]  }
 0x7bd   :  { %13376 = vmatprep.subr.bf16.mxu1 %v19253_v20  ;;  %v19307_v20 = vld [vmem:[#allocation8 + $0x29bc] ss:$56 sps:$4 sm:$0xff]  }
 0x7be   :  { %13106 = vmatpush1.bf16.msra.mxu0 %v19248_v27  ;;  %v19302_v27 = vld [vmem:[#allocation8 + $0x2d30] ss:$56 sps:$4 sm:$0xff]  }
 0x7bf   :  { %13107 = vmatprep.subr.bf16.mxu0 %v19256_v29  ;;  %v19310_v29 = vld [vmem:[#allocation8 + $0x2da4] ss:$56 sps:$4 sm:$0xff]  }
 0x7c0   :  { %13377 = vmatpush1.bf16.msra.mxu1 %v19251_v30  ;;  %v19305_v30 = vld [vmem:[#allocation8 + $0x29b8] ss:$56 sps:$4 sm:$0xff]  }
 0x7c1   :  { %13378 = vmatprep.subr.bf16.mxu1 %v19259_v31  ;;  %v19313_v31 = vld [vmem:[#allocation8 + $0x2a2c] ss:$56 sps:$4 sm:$0xff]  }
 0x7c2   :  { %13108 = vmatpush1.bf16.msra.mxu0 %v19254_v32  ;;  %v19308_v32 = vld [vmem:[#allocation8 + $0x2da0] ss:$56 sps:$4 sm:$0xff]  }
 0x7c3   :  { %13118 = vmatprep.subr.bf16.mxu0 %v19262_v34  ;;  %v19316_v34 = vld [vmem:[#allocation8 + $0x2e14] ss:$56 sps:$4 sm:$0xff]  }
 0x7c4   :  { %13379 = vmatpush1.bf16.msra.mxu1 %v19257_v40  ;;  %v19311_v40 = vld [vmem:[#allocation8 + $0x2a28] ss:$56 sps:$4 sm:$0xff]  }
 0x7c5   :  { %13110 = vmatmul.mubr.bf16.vlgmr.msra.gmra.mrb[20].mxu0 %v20447_v19  ;;  %13380 = vmatprep.subr.bf16.mxu1 %v19265_v57  ;;  %v19319_v57 = vld [vmem:[#allocation8 + $0x2a9c] ss:$56 sps:$4 sm:$0xff]  }
 0x7c6   :  { %13119 = vmatpush1.bf16.msra.mxu0 %v19260_v33  ;;  %13150 = vmatprep.mubr.bf16.mxu0 %v20451_v39  ;;  %v19314_v33 = vld [vmem:[#allocation8 + $0x2e10] ss:$56 sps:$4 sm:$0xff]  }
 0x7c7   :  { %13120 = vmatprep.subr.bf16.mxu0 %v19268_v26  ;;  %v19322_v26 = vld [vmem:[#allocation8 + $0x2e84] ss:$56 sps:$4 sm:$0xff]  }
 0x7c8   :  { %13381 = vmatpush1.bf16.msra.mxu1 %v19263_v62  ;;  %v19317_v62 = vld [vmem:[#allocation8 + $0x2a98] ss:$56 sps:$4 sm:$0xff]  }
 0x7c9   :  { %13382 = vmatprep.subr.bf16.mxu1 %v19271_v63  ;;  %v19325_v63 = vld [vmem:[#allocation8 + $0x2b0c] ss:$56 sps:$4 sm:$0xff]  }
 0x7ca   :  { %13121 = vmatpush1.bf16.msra.mxu0 %v19266_v0  ;;  %v19320_v0 = vld [vmem:[#allocation8 + $0x2e80] ss:$56 sps:$4 sm:$0xff]  }
 0x7cb   :  { %13122 = vmatprep.subr.bf16.mxu0 %v19274_v1  ;;  %v19328_v1 = vld [vmem:[#allocation8 + $0x2ef4] ss:$56 sps:$4 sm:$0xff]  }
 0x7cc   :  { %13383 = vmatpush1.bf16.msra.mxu1 %v19269_v2  ;;  %v19323_v2 = vld [vmem:[#allocation8 + $0x2b08] ss:$56 sps:$4 sm:$0xff]  }
 0x7cd   :  { %13384 = vmatprep.subr.bf16.mxu1 %v19277_v8  ;;  %v19331_v8 = vld [vmem:[#allocation8 + $0x2b7c] ss:$56 sps:$4 sm:$0xff]  }
 0x7ce   :  { %13123 = vmatpush1.bf16.msra.mxu0 %v19272_v10  ;;  %v19326_v10 = vld [vmem:[#allocation8 + $0x2ef0] ss:$56 sps:$4 sm:$0xff]  }
 0x7cf   :  { %13124 = vmatprep.subr.bf16.mxu0 %v19280_v5  ;;  %v19334_v5 = vld [vmem:[#allocation8 + $0x2f64] ss:$56 sps:$4 sm:$0xff]  }
 0x7d0   :  { %13385 = vmatpush1.bf16.msra.mxu1 %v19275_v54  ;;  %v19329_v54 = vld [vmem:[#allocation8 + $0x2b78] ss:$56 sps:$4 sm:$0xff]  }
 0x7d1   :  { %13386 = vmatprep.subr.bf16.mxu1 %v19283_v9  ;;  %v19337_v9 = vld [vmem:[#allocation8 + $0x2bec] ss:$56 sps:$4 sm:$0xff]  }
 0x7d2   :  { %13125 = vmatpush1.bf16.msra.mxu0 %v19278_v42  ;;  %v19332_v42 = vld [vmem:[#allocation8 + $0x2f60] ss:$56 sps:$4 sm:$0xff]  }
 0x7d3   :  { %13126 = vmatprep.subr.bf16.mxu0 %v19286_v38  ;;  %v19340_v38 = vld [vmem:[#allocation8 + $0x2fd4] ss:$56 sps:$4 sm:$0xff]  }
 0x7d4   :  { %13387 = vmatpush1.bf16.msra.mxu1 %v19281_v13  ;;  %v19335_v13 = vld [vmem:[#allocation8 + $0x2be8] ss:$56 sps:$4 sm:$0xff]  }
 0x7d5   :  { %13388 = vmatprep.subr.bf16.mxu1 %v19289_v17  ;;  %v19343_v17 = vld [vmem:[#allocation8 + $0x2c5c] ss:$56 sps:$4 sm:$0xff]  }
 0x7d6   :  { %13127 = vmatpush1.bf16.msra.mxu0 %v19284_v36  ;;  %v19338_v36 = vld [vmem:[#allocation8 + $0x2fd0] ss:$56 sps:$4 sm:$0xff]  }
 0x7d7   :  { %13128 = vmatprep.subr.bf16.mxu0 %v19292_v41  ;;  %v19346_v41 = vld [vmem:[#allocation8 + $0x3044] ss:$56 sps:$4 sm:$0xff]  }
 0x7d8   :  { %13389 = vmatpush1.bf16.msra.mxu1 %v19287_v23  ;;  %v19341_v23 = vld [vmem:[#allocation8 + $0x2c58] ss:$56 sps:$4 sm:$0xff]  }
 0x7d9   :  { %13390 = vmatprep.subr.bf16.mxu1 %v19295_v25  ;;  %v19349_v25 = vld [vmem:[#allocation8 + $0x2ccc] ss:$56 sps:$4 sm:$0xff]  }
 0x7da   :  { %13129 = vmatpush1.bf16.msra.mxu0 %v19290_v46  ;;  %v19344_v46 = vld [vmem:[#allocation8 + $0x3040] ss:$56 sps:$4 sm:$0xff]  }
 0x7db   :  { %13130 = vmatprep.subr.bf16.mxu0 %v19298_v50  ;;  %v19352_v50 = vld [vmem:[#allocation8 + $0x30b4] ss:$56 sps:$4 sm:$0xff]  }
 0x7dc   :  { %13391 = vmatpush1.bf16.msra.mxu1 %v19293_v14  ;;  %v19347_v14 = vld [vmem:[#allocation8 + $0x2cc8] ss:$56 sps:$4 sm:$0xff]  }
 0x7dd   :  { %13392 = vmatprep.subr.bf16.mxu1 %v19301_v7  ;;  %v19355_v7 = vld [vmem:[#allocation8 + $0x2d3c] ss:$56 sps:$4 sm:$0xff]  }
 0x7de   :  { %13131 = vmatpush1.bf16.msra.mxu0 %v19296_v47  ;;  %v19350_v47 = vld [vmem:[#allocation8 + $0x30b0] ss:$56 sps:$4 sm:$0xff]  }
 0x7df   :  { %13132 = vmatprep.subr.bf16.mxu0 %v19304_v52  ;;  %v19358_v52 = vld [vmem:[#allocation8 + $0x34] ss:$56 sps:$4 sm:$0xff]  }
 0x7e0   :  { %13393 = vmatpush1.bf16.msra.mxu1 %v19299_v45  ;;  %v19353_v45 = vld [vmem:[#allocation8 + $0x2d38] ss:$56 sps:$4 sm:$0xff]  }
 0x7e1   :  { %13394 = vmatprep.subr.bf16.mxu1 %v19307_v20  ;;  %v19361_v20 = vld [vmem:[#allocation8 + $0x2dac] ss:$56 sps:$4 sm:$0xff]  }
 0x7e2   :  { %13133 = vmatpush1.bf16.msra.mxu0 %v19302_v27  ;;  %v19356_v27 = vld [vmem:[#allocation8 + $0x30] ss:$56 sps:$4 sm:$0xff]  }
 0x7e3   :  { %13134 = vmatprep.subr.bf16.mxu0 %v19310_v29  ;;  %v19364_v29 = vld [vmem:[#allocation8 + $0xa4] ss:$56 sps:$4 sm:$0xff]  }
 0x7e4   :  { %13395 = vmatpush1.bf16.msra.mxu1 %v19305_v30  ;;  %v19359_v30 = vld [vmem:[#allocation8 + $0x2da8] ss:$56 sps:$4 sm:$0xff]  }
 0x7e5   :  { %13405 = vmatprep.subr.bf16.mxu1 %v19313_v31  ;;  %v19367_v31 = vld [vmem:[#allocation8 + $0x2e1c] ss:$56 sps:$4 sm:$0xff]  }
 0x7e6   :  { %13135 = vmatpush1.bf16.msra.mxu0 %v19308_v32  ;;  %v19362_v32 = vld [vmem:[#allocation8 + $0xa0] ss:$56 sps:$4 sm:$0xff]  }
 0x7e7   :  { %13397 = vmatmul.mubr.bf16.vlgmr.msra.gmra.mrb[28].mxu1 %v20447_v19  ;;  %13136 = vmatprep.subr.bf16.mxu0 %v19316_v34  ;;  %v19370_v34 = vld [vmem:[#allocation8 + $0x114] ss:$56 sps:$4 sm:$0xff]  }
 0x7e8   :  { %13406 = vmatpush1.bf16.msra.mxu1 %v19311_v40  ;;  %13437 = vmatprep.mubr.bf16.mxu1 %v20451_v39  ;;  %v19365_v40 = vld [vmem:[#allocation8 + $0x2e18] ss:$56 sps:$4 sm:$0xff]  }
 0x7e9   :  { %13407 = vmatprep.subr.bf16.mxu1 %v19319_v57  ;;  %v19373_v57 = vld [vmem:[#allocation8 + $0x2e8c] ss:$56 sps:$4 sm:$0xff]  }
 0x7ea   :  { %13137 = vmatpush1.bf16.msra.mxu0 %v19314_v33  ;;  %v19368_v33 = vld [vmem:[#allocation8 + $0x110] ss:$56 sps:$4 sm:$0xff]  }
 0x7eb   :  { %13138 = vmatprep.subr.bf16.mxu0 %v19322_v26  ;;  %v19376_v26 = vld [vmem:[#allocation8 + $0x184] ss:$56 sps:$4 sm:$0xff]  }
 0x7ec   :  { %13408 = vmatpush1.bf16.msra.mxu1 %v19317_v62  ;;  %v19371_v62 = vld [vmem:[#allocation8 + $0x2e88] ss:$56 sps:$4 sm:$0xff]  }
 0x7ed   :  { %13409 = vmatprep.subr.bf16.mxu1 %v19325_v63  ;;  %v19379_v63 = vld [vmem:[#allocation8 + $0x2efc] ss:$56 sps:$4 sm:$0xff]  }
 0x7ee   :  { %13139 = vmatpush1.bf16.msra.mxu0 %v19320_v0  ;;  %v19374_v0 = vld [vmem:[#allocation8 + $0x180] ss:$56 sps:$4 sm:$0xff]  }
 0x7ef   :  { %13140 = vmatprep.subr.bf16.mxu0 %v19328_v1  ;;  %v19382_v1 = vld [vmem:[#allocation8 + $0x1f4] ss:$56 sps:$4 sm:$0xff]  }
 0x7f0   :  { %13410 = vmatpush1.bf16.msra.mxu1 %v19323_v2  ;;  %v19385_v2 = vld [vmem:[#allocation8 + $0x2f6c] ss:$56 sps:$4 sm:$0xff]  }
 0x7f1   :  { %13411 = vmatprep.subr.bf16.mxu1 %v19331_v8  ;;  %v19380_v8 = vld [vmem:[#allocation8 + $0x1f0] ss:$56 sps:$4 sm:$0xff]  }
 0x7f2   :  { %13141 = vmatpush1.bf16.msra.mxu0 %v19326_v10  ;;  %v19388_v10 = vld [vmem:[#allocation8 + $0x264] ss:$56 sps:$4 sm:$0xff]  }
 0x7f3   :  { %13142 = vmatprep.subr.bf16.mxu0 %v19334_v5  ;;  %v19383_v5 = vld [vmem:[#allocation8 + $0x2f68] ss:$56 sps:$4 sm:$0xff]  }
 0x7f4   :  { %13412 = vmatpush1.bf16.msra.mxu1 %v19329_v54  ;;  %v19391_v54 = vld [vmem:[#allocation8 + $0x2fdc] ss:$56 sps:$4 sm:$0xff]  }
 0x7f5   :  { %13413 = vmatprep.subr.bf16.mxu1 %v19337_v9  ;;  %v19386_v9 = vld [vmem:[#allocation8 + $0x260] ss:$56 sps:$4 sm:$0xff]  }
 0x7f6   :  { %13143 = vmatpush1.bf16.msra.mxu0 %v19332_v42  ;;  %v19394_v42 = vld [vmem:[#allocation8 + $0x2d4] ss:$56 sps:$4 sm:$0xff]  }
 0x7f7   :  { %13144 = vmatprep.subr.bf16.mxu0 %v19340_v38  ;;  %v19389_v38 = vld [vmem:[#allocation8 + $0x2fd8] ss:$56 sps:$4 sm:$0xff]  }
 0x7f8   :  { %13414 = vmatpush1.bf16.msra.mxu1 %v19335_v13  ;;  %v19397_v13 = vld [vmem:[#allocation8 + $0x304c] ss:$56 sps:$4 sm:$0xff]  }
 0x7f9   :  { %13415 = vmatprep.subr.bf16.mxu1 %v19343_v17  ;;  %v19392_v17 = vld [vmem:[#allocation8 + $0x2d0] ss:$56 sps:$4 sm:$0xff]  }
 0x7fa   :  { %13145 = vmatpush1.bf16.msra.mxu0 %v19338_v36  ;;  %v19400_v36 = vld [vmem:[#allocation8 + $0x344] ss:$56 sps:$4 sm:$0xff]  }
 0x7fb   :  { %13146 = vmatprep.subr.bf16.mxu0 %v19346_v41  ;;  %v19395_v41 = vld [vmem:[#allocation8 + $0x3048] ss:$56 sps:$4 sm:$0xff]  }
 0x7fc   :  { %13416 = vmatpush1.bf16.msra.mxu1 %v19341_v23  ;;  %v19403_v23 = vld [vmem:[#allocation8 + $0x30bc] ss:$56 sps:$4 sm:$0xff]  }
 0x7fd   :  { %13417 = vmatprep.subr.bf16.mxu1 %v19349_v25  ;;  %v19398_v25 = vld [vmem:[#allocation8 + $0x340] ss:$56 sps:$4 sm:$0xff]  }
 0x7fe   :  { %13147 = vmatpush1.bf16.msra.mxu0 %v19344_v46  ;;  %v19406_v46 = vld [vmem:[#allocation8 + $0x3b4] ss:$56 sps:$4 sm:$0xff]  }
 0x7ff   :  { %13148 = vmatprep.subr.bf16.mxu0 %v19352_v50  ;;  %v19401_v50 = vld [vmem:[#allocation8 + $0x30b8] ss:$56 sps:$4 sm:$0xff]  }
 0x800   :  { %13418 = vmatpush1.bf16.msra.mxu1 %v19347_v14  ;;  %v19404_v14 = vld [vmem:[#allocation8 + $0x3b0] ss:$56 sps:$4 sm:$0xff]  }
 0x801   :  { %13419 = vmatprep.subr.bf16.mxu1 %v19355_v7  ;;  %v19409_v7 = vld [vmem:[#allocation8 + $0x424] ss:$56 sps:$4 sm:$0xff]  }
 0x802   :  { %13149 = vmatpush1.bf16.msra.mxu0 %v19350_v47  ;;  %v19407_v47 = vld [vmem:[#allocation8 + $0x420] ss:$56 sps:$4 sm:$0xff]  }
 0x803   :  { %13446 = vmatprep.subr.bf16.mxu0 %v19358_v52  ;;  %v19412_v52 = vld [vmem:[#allocation8 + $0x494] ss:$56 sps:$4 sm:$0xff]  }
 0x804   :  { %13420 = vmatpush1.bf16.msra.mxu1 %v19353_v45  ;;  %v19410_v45 = vld [vmem:[#allocation8 + $0x490] ss:$56 sps:$4 sm:$0xff]  }
 0x805   :  { %13151 = vmatmul.mubr.bf16.vlgmr.msra.gmra.mrb[20].mxu0 %v20459_v55  ;;  %13421 = vmatprep.subr.bf16.mxu1 %v19361_v20  ;;  %v19415_v20 = vld [vmem:[#allocation8 + $0x504] ss:$56 sps:$4 sm:$0xff]  }
 0x806   :  { %13447 = vmatpush1.bf16.msra.mxu0 %v19356_v27  ;;  %13478 = vmatprep.mubr.bf16.mxu0 %v20343_v4  ;;  %v19377_v4 = vld [vmem:[#allocation8 + $0x2ef8] ss:$56 sps:$4 sm:$0xff]  }
 0x807   :  { %13448 = vmatprep.subr.bf16.mxu0 %v19364_v29  ;;  %v19413_v27 = vld [vmem:[#allocation8 + $0x500] ss:$56 sps:$4 sm:$0xff]   ;;  %v19418_v29 = vld [vmem:[#allocation8 + $0x574] ss:$56 sps:$4 sm:$0xff]  }
 0x808   :  { %13422 = vmatpush1.bf16.msra.mxu1 %v19359_v30  ;;  %v19416_v30 = vld [vmem:[#allocation8 + $0x570] ss:$56 sps:$4 sm:$0xff]  }
 0x809   :  { %13423 = vmatprep.subr.bf16.mxu1 %v19367_v31  ;;  %v19421_v31 = vld [vmem:[#allocation8 + $0x5e4] ss:$56 sps:$4 sm:$0xff]  }
 0x80a   :  { %13449 = vmatpush1.bf16.msra.mxu0 %v19362_v32  ;;  %v19419_v32 = vld [vmem:[#allocation8 + $0x5e0] ss:$56 sps:$4 sm:$0xff]  }
 0x80b   :  { %13450 = vmatprep.subr.bf16.mxu0 %v19370_v34  ;;  %v19424_v34 = vld [vmem:[#allocation8 + $0x654] ss:$56 sps:$4 sm:$0xff]  }
 0x80c   :  { %13424 = vmatpush1.bf16.msra.mxu1 %v19365_v40  ;;  %v19422_v40 = vld [vmem:[#allocation8 + $0x650] ss:$56 sps:$4 sm:$0xff]  }
 0x80d   :  { %13425 = vmatprep.subr.bf16.mxu1 %v19373_v57  ;;  %v19427_v57 = vld [vmem:[#allocation8 + $0x6c4] ss:$56 sps:$4 sm:$0xff]  }
 0x80e   :  { %13451 = vmatpush1.bf16.msra.mxu0 %v19368_v33  ;;  %v19425_v33 = vld [vmem:[#allocation8 + $0x6c0] ss:$56 sps:$4 sm:$0xff]  }
 0x80f   :  { %13452 = vmatprep.subr.bf16.mxu0 %v19376_v26  ;;  %v19430_v26 = vld [vmem:[#allocation8 + $0x734] ss:$56 sps:$4 sm:$0xff]  }
 0x810   :  { %13426 = vmatpush1.bf16.msra.mxu1 %v19371_v62  ;;  %v19524_v62 = vld [vmem:[#allocation11 + $0x40] sm:$0xff]  }
 0x811   :  { %13427 = vmatprep.subr.bf16.mxu1 %v19379_v63  ;;  %v19525_v63 = vld [vmem:[#allocation11] sm:$0xff]  }
 0x812   :  { %13453 = vmatpush1.bf16.msra.mxu0 %v19374_v0  ;;  %v19428_v0 = vld [vmem:[#allocation8 + $0x730] ss:$56 sps:$4 sm:$0xff]  }
 0x813   :  { %13454 = vmatprep.subr.bf16.mxu0 %v19382_v1  ;;  %v19433_v1 = vld [vmem:[#allocation8 + $0x7a4] ss:$56 sps:$4 sm:$0xff]  }
 0x814   :  { %13428 = vmatpush1.bf16.msra.mxu1 %v19377_v4  ;;  %v19529_v4 = vld [vmem:[#allocation11 + $0x48] sm:$0xff]  }
 0x815   :  { %13429 = vmatprep.subr.bf16.mxu1 %v19385_v2  ;;  %v19530_v2 = vld [vmem:[#allocation11 + $0x8] sm:$0xff]  }
 0x816   :  { %13455 = vmatpush1.bf16.msra.mxu0 %v19380_v8  ;;  %v19431_v8 = vld [vmem:[#allocation8 + $0x7a0] ss:$56 sps:$4 sm:$0xff]  }
 0x817   :  { %13456 = vmatprep.subr.bf16.mxu0 %v19388_v10  ;;  %v19436_v10 = vld [vmem:[#allocation8 + $0x814] ss:$56 sps:$4 sm:$0xff]  }
 0x818   :  { %13430 = vmatpush1.bf16.msra.mxu1 %v19383_v5  ;;  %v19534_v5 = vld [vmem:[#allocation11 + $0x50] sm:$0xff]  }
 0x819   :  { %13431 = vmatprep.subr.bf16.mxu1 %v19391_v54  ;;  %v19535_v54 = vld [vmem:[#allocation11 + $0x10] sm:$0xff]  }
 0x81a   :  { %13457 = vmatpush1.bf16.msra.mxu0 %v19386_v9  ;;  %v19434_v9 = vld [vmem:[#allocation8 + $0x810] ss:$56 sps:$4 sm:$0xff]  }
 0x81b   :  { %13458 = vmatprep.subr.bf16.mxu0 %v19394_v42  ;;  %v19439_v42 = vld [vmem:[#allocation8 + $0x884] ss:$56 sps:$4 sm:$0xff]  }
 0x81c   :  { %13432 = vmatpush1.bf16.msra.mxu1 %v19389_v38  ;;  %v19539_v38 = vld [vmem:[#allocation11 + $0x58] sm:$0xff]  }
 0x81d   :  { %13433 = vmatprep.subr.bf16.mxu1 %v19397_v13  ;;  %v19540_v13 = vld [vmem:[#allocation11 + $0x18] sm:$0xff]  }
 0x81e   :  { %13459 = vmatpush1.bf16.msra.mxu0 %v19392_v17  ;;  %v19544_v17 = vld [vmem:[#allocation11 + $0x60] sm:$0xff]  }
 0x81f   :  { %13460 = vmatprep.subr.bf16.mxu0 %v19400_v36  ;;  %v19545_v36 = vld [vmem:[#allocation11 + $0x20] sm:$0xff]  }
 0x820   :  { %13434 = vmatpush1.bf16.msra.mxu1 %v19395_v41  ;;  %v19440_v41 = vld [vmem:[#allocation8 + $0x8f0] ss:$56 sps:$4 sm:$0xff]  }
 0x821   :  { %13435 = vmatprep.subr.bf16.mxu1 %v19403_v23  ;;  %v19445_v23 = vld [vmem:[#allocation8 + $0x964] ss:$56 sps:$4 sm:$0xff]  }
 0x822   :  { %13461 = vmatpush1.bf16.msra.mxu0 %v19398_v25  ;;  %v19549_v25 = vld [vmem:[#allocation11 + $0x68] sm:$0xff]  }
 0x823   :  { %13462 = vmatprep.subr.bf16.mxu0 %v19406_v46  ;;  %v19550_v46 = vld [vmem:[#allocation11 + $0x28] sm:$0xff]  }
 0x824   :  { %13436 = vmatpush1.bf16.msra.mxu1 %v19401_v50  ;;  %v19443_v50 = vld [vmem:[#allocation8 + $0x960] ss:$56 sps:$4 sm:$0xff]  }
 0x825   :  { %16144 = vmatprep.subr.bf16.mxu1 %v19524_v62  ;;  %v19461_v62 = vld [vmem:[#allocation8 + $0xc00] ss:$56 sps:$4 sm:$0xff]  }
 0x826   :  { %13463 = vmatpush1.bf16.msra.mxu0 %v19404_v14  ;;  %v19448_v14 = vld [vmem:[#allocation8 + $0x9d4] ss:$56 sps:$4 sm:$0xff]  }
 0x827   :  { %13438 = vmatmul.mubr.bf16.vlgmr.msra.gmra.mrb[28].mxu1 %v20459_v55  ;;  %13464 = vmatprep.subr.bf16.mxu0 %v19409_v7  ;;  %v19554_v7 = vld [vmem:[#allocation11 + $0x70] sm:$0xff]  }
 0x828   :  { %16145 = vmatpush3.bf16.msra.mxu1 %v19525_v63  ;;  %v19466_v63 = vld [vmem:[#allocation8 + $0xc74] ss:$56 sps:$4 sm:$0xff]  }
 0x829   :  { %16146 = vmatprep.subr.bf16.mxu1 %v19529_v4  ;;  %v19467_v4 = vld [vmem:[#allocation8 + $0xce0] ss:$56 sps:$4 sm:$0xff]  }
 0x82a   :  { %13465 = vmatpush1.bf16.msra.mxu0 %v19407_v47  ;;  %v19555_v47 = vld [vmem:[#allocation11 + $0x30] sm:$0xff]  }
 0x82b   :  { %13466 = vmatprep.subr.bf16.mxu0 %v19412_v52  ;;  %v19446_v52 = vld [vmem:[#allocation8 + $0x9d0] ss:$56 sps:$4 sm:$0xff]  }
 0x82c   :  { %16147 = vmatpush3.bf16.msra.mxu1 %v19530_v2  ;;  %v19472_v2 = vld [vmem:[#allocation8 + $0xd54] ss:$56 sps:$4 sm:$0xff]  }
 0x82d   :  { %16148 = vmatprep.subr.bf16.mxu1 %v19534_v5  ;;  %v19473_v5 = vld [vmem:[#allocation8 + $0xdc0] ss:$56 sps:$4 sm:$0xff]  }
 0x82e   :  { %13467 = vmatpush1.bf16.msra.mxu0 %v19410_v45  ;;  %v19451_v45 = vld [vmem:[#allocation8 + $0xa44] ss:$56 sps:$4 sm:$0xff]  }
 0x82f   :  { %13468 = vmatprep.subr.bf16.mxu0 %v19415_v20  ;;  %v19559_v20 = vld [vmem:[#allocation11 + $0x78] sm:$0xff]  }
 0x830   :  { %16149 = vmatpush3.bf16.msra.mxu1 %v19535_v54  ;;  %v19478_v54 = vld [vmem:[#allocation8 + $0xe34] ss:$56 sps:$4 sm:$0xff]  }
 0x831   :  { %16150 = vmatprep.subr.bf16.mxu1 %v19539_v38  ;;  %v19479_v38 = vld [vmem:[#allocation8 + $0xea0] ss:$56 sps:$4 sm:$0xff]  }
 0x832   :  { %13469 = vmatpush1.bf16.msra.mxu0 %v19413_v27  ;;  %v19560_v27 = vld [vmem:[#allocation11 + $0x38] sm:$0xff]  }
 0x833   :  { %13470 = vmatprep.subr.bf16.mxu0 %v19418_v29  ;;  %v19449_v29 = vld [vmem:[#allocation8 + $0xa40] ss:$56 sps:$4 sm:$0xff]  }
 0x834   :  { %16151 = vmatpush3.bf16.msra.mxu1 %v19540_v13  ;;  %v19484_v13 = vld [vmem:[#allocation8 + $0xf14] ss:$56 sps:$4 sm:$0xff]  }
 0x835   :  { %16152 = vmatprep.subr.bf16.mxu1 %v19544_v17  ;;  %v19485_v17 = vld [vmem:[#allocation8 + $0xf80] ss:$56 sps:$4 sm:$0xff]  }
 0x836   :  { %13471 = vmatpush1.bf16.msra.mxu0 %v19416_v30  ;;  %v19454_v30 = vld [vmem:[#allocation8 + $0xab4] ss:$56 sps:$4 sm:$0xff]  }
 0x837   :  { %13472 = vmatprep.subr.bf16.mxu0 %v19421_v31  ;;  %v19452_v31 = vld [vmem:[#allocation8 + $0xab0] ss:$56 sps:$4 sm:$0xff]  }
 0x838   :  { %16153 = vmatpush3.bf16.msra.mxu1 %v19545_v36  ;;  %v19490_v36 = vld [vmem:[#allocation8 + $0xff4] ss:$56 sps:$4 sm:$0xff]  }
 0x839   :  { %16154 = vmatprep.subr.bf16.mxu1 %v19549_v25  ;;  %v19496_v25 = vld [vmem:[#allocation8 + $0x10d4] ss:$56 sps:$4 sm:$0xff]  }
 0x83a   :  { %13473 = vmatpush1.bf16.msra.mxu0 %v19419_v32  ;;  %v19457_v32 = vld [vmem:[#allocation8 + $0xb24] ss:$56 sps:$4 sm:$0xff]  }
 0x83b   :  { %13474 = vmatprep.subr.bf16.mxu0 %v19424_v34  ;;  %v19567_v34 = vld [vmem:[#allocation11 + $0xc0] sm:$0xff]  }
 0x83c   :  { %16155 = vmatpush3.bf16.msra.mxu1 %v19550_v46  ;;  %v19499_v46 = vld [vmem:[#allocation8 + $0x1144] ss:$56 sps:$4 sm:$0xff]  }
 0x83d   :  { %16156 = vmatprep.subr.bf16.mxu1 %v19554_v7  ;;  %v19500_v7 = vld [vmem:[#allocation8 + $0x11b0] ss:$56 sps:$4 sm:$0xff]  }
 0x83e   :  { %13475 = vmatpush1.bf16.msra.mxu0 %v19422_v40  ;;  %v19455_v40 = vld [vmem:[#allocation8 + $0xb20] ss:$56 sps:$4 sm:$0xff]  }
 0x83f   :  { %13476 = vmatprep.subr.bf16.mxu0 %v19427_v57  ;;  %v19460_v57 = vld [vmem:[#allocation8 + $0xb94] ss:$56 sps:$4 sm:$0xff]  }
 0x840   :  { %16157 = vmatpush3.bf16.msra.mxu1 %v19555_v47  ;;  %v19505_v47 = vld [vmem:[#allocation8 + $0x1224] ss:$56 sps:$4 sm:$0xff]  }
 0x841   :  { %16158 = vmatprep.subr.bf16.mxu1 %v19559_v20  ;;  %v19506_v20 = vld [vmem:[#allocation8 + $0x1290] ss:$56 sps:$4 sm:$0xff]  }
 0x842   :  { %13477 = vmatpush1.bf16.msra.mxu0 %v19425_v33  ;;  %v19458_v33 = vld [vmem:[#allocation8 + $0xb90] ss:$56 sps:$4 sm:$0xff]  }
 0x843   :  { %13487 = vmatprep.subr.bf16.mxu0 %v19430_v26  ;;  %v19463_v26 = vld [vmem:[#allocation8 + $0xc04] ss:$56 sps:$4 sm:$0xff]  }
 0x844   :  { %16159 = vmatpush3.bf16.msra.mxu1 %v19560_v27  ;;  %v19511_v27 = vld [vmem:[#allocation8 + $0x1304] ss:$56 sps:$4 sm:$0xff]  }
 0x845   :  { %13479 = vmatmul.mubr.bf16.vlgmr.msra.gmra.mrb[24].mxu0 %v20345_v24  ;;  %v19437_v24 = vld [vmem:[#allocation8 + $0x880] ss:$56 sps:$4 sm:$0xff]   ;;  %16166 = vmatprep.subr.bf16.mxu1 %v19567_v34 }
 0x846   :  { %13488 = vmatpush1.bf16.msra.mxu0 %v19428_v0  ;;  %13519 = vmatprep.mubr.bf16.mxu0 %v20349_v6  ;;  %v19442_v6 = vld [vmem:[#allocation8 + $0x8f4] ss:$56 sps:$4 sm:$0xff]   ;;  %v19464_v0 = vld [vmem:[#allocation8 + $0xc70] ss:$56 sps:$4 sm:$0xff]   ;;  %v19515_v34 = vld [vmem:[#allocation8 + $0x13e0] ss:$56 sps:$4 sm:$0xff]  }
 0x847   :  { %13489 = vmatprep.subr.bf16.mxu0 %v19433_v1  ;;  %v19469_v1 = vld [vmem:[#allocation8 + $0xce4] ss:$56 sps:$4 sm:$0xff]  }
 0x84a   :  { %13490 = vmatpush1.bf16.msra.mxu0 %v19431_v8  ;;  %v19470_v8 = vld [vmem:[#allocation8 + $0xd50] ss:$56 sps:$4 sm:$0xff]  }
 0x84b   :  { %13491 = vmatprep.subr.bf16.mxu0 %v19436_v10  ;;  %v19475_v10 = vld [vmem:[#allocation8 + $0xdc4] ss:$56 sps:$4 sm:$0xff]  }
 0x84e   :  { %13492 = vmatpush1.bf16.msra.mxu0 %v19434_v9  ;;  %v19476_v9 = vld [vmem:[#allocation8 + $0xe30] ss:$56 sps:$4 sm:$0xff]  }
 0x84f   :  { %13493 = vmatprep.subr.bf16.mxu0 %v19439_v42  ;;  %v19481_v42 = vld [vmem:[#allocation8 + $0xea4] ss:$56 sps:$4 sm:$0xff]  }
 0x852   :  { %13494 = vmatpush1.bf16.msra.mxu0 %v19437_v24  ;;  %v19482_v24 = vld [vmem:[#allocation8 + $0xf10] ss:$56 sps:$4 sm:$0xff]  }
 0x853   :  { %13495 = vmatprep.subr.bf16.mxu0 %v19442_v6  ;;  %v19487_v6 = vld [vmem:[#allocation8 + $0xf84] ss:$56 sps:$4 sm:$0xff]  }
 0x856   :  { %13496 = vmatpush1.bf16.msra.mxu0 %v19440_v41  ;;  %v19488_v41 = vld [vmem:[#allocation8 + $0xff0] ss:$56 sps:$4 sm:$0xff]  }
 0x857   :  { %13497 = vmatprep.subr.bf16.mxu0 %v19445_v23  ;;  %v19493_v23 = vld [vmem:[#allocation8 + $0x1064] ss:$56 sps:$4 sm:$0xff]  }
 0x85a   :  { %13498 = vmatpush1.bf16.msra.mxu0 %v19443_v50  ;;  %v19497_v50 = vld [vmem:[#allocation8 + $0x1140] ss:$56 sps:$4 sm:$0xff]  }
 0x85b   :  { %13499 = vmatprep.subr.bf16.mxu0 %v19448_v14  ;;  %v19502_v14 = vld [vmem:[#allocation8 + $0x11b4] ss:$56 sps:$4 sm:$0xff]  }
 0x85e   :  { %13500 = vmatpush1.bf16.msra.mxu0 %v19446_v52  ;;  %v19503_v52 = vld [vmem:[#allocation8 + $0x1220] ss:$56 sps:$4 sm:$0xff]  }
 0x85f   :  { %13501 = vmatprep.subr.bf16.mxu0 %v19451_v45  ;;  %v19508_v45 = vld [vmem:[#allocation8 + $0x1294] ss:$56 sps:$4 sm:$0xff]  }
 0x862   :  { %13502 = vmatpush1.bf16.msra.mxu0 %v19449_v29  ;;  %v19509_v29 = vld [vmem:[#allocation8 + $0x1300] ss:$56 sps:$4 sm:$0xff]  }
 0x863   :  { %13503 = vmatprep.subr.bf16.mxu0 %v19454_v30  ;;  %v19514_v30 = vld [vmem:[#allocation8 + $0x1374] ss:$56 sps:$4 sm:$0xff]  }
 0x866   :  { %13504 = vmatpush1.bf16.msra.mxu0 %v19452_v31  ;;  %v19512_v31 = vld [vmem:[#allocation8 + $0x1370] ss:$56 sps:$4 sm:$0xff]  }
 0x867   :  { %13505 = vmatprep.subr.bf16.mxu0 %v19457_v32  ;;  %v19517_v32 = vld [vmem:[#allocation8 + $0x13e4] ss:$56 sps:$4 sm:$0xff]  }
 0x86a   :  { %13506 = vmatpush1.bf16.msra.mxu0 %v19455_v40  ;;  %v19520_v40 = vld [vmem:[#allocation8 + $0x1454] ss:$56 sps:$4 sm:$0xff]  }
 0x86b   :  { %13507 = vmatprep.subr.bf16.mxu0 %v19460_v57  ;;  %v19518_v57 = vld [vmem:[#allocation8 + $0x1450] ss:$56 sps:$4 sm:$0xff]  }
 0x86e   :  { %13508 = vmatpush1.bf16.msra.mxu0 %v19458_v33  ;;  %v19523_v33 = vld [vmem:[#allocation8 + $0x14c4] ss:$56 sps:$4 sm:$0xff]  }
 0x86f   :  { %13509 = vmatprep.subr.bf16.mxu0 %v19463_v26  ;;  %v19521_v26 = vld [vmem:[#allocation8 + $0x14c0] ss:$56 sps:$4 sm:$0xff]  }
 0x872   :  { %13510 = vmatpush1.bf16.msra.mxu0 %v19461_v62  ;;  %v19528_v62 = vld [vmem:[#allocation8 + $0x1534] ss:$56 sps:$4 sm:$0xff]  }
 0x873   :  { %13511 = vmatprep.subr.bf16.mxu0 %v19466_v63  ;;  %v19526_v63 = vld [vmem:[#allocation8 + $0x1530] ss:$56 sps:$4 sm:$0xff]  }
 0x876   :  { %13512 = vmatpush1.bf16.msra.mxu0 %v19464_v0  ;;  %v19533_v0 = vld [vmem:[#allocation8 + $0x15a4] ss:$56 sps:$4 sm:$0xff]  }
 0x877   :  { %13513 = vmatprep.subr.bf16.mxu0 %v19469_v1  ;;  %v19531_v1 = vld [vmem:[#allocation8 + $0x15a0] ss:$56 sps:$4 sm:$0xff]  }
 0x87a   :  { %13514 = vmatpush1.bf16.msra.mxu0 %v19467_v4  ;;  %v19538_v4 = vld [vmem:[#allocation8 + $0x1614] ss:$56 sps:$4 sm:$0xff]  }
 0x87b   :  { %13515 = vmatprep.subr.bf16.mxu0 %v19472_v2  ;;  %v19536_v2 = vld [vmem:[#allocation8 + $0x1610] ss:$56 sps:$4 sm:$0xff]  }
 0x87e   :  { %13516 = vmatpush1.bf16.msra.mxu0 %v19470_v8  ;;  %v19543_v8 = vld [vmem:[#allocation8 + $0x1684] ss:$56 sps:$4 sm:$0xff]  }
 0x87f   :  { %13517 = vmatprep.subr.bf16.mxu0 %v19475_v10  ;;  %v19541_v10 = vld [vmem:[#allocation8 + $0x1680] ss:$56 sps:$4 sm:$0xff]  }
 0x882   :  { %13518 = vmatpush1.bf16.msra.mxu0 %v19473_v5  ;;  %v19548_v5 = vld [vmem:[#allocation8 + $0x16f4] ss:$56 sps:$4 sm:$0xff]  }
 0x883   :  { %13528 = vmatprep.subr.bf16.mxu0 %v19478_v54  ;;  %v19546_v54 = vld [vmem:[#allocation8 + $0x16f0] ss:$56 sps:$4 sm:$0xff]  }
 0x885   :  { %13520 = vmatmul.mubr.bf16.vlgmr.msra.gmra.mrb[24].mxu0 %v20375_v35  ;;  %v19491_v35 = vld [vmem:[#allocation8 + $0x1060] ss:$56 sps:$4 sm:$0xff]  }
 0x886   :  { %13529 = vmatpush1.bf16.msra.mxu0 %v19476_v9  ;;  %13560 = vmatprep.mubr.bf16.mxu0 %v20371_v21  ;;  %v19494_v21 = vld [vmem:[#allocation8 + $0x10d0] ss:$56 sps:$4 sm:$0xff]  }
 0x887   :  { %13530 = vmatprep.subr.bf16.mxu0 %v19481_v42  ;;  %v20545_v9 = vld [vmem:[#allocation10 + $0x8] sm:$0x3f]  ;;  %v20547_v42 = vld [vmem:[#allocation10] sm:$0xff] }
 0x88a   :  { %13531 = vmatpush1.bf16.msra.mxu0 %v19479_v38  ;;  %v3825_v38 = vrot.slane %v20547_v42, %v20254_v49 }
 0x88b   :  { %13532 = vmatprep.subr.bf16.mxu0 %v19484_v13  ;;  %v3849_v13 = vrot.slane %v20545_v9, %v20264_v58 }
 0x88e   :  { %13533 = vmatpush1.bf16.msra.mxu0 %v19482_v24  ;;  %v3853_v24 = vrot.slane %v20545_v9, %v20269_v59 }
 0x88f   :  { %13534 = vmatprep.subr.bf16.mxu0 %v19487_v6  ;;  %v19551_v6 = vld [vmem:[#allocation8 + $0x1760] ss:$56 sps:$4 sm:$0xff]  }
 0x892   :  { %13535 = vmatpush1.bf16.msra.mxu0 %v19485_v17 }
 0x893   :  { %13536 = vmatprep.subr.bf16.mxu0 %v19490_v36  ;;  %v19558_v36 = vld [vmem:[#allocation8 + $0x17d4] ss:$56 sps:$4 sm:$0xff]  }
 0x896   :  { %13537 = vmatpush1.bf16.msra.mxu0 %v19488_v41  ;;  %v17166_v41 = vadd.f32 %v20481_v44, %v3825_v38  ;;  %v19597_v38 = vld [vmem:[#allocation11 + $0xf0] sm:$0xff]  }
 0x897   :  { %13538 = vmatprep.subr.bf16.mxu0 %v19493_v23 }
 0x89a   :  { %13539 = vmatpush1.bf16.msra.mxu0 %v19491_v35 }
 0x89b   :  { %13540 = vmatprep.subr.bf16.mxu0 %v19496_v25 }
 0x89e   :  { %13541 = vmatpush1.bf16.msra.mxu0 %v19494_v21 }
 0x89f   :  { %13542 = vmatprep.subr.bf16.mxu0 %v19499_v46 }
 0x8a2   :  { %13543 = vmatpush1.bf16.msra.mxu0 %v19497_v50  ;;  %v19556_v50 = vld [vmem:[#allocation8 + $0x17d0] ss:$56 sps:$4 sm:$0xff]  }
 0x8a3   :  { %13544 = vmatprep.subr.bf16.mxu0 %v19502_v14 }
 0x8a6   :  { %13545 = vmatpush1.bf16.msra.mxu0 %v19500_v7 }
 0x8a7   :  { %13546 = vmatprep.subr.bf16.mxu0 %v19505_v47  ;;  %v19563_v47 = vld [vmem:[#allocation8 + $0x1844] ss:$56 sps:$4 sm:$0xff]  }
 0x8aa   :  { %13547 = vmatpush1.bf16.msra.mxu0 %v19503_v52 }
 0x8ab   :  { %13548 = vmatprep.subr.bf16.mxu0 %v19508_v45 }
 0x8ae   :  { %13549 = vmatpush1.bf16.msra.mxu0 %v19506_v20  ;;  %v19561_v20 = vld [vmem:[#allocation8 + $0x1840] ss:$56 sps:$4 sm:$0xff]  }
 0x8af   :  { %13550 = vmatprep.subr.bf16.mxu0 %v19511_v27  ;;  %v19566_v27 = vld [vmem:[#allocation8 + $0x18b4] ss:$56 sps:$4 sm:$0xff]  }
 0x8b2   :  { %13551 = vmatpush1.bf16.msra.mxu0 %v19509_v29  ;;  %v19568_v29 = vld [vmem:[#allocation11 + $0x80] sm:$0xff]  }
 0x8b3   :  { %13552 = vmatprep.subr.bf16.mxu0 %v19514_v30  ;;  %v13754_v30 = vpack.c.bf16 %v20522_v15, %v20522_v15  ;;  %v19574_v15 = vld [vmem:[#allocation8 + $0x1990] ss:$56 sps:$4 sm:$0xff]  }
 0x8b6   :  { %13553 = vmatpush1.bf16.msra.mxu0 %v19512_v31  ;;  %v19572_v31 = vld [vmem:[#allocation11 + $0xc8] sm:$0xff]  }
 0x8b7   :  { %13554 = vmatprep.subr.bf16.mxu0 %v19517_v32  ;;  %v19564_v32 = vld [vmem:[#allocation8 + $0x18b0] ss:$56 sps:$4 sm:$0xff]  }
 0x8ba   :  { %13555 = vmatpush1.bf16.msra.mxu0 %v19515_v34  ;;  %v19571_v34 = vld [vmem:[#allocation8 + $0x1924] ss:$56 sps:$4 sm:$0xff]  }
 0x8bb   :  { %13556 = vmatprep.subr.bf16.mxu0 %v19520_v40  ;;  %v19573_v40 = vld [vmem:[#allocation11 + $0x88] sm:$0xff]  }
 0x8be   :  { %13557 = vmatpush1.bf16.msra.mxu0 %v19518_v57  ;;  %v19577_v57 = vld [vmem:[#allocation11 + $0xd0] sm:$0xff]  }
 0x8bf   :  { %13558 = vmatprep.subr.bf16.mxu0 %v19523_v33  ;;  %v19569_v33 = vld [vmem:[#allocation8 + $0x1920] ss:$56 sps:$4 sm:$0xff]  }
 0x8c2   :  { %13559 = vmatpush1.bf16.msra.mxu0 %v19521_v26  ;;  %v19576_v26 = vld [vmem:[#allocation8 + $0x1994] ss:$56 sps:$4 sm:$0xff]  }
 0x8c3   :  { %13569 = vmatprep.subr.bf16.mxu0 %v19528_v62  ;;  %v19578_v62 = vld [vmem:[#allocation11 + $0x90] sm:$0xff]  }
 0x8c5   :  { %13561 = vmatmul.mubr.bf16.vlgmr.msra.gmra.mrb[24].mxu0 %v20399_v18  ;;  %v3821_v18 = vrot.slane %v20547_v42, %v20269_v59  ;;  %v13735_v59 = vmax.f32 %v17166_v41, 0.0  ;;  %v19598_v41 = vld [vmem:[#allocation11 + $0xb0] sm:$0xff]  }
 0x8c6   :  { %13570 = vmatpush1.bf16.msra.mxu0 %v19526_v63  ;;  %13601 = vmatprep.mubr.bf16.mxu0 %v20403_v22  ;;  %v19553_v22 = vld [vmem:[#allocation8 + $0x1764] ss:$56 sps:$4 sm:$0xff]  }
 0x8c7   :  { %13571 = vmatprep.subr.bf16.mxu0 %v19533_v0  ;;  %v17165_v17 = vadd.f32 %v20477_v16, %v3821_v18  ;;  %v19582_v63 = vld [vmem:[#allocation11 + $0xd8] sm:$0xff]  }
 0x8c8   :  { %v19581_v0 = vld [vmem:[#allocation8 + $0x1a04] ss:$56 sps:$4 sm:$0xff]  }
 0x8c9   :  { %v13734_v14 = vmax.f32 %v17165_v17, 0.0  ;;  %v19591_v18 = vld [vmem:[#allocation8 + $0x1ae4] ss:$56 sps:$4 sm:$0xff]   ;;  %v3857_v17 = vrot.slane %v20545_v9, %v20254_v49 }
 0x8ca   :  { %13572 = vmatpush1.bf16.msra.mxu0 %v19531_v1  ;;  %v19583_v1 = vld [vmem:[#allocation11 + $0x98] sm:$0xff]  }
 0x8cb   :  { %13573 = vmatprep.subr.bf16.mxu0 %v19538_v4  ;;  %v19587_v4 = vld [vmem:[#allocation11 + $0xe0] sm:$0xff]   ;;  %v19603_v49 = vld [vmem:[#allocation11 + $0xb8] sm:$0xff]  }
 0x8ce   :  { %13574 = vmatpush1.bf16.msra.mxu0 %v19536_v2  ;;  %v19579_v2 = vld [vmem:[#allocation8 + $0x1a00] ss:$56 sps:$4 sm:$0xff]  }
 0x8cf   :  { %13575 = vmatprep.subr.bf16.mxu0 %v19543_v8  ;;  %v19586_v8 = vld [vmem:[#allocation8 + $0x1a74] ss:$56 sps:$4 sm:$0xff]  }
 0x8d2   :  { %13576 = vmatpush1.bf16.msra.mxu0 %v19541_v10  ;;  %v19588_v10 = vld [vmem:[#allocation11 + $0xa0] sm:$0xff]  }
 0x8d3   :  { %13577 = vmatprep.subr.bf16.mxu0 %v19548_v5  ;;  %v19592_v5 = vld [vmem:[#allocation11 + $0xe8] sm:$0xff]  }
 0x8d6   :  { %13578 = vmatpush1.bf16.msra.mxu0 %v19546_v54  ;;  %v19584_v54 = vld [vmem:[#allocation8 + $0x1a70] ss:$56 sps:$4 sm:$0xff]  }
 0x8d7   :  { %13579 = vmatprep.subr.bf16.mxu0 %v19553_v22  ;;  %v19593_v22 = vld [vmem:[#allocation11 + $0xa8] sm:$0xff]  }
 0x8d8   :  { %v13152_v23 = vpop.f32.mrb[20].mxu0 }
 0x8d9   :  { %v17172_v35 = vadd.f32 %v13152_v23, %v3849_v13  ;;  %v13154_v25 = vpop.f32.mrb[21].mxu0  ;;  %v3829_v13 = vrot.slane %v20547_v42, %v20259_v51  ;;  %v3861_v23 = vrot.slane %v20545_v9, %v20259_v51 }
 0x8da   :  { %v17173_v21 = vadd.f32 %v13154_v25, %v3853_v24  ;;  %v13156_v46 = vpop.f32.mrb[22].mxu0  ;;  %13580 = vmatpush1.bf16.msra.mxu0 %v19551_v6  ;;  %v3833_v24 = vrot.slane %v20547_v42, %v20300_v60  ;;  %v19589_v6 = vld [vmem:[#allocation8 + $0x1ae0] ss:$56 sps:$4 sm:$0xff]  }
 0x8db   :  { %v13741_v58 = vmax.f32 %v17172_v35, 0.0  ;;  %v13157_v7 = vpop.f32.mrb[23].mxu0  ;;  %13581 = vmatprep.subr.bf16.mxu0 %v19558_v36  ;;  %v19596_v36 = vld [vmem:[#allocation8 + $0x1b54] ss:$56 sps:$4 sm:$0xff]   ;;  %v17167_v25 = vadd.f32 %v20483_v56, %v3829_v13  ;;  %v19599_v56 = vld [vmem:[#allocation8 + $0x1bc0] ss:$56 sps:$4 sm:$0xff]  }
 0x8dc   :  { %v13742_v52 = vmax.f32 %v17173_v21, 0.0  ;;  %v19602_v35 = vld [vmem:[#allocation11 + $0xf8] sm:$0xff]   ;;  %v17168_v21 = vadd.f32 %v20511_v37, %v3833_v24 }
 0x8dd   :  { %v13748_v45 = vmax.f32 %v13734_v14, %v13741_v58  ;;  %v19601_v7 = vld [vmem:[#allocation8 + $0x1bc4] ss:$56 sps:$4 sm:$0xff]   ;;  %v19642_v13 = vld [vmem:[#allocation8 + $0x2174] ss:$56 sps:$4 sm:$0xff]   ;;  %v19640_v24 = vld [vmem:[#allocation8 + $0x2170] ss:$56 sps:$4 sm:$0xff]  }
 0x8de   :  { %v20559_v16 = vmax.f32 %v13735_v59, %v13742_v52  ;;  %13582 = vmatpush1.bf16.msra.mxu0 %v19556_v50  ;;  %v19594_v50 = vld [vmem:[#allocation8 + $0x1b50] ss:$56 sps:$4 sm:$0xff]   ;;  %v13736_v52 = vmax.f32 %v17167_v25, 0.0  ;;  %v19654_v25 = vld [vmem:[#allocation8 + $0x2334] ss:$56 sps:$4 sm:$0xff]  }
 0x8df   :  { %v13755_v44 = vpack.c.bf16 %v13748_v45, %v13748_v45  ;;  %13583 = vmatprep.subr.bf16.mxu0 %v19563_v47 }
 0x8e1   :  { %14248 = vmatprep.mubr.bf16.mxu1 %v13755_v44 }
 0x8e2   :  { %13584 = vmatpush1.bf16.msra.mxu0 %v19561_v20  ;;  %14249 = vmatmul.mubr.bf16.vlgmr.msra.gmra.mrb[32].mxu1 %v13754_v30  ;;  %v13737_v20 = vmax.f32 %v17168_v21, 0.0  ;;  %v19652_v21 = vld [vmem:[#allocation8 + $0x2330] ss:$56 sps:$4 sm:$0xff]  }
 0x8e3   :  { %13585 = vmatprep.subr.bf16.mxu0 %v19566_v27  ;;  %16167 = vmatpush3.bf16.msra.mxu1 %v19568_v29  ;;  %v19606_v27 = vld [vmem:[#allocation8 + $0x1c34] ss:$56 sps:$4 sm:$0xff]  }
 0x8e4   :  { %16168 = vmatprep.subr.bf16.mxu1 %v19572_v31  ;;  %v13756_v31 = vpack.c.bf16 %v20559_v16, %v20559_v16  ;;  %v19613_v16 = vld [vmem:[#allocation8 + $0x1d80] ss:$56 sps:$4 sm:$0xff]  }
 0x8e6   :  { %13586 = vmatpush1.bf16.msra.mxu0 %v19564_v32  ;;  %v19604_v32 = vld [vmem:[#allocation8 + $0x1c30] ss:$56 sps:$4 sm:$0xff]  }
 0x8e7   :  { %13587 = vmatprep.subr.bf16.mxu0 %v19571_v34  ;;  %16169 = vmatpush3.bf16.msra.mxu1 %v19573_v40  ;;  %v19609_v34 = vld [vmem:[#allocation8 + $0x1ca4] ss:$56 sps:$4 sm:$0xff]   ;;  %v19607_v40 = vld [vmem:[#allocation8 + $0x1ca0] ss:$56 sps:$4 sm:$0xff]  }
 0x8e8   :  { %16170 = vmatprep.subr.bf16.mxu1 %v19577_v57  ;;  %v19612_v57 = vld [vmem:[#allocation8 + $0x1d14] ss:$56 sps:$4 sm:$0xff]  }
 0x8ea   :  { %13588 = vmatpush1.bf16.msra.mxu0 %v19569_v33  ;;  %v19610_v33 = vld [vmem:[#allocation8 + $0x1d10] ss:$56 sps:$4 sm:$0xff]  }
 0x8eb   :  { %13589 = vmatprep.subr.bf16.mxu0 %v19576_v26  ;;  %16171 = vmatpush3.bf16.msra.mxu1 %v19578_v62  ;;  %v19615_v26 = vld [vmem:[#allocation8 + $0x1d84] ss:$56 sps:$4 sm:$0xff]   ;;  %v19618_v62 = vld [vmem:[#allocation8 + $0x1df4] ss:$56 sps:$4 sm:$0xff]  }
 0x8ec   :  { %16172 = vmatprep.subr.bf16.mxu1 %v19582_v63  ;;  %v19616_v63 = vld [vmem:[#allocation8 + $0x1df0] ss:$56 sps:$4 sm:$0xff]  }
 0x8ee   :  { %13590 = vmatpush1.bf16.msra.mxu0 %v19574_v15  ;;  %v19621_v15 = vld [vmem:[#allocation8 + $0x1e64] ss:$56 sps:$4 sm:$0xff]  }
 0x8ef   :  { %13591 = vmatprep.subr.bf16.mxu0 %v19581_v0  ;;  %16173 = vmatpush3.bf16.msra.mxu1 %v19583_v1  ;;  %v19624_v0 = vld [vmem:[#allocation8 + $0x1ed4] ss:$56 sps:$4 sm:$0xff]   ;;  %v19627_v1 = vld [vmem:[#allocation8 + $0x1f44] ss:$56 sps:$4 sm:$0xff]  }
 0x8f0   :  { %16174 = vmatprep.subr.bf16.mxu1 %v19587_v4  ;;  %v19625_v4 = vld [vmem:[#allocation8 + $0x1f40] ss:$56 sps:$4 sm:$0xff]  }
 0x8f2   :  { %13592 = vmatpush1.bf16.msra.mxu0 %v19579_v2  ;;  %v19630_v2 = vld [vmem:[#allocation8 + $0x1fb4] ss:$56 sps:$4 sm:$0xff]  }
 0x8f3   :  { %13593 = vmatprep.subr.bf16.mxu0 %v19586_v8  ;;  %16175 = vmatpush3.bf16.msra.mxu1 %v19588_v10  ;;  %v19628_v8 = vld [vmem:[#allocation8 + $0x1fb0] ss:$56 sps:$4 sm:$0xff]   ;;  %v19633_v10 = vld [vmem:[#allocation8 + $0x2024] ss:$56 sps:$4 sm:$0xff]  }
 0x8f4   :  { %16176 = vmatprep.subr.bf16.mxu1 %v19592_v5  ;;  %v19631_v5 = vld [vmem:[#allocation8 + $0x2020] ss:$56 sps:$4 sm:$0xff]  }
 0x8f6   :  { %13594 = vmatpush1.bf16.msra.mxu0 %v19584_v54  ;;  %v19636_v54 = vld [vmem:[#allocation8 + $0x2094] ss:$56 sps:$4 sm:$0xff]  }
 0x8f7   :  { %13595 = vmatprep.subr.bf16.mxu0 %v19591_v18  ;;  %16177 = vmatpush3.bf16.msra.mxu1 %v19593_v22  ;;  %v19634_v18 = vld [vmem:[#allocation8 + $0x2090] ss:$56 sps:$4 sm:$0xff]   ;;  %v19639_v22 = vld [vmem:[#allocation8 + $0x2104] ss:$56 sps:$4 sm:$0xff]  }
 0x8f8   :  { %16178 = vmatprep.subr.bf16.mxu1 %v19597_v38  ;;  %v19637_v38 = vld [vmem:[#allocation8 + $0x2100] ss:$56 sps:$4 sm:$0xff]  }
 0x8fa   :  { %13596 = vmatpush1.bf16.msra.mxu0 %v19589_v6  ;;  %v13439_v46 = vpop.f32.mrb[28].mxu1  ;;  %v19645_v6 = vld [vmem:[#allocation8 + $0x21e4] ss:$56 sps:$4 sm:$0xff]  }
 0x8fb   :  { %v17174_v14 = vadd.f32 %v13439_v46, %v3857_v17  ;;  %v13441_v58 = vpop.f32.mrb[29].mxu1  ;;  %13597 = vmatprep.subr.bf16.mxu0 %v19596_v36  ;;  %16179 = vmatpush3.bf16.msra.mxu1 %v19598_v41  ;;  %v19643_v17 = vld [vmem:[#allocation8 + $0x21e0] ss:$56 sps:$4 sm:$0xff]   ;;  %v19648_v36 = vld [vmem:[#allocation8 + $0x2254] ss:$56 sps:$4 sm:$0xff]  }
 0x8fc   :  { %v17175_v47 = vadd.f32 %v13441_v58, %v3861_v23  ;;  %v13443_v59 = vpop.f32.mrb[30].mxu1  ;;  %16180 = vmatprep.subr.bf16.mxu1 %v19602_v35  ;;  %v19646_v41 = vld [vmem:[#allocation8 + $0x2250] ss:$56 sps:$4 sm:$0xff]   ;;  %v19651_v23 = vld [vmem:[#allocation8 + $0x22c4] ss:$56 sps:$4 sm:$0xff]  }
 0x8fd   :  { %v13743_v51 = vmax.f32 %v17174_v14, 0.0  ;;  %v13444_v45 = vpop.f32.mrb[31].mxu1  ;;  %v19649_v35 = vld [vmem:[#allocation8 + $0x22c0] ss:$56 sps:$4 sm:$0xff]   ;;  %v19657_v46 = vld [vmem:[#allocation8 + $0x23a4] ss:$56 sps:$4 sm:$0xff]  }
 0x8fe   :  { %v13744_v44 = vmax.f32 %v17175_v47, 0.0  ;;  %13598 = vmatpush1.bf16.msra.mxu0 %v19594_v50  ;;  %v19655_v50 = vld [vmem:[#allocation8 + $0x23a0] ss:$56 sps:$4 sm:$0xff]   ;;  %v19660_v14 = vld [vmem:[#allocation8 + $0x2414] ss:$56 sps:$4 sm:$0xff]  }
 0x8ff   :  { %v13750_v37 = vmax.f32 %v13736_v52, %v13743_v51  ;;  %13599 = vmatprep.subr.bf16.mxu0 %v19601_v7  ;;  %16181 = vmatpush3.bf16.msra.mxu1 %v19603_v49  ;;  %v19658_v58 = vld [vmem:[#allocation8 + $0x2410] ss:$56 sps:$4 sm:$0xff]   ;;  %v19663_v7 = vld [vmem:[#allocation8 + $0x2484] ss:$56 sps:$4 sm:$0xff]   ;;  %v19661_v49 = vld [vmem:[#allocation8 + $0x2480] ss:$56 sps:$4 sm:$0xff]  }
 0x900   :  { %v20573_v29 = vmax.f32 %v13737_v20, %v13744_v44  ;;  %v19666_v47 = vld [vmem:[#allocation8 + $0x24f4] ss:$56 sps:$4 sm:$0xff]   ;;  %v19664_v59 = vld [vmem:[#allocation8 + $0x24f0] ss:$56 sps:$4 sm:$0xff]   ;;  %v19669_v52 = vld [vmem:[#allocation8 + $0x2564] ss:$56 sps:$4 sm:$0xff]  }
 0x901   :  { %v13757_v30 = vpack.c.bf16 %v13750_v37, %v13750_v37  ;;  %v19672_v51 = vld [vmem:[#allocation8 + $0x25d4] ss:$56 sps:$4 sm:$0xff]   ;;  %v19675_v45 = vld [vmem:[#allocation8 + $0x2644] ss:$56 sps:$4 sm:$0xff]   ;;  %v19673_v37 = vld [vmem:[#allocation8 + $0x2640] ss:$56 sps:$4 sm:$0xff]  }
 0x902   :  { %13600 = vmatpush1.bf16.msra.mxu0 %v19599_v56  ;;  %v19748_v20 = vld [vmem:[#allocation11 + $0x140] sm:$0xff]   ;;  %v19750_v56 = vld [vmem:[#allocation11 + $0x148] sm:$0xff]  }
 0x903   :  { %14288 = vmatprep.mubr.bf16.mxu1 %v13757_v30  ;;  %13610 = vmatprep.subr.bf16.mxu0 %v19606_v27  ;;  %v19749_v44 = vld [vmem:[#allocation11 + $0x100] sm:$0xff]   ;;  %v19751_v27 = vld [vmem:[#allocation11 + $0x108] sm:$0xff]  }
 0x904   :  { %14289 = vmatmul.mubr.bf16.vlgmr.msra.gmra.mrb[36].mxu1 %v13756_v31  ;;  %16188 = vmatprep.subr.bf16.mxu1 %v19748_v20  ;;  %v19678_v30 = vld [vmem:[#allocation8 + $0x26b4] ss:$56 sps:$4 sm:$0xff]   ;;  %v19752_v31 = vld [vmem:[#allocation11 + $0x150] sm:$0xff]  }
 0x905   :  { %13602 = vmatmul.mubr.bf16.vlgmr.msra.gmra.mrb[24].mxu0 %v20423_v11  ;;  %v19619_v11 = vld [vmem:[#allocation8 + $0x1e60] ss:$56 sps:$4 sm:$0xff]   ;;  %16189 = vmatpush3.bf16.msra.mxu1 %v19749_v44  ;;  %v19741_v20 = vld [vmem:[#allocation8 + $0x2fe4] ss:$56 sps:$4 sm:$0xff]  }
 0x906   :  { %13611 = vmatpush1.bf16.msra.mxu0 %v19604_v32  ;;  %13642 = vmatprep.mubr.bf16.mxu0 %v20427_v12  ;;  %v19622_v12 = vld [vmem:[#allocation8 + $0x1ed0] ss:$56 sps:$4 sm:$0xff]  }
 0x907   :  { %13612 = vmatprep.subr.bf16.mxu0 %v19609_v34  ;;  %16190 = vmatprep.subr.bf16.mxu1 %v19750_v56  ;;  %v19676_v32 = vld [vmem:[#allocation8 + $0x26b0] ss:$56 sps:$4 sm:$0xff]   ;;  %v19753_v34 = vld [vmem:[#allocation11 + $0x110] sm:$0xff]  }
 0x909   :  { %16191 = vmatpush3.bf16.msra.mxu1 %v19751_v27 }
 0x90a   :  { %13613 = vmatpush1.bf16.msra.mxu0 %v19607_v40  ;;  %v19681_v40 = vld [vmem:[#allocation8 + $0x2724] ss:$56 sps:$4 sm:$0xff]   ;;  %16192 = vmatprep.subr.bf16.mxu1 %v19752_v31  ;;  %v19744_v31 = vld [vmem:[#allocation8 + $0x3054] ss:$56 sps:$4 sm:$0xff]  }
 0x90b   :  { %13614 = vmatprep.subr.bf16.mxu0 %v19612_v57  ;;  %v19754_v57 = vld [vmem:[#allocation11 + $0x158] sm:$0xff]  }
 0x90d   :  { %16193 = vmatpush3.bf16.msra.mxu1 %v19753_v34  ;;  %v19742_v34 = vld [vmem:[#allocation8 + $0x3050] ss:$56 sps:$4 sm:$0xff]  }
 0x90e   :  { %13615 = vmatpush1.bf16.msra.mxu0 %v19610_v33  ;;  %v19679_v33 = vld [vmem:[#allocation8 + $0x2720] ss:$56 sps:$4 sm:$0xff]   ;;  %16194 = vmatprep.subr.bf16.mxu1 %v19754_v57 }
 0x90f   :  { %13616 = vmatprep.subr.bf16.mxu0 %v19615_v26  ;;  %v19755_v26 = vld [vmem:[#allocation11 + $0x118] sm:$0xff]   ;;  %v19745_v57 = vld [vmem:[#allocation8 + $0x30c0] ss:$56 sps:$4 sm:$0xff]  }
 0x911   :  { %16195 = vmatpush3.bf16.msra.mxu1 %v19755_v26 }
 0x912   :  { %13617 = vmatpush1.bf16.msra.mxu0 %v19613_v16  ;;  %v19684_v16 = vld [vmem:[#allocation8 + $0x2794] ss:$56 sps:$4 sm:$0xff]  }
 0x913   :  { %13618 = vmatprep.subr.bf16.mxu0 %v19618_v62  ;;  %v19756_v62 = vld [vmem:[#allocation11 + $0x160] sm:$0xff]  }
 0x914   :  { %16196 = vmatprep.subr.bf16.mxu1 %v19756_v62 }
 0x916   :  { %13619 = vmatpush1.bf16.msra.mxu0 %v19616_v63  ;;  %v19682_v63 = vld [vmem:[#allocation8 + $0x2790] ss:$56 sps:$4 sm:$0xff]  }
 0x917   :  { %13620 = vmatprep.subr.bf16.mxu0 %v19621_v15  ;;  %v19757_v15 = vld [vmem:[#allocation11 + $0x120] sm:$0xff]  }
 0x918   :  { %16197 = vmatpush3.bf16.msra.mxu1 %v19757_v15 }
 0x91a   :  { %13621 = vmatpush1.bf16.msra.mxu0 %v19619_v11  ;;  %v19687_v11 = vld [vmem:[#allocation8 + $0x2804] ss:$56 sps:$4 sm:$0xff]  }
 0x91b   :  { %13622 = vmatprep.subr.bf16.mxu0 %v19624_v0  ;;  %v19758_v0 = vld [vmem:[#allocation11 + $0x168] sm:$0xff]  }
 0x91c   :  { %16198 = vmatprep.subr.bf16.mxu1 %v19758_v0 }
 0x91e   :  { %13623 = vmatpush1.bf16.msra.mxu0 %v19622_v12  ;;  %v19685_v12 = vld [vmem:[#allocation8 + $0x2800] ss:$56 sps:$4 sm:$0xff]  }
 0x91f   :  { %13624 = vmatprep.subr.bf16.mxu0 %v19627_v1  ;;  %v19759_v1 = vld [vmem:[#allocation11 + $0x128] sm:$0xff]  }
 0x920   :  { %16199 = vmatpush3.bf16.msra.mxu1 %v19759_v1  ;;  %v19761_v1 = vld [vmem:[#allocation11 + $0x130] sm:$0xff]  }
 0x922   :  { %13625 = vmatpush1.bf16.msra.mxu0 %v19625_v4  ;;  %v19690_v4 = vld [vmem:[#allocation8 + $0x2874] ss:$56 sps:$4 sm:$0xff]  }
 0x923   :  { %13626 = vmatprep.subr.bf16.mxu0 %v19630_v2  ;;  %v19688_v2 = vld [vmem:[#allocation8 + $0x2870] ss:$56 sps:$4 sm:$0xff]  }
 0x926   :  { %13627 = vmatpush1.bf16.msra.mxu0 %v19628_v8  ;;  %v19693_v8 = vld [vmem:[#allocation8 + $0x28e4] ss:$56 sps:$4 sm:$0xff]  }
 0x927   :  { %13628 = vmatprep.subr.bf16.mxu0 %v19633_v10  ;;  %v19691_v10 = vld [vmem:[#allocation8 + $0x28e0] ss:$56 sps:$4 sm:$0xff]  }
 0x92a   :  { %13629 = vmatpush1.bf16.msra.mxu0 %v19631_v5  ;;  %v19696_v5 = vld [vmem:[#allocation8 + $0x2954] ss:$56 sps:$4 sm:$0xff]  }
 0x92b   :  { %13630 = vmatprep.subr.bf16.mxu0 %v19636_v54  ;;  %v19694_v54 = vld [vmem:[#allocation8 + $0x2950] ss:$56 sps:$4 sm:$0xff]  }
 0x92e   :  { %13631 = vmatpush1.bf16.msra.mxu0 %v19634_v18  ;;  %v19699_v18 = vld [vmem:[#allocation8 + $0x29c4] ss:$56 sps:$4 sm:$0xff]  }
 0x92f   :  { %13632 = vmatprep.subr.bf16.mxu0 %v19639_v22  ;;  %v19697_v22 = vld [vmem:[#allocation8 + $0x29c0] ss:$56 sps:$4 sm:$0xff]  }
 0x932   :  { %13633 = vmatpush1.bf16.msra.mxu0 %v19637_v38  ;;  %v19702_v38 = vld [vmem:[#allocation8 + $0x2a34] ss:$56 sps:$4 sm:$0xff]  }
 0x933   :  { %13634 = vmatprep.subr.bf16.mxu0 %v19642_v13  ;;  %v19700_v13 = vld [vmem:[#allocation8 + $0x2a30] ss:$56 sps:$4 sm:$0xff]  }
 0x936   :  { %13635 = vmatpush1.bf16.msra.mxu0 %v19640_v24  ;;  %v19705_v24 = vld [vmem:[#allocation8 + $0x2aa4] ss:$56 sps:$4 sm:$0xff]  }
 0x937   :  { %13636 = vmatprep.subr.bf16.mxu0 %v19645_v6  ;;  %v19703_v6 = vld [vmem:[#allocation8 + $0x2aa0] ss:$56 sps:$4 sm:$0xff]  }
 0x93a   :  { %13637 = vmatpush1.bf16.msra.mxu0 %v19643_v17  ;;  %v19708_v17 = vld [vmem:[#allocation8 + $0x2b14] ss:$56 sps:$4 sm:$0xff]  }
 0x93b   :  { %13638 = vmatprep.subr.bf16.mxu0 %v19648_v36  ;;  %v19706_v36 = vld [vmem:[#allocation8 + $0x2b10] ss:$56 sps:$4 sm:$0xff]  }
 0x93e   :  { %13639 = vmatpush1.bf16.msra.mxu0 %v19646_v41  ;;  %v19711_v41 = vld [vmem:[#allocation8 + $0x2b84] ss:$56 sps:$4 sm:$0xff]  }
 0x93f   :  { %13640 = vmatprep.subr.bf16.mxu0 %v19651_v23  ;;  %v19709_v23 = vld [vmem:[#allocation8 + $0x2b80] ss:$56 sps:$4 sm:$0xff]  }
 0x942   :  { %13641 = vmatpush1.bf16.msra.mxu0 %v19649_v35  ;;  %v19714_v35 = vld [vmem:[#allocation8 + $0x2bf4] ss:$56 sps:$4 sm:$0xff]  }
 0x943   :  { %13651 = vmatprep.subr.bf16.mxu0 %v19654_v25  ;;  %v19712_v25 = vld [vmem:[#allocation8 + $0x2bf0] ss:$56 sps:$4 sm:$0xff]  }
 0x945   :  { %13643 = vmatmul.mubr.bf16.vlgmr.msra.gmra.mrb[24].mxu0 %v20435_v43  ;;  %v19667_v43 = vld [vmem:[#allocation8 + $0x2560] ss:$56 sps:$4 sm:$0xff]  }
 0x946   :  { %13652 = vmatpush1.bf16.msra.mxu0 %v19652_v21  ;;  %13683 = vmatprep.mubr.bf16.mxu0 %v20439_v28  ;;  %v19670_v28 = vld [vmem:[#allocation8 + $0x25d0] ss:$56 sps:$4 sm:$0xff]   ;;  %v19717_v21 = vld [vmem:[#allocation8 + $0x2c64] ss:$56 sps:$4 sm:$0xff]  }
 0x947   :  { %13653 = vmatprep.subr.bf16.mxu0 %v19657_v46  ;;  %v19720_v46 = vld [vmem:[#allocation8 + $0x2cd4] ss:$56 sps:$4 sm:$0xff]  }
 0x94a   :  { %13654 = vmatpush1.bf16.msra.mxu0 %v19655_v50  ;;  %v19723_v50 = vld [vmem:[#allocation8 + $0x2d44] ss:$56 sps:$4 sm:$0xff]  }
 0x94b   :  { %13655 = vmatprep.subr.bf16.mxu0 %v19660_v14  ;;  %v19721_v14 = vld [vmem:[#allocation8 + $0x2d40] ss:$56 sps:$4 sm:$0xff]  }
 0x94e   :  { %13656 = vmatpush1.bf16.msra.mxu0 %v19658_v58  ;;  %v19726_v58 = vld [vmem:[#allocation8 + $0x2db4] ss:$56 sps:$4 sm:$0xff]  }
 0x94f   :  { %13657 = vmatprep.subr.bf16.mxu0 %v19663_v7  ;;  %v19724_v7 = vld [vmem:[#allocation8 + $0x2db0] ss:$56 sps:$4 sm:$0xff]  }
 0x952   :  { %13658 = vmatpush1.bf16.msra.mxu0 %v19661_v49  ;;  %v19729_v49 = vld [vmem:[#allocation8 + $0x2e24] ss:$56 sps:$4 sm:$0xff]  }
 0x953   :  { %13659 = vmatprep.subr.bf16.mxu0 %v19666_v47  ;;  %v19727_v47 = vld [vmem:[#allocation8 + $0x2e20] ss:$56 sps:$4 sm:$0xff]  }
 0x956   :  { %13660 = vmatpush1.bf16.msra.mxu0 %v19664_v59  ;;  %v19732_v59 = vld [vmem:[#allocation8 + $0x2e94] ss:$56 sps:$4 sm:$0xff]  }
 0x957   :  { %13661 = vmatprep.subr.bf16.mxu0 %v19669_v52  ;;  %v19730_v52 = vld [vmem:[#allocation8 + $0x2e90] ss:$56 sps:$4 sm:$0xff]  }
 0x95a   :  { %13662 = vmatpush1.bf16.msra.mxu0 %v19667_v43  ;;  %v19735_v43 = vld [vmem:[#allocation8 + $0x2f04] ss:$56 sps:$4 sm:$0xff]  }
 0x95b   :  { %13663 = vmatprep.subr.bf16.mxu0 %v19672_v51  ;;  %v19733_v51 = vld [vmem:[#allocation8 + $0x2f00] ss:$56 sps:$4 sm:$0xff]  }
 0x95e   :  { %13664 = vmatpush1.bf16.msra.mxu0 %v19670_v28  ;;  %v19738_v28 = vld [vmem:[#allocation8 + $0x2f74] ss:$56 sps:$4 sm:$0xff]  }
 0x95f   :  { %13665 = vmatprep.subr.bf16.mxu0 %v19675_v45  ;;  %v19736_v45 = vld [vmem:[#allocation8 + $0x2f70] ss:$56 sps:$4 sm:$0xff]  }
 0x962   :  { %13666 = vmatpush1.bf16.msra.mxu0 %v19673_v37  ;;  %v19739_v37 = vld [vmem:[#allocation8 + $0x2fe0] ss:$56 sps:$4 sm:$0xff]  }
 0x963   :  { %13667 = vmatprep.subr.bf16.mxu0 %v19678_v30 }
 0x966   :  { %13668 = vmatpush1.bf16.msra.mxu0 %v19676_v32 }
 0x967   :  { %13669 = vmatprep.subr.bf16.mxu0 %v19681_v40  ;;  %v19747_v40 = vld [vmem:[#allocation8 + $0x30c4] ss:$56 sps:$4 sm:$0xff]  }
 0x96a   :  { %13670 = vmatpush1.bf16.msra.mxu0 %v19679_v33  ;;  %v16078_v33 = vld [vmem:[#allocation13] ss:$0 sm:$0xff] }
 0x96b   :  { %13671 = vmatprep.subr.bf16.mxu0 %v19684_v16 }
 0x96e   :  { %13672 = vmatpush1.bf16.msra.mxu0 %v19682_v63 }
 0x96f   :  { %13673 = vmatprep.subr.bf16.mxu0 %v19687_v11 }
 0x972   :  { %13674 = vmatpush1.bf16.msra.mxu0 %v19685_v12  ;;  %v19760_v12 = vld [vmem:[#allocation11 + $0x170] sm:$0xff]  }
 0x973   :  { %13675 = vmatprep.subr.bf16.mxu0 %v19690_v4  ;;  %16200 = vmatprep.subr.bf16.mxu1 %v19760_v12  ;;  %v19762_v4 = vld [vmem:[#allocation11 + $0x178] sm:$0xff]  }
 0x974   :  { %16201 = vmatpush3.bf16.msra.mxu1 %v19761_v1 }
 0x975   :  { %16202 = vmatprep.subr.bf16.mxu1 %v19762_v4 }
 0x976   :  { %13676 = vmatpush1.bf16.msra.mxu0 %v19688_v2  ;;  %v19763_v2 = vld [vmem:[#allocation11 + $0x138] sm:$0xff]  }
 0x977   :  { %13677 = vmatprep.subr.bf16.mxu0 %v19693_v8  ;;  %v20039_v8 = vmov 0.0  }
 0x978   :  { %16203 = vmatpush3.bf16.msra.mxu1 %v19763_v2 }
 0x979   :  { %16228 = vmatprep.subr.bf16.mxu1 %v20039_v8 }
 0x97a   :  { %13678 = vmatpush1.bf16.msra.mxu0 %v19691_v10  ;;  %v3841_v10 = vrot.slane %v20547_v42, %v20294_v48 }
 0x97b   :  { %13679 = vmatprep.subr.bf16.mxu0 %v19696_v5  ;;  %v3865_v5 = vrot.slane %v20545_v9, %v20300_v60 }
 0x97e   :  { %13680 = vmatpush1.bf16.msra.mxu0 %v19694_v54  ;;  %v3869_v54 = vrot.slane %v20545_v9, %v20303_v61  ;;  %v19767_v9 = vld [vmem:[#allocation11 + $0x198] sm:$0xff]  }
 0x97f   :  { %13681 = vmatprep.subr.bf16.mxu0 %v19699_v18 }
 0x982   :  { %13682 = vmatpush1.bf16.msra.mxu0 %v19697_v22  ;;  %v17170_v22 = vadd.f32 %v20520_v3, %v3841_v10  ;;  %v19766_v3 = vld [vmem:[#allocation11 + $0x190] sm:$0xff]  }
 0x983   :  { %13692 = vmatprep.subr.bf16.mxu0 %v19702_v38 }
 0x985   :  { %13684 = vmatmul.mubr.bf16.vlgmr.msra.gmra.mrb[24].mxu0 %v20447_v19  ;;  %v19715_v19 = vld [vmem:[#allocation8 + $0x2c60] ss:$56 sps:$4 sm:$0xff]  }
 0x986   :  { %13693 = vmatpush1.bf16.msra.mxu0 %v19700_v13  ;;  %13724 = vmatprep.mubr.bf16.mxu0 %v20451_v39  ;;  %v19718_v39 = vld [vmem:[#allocation8 + $0x2cd0] ss:$56 sps:$4 sm:$0xff]  }
 0x987   :  { %13694 = vmatprep.subr.bf16.mxu0 %v19705_v24 }
 0x98a   :  { %13695 = vmatpush1.bf16.msra.mxu0 %v19703_v6 }
 0x98b   :  { %13696 = vmatprep.subr.bf16.mxu0 %v19708_v17 }
 0x98e   :  { %13697 = vmatpush1.bf16.msra.mxu0 %v19706_v36 }
 0x98f   :  { %13698 = vmatprep.subr.bf16.mxu0 %v19711_v41 }
 0x992   :  { %13699 = vmatpush1.bf16.msra.mxu0 %v19709_v23 }
 0x993   :  { %13700 = vmatprep.subr.bf16.mxu0 %v19714_v35  ;;  %v13739_v35 = vmax.f32 %v17170_v22, 0.0 }
 0x996   :  { %13701 = vmatpush1.bf16.msra.mxu0 %v19712_v25 }
 0x997   :  { %13702 = vmatprep.subr.bf16.mxu0 %v19717_v21  ;;  %v19764_v21 = vld [vmem:[#allocation11 + $0x180] sm:$0xff]  }
 0x99a   :  { %13703 = vmatpush1.bf16.msra.mxu0 %v19715_v19  ;;  %v19769_v19 = vld [vmem:[#allocation11 + $0x1a8] sm:$0xff]  }
 0x99b   :  { %13704 = vmatprep.subr.bf16.mxu0 %v19720_v46  ;;  %v19770_v46 = vld [vmem:[#allocation11 + $0x1b0] sm:$0xff]  }
 0x99e   :  { %13705 = vmatpush1.bf16.msra.mxu0 %v19718_v39  ;;  %v19771_v39 = vld [vmem:[#allocation11 + $0x1b8] sm:$0xff]  }
 0x99f   :  { %13706 = vmatprep.subr.bf16.mxu0 %v19723_v50 }
 0x9a2   :  { %13707 = vmatpush1.bf16.msra.mxu0 %v19721_v14  ;;  %v19772_v14 = vld [vmem:[#allocation14] sm:$0xff]  }
 0x9a3   :  { %13708 = vmatprep.subr.bf16.mxu0 %v19726_v58  ;;  %v19773_v58 = vld [vmem:[#allocation14 + $0x8] sm:$0xff]  }
 0x9a6   :  { %13709 = vmatpush1.bf16.msra.mxu0 %v19724_v7  ;;  %v19774_v7 = vld [vmem:[#allocation14 + $0x10] sm:$0xff]  }
 0x9a7   :  { %13710 = vmatprep.subr.bf16.mxu0 %v19729_v49  ;;  %v19775_v49 = vld [vmem:[#allocation14 + $0x18] sm:$0xff]  }
 0x9aa   :  { %13711 = vmatpush1.bf16.msra.mxu0 %v19727_v47  ;;  %v19776_v47 = vld [vmem:[#allocation14 + $0x20] sm:$0xff]  }
 0x9ab   :  { %13712 = vmatprep.subr.bf16.mxu0 %v19732_v59  ;;  %v19777_v59 = vld [vmem:[#allocation14 + $0x28] sm:$0xff]  }
 0x9ae   :  { %13713 = vmatpush1.bf16.msra.mxu0 %v19730_v52  ;;  %v19778_v52 = vld [vmem:[#allocation14 + $0x30] sm:$0xff]  }
 0x9af   :  { %13714 = vmatprep.subr.bf16.mxu0 %v19735_v43  ;;  %v19779_v43 = vld [vmem:[#allocation14 + $0x38] sm:$0xff]  }
 0x9b2   :  { %13715 = vmatpush1.bf16.msra.mxu0 %v19733_v51 }
 0x9b3   :  { %13716 = vmatprep.subr.bf16.mxu0 %v19738_v28 }
 0x9b5   :  { %v16160_v44 = vpop.f32.mrb[32].mxu1 }
 0x9b6   :  { %13717 = vmatpush1.bf16.msra.mxu0 %v19736_v45  ;;  %v16161_v56 = vpop.f32.mrb[33].mxu1 }
 0x9b7   :  { %v16162_v27 = vadd.f32 %v16161_v56, %v16160_v44  ;;  %v16163_v30 = vpop.f32.mrb[34].mxu1  ;;  %13718 = vmatprep.subr.bf16.mxu0 %v19741_v20 }
 0x9b8   :  { %v16164_v32 = vpop.f32.mrb[35].mxu1 }
 0x9b9   :  { %v14251_v62 = vadd.f32 %v16162_v27, %v16078_v33 }
 0x9ba   :  { %13719 = vmatpush1.bf16.msra.mxu0 %v19739_v37 }
 0x9bb   :  { %13720 = vmatprep.subr.bf16.mxu0 %v19744_v31 }
 0x9be   :  { %13721 = vmatpush1.bf16.msra.mxu0 %v19742_v34 }
 0x9bf   :  { %13722 = vmatprep.subr.bf16.mxu0 %v19747_v40 }
 0x9c2   :  { %13723 = vmatpush1.bf16.msra.mxu0 %v19745_v57  ;;  %v16135_v57 = vld [vmem:[#allocation16] ss:$0 sm:$0xff] }
 0x9c5   :  { %13725 = vmatmul.mubr.bf16.vlgmr.msra.gmra.mrb[24].mxu0 %v20459_v55  ;;  %v3837_v55 = vrot.slane %v20547_v42, %v20303_v61  ;;  %v13758_v61 = vpack.c.bf16 %v20573_v29, %v20573_v29  ;;  %v19768_v29 = vld [vmem:[#allocation11 + $0x1a0] sm:$0xff]  }
 0x9c7   :  { %v17169_v18 = vadd.f32 %v20513_v53, %v3837_v55  ;;  %v19765_v53 = vld [vmem:[#allocation11 + $0x188] sm:$0xff]  }
 0x9c9   :  { %v13738_v36 = vmax.f32 %v17169_v18, 0.0 }
 0x9d7   :  { %v16182_v26 = vpop.f32.mrb[36].mxu1 }
 0x9d8   :  { %v16183_v16 = vpop.f32.mrb[37].mxu1 }
 0x9d9   :  { %v16184_v63 = vadd.f32 %v16183_v16, %v16182_v26  ;;  %v16185_v15 = vpop.f32.mrb[38].mxu1 }
 0x9da   :  { %v16186_v11 = vpop.f32.mrb[39].mxu1 }
 0x9db   :  { %v20584_v0 = vadd.f32 %v16184_v63, %v14251_v62 }
 0xa98   :  { %v13726_v38 = vpop.f32.mrb[24].mxu0 }
 0xa99   :  { %v17176_v13 = vadd.f32 %v13726_v38, %v3865_v5  ;;  %v13728_v24 = vpop.f32.mrb[25].mxu0 }
 0xa9a   :  { %v17177_v6 = vadd.f32 %v13728_v24, %v3869_v54  ;;  %v13730_v17 = vpop.f32.mrb[26].mxu0 }
 0xa9b   :  { %v13745_v41 = vmax.f32 %v17176_v13, 0.0  ;;  %v13731_v23 = vpop.f32.mrb[27].mxu0 }
 0xa9c   :  { %v13746_v48 = vmax.f32 %v17177_v6, 0.0 }
 0xa9d   :  { %v13752_v42 = vmax.f32 %v13738_v36, %v13745_v41 }
 0xa9e   :  { %v13753_v25 = vmax.f32 %v13739_v35, %v13746_v48 }
 0xa9f   :  { %v13759_v60 = vpack.c.bf16 %v13752_v42, %v13752_v42 }
 0xaa0   :  { %v13760_v50 = vpack.c.bf16 %v13753_v25, %v13753_v25 }
 0xaa1   :  { %14328 = vmatprep.mubr.bf16.mxu1 %v13759_v60 }
 0xaa2   :  { %14329 = vmatmul.mubr.bf16.vlgmr.msra.gmra.mrb[40].mxu1 %v13758_v61 }
 0xaa3   :  { %16229 = vmatpush3.bf16.msra.mxu1 %v19764_v21  ;;  %16244 = vmatprep.mubr.msk.bf16.mxu1 %vm20040_vm0, %v20039_v8 }
 0xaa4   :  { %16230 = vmatprep.subr.bf16.mxu1 %v20039_v8 }
 0xaa7   :  { %16231 = vmatpush3.bf16.msra.mxu1 %v19765_v53 }
 0xaa8   :  { %16232 = vmatprep.subr.bf16.mxu1 %v20039_v8 }
 0xaab   :  { %16233 = vmatpush3.bf16.msra.mxu1 %v19766_v3 }
 0xaac   :  { %16234 = vmatprep.subr.bf16.mxu1 %v20039_v8 }
 0xaaf   :  { %16235 = vmatpush3.bf16.msra.mxu1 %v19767_v9 }
 0xab0   :  { %16236 = vmatprep.subr.bf16.mxu1 %v20039_v8 }
 0xab3   :  { %16237 = vmatpush3.bf16.msra.mxu1 %v19768_v29 }
 0xab4   :  { %16238 = vmatprep.subr.bf16.mxu1 %v20039_v8 }
 0xab7   :  { %16239 = vmatpush3.bf16.msra.mxu1 %v19769_v19 }
 0xab8   :  { %16240 = vmatprep.subr.bf16.mxu1 %v20039_v8 }
 0xabb   :  { %16241 = vmatpush3.bf16.msra.mxu1 %v19770_v46 }
 0xabc   :  { %16242 = vmatprep.subr.bf16.mxu1 %v20039_v8 }
 0xabf   :  { %16243 = vmatpush3.bf16.msra.mxu1 %v19771_v39 }
 0xac0   :  { %16248 = vmatprep.subr.bf16.mxu1 %v20039_v8 }
 0xac2   :  { %16245 = vmatmul.mubr.bf16.vlgmr.msra.gmra.mrb[44].mxu1 %v13760_v50 }
 0xac3   :  { %16264 = vmatprep.mubr.msk.bf16.mxu1 %vm20040_vm0, %v20039_v8  ;;  %16249 = vmatpush3.bf16.msra.mxu1 %v19772_v14 }
 0xac4   :  { %16250 = vmatprep.subr.bf16.mxu1 %v20039_v8 }
 0xac7   :  { %16251 = vmatpush3.bf16.msra.mxu1 %v19773_v58 }
 0xac8   :  { %16252 = vmatprep.subr.bf16.mxu1 %v20039_v8 }
 0xacb   :  { %16253 = vmatpush3.bf16.msra.mxu1 %v19774_v7 }
 0xacc   :  { %16254 = vmatprep.subr.bf16.mxu1 %v20039_v8 }
 0xacf   :  { %16255 = vmatpush3.bf16.msra.mxu1 %v19775_v49 }
 0xad0   :  { %16256 = vmatprep.subr.bf16.mxu1 %v20039_v8 }
 0xad3   :  { %16257 = vmatpush3.bf16.msra.mxu1 %v19776_v47 }
 0xad4   :  { %16258 = vmatprep.subr.bf16.mxu1 %v20039_v8 }
 0xad7   :  { %16259 = vmatpush3.bf16.msra.mxu1 %v19777_v59 }
 0xad8   :  { %16260 = vmatprep.subr.bf16.mxu1 %v20039_v8 }
 0xadb   :  { %16261 = vmatpush3.bf16.msra.mxu1 %v19778_v52 }
 0xadc   :  { %16262 = vmatprep.subr.bf16.mxu1 %v20039_v8 }
 0xadf   :  { %16263 = vmatpush3.bf16.msra.mxu1 %v19779_v43 }
 0xb75   :  { %v16204_v51 = vpop.f32.mrb[40].mxu1 }
 0xb76   :  { %v16205_v28 = vpop.f32.mrb[41].mxu1 }
 0xb77   :  { %v16206_v45 = vadd.f32 %v16205_v28, %v16204_v51  ;;  %v16207_v20 = vpop.f32.mrb[42].mxu1 }
 0xb78   :  { %v16208_v44 = vpop.f32.mrb[43].mxu1 }
 0xb79   :  { %v14331_v56 = vadd.f32 %v16206_v45, %v20584_v0 }
 0xb95   :  { %v14370_v37 = vpop.f32.mrb[44].mxu1 }
 0xb96   :  { %v14371_v27 = vadd.f32 %v14370_v37, %v14331_v56  ;;  %v16246_v30 = vpop.f32.mrb[45].mxu1 }
 0xb97   :  { %v14373_v31 = vpop.f32.mrb[46].mxu1 }
 0xb98   :  { %v14376_v32 = vmax.f32 %v14371_v27, 0.0  ;;  %v16247_v34 = vpop.f32.mrb[47].mxu1 }
 0xb9a   :  { %v14377_v40 = vpack.c.bf16 %v14376_v32, %v14376_v32 }
 0xb9c   :  { %16265 = vmatmul.mubr.bf16.vlgmr.msra.gmra.mrb[48].mxu1 %v14377_v40 }
 0xc6f   :  { %v14483_v33 = vpop.f32.mrb[48].mxu1 }
 0xc70   :  { %v14484_v26 = vadd.f32 %v16135_v57, %v14483_v33  ;;  %v16266_v16 = vpop.f32.mrb[49].mxu1 }
 0xc71   :  { %v14486_v62 = vpop.f32.mrb[50].mxu1 }
 0xc72   :  { %v14489_v63 = vpack.c.bf16 %v14484_v26, %v14484_v26  ;;  %v16267_v15 = vpop.f32.mrb[51].mxu1 }
 0xc74   :  { %14490 = vst [vmem:[#allocation17] sm:$0xf] %v14489_v63 }
 0xc75   :  { %20001 = shalt.err (!%p19998_p6)
}
 0xc76   :  { %s20002_s7 = scalar_lea.hbm %s20640_s9, 64 }
 0xc77   :  { %p20003_p7 = scmp.ne.s32.totalorder %s20640_s9, %s20002_s7  ;;  %p20006_p8 = scmp.lt.u32.totalorder %s20002_s7, %s20640_s9 }
 0xc79   :  { %p20008_p9 = pnand %p20006_p8, %p20003_p7 }
 0xc7b   :  { %20011 = shalt.err (!%p20008_p9)
}
 0xc7c   :  { %14500 = dma.vmem_to_hbm [thread:$0]  %s14498_s25, 64, %s20640_s9, [#allocation4]  }
 0xc7d   :  { %20022 = dma.done.wait [#allocation4], 64  }
 0xc7e   :  { %20023 = vsyncadd [#allocation4], 4294967232 }
 0xc7f   :  { %14504 = vsyncpa [#allocation3], 1 }
 0xc80   :  { %14505 = vsyncpa [#allocation6], 1 }
 0xc81   :  { %14506 = vsyncpa [#allocation9], 1 }
 0xc82   :  { %14507 = vsyncpa [#allocation12], 1 }
 0xc83   :  { %14508 = vsyncpa [#allocation15], 1 }
 0xc84   :  { %14509 = vsyncpa [#allocation4], 1 }

</bundles_post_ra>
